<compile_context>
chip_gen: v6e
topology: v6e:2x2x1
jax: 0.10.0
libtpu: 0.0.40
codegen_flags: <defaults>
</compile_context>

<pallas_src>
import functools

import jax
import jax.numpy as jnp
from jax.experimental import pallas as pl
from jax.experimental.pallas import tpu as pltpu

# Peak in-kernel VMEM is < 10 MiB; 32 MiB is safe on v5e/v6e (128 MiB) and
# v7x (64 MiB physical per TensorCore).
_VMEM_LIMIT = 32 * 1024 * 1024


def _pick_tile(dim, preferred):
    """Largest multiple-of-128 divisor of `dim` that is <= preferred, else full dim."""
    if dim % 128 == 0:
        t = min(preferred, dim)
        t -= t % 128
        while t >= 128:
            if dim % t == 0:
                return t
            t -= 128
    return dim


# ---------------------------------------------------------------------------
# Kernel 1: fused encoder (enc1 K-tiled + enc2 + fc_mu + fc_var + reparam)
#   grid = (K_tiles,) over enc1's contraction axis ("arbitrary" -> accumulator)
#   step k     : acc += x[:, k-tile] @ W1[k-tile, :]     (bf16 MXU, f32 acc)
#   last step  : h1 = relu(acc + b1);  h2 = relu(h1 @ W2 + b2)
#                mu = h2 @ Wmu + bmu;  logvar = h2 @ Wvar + bvar
#                z  = mu + eps * exp(0.5 * logvar)
# ---------------------------------------------------------------------------
def _encode_kernel(x_ref, w1_ref, b1_ref, w2_ref, b2_ref,
                   wmu_ref, bmu_ref, wvar_ref, bvar_ref, eps_ref,
                   mu_ref, logvar_ref, z_ref, acc_ref):
    k = pl.program_id(0)

    @pl.when(k == 0)
    def _():
        acc_ref[...] = jnp.zeros_like(acc_ref)

    acc_ref[...] += jnp.dot(x_ref[...].astype(jnp.bfloat16), w1_ref[...],
                            preferred_element_type=jnp.float32)

    @pl.when(k == pl.num_programs(0) - 1)
    def _():
        h1 = jnp.maximum(acc_ref[...] + b1_ref[...], 0.0).astype(jnp.bfloat16)
        h2 = jnp.dot(h1, w2_ref[...], preferred_element_type=jnp.float32)
        h2 = jnp.maximum(h2 + b2_ref[...], 0.0).astype(jnp.bfloat16)
        mu = jnp.dot(h2, wmu_ref[...],
                     preferred_element_type=jnp.float32) + bmu_ref[...]
        logvar = jnp.dot(h2, wvar_ref[...],
                         preferred_element_type=jnp.float32) + bvar_ref[...]
        mu_ref[...] = mu
        logvar_ref[...] = logvar
        z_ref[...] = mu + eps_ref[...] * jnp.exp(0.5 * logvar)


def vae_encode_pallas(x2d, w1, b1, w2, b2, wmu, bmu, wvar, bvar, eps):
    B, K = x2d.shape
    N1 = w1.shape[1]            # 1000
    N2 = w2.shape[1]            # 400
    Dm = wmu.shape[1]           # 20
    tk = _pick_tile(K, 1024)    # 3072 -> 1024 (3 K-steps, weight DMA pipelined)
    kt = K // tk

    flops = 2 * B * (K * N1 + N1 * N2 + 2 * N2 * Dm)
    bytes_accessed = (x2d.size * x2d.dtype.itemsize
                      + sum(a.size * a.dtype.itemsize
                            for a in (w1, b1, w2, b2, wmu, bmu, wvar, bvar, eps))
                      + 3 * B * Dm * 4)
    cost = pl.CostEstimate(flops=flops, transcendentals=B * Dm,
                           bytes_accessed=bytes_accessed)

    return pl.pallas_call(
        _encode_kernel,
        out_shape=(jax.ShapeDtypeStruct((B, Dm), jnp.float32),
                   jax.ShapeDtypeStruct((B, Dm), jnp.float32),
                   jax.ShapeDtypeStruct((B, Dm), jnp.float32)),
        grid=(kt,),
        in_specs=[
            pl.BlockSpec((B, tk), lambda k: (0, k)),     # x   (K-tiled)
            pl.BlockSpec((tk, N1), lambda k: (k, 0)),    # W1  (K-tiled, streamed)
            pl.BlockSpec((1, N1), lambda k: (0, 0)),     # b1
            pl.BlockSpec((N1, N2), lambda k: (0, 0)),    # W2  (resident)
            pl.BlockSpec((1, N2), lambda k: (0, 0)),     # b2
            pl.BlockSpec((N2, Dm), lambda k: (0, 0)),    # W_mu
            pl.BlockSpec((1, Dm), lambda k: (0, 0)),     # b_mu
            pl.BlockSpec((N2, Dm), lambda k: (0, 0)),    # W_var
            pl.BlockSpec((1, Dm), lambda k: (0, 0)),     # b_var
            pl.BlockSpec((B, Dm), lambda k: (0, 0)),     # eps
        ],
        out_specs=(
            pl.BlockSpec((B, Dm), lambda k: (0, 0)),     # mu
            pl.BlockSpec((B, Dm), lambda k: (0, 0)),     # logvar
            pl.BlockSpec((B, Dm), lambda k: (0, 0)),     # z
        ),
        scratch_shapes=[pltpu.VMEM((B, N1), jnp.float32)],
        compiler_params=pltpu.CompilerParams(
            dimension_semantics=("arbitrary",),
            vmem_limit_bytes=_VMEM_LIMIT),
        cost_estimate=cost,
    )(x2d, w1, b1, w2, b2, wmu, bmu, wvar, bvar, eps)


# ---------------------------------------------------------------------------
# Kernel 2: fused decoder (dec1 + dec2 + dec3 + sigmoid)
#   grid = (N_tiles,) over dec3's output columns, "parallel" so v7x's two
#   TensorCores split the dominant 1000x3072 weight stream.  dec1/dec2 are
#   recomputed per tile (a few MFLOP) with their small weights resident.
# ---------------------------------------------------------------------------
def _decode_kernel(z_ref, wd1_ref, bd1_ref, wd2_ref, bd2_ref, wd3_ref, bd3_ref,
                   o_ref):
    d1 = jnp.dot(z_ref[...].astype(jnp.bfloat16), wd1_ref[...],
                 preferred_element_type=jnp.float32)
    d1 = jnp.maximum(d1 + bd1_ref[...], 0.0).astype(jnp.bfloat16)
    d2 = jnp.dot(d1, wd2_ref[...], preferred_element_type=jnp.float32)
    d2 = jnp.maximum(d2 + bd2_ref[...], 0.0).astype(jnp.bfloat16)
    y = jnp.dot(d2, wd3_ref[...], preferred_element_type=jnp.float32) + bd3_ref[...]
    # exact sigmoid (keeps output strictly inside [0, 1]); exp runs on the EUP
    o_ref[...] = 1.0 / (1.0 + jnp.exp(-y))


def vae_decode_pallas(z, wd1, bd1, wd2, bd2, wd3, bd3):
    B, Dz = z.shape
    N1 = wd1.shape[1]           # 400
    N2 = wd2.shape[1]           # 1000
    N3 = wd3.shape[1]           # 3072
    tn = _pick_tile(N3, 1536)   # 3072 -> 1536 (2 tiles; even split on v7x TCs)
    nt = N3 // tn

    flops = 2 * B * (nt * (Dz * N1 + N1 * N2) + N2 * N3)
    bytes_accessed = (z.size * 4
                      + sum(a.size * a.dtype.itemsize
                            for a in (wd1, bd1, wd2, bd2, wd3, bd3))
                      + B * N3 * 4)
    cost = pl.CostEstimate(flops=flops, transcendentals=B * N3,
                           bytes_accessed=bytes_accessed)

    return pl.pallas_call(
        _decode_kernel,
        out_shape=jax.ShapeDtypeStruct((B, N3), jnp.float32),
        grid=(nt,),
        in_specs=[
            pl.BlockSpec((B, Dz), lambda j: (0, 0)),     # z       (resident)
            pl.BlockSpec((Dz, N1), lambda j: (0, 0)),    # W_dec1  (resident)
            pl.BlockSpec((1, N1), lambda j: (0, 0)),     # b_dec1
            pl.BlockSpec((N1, N2), lambda j: (0, 0)),    # W_dec2  (resident)
            pl.BlockSpec((1, N2), lambda j: (0, 0)),     # b_dec2
            pl.BlockSpec((N2, tn), lambda j: (0, j)),    # W_dec3  (N-tiled, streamed)
            pl.BlockSpec((1, tn), lambda j: (0, j)),     # b_dec3
        ],
        out_specs=pl.BlockSpec((B, tn), lambda j: (0, j)),
        compiler_params=pltpu.CompilerParams(
            dimension_semantics=("parallel",),
            vmem_limit_bytes=_VMEM_LIMIT),
        cost_estimate=cost,
    )(z, wd1, bd1, wd2, bd2, wd3, bd3)


# ---------------------------------------------------------------------------
# Parameters (PyTorch nn.Linear-style init); weights stored bf16, biases f32
# ---------------------------------------------------------------------------
def _init_linear(key, fan_in, fan_out):
    kw, kb = jax.random.split(key)
    bound = 1.0 / jnp.sqrt(jnp.float32(fan_in))
    w = jax.random.uniform(kw, (fan_in, fan_out), jnp.float32, -bound, bound)
    b = jax.random.uniform(kb, (1, fan_out), jnp.float32, -bound, bound)
    return w.astype(jnp.bfloat16), b


def init_vae_params(key, dim_input=1024, dim_mu=20):
    d_in = dim_input * 3
    k = jax.random.split(key, 7)
    return {
        "enc1": _init_linear(k[0], d_in, 1000),
        "enc2": _init_linear(k[1], 1000, 400),
        "fc_mu": _init_linear(k[2], 400, dim_mu),
        "fc_var": _init_linear(k[3], 400, dim_mu),
        "dec1": _init_linear(k[4], dim_mu, 400),
        "dec2": _init_linear(k[5], 400, 1000),
        "dec3": _init_linear(k[6], 1000, d_in),
    }


# ---------------------------------------------------------------------------
# Full forward pass (matches VAE_classic.forward) — exactly two pallas_calls.
# NOTE: batch rows beyond 2 are essentially free (weights are re-streamed per
#       forward); callers should batch up to >=128 rows when possible.
# ---------------------------------------------------------------------------
def vae_forward(params, x, eps_key, dim_input=1024, dim_mu=20):
    d_in = dim_input * 3
    x2d = x.reshape(-1, d_in).astype(jnp.float32)        # == x.view(-1, 1024*3)
    B = x2d.shape[0]
    eps = jax.random.normal(eps_key, (B, dim_mu), jnp.float32)   # eps ~ N(0,1)

    mu, logvar, z = vae_encode_pallas(
        x2d,
        *params["enc1"], *params["enc2"],
        *params["fc_mu"], *params["fc_var"],
        eps)
    recon = vae_decode_pallas(z, *params["dec1"], *params["dec2"], *params["dec3"])
    return recon, mu, logvar


# Plain-JAX reference with identical bf16 casting (for numerical cross-check).
def _reference_forward(params, x, eps, dim_input=1024):
    def lin(h, w, b):
        return jnp.dot(h.astype(jnp.bfloat16), w,
                       preferred_element_type=jnp.float32) + b
    x2d = x.reshape(-1, dim_input * 3).astype(jnp.float32)
    h = jnp.maximum(lin(x2d, *params["enc1"]), 0.0)
    h = jnp.maximum(lin(h, *params["enc2"]), 0.0)
    mu = lin(h, *params["fc_mu"])
    logvar = lin(h, *params["fc_var"])
    z = mu + eps * jnp.exp(0.5 * logvar)
    d = jnp.maximum(lin(z, *params["dec1"]), 0.0)
    d = jnp.maximum(lin(d, *params["dec2"]), 0.0)
    recon = 1.0 / (1.0 + jnp.exp(-lin(d, *params["dec3"])))
    return recon, mu, logvar


# ---------------------------------------------------------------------------
if __name__ == "__main__":
    key = jax.random.PRNGKey(0)
    k_param, k_x, k_eps = jax.random.split(key, 3)

    dim_input, dim_mu = 1024, 20
    params = init_vae_params(k_param, dim_input=dim_input, dim_mu=dim_mu)

    # input consistent with x.view(-1, 1024*3): (B, 3, 32, 32) -> 3*32*32 = 3072
    B = 2
    x = jax.random.uniform(k_x, (B, 3, 32, 32), jnp.float32)

    fwd = jax.jit(functools.partial(vae_forward, dim_input=dim_input, dim_mu=dim_mu))
    recon, mu, logvar = fwd(params, x, k_eps)
    jax.block_until_ready((recon, mu, logvar))

    assert recon.shape == (B, dim_input * 3)
    assert mu.shape == (B, dim_mu) and logvar.shape == (B, dim_mu)
    assert bool(jnp.all(jnp.isfinite(recon)))
    assert bool(jnp.all((recon >= 0.0) & (recon <= 1.0)))   # sigmoid output range

    # numerical cross-check vs a plain-JAX reference (same eps, same bf16 casts)
    eps = jax.random.normal(k_eps, (B, dim_mu), jnp.float32)
    r_ref, mu_ref, lv_ref = _reference_forward(params, x, eps, dim_input=dim_input)
    assert bool(jnp.allclose(mu, mu_ref, atol=1e-2, rtol=1e-2))
    assert bool(jnp.allclose(logvar, lv_ref, atol=1e-2, rtol=1e-2))
    assert bool(jnp.allclose(recon, r_ref, atol=1e-2, rtol=1e-2))

    print("KERNEL_OK")
</pallas_src>

<mosaic_0001>
module attributes {stable_mosaic.version = 11 : i64} {
  func.func @_encode_kernel(%arg0: i32, %arg1: memref<2x1024xf32, #tpu.memory_space<vmem>>, %arg2: memref<1024x1000xbf16, #tpu.memory_space<vmem>>, %arg3: memref<1x1000xf32, #tpu.memory_space<vmem>>, %arg4: memref<1000x400xbf16, #tpu.memory_space<vmem>>, %arg5: memref<1x400xf32, #tpu.memory_space<vmem>>, %arg6: memref<400x20xbf16, #tpu.memory_space<vmem>>, %arg7: memref<1x20xf32, #tpu.memory_space<vmem>>, %arg8: memref<400x20xbf16, #tpu.memory_space<vmem>>, %arg9: memref<1x20xf32, #tpu.memory_space<vmem>>, %arg10: memref<2x20xf32, #tpu.memory_space<vmem>>, %arg11: memref<2x20xf32, #tpu.memory_space<vmem>>, %arg12: memref<2x20xf32, #tpu.memory_space<vmem>>, %arg13: memref<2x20xf32, #tpu.memory_space<vmem>>, %arg14: memref<2x1000xf32, #tpu.memory_space<vmem>>) attributes {dimension_semantics = [#tpu.dimension_semantics<arbitrary>], iteration_bounds = array<i64: 3>, scalar_prefetch = 0 : i64, scratch_operands = 1 : i64, tpu.core_type = #tpu.core_type<tc>, window_params = [{transform_indices = @transform_0, window_bounds = array<i64: 2, 1024>}, {transform_indices = @transform_1, window_bounds = array<i64: 1024, 1000>}, {pipeline_mode = #tpu.pipeline_mode<synchronous>, transform_indices = @transform_2, window_bounds = array<i64: 1, 1000>}, {pipeline_mode = #tpu.pipeline_mode<synchronous>, transform_indices = @transform_3, window_bounds = array<i64: 1000, 400>}, {pipeline_mode = #tpu.pipeline_mode<synchronous>, transform_indices = @transform_4, window_bounds = array<i64: 1, 400>}, {pipeline_mode = #tpu.pipeline_mode<synchronous>, transform_indices = @transform_5, window_bounds = array<i64: 400, 20>}, {pipeline_mode = #tpu.pipeline_mode<synchronous>, transform_indices = @transform_6, window_bounds = array<i64: 1, 20>}, {pipeline_mode = #tpu.pipeline_mode<synchronous>, transform_indices = @transform_7, window_bounds = array<i64: 400, 20>}, {pipeline_mode = #tpu.pipeline_mode<synchronous>, transform_indices = @transform_8, window_bounds = array<i64: 1, 20>}, {pipeline_mode = #tpu.pipeline_mode<synchronous>, transform_indices = @transform_9, window_bounds = array<i64: 2, 20>}, {pipeline_mode = #tpu.pipeline_mode<synchronous>, transform_indices = @transform_10, window_bounds = array<i64: 2, 20>}, {pipeline_mode = #tpu.pipeline_mode<synchronous>, transform_indices = @transform_11, window_bounds = array<i64: 2, 20>}, {pipeline_mode = #tpu.pipeline_mode<synchronous>, transform_indices = @transform_12, window_bounds = array<i64: 2, 20>}]} {
    %c0_i32 = arith.constant 0 : i32
    %0 = arith.cmpi eq, %arg0, %c0_i32 : i32
    %1 = arith.extui %0 : i1 to i32
    %c0_i32_0 = arith.constant 0 : i32
    %2 = arith.cmpi ne, %1, %c0_i32_0 : i32
    scf.if %2 {
      %cst_9 = arith.constant 0.000000e+00 : f32
      %13 = vector.broadcast %cst_9 : f32 to vector<2x1000xf32>
      %c0_10 = arith.constant 0 : index
      %c0_11 = arith.constant 0 : index
      %14 = vector.load %arg14[%c0_10, %c0_11] : memref<2x1000xf32, #tpu.memory_space<vmem>>, vector<2x1000xf32>
      tpu.vector_store %arg14[%c0_10, %c0_11], %13 {strides = array<i32>} : memref<2x1000xf32, #tpu.memory_space<vmem>>, vector<2x1000xf32>,
    } else {
    }
    %c0 = arith.constant 0 : index
    %c0_1 = arith.constant 0 : index
    %3 = vector.load %arg14[%c0, %c0_1] : memref<2x1000xf32, #tpu.memory_space<vmem>>, vector<2x1000xf32>
    %c0_2 = arith.constant 0 : index
    %c0_3 = arith.constant 0 : index
    %4 = vector.load %arg1[%c0_2, %c0_3] : memref<2x1024xf32, #tpu.memory_space<vmem>>, vector<2x1024xf32>
    %5 = arith.truncf %4 : vector<2x1024xf32> to vector<2x1024xbf16>
    %c0_4 = arith.constant 0 : index
    %c0_5 = arith.constant 0 : index
    %6 = vector.load %arg2[%c0_4, %c0_5] : memref<1024x1000xbf16, #tpu.memory_space<vmem>>, vector<1024x1000xbf16>
    %cst = arith.constant dense<0.000000e+00> : vector<2x1000xf32>
    %7 = tpu.matmul %5, %6, %cst {dimension_numbers = #tpu.dot_dimension_numbers<[1], [0], [0], [1], [0, 0, 1, 1], [], []>} : vector<2x1024xbf16>, vector<1024x1000xbf16>, vector<2x1000xf32> -> vector<2x1000xf32>
    %8 = arith.addf %3, %7 : vector<2x1000xf32>
    %c0_6 = arith.constant 0 : index
    %c0_7 = arith.constant 0 : index
    %9 = vector.load %arg14[%c0_6, %c0_7] : memref<2x1000xf32, #tpu.memory_space<vmem>>, vector<2x1000xf32>
    tpu.vector_store %arg14[%c0_6, %c0_7], %8 {strides = array<i32>} : memref<2x1000xf32, #tpu.memory_space<vmem>>, vector<2x1000xf32>,
    %c2_i32 = arith.constant 2 : i32
    %10 = arith.cmpi eq, %arg0, %c2_i32 : i32
    %11 = arith.extui %10 : i1 to i32
    %c0_i32_8 = arith.constant 0 : i32
    %12 = arith.cmpi ne, %11, %c0_i32_8 : i32
    scf.if %12 {
      %c0_9 = arith.constant 0 : index
      %c0_10 = arith.constant 0 : index
      %13 = vector.load %arg14[%c0_9, %c0_10] : memref<2x1000xf32, #tpu.memory_space<vmem>>, vector<2x1000xf32>
      %c0_11 = arith.constant 0 : index
      %c0_12 = arith.constant 0 : index
      %14 = vector.load %arg3[%c0_11, %c0_12] : memref<1x1000xf32, #tpu.memory_space<vmem>>, vector<1x1000xf32>
      %15 = vector.broadcast %14 : vector<1x1000xf32> to vector<2x1000xf32>
      %16 = arith.addf %13, %15 : vector<2x1000xf32>
      %cst_13 = arith.constant 0.000000e+00 : f32
      %17 = vector.broadcast %cst_13 : f32 to vector<2x1000xf32>
      %18 = arith.maximumf %16, %17 : vector<2x1000xf32>
      %19 = arith.truncf %18 : vector<2x1000xf32> to vector<2x1000xbf16>
      %c0_14 = arith.constant 0 : index
      %c0_15 = arith.constant 0 : index
      %20 = vector.load %arg4[%c0_14, %c0_15] : memref<1000x400xbf16, #tpu.memory_space<vmem>>, vector<1000x400xbf16>
      %cst_16 = arith.constant dense<0.000000e+00> : vector<2x400xf32>
      %21 = tpu.matmul %19, %20, %cst_16 {dimension_numbers = #tpu.dot_dimension_numbers<[1], [0], [0], [1], [0, 0, 1, 1], [], []>} : vector<2x1000xbf16>, vector<1000x400xbf16>, vector<2x400xf32> -> vector<2x400xf32>
      %c0_17 = arith.constant 0 : index
      %c0_18 = arith.constant 0 : index
      %22 = vector.load %arg5[%c0_17, %c0_18] : memref<1x400xf32, #tpu.memory_space<vmem>>, vector<1x400xf32>
      %23 = vector.broadcast %22 : vector<1x400xf32> to vector<2x400xf32>
      %24 = arith.addf %21, %23 : vector<2x400xf32>
      %cst_19 = arith.constant 0.000000e+00 : f32
      %25 = vector.broadcast %cst_19 : f32 to vector<2x400xf32>
      %26 = arith.maximumf %24, %25 : vector<2x400xf32>
      %27 = arith.truncf %26 : vector<2x400xf32> to vector<2x400xbf16>
      %c0_20 = arith.constant 0 : index
      %c0_21 = arith.constant 0 : index
      %28 = vector.load %arg6[%c0_20, %c0_21] : memref<400x20xbf16, #tpu.memory_space<vmem>>, vector<400x20xbf16>
      %cst_22 = arith.constant dense<0.000000e+00> : vector<2x20xf32>
      %29 = tpu.matmul %27, %28, %cst_22 {dimension_numbers = #tpu.dot_dimension_numbers<[1], [0], [0], [1], [0, 0, 1, 1], [], []>} : vector<2x400xbf16>, vector<400x20xbf16>, vector<2x20xf32> -> vector<2x20xf32>
      %c0_23 = arith.constant 0 : index
      %c0_24 = arith.constant 0 : index
      %30 = vector.load %arg7[%c0_23, %c0_24] : memref<1x20xf32, #tpu.memory_space<vmem>>, vector<1x20xf32>
      %31 = vector.broadcast %30 : vector<1x20xf32> to vector<2x20xf32>
      %32 = arith.addf %29, %31 : vector<2x20xf32>
      %c0_25 = arith.constant 0 : index
      %c0_26 = arith.constant 0 : index
      %33 = vector.load %arg8[%c0_25, %c0_26] : memref<400x20xbf16, #tpu.memory_space<vmem>>, vector<400x20xbf16>
      %cst_27 = arith.constant dense<0.000000e+00> : vector<2x20xf32>
      %34 = tpu.matmul %27, %33, %cst_27 {dimension_numbers = #tpu.dot_dimension_numbers<[1], [0], [0], [1], [0, 0, 1, 1], [], []>} : vector<2x400xbf16>, vector<400x20xbf16>, vector<2x20xf32> -> vector<2x20xf32>
      %c0_28 = arith.constant 0 : index
      %c0_29 = arith.constant 0 : index
      %35 = vector.load %arg9[%c0_28, %c0_29] : memref<1x20xf32, #tpu.memory_space<vmem>>, vector<1x20xf32>
      %36 = vector.broadcast %35 : vector<1x20xf32> to vector<2x20xf32>
      %37 = arith.addf %34, %36 : vector<2x20xf32>
      %c0_30 = arith.constant 0 : index
      %c0_31 = arith.constant 0 : index
      %38 = vector.load %arg11[%c0_30, %c0_31] : memref<2x20xf32, #tpu.memory_space<vmem>>, vector<2x20xf32>
      tpu.vector_store %arg11[%c0_30, %c0_31], %32 {strides = array<i32>} : memref<2x20xf32, #tpu.memory_space<vmem>>, vector<2x20xf32>,
      %c0_32 = arith.constant 0 : index
      %c0_33 = arith.constant 0 : index
      %39 = vector.load %arg12[%c0_32, %c0_33] : memref<2x20xf32, #tpu.memory_space<vmem>>, vector<2x20xf32>
      tpu.vector_store %arg12[%c0_32, %c0_33], %37 {strides = array<i32>} : memref<2x20xf32, #tpu.memory_space<vmem>>, vector<2x20xf32>,
      %c0_34 = arith.constant 0 : index
      %c0_35 = arith.constant 0 : index
      %40 = vector.load %arg10[%c0_34, %c0_35] : memref<2x20xf32, #tpu.memory_space<vmem>>, vector<2x20xf32>
      %cst_36 = arith.constant 5.000000e-01 : f32
      %41 = vector.broadcast %cst_36 : f32 to vector<2x20xf32>
      %42 = arith.mulf %41, %37 : vector<2x20xf32>
      %43 = math.exp %42 : vector<2x20xf32>
      %44 = arith.mulf %40, %43 : vector<2x20xf32>
      %45 = arith.addf %32, %44 : vector<2x20xf32>
      %c0_37 = arith.constant 0 : index
      %c0_38 = arith.constant 0 : index
      %46 = vector.load %arg13[%c0_37, %c0_38] : memref<2x20xf32, #tpu.memory_space<vmem>>, vector<2x20xf32>
      tpu.vector_store %arg13[%c0_37, %c0_38], %45 {strides = array<i32>} : memref<2x20xf32, #tpu.memory_space<vmem>>, vector<2x20xf32>,
    } else {
    }
    return
  }
  func.func @transform_0(%arg0: i32) -> (i32, i32) {
    %c0_i32 = arith.constant 0 : i32
    %c0_i32_0 = arith.constant 0 : i32
    return %c0_i32, %arg0 : i32, i32
  }
  func.func @transform_1(%arg0: i32) -> (i32, i32) {
    %c0_i32 = arith.constant 0 : i32
    %c0_i32_0 = arith.constant 0 : i32
    return %arg0, %c0_i32 : i32, i32
  }
  func.func @transform_2(%arg0: i32) -> (i32, i32) {
    %c0_i32 = arith.constant 0 : i32
    %c0_i32_0 = arith.constant 0 : i32
    %c0_i32_1 = arith.constant 0 : i32
    return %c0_i32, %c0_i32_0 : i32, i32
  }
  func.func @transform_3(%arg0: i32) -> (i32, i32) {
    %c0_i32 = arith.constant 0 : i32
    %c0_i32_0 = arith.constant 0 : i32
    %c0_i32_1 = arith.constant 0 : i32
    return %c0_i32, %c0_i32_0 : i32, i32
  }
  func.func @transform_4(%arg0: i32) -> (i32, i32) {
    %c0_i32 = arith.constant 0 : i32
    %c0_i32_0 = arith.constant 0 : i32
    %c0_i32_1 = arith.constant 0 : i32
    return %c0_i32, %c0_i32_0 : i32, i32
  }
  func.func @transform_5(%arg0: i32) -> (i32, i32) {
    %c0_i32 = arith.constant 0 : i32
    %c0_i32_0 = arith.constant 0 : i32
    %c0_i32_1 = arith.constant 0 : i32
    return %c0_i32, %c0_i32_0 : i32, i32
  }
  func.func @transform_6(%arg0: i32) -> (i32, i32) {
    %c0_i32 = arith.constant 0 : i32
    %c0_i32_0 = arith.constant 0 : i32
    %c0_i32_1 = arith.constant 0 : i32
    return %c0_i32, %c0_i32_0 : i32, i32
  }
  func.func @transform_7(%arg0: i32) -> (i32, i32) {
    %c0_i32 = arith.constant 0 : i32
    %c0_i32_0 = arith.constant 0 : i32
    %c0_i32_1 = arith.constant 0 : i32
    return %c0_i32, %c0_i32_0 : i32, i32
  }
  func.func @transform_8(%arg0: i32) -> (i32, i32) {
    %c0_i32 = arith.constant 0 : i32
    %c0_i32_0 = arith.constant 0 : i32
    %c0_i32_1 = arith.constant 0 : i32
    return %c0_i32, %c0_i32_0 : i32, i32
  }
  func.func @transform_9(%arg0: i32) -> (i32, i32) {
    %c0_i32 = arith.constant 0 : i32
    %c0_i32_0 = arith.constant 0 : i32
    %c0_i32_1 = arith.constant 0 : i32
    return %c0_i32, %c0_i32_0 : i32, i32
  }
  func.func @transform_10(%arg0: i32) -> (i32, i32) {
    %c0_i32 = arith.constant 0 : i32
    %c0_i32_0 = arith.constant 0 : i32
    %c0_i32_1 = arith.constant 0 : i32
    return %c0_i32, %c0_i32_0 : i32, i32
  }
  func.func @transform_11(%arg0: i32) -> (i32, i32) {
    %c0_i32 = arith.constant 0 : i32
    %c0_i32_0 = arith.constant 0 : i32
    %c0_i32_1 = arith.constant 0 : i32
    return %c0_i32, %c0_i32_0 : i32, i32
  }
  func.func @transform_12(%arg0: i32) -> (i32, i32) {
    %c0_i32 = arith.constant 0 : i32
    %c0_i32_0 = arith.constant 0 : i32
    %c0_i32_1 = arith.constant 0 : i32
    return %c0_i32, %c0_i32_0 : i32, i32
  }
}

module attributes {stable_mosaic.version = 11 : i64} {
  func.func @_decode_kernel(%arg0: i32, %arg1: memref<2x20xf32, #tpu.memory_space<vmem>>, %arg2: memref<20x400xbf16, #tpu.memory_space<vmem>>, %arg3: memref<1x400xf32, #tpu.memory_space<vmem>>, %arg4: memref<400x1000xbf16, #tpu.memory_space<vmem>>, %arg5: memref<1x1000xf32, #tpu.memory_space<vmem>>, %arg6: memref<1000x1536xbf16, #tpu.memory_space<vmem>>, %arg7: memref<1x1536xf32, #tpu.memory_space<vmem>>, %arg8: memref<2x1536xf32, #tpu.memory_space<vmem>>) attributes {dimension_semantics = [#tpu.dimension_semantics<parallel>], iteration_bounds = array<i64: 2>, scalar_prefetch = 0 : i64, scratch_operands = 0 : i64, tpu.core_type = #tpu.core_type<tc>, window_params = [{pipeline_mode = #tpu.pipeline_mode<synchronous>, transform_indices = @transform_0, window_bounds = array<i64: 2, 20>}, {pipeline_mode = #tpu.pipeline_mode<synchronous>, transform_indices = @transform_1, window_bounds = array<i64: 20, 400>}, {pipeline_mode = #tpu.pipeline_mode<synchronous>, transform_indices = @transform_2, window_bounds = array<i64: 1, 400>}, {pipeline_mode = #tpu.pipeline_mode<synchronous>, transform_indices = @transform_3, window_bounds = array<i64: 400, 1000>}, {pipeline_mode = #tpu.pipeline_mode<synchronous>, transform_indices = @transform_4, window_bounds = array<i64: 1, 1000>}, {transform_indices = @transform_5, window_bounds = array<i64: 1000, 1536>}, {transform_indices = @transform_6, window_bounds = array<i64: 1, 1536>}, {transform_indices = @transform_7, window_bounds = array<i64: 2, 1536>}]} {
    %c0 = arith.constant 0 : index
    %c0_0 = arith.constant 0 : index
    %0 = vector.load %arg1[%c0, %c0_0] : memref<2x20xf32, #tpu.memory_space<vmem>>, vector<2x20xf32>
    %1 = arith.truncf %0 : vector<2x20xf32> to vector<2x20xbf16>
    %c0_1 = arith.constant 0 : index
    %c0_2 = arith.constant 0 : index
    %2 = vector.load %arg2[%c0_1, %c0_2] : memref<20x400xbf16, #tpu.memory_space<vmem>>, vector<20x400xbf16>
    %cst = arith.constant dense<0.000000e+00> : vector<2x400xf32>
    %3 = tpu.matmul %1, %2, %cst {dimension_numbers = #tpu.dot_dimension_numbers<[1], [0], [0], [1], [0, 0, 1, 1], [], []>} : vector<2x20xbf16>, vector<20x400xbf16>, vector<2x400xf32> -> vector<2x400xf32>
    %c0_3 = arith.constant 0 : index
    %c0_4 = arith.constant 0 : index
    %4 = vector.load %arg3[%c0_3, %c0_4] : memref<1x400xf32, #tpu.memory_space<vmem>>, vector<1x400xf32>
    %5 = vector.broadcast %4 : vector<1x400xf32> to vector<2x400xf32>
    %6 = arith.addf %3, %5 : vector<2x400xf32>
    %cst_5 = arith.constant 0.000000e+00 : f32
    %7 = vector.broadcast %cst_5 : f32 to vector<2x400xf32>
    %8 = arith.maximumf %6, %7 : vector<2x400xf32>
    %9 = arith.truncf %8 : vector<2x400xf32> to vector<2x400xbf16>
    %c0_6 = arith.constant 0 : index
    %c0_7 = arith.constant 0 : index
    %10 = vector.load %arg4[%c0_6, %c0_7] : memref<400x1000xbf16, #tpu.memory_space<vmem>>, vector<400x1000xbf16>
    %cst_8 = arith.constant dense<0.000000e+00> : vector<2x1000xf32>
    %11 = tpu.matmul %9, %10, %cst_8 {dimension_numbers = #tpu.dot_dimension_numbers<[1], [0], [0], [1], [0, 0, 1, 1], [], []>} : vector<2x400xbf16>, vector<400x1000xbf16>, vector<2x1000xf32> -> vector<2x1000xf32>
    %c0_9 = arith.constant 0 : index
    %c0_10 = arith.constant 0 : index
    %12 = vector.load %arg5[%c0_9, %c0_10] : memref<1x1000xf32, #tpu.memory_space<vmem>>, vector<1x1000xf32>
    %13 = vector.broadcast %12 : vector<1x1000xf32> to vector<2x1000xf32>
    %14 = arith.addf %11, %13 : vector<2x1000xf32>
    %cst_11 = arith.constant 0.000000e+00 : f32
    %15 = vector.broadcast %cst_11 : f32 to vector<2x1000xf32>
    %16 = arith.maximumf %14, %15 : vector<2x1000xf32>
    %17 = arith.truncf %16 : vector<2x1000xf32> to vector<2x1000xbf16>
    %c0_12 = arith.constant 0 : index
    %c0_13 = arith.constant 0 : index
    %18 = vector.load %arg6[%c0_12, %c0_13] : memref<1000x1536xbf16, #tpu.memory_space<vmem>>, vector<1000x1536xbf16>
    %cst_14 = arith.constant dense<0.000000e+00> : vector<2x1536xf32>
    %19 = tpu.matmul %17, %18, %cst_14 {dimension_numbers = #tpu.dot_dimension_numbers<[1], [0], [0], [1], [0, 0, 1, 1], [], []>} : vector<2x1000xbf16>, vector<1000x1536xbf16>, vector<2x1536xf32> -> vector<2x1536xf32>
    %c0_15 = arith.constant 0 : index
    %c0_16 = arith.constant 0 : index
    %20 = vector.load %arg7[%c0_15, %c0_16] : memref<1x1536xf32, #tpu.memory_space<vmem>>, vector<1x1536xf32>
    %21 = vector.broadcast %20 : vector<1x1536xf32> to vector<2x1536xf32>
    %22 = arith.addf %19, %21 : vector<2x1536xf32>
    %cst_17 = arith.constant 0.000000e+00 : f32
    %23 = vector.broadcast %cst_17 : f32 to vector<2x1536xf32>
    %24 = arith.subf %23, %22 : vector<2x1536xf32>
    %25 = math.exp %24 : vector<2x1536xf32>
    %cst_18 = arith.constant 1.000000e+00 : f32
    %26 = vector.broadcast %cst_18 : f32 to vector<2x1536xf32>
    %27 = arith.addf %26, %25 : vector<2x1536xf32>
    %cst_19 = arith.constant 1.000000e+00 : f32
    %28 = vector.broadcast %cst_19 : f32 to vector<2x1536xf32>
    %29 = arith.divf %28, %27 : vector<2x1536xf32>
    %c0_20 = arith.constant 0 : index
    %c0_21 = arith.constant 0 : index
    %30 = vector.load %arg8[%c0_20, %c0_21] : memref<2x1536xf32, #tpu.memory_space<vmem>>, vector<2x1536xf32>
    tpu.vector_store %arg8[%c0_20, %c0_21], %29 {strides = array<i32>} : memref<2x1536xf32, #tpu.memory_space<vmem>>, vector<2x1536xf32>,
    return
  }
  func.func @transform_0(%arg0: i32) -> (i32, i32) {
    %c0_i32 = arith.constant 0 : i32
    %c0_i32_0 = arith.constant 0 : i32
    %c0_i32_1 = arith.constant 0 : i32
    return %c0_i32, %c0_i32_0 : i32, i32
  }
  func.func @transform_1(%arg0: i32) -> (i32, i32) {
    %c0_i32 = arith.constant 0 : i32
    %c0_i32_0 = arith.constant 0 : i32
    %c0_i32_1 = arith.constant 0 : i32
    return %c0_i32, %c0_i32_0 : i32, i32
  }
  func.func @transform_2(%arg0: i32) -> (i32, i32) {
    %c0_i32 = arith.constant 0 : i32
    %c0_i32_0 = arith.constant 0 : i32
    %c0_i32_1 = arith.constant 0 : i32
    return %c0_i32, %c0_i32_0 : i32, i32
  }
  func.func @transform_3(%arg0: i32) -> (i32, i32) {
    %c0_i32 = arith.constant 0 : i32
    %c0_i32_0 = arith.constant 0 : i32
    %c0_i32_1 = arith.constant 0 : i32
    return %c0_i32, %c0_i32_0 : i32, i32
  }
  func.func @transform_4(%arg0: i32) -> (i32, i32) {
    %c0_i32 = arith.constant 0 : i32
    %c0_i32_0 = arith.constant 0 : i32
    %c0_i32_1 = arith.constant 0 : i32
    return %c0_i32, %c0_i32_0 : i32, i32
  }
  func.func @transform_5(%arg0: i32) -> (i32, i32) {
    %c0_i32 = arith.constant 0 : i32
    %c0_i32_0 = arith.constant 0 : i32
    return %c0_i32, %arg0 : i32, i32
  }
  func.func @transform_6(%arg0: i32) -> (i32, i32) {
    %c0_i32 = arith.constant 0 : i32
    %c0_i32_0 = arith.constant 0 : i32
    return %c0_i32, %arg0 : i32, i32
  }
  func.func @transform_7(%arg0: i32) -> (i32, i32) {
    %c0_i32 = arith.constant 0 : i32
    %c0_i32_0 = arith.constant 0 : i32
    return %c0_i32, %arg0 : i32, i32
  }
}

</mosaic_0001>

<bundles_post_ra>
// kernel: vae_forward.2
= control target key start
LH: loop header
LB: loop body
LE: loop exit
PB: predicated region body
PF: predicated region fallthrough
CT: control target
= control target key end

     0   :  { %18 = vsyncpa [#allocation4], 0  ;;  %s10149_s0 = inlined_call_operand.vmem [shape: f32[2,3072], index: 0, kind: input, shape index: {}]   ;;  %s10150_s1 = inlined_call_operand.vmem [shape: bf16[3072,1000], index: 1, kind: input, shape index: {}]   ;;  %s10151_s2 = inlined_call_operand.vmem [shape: f32[1,1000], index: 2, kind: input, shape index: {}]   ;;  %s10152_s3 = inlined_call_operand.vmem [shape: bf16[1000,400], index: 3, kind: input, shape index: {}]   ;;  %s10153_s4 = inlined_call_operand.vmem [shape: f32[1,400], index: 4, kind: input, shape index: {}]   ;;  %s10154_s5 = inlined_call_operand.vmem [shape: bf16[400,20], index: 5, kind: input, shape index: {}]   ;;  %s10155_s6 = inlined_call_operand.vmem [shape: f32[1,20], index: 6, kind: input, shape index: {}]   ;;  %s10156_s7 = inlined_call_operand.vmem [shape: bf16[400,20], index: 7, kind: input, shape index: {}]   ;;  %s10157_s8 = inlined_call_operand.vmem [shape: f32[1,20], index: 8, kind: input, shape index: {}]   ;;  %s10158_s9 = inlined_call_operand.vmem [shape: f32[2,20], index: 9, kind: input, shape index: {}]   ;;  %s10159_s10 = inlined_call_operand.hbm [shape: f32[2,20], index: 10, kind: output, shape index: {0}]   ;;  %s10160_s11 = inlined_call_operand.hbm [shape: f32[2,20], index: 11, kind: output, shape index: {1}]   ;;  %s10161_s12 = inlined_call_operand.vmem [shape: f32[2,20], index: 12, kind: output, shape index: {2}]  }
   0x1   :  { %19 = vsyncpa [#allocation6], 0  ;;  %s8430_s21 = smov 0  }
   0x2 LB: > { %s8436_s22 = sadd.s32 4294967295, %s8358_s21   ;;  %p6960_p0 = scmp.ge.s32.totalorder %s8358_s21, 1  ;;  %s8358_s21 = sphi %s8430_s21, %s25_s21  }
   0x3   : > { %p367_p1 = scmp.lt.s32.totalorder %s8358_s21, 4 }
   0x5   : > { %p368_p2 = pnand %p6960_p0, %p367_p1 }
   0x6   : > { %s6961_s23 = sshll.u32 (!%p368_p2), %s8436_s22, 3  ;;  %s6963_s24 = sshll.u32 (!%p368_p2), %s8436_s22, 7 }
   0x7   : > { %371 = sbr.rel (%p368_p2) target bundleno = 1490 (0x5d2), region = 60  ;;  %p411_p3 = scmp.lt.s32.totalorder (!%p368_p2), %s6961_s23, 23 }
   0x8   : > { %p417_p4 = scmp.lt.s32.totalorder (!%p368_p2), %s6963_s24, 383  ;;  %p6966_p5 = scmp.ne.s32.totalorder (!%p368_p2), %s8436_s22, 0 }
   0xc   : > { %s10163_s23 = smov (!%p411_p3, %s6961_s23), 23  ;;  %s10165_s24 = smov (!%p417_p4, %s6963_s24), 383 }
   0xd   : > { %s6962_s25 = sshll.u32 %s10163_s23, 1  ;;  %s7796_s29 = sshll.u32 %s10165_s24, 5 }
   0xe   : > { %s8445_s28 = scalar_lea.vmem %s10149_s0, %s6962_s25  ;;  %s8450_s14 = scalar_lea.vmem %s10150_s1, %s7796_s29 }
   0xf   : > { %427 = sbr.rel (%p6966_p5) target bundleno = 25 (0x19), region = 64 }
  0x14   : > { %vm429_vm0 = vcmask 1041408   ;;  %vm430_vm1 = vcmask 1043458   ;;  %vm432_vm2 = vcmask 1045508   ;;  %v8360_v0 = vmov 0.0  }
  0x15   : > { %428 = vst [vmem:[#allocation2] sm:$0xff] %v8360_v0  ;;  %vm431_vm3 = vmor %vm430_vm1, %vm429_vm0  ;;  %vm434_vm4 = vcmask 850950  }
  0x16   : > { %vm433_vm5 = vmor %vm432_vm2, %vm431_vm3 }
  0x17   : > { %vm435_vm6 = vmor %vm434_vm4, %vm433_vm5 }
  0x18   : > { %436 = vst.msk [vmem:[#allocation2 + $0x8] sm:$0xff] %vm435_vm6, %v8360_v0 }
  0x19 PF: > { %v549_v1 = vld [vmem:[%s8450_s14 + $0x1c0] sm:$0xff]  ;;  %v8361_v33 = vmov 1983009808   ;;  %v447_v35 = vlaneseq  ;;  %vm4268_vm7 = vcmask 1041408   ;;  %vm4269_vm8 = vcmask 1043458   ;;  %p7479_p6 = scmp.ne.s32.totalorder %s8436_s22, 2 }
  0x1a   : > { %v553_v2 = vld [vmem:[%s8450_s14 + $0x1e0] sm:$0xff]  ;;  %v445_v34 = vunpack.c.l.s4 %v8361_v33  ;;  %vm4270_vm9 = vmor %vm4269_vm8, %vm4268_vm7  ;;  %vm4271_vm10 = vcmask 1045508   ;;  %vm4273_vm12 = vcmask 850950  }
  0x1b   : > { %v677_v3 = vld [vmem:[%s8450_s14 + $0x5c0] sm:$0xff]  ;;  %v7024_v4 = vcombine.high %v549_v1, %v553_v2  ;;  %v7023_v6 = vcombine.low %v549_v1, %v553_v2  ;;  %v8475_v45 = vshrl.u32 %v447_v35, 7  ;;  %vm4272_vm11 = vmor %vm4271_vm10, %vm4270_vm9 }
  0x1c   : > { %v681_v5 = vld [vmem:[%s8450_s14 + $0x5e0] sm:$0xff]  ;;  %v446_v44 = vunpack.c.0.s8 %v445_v34  ;;  %vm4274_vm13 = vmor %vm4273_vm12, %vm4272_vm11 }
  0x1d   : > { %v541_v7 = vld [vmem:[%s8450_s14 + $0x180] sm:$0xff]  ;;  %v7152_v9 = vcombine.high %v677_v3, %v681_v5  ;;  %v7151_v10 = vcombine.low %v677_v3, %v681_v5  ;;  %3565 = vmatprep.subr.bf16.mxu0 %v7024_v4 }
  0x1e   : > { %v545_v8 = vld [vmem:[%s8450_s14 + $0x1a0] sm:$0xff]  ;;  %3566 = vmatpush1.bf16.msra.mxu0 %v7023_v6  ;;  %v8482_v54 = vsub.s32 %v446_v44, %v8475_v45 }
  0x1f   : > { %v7016_v11 = vcombine.high %v541_v7, %v545_v8  ;;  %v669_v12 = vld [vmem:[%s8450_s14 + $0x580] sm:$0xff]  ;;  %3606 = vmatprep.subr.bf16.mxu1 %v7152_v9  ;;  %v7015_v19 = vcombine.low %v541_v7, %v545_v8 }
  0x20   : > { %v673_v13 = vld [vmem:[%s8450_s14 + $0x5a0] sm:$0xff]  ;;  %3607 = vmatpush1.bf16.msra.mxu1 %v7151_v10 }
  0x21   : > { %v533_v14 = vld [vmem:[%s8450_s14 + $0x140] sm:$0xff]  ;;  %v7144_v15 = vcombine.high %v669_v12, %v673_v13  ;;  %3567 = vmatprep.subr.bf16.mxu0 %v7016_v11  ;;  %v7143_v20 = vcombine.low %v669_v12, %v673_v13 }
  0x22   : > { %v537_v16 = vld [vmem:[%s8450_s14 + $0x160] sm:$0xff]  ;;  %3568 = vmatpush1.bf16.msra.mxu0 %v7015_v19 }
  0x23   : > { %v661_v17 = vld [vmem:[%s8450_s14 + $0x540] sm:$0xff]  ;;  %v7008_v21 = vcombine.high %v533_v14, %v537_v16  ;;  %3608 = vmatprep.subr.bf16.mxu1 %v7144_v15  ;;  %v7007_v27 = vcombine.low %v533_v14, %v537_v16 }
  0x24   : > { %v665_v18 = vld [vmem:[%s8450_s14 + $0x560] sm:$0xff]  ;;  %3609 = vmatpush1.bf16.msra.mxu1 %v7143_v20 }
  0x25   : > { %v7136_v22 = vcombine.high %v661_v17, %v665_v18  ;;  %v525_v23 = vld [vmem:[%s8450_s14 + $0x100] sm:$0xff]  ;;  %3569 = vmatprep.subr.bf16.mxu0 %v7008_v21  ;;  %v7135_v28 = vcombine.low %v661_v17, %v665_v18 }
  0x26   : > { %v529_v24 = vld [vmem:[%s8450_s14 + $0x120] sm:$0xff]  ;;  %3570 = vmatpush1.bf16.msra.mxu0 %v7007_v27 }
  0x27   : > { %v653_v25 = vld [vmem:[%s8450_s14 + $0x500] sm:$0xff]  ;;  %v7000_v29 = vcombine.high %v525_v23, %v529_v24  ;;  %3610 = vmatprep.subr.bf16.mxu1 %v7136_v22  ;;  %v6999_v38 = vcombine.low %v525_v23, %v529_v24 }
  0x28   : > { %v657_v26 = vld [vmem:[%s8450_s14 + $0x520] sm:$0xff]  ;;  %3611 = vmatpush1.bf16.msra.mxu1 %v7135_v28 }
  0x29   : > { %v7128_v30 = vcombine.high %v653_v25, %v657_v26  ;;  %v517_v31 = vld [vmem:[%s8450_s14 + $0xc0] sm:$0xff]  ;;  %3571 = vmatprep.subr.bf16.mxu0 %v7000_v29  ;;  %v7127_v39 = vcombine.low %v653_v25, %v657_v26 }
  0x2a   : > { %v521_v32 = vld [vmem:[%s8450_s14 + $0xe0] sm:$0xff]  ;;  %3572 = vmatpush1.bf16.msra.mxu0 %v6999_v38 }
  0x2b   : > { %v645_v36 = vld [vmem:[%s8450_s14 + $0x4c0] sm:$0xff]  ;;  %v6992_v40 = vcombine.high %v517_v31, %v521_v32  ;;  %3612 = vmatprep.subr.bf16.mxu1 %v7128_v30  ;;  %v6991_v48 = vcombine.low %v517_v31, %v521_v32 }
  0x2c   : > { %v649_v37 = vld [vmem:[%s8450_s14 + $0x4e0] sm:$0xff]  ;;  %3613 = vmatpush1.bf16.msra.mxu1 %v7127_v39 }
  0x2d   : > { %v7120_v41 = vcombine.high %v645_v36, %v649_v37  ;;  %v509_v42 = vld [vmem:[%s8450_s14 + $0x80] sm:$0xff]  ;;  %3573 = vmatprep.subr.bf16.mxu0 %v6992_v40  ;;  %v7119_v49 = vcombine.low %v645_v36, %v649_v37 }
  0x2e   : > { %v513_v43 = vld [vmem:[%s8450_s14 + $0xa0] sm:$0xff]  ;;  %3574 = vmatpush1.bf16.msra.mxu0 %v6991_v48 }
  0x2f   : > { %v637_v46 = vld [vmem:[%s8450_s14 + $0x480] sm:$0xff]  ;;  %v6984_v50 = vcombine.high %v509_v42, %v513_v43  ;;  %3614 = vmatprep.subr.bf16.mxu1 %v7120_v41  ;;  %v6983_v57 = vcombine.low %v509_v42, %v513_v43 }
  0x30   : > { %v641_v47 = vld [vmem:[%s8450_s14 + $0x4a0] sm:$0xff]  ;;  %3615 = vmatpush1.bf16.msra.mxu1 %v7119_v49 }
  0x31   : > { %v7112_v51 = vcombine.high %v637_v46, %v641_v47  ;;  %v501_v52 = vld [vmem:[%s8450_s14 + $0x40] sm:$0xff]  ;;  %3575 = vmatprep.subr.bf16.mxu0 %v6984_v50  ;;  %v7111_v58 = vcombine.low %v637_v46, %v641_v47 }
  0x32   : > { %v505_v53 = vld [vmem:[%s8450_s14 + $0x60] sm:$0xff]  ;;  %3576 = vmatpush1.bf16.msra.mxu0 %v6983_v57 }
  0x33   : > { %v629_v55 = vld [vmem:[%s8450_s14 + $0x440] sm:$0xff]  ;;  %v6976_v59 = vcombine.high %v501_v52, %v505_v53  ;;  %3616 = vmatprep.subr.bf16.mxu1 %v7112_v51  ;;  %v6975_v4 = vcombine.low %v501_v52, %v505_v53 }
  0x34   : > { %v633_v56 = vld [vmem:[%s8450_s14 + $0x460] sm:$0xff]  ;;  %3617 = vmatpush1.bf16.msra.mxu1 %v7111_v58 }
  0x35   : > { %v439_v60 = vld [vmem:[%s8445_s28] sm:$0xff]  ;;  %v7104_v61 = vcombine.high %v629_v55, %v633_v56  ;;  %3577 = vmatprep.subr.bf16.mxu0 %v6976_v59  ;;  %v7103_v7 = vcombine.low %v629_v55, %v633_v56 }
  0x36   : > { %v493_v62 = vld [vmem:[%s8450_s14] sm:$0xff]  ;;  %v8490_v0 = vrot.slane %v439_v60, %v8482_v54  ;;  %v443_v1 = vcombine.high %v439_v60, %v439_v60  ;;  %3578 = vmatpush1.bf16.msra.mxu0 %v6975_v4 }
  0x37   : > { %v497_v63 = vld [vmem:[%s8450_s14 + $0x20] sm:$0xff]  ;;  %3618 = vmatprep.subr.bf16.mxu1 %v7104_v61 }
  0x38   : > { %v621_v2 = vld [vmem:[%s8450_s14 + $0x400] sm:$0xff]  ;;  %v458_v5 = vcombine.high %v8490_v0, %v8490_v0  ;;  %v8497_v6 = vrot.slane %v443_v1, %v8482_v54  ;;  %v6968_v8 = vcombine.high %v493_v62, %v497_v63  ;;  %v6967_v16 = vcombine.low %v493_v62, %v497_v63  ;;  %3619 = vmatpush1.bf16.msra.mxu1 %v7103_v7 }
  0x39   : > { %v625_v3 = vld [vmem:[%s8450_s14 + $0x420] sm:$0xff] }
  0x3a   : > { %v7096_v9 = vcombine.high %v621_v2, %v625_v3  ;;  %v613_v10 = vld [vmem:[%s8450_s14 + $0x3c0] sm:$0xff]  ;;  %v8501_v12 = vpack.c.bf16 %v458_v5, %v458_v5  ;;  %v459_v13 = vcombine.high %v8497_v6, %v8497_v6  ;;  %3579 = vmatprep.subr.bf16.mxu0 %v6968_v8  ;;  %v7095_v18 = vcombine.low %v621_v2, %v625_v3  ;;  %v440_v5 = vld [vmem:[%s8445_s28 + $0x8] sm:$0xff] }
  0x3b   : > { %v617_v11 = vld [vmem:[%s8450_s14 + $0x3e0] sm:$0xff]  ;;  %3580 = vmatpush1.bf16.msra.mxu0 %v6967_v16 }
  0x3c   : > { %v741_v14 = vld [vmem:[%s8450_s14 + $0x7c0] sm:$0xff]  ;;  %3597 = vmatprep.mubr.bf16.mxu0 %v8501_v12  ;;  %v8508_v17 = vpack.c.bf16 %v459_v13, %v459_v13  ;;  %v7088_v19 = vcombine.high %v613_v10, %v617_v11  ;;  %3620 = vmatprep.subr.bf16.mxu1 %v7096_v9  ;;  %v7087_v25 = vcombine.low %v613_v10, %v617_v11 }
  0x3d   : > { %v745_v15 = vld [vmem:[%s8450_s14 + $0x7e0] sm:$0xff]  ;;  %3621 = vmatpush1.bf16.msra.mxu1 %v7095_v18 }
  0x3e   : > { %v7216_v20 = vcombine.high %v741_v14, %v745_v15  ;;  %v605_v21 = vld [vmem:[%s8450_s14 + $0x380] sm:$0xff]  ;;  %3638 = vmatprep.mubr.bf16.mxu1 %v8508_v17  ;;  %3581 = vmatprep.subr.bf16.mxu0 %v7088_v19  ;;  %v7215_v26 = vcombine.low %v741_v14, %v745_v15  ;;  %v460_v15 = vcombine.high %v440_v5, %v440_v5 }
  0x3f   : > { %v609_v22 = vld [vmem:[%s8450_s14 + $0x3a0] sm:$0xff]  ;;  %3582 = vmatpush2.bf16.msra.mxu0 %v7087_v25 }
  0x40   : > { %v733_v23 = vld [vmem:[%s8450_s14 + $0x780] sm:$0xff]  ;;  %v7080_v27 = vcombine.high %v605_v21, %v609_v22  ;;  %3622 = vmatprep.subr.bf16.mxu1 %v7216_v20  ;;  %v7079_v33 = vcombine.low %v605_v21, %v609_v22 }
  0x41   : > { %v737_v24 = vld [vmem:[%s8450_s14 + $0x7a0] sm:$0xff]  ;;  %3623 = vmatpush2.bf16.msra.mxu1 %v7215_v26  ;;  %v8548_v26 = vrot.slane %v460_v15, %v8482_v54 }
  0x42   : > { %v7208_v28 = vcombine.high %v733_v23, %v737_v24  ;;  %v597_v29 = vld [vmem:[%s8450_s14 + $0x340] sm:$0xff]  ;;  %3583 = vmatprep.subr.bf16.mxu0 %v7080_v27  ;;  %v7207_v34 = vcombine.low %v733_v23, %v737_v24  ;;  %v8543_v23 = vrot.slane %v440_v5, %v8482_v54 }
  0x43   : > { %v601_v30 = vld [vmem:[%s8450_s14 + $0x360] sm:$0xff]  ;;  %3584 = vmatpush2.bf16.msra.mxu0 %v7079_v33 }
  0x44   : > { %v725_v31 = vld [vmem:[%s8450_s14 + $0x740] sm:$0xff]  ;;  %v7072_v35 = vcombine.high %v597_v29, %v601_v30  ;;  %3624 = vmatprep.subr.bf16.mxu1 %v7208_v28  ;;  %v7071_v41 = vcombine.low %v597_v29, %v601_v30  ;;  %v475_v33 = vcombine.high %v8543_v23, %v8543_v23 }
  0x45   : > { %v729_v32 = vld [vmem:[%s8450_s14 + $0x760] sm:$0xff]  ;;  %3625 = vmatpush2.bf16.msra.mxu1 %v7207_v34  ;;  %v8556_v34 = vpack.c.bf16 %v8490_v0, %v8490_v0 }
  0x46   : > { %v7200_v36 = vcombine.high %v725_v31, %v729_v32  ;;  %v589_v37 = vld [vmem:[%s8450_s14 + $0x300] sm:$0xff]  ;;  %3585 = vmatprep.subr.bf16.mxu0 %v7072_v35  ;;  %v7199_v42 = vcombine.low %v725_v31, %v729_v32 }
  0x47   : > { %v593_v38 = vld [vmem:[%s8450_s14 + $0x320] sm:$0xff]  ;;  %3586 = vmatpush2.bf16.msra.mxu0 %v7071_v41 }
  0x48   : > { %v717_v39 = vld [vmem:[%s8450_s14 + $0x700] sm:$0xff]  ;;  %v7064_v43 = vcombine.high %v589_v37, %v593_v38  ;;  %3626 = vmatprep.subr.bf16.mxu1 %v7200_v36  ;;  %v7063_v50 = vcombine.low %v589_v37, %v593_v38  ;;  %v476_v37 = vcombine.high %v8548_v26, %v8548_v26  ;;  %v8564_v38 = vpack.c.bf16 %v8497_v6, %v8497_v6 }
  0x49   : > { %v721_v40 = vld [vmem:[%s8450_s14 + $0x720] sm:$0xff]  ;;  %3627 = vmatpush2.bf16.msra.mxu1 %v7199_v42 }
  0x4a   : > { %v7192_v44 = vcombine.high %v717_v39, %v721_v40  ;;  %v581_v46 = vld [vmem:[%s8450_s14 + $0x2c0] sm:$0xff]  ;;  %3587 = vmatprep.subr.bf16.mxu0 %v7064_v43  ;;  %v7191_v51 = vcombine.low %v717_v39, %v721_v40 }
  0x4b   : > { %v585_v47 = vld [vmem:[%s8450_s14 + $0x2e0] sm:$0xff]  ;;  %3588 = vmatpush2.bf16.msra.mxu0 %v7063_v50 }
  0x4c   : > { %v709_v48 = vld [vmem:[%s8450_s14 + $0x6c0] sm:$0xff]  ;;  %v7056_v52 = vcombine.high %v581_v46, %v585_v47  ;;  %3628 = vmatprep.subr.bf16.mxu1 %v7192_v44  ;;  %v7055_v59 = vcombine.low %v581_v46, %v585_v47  ;;  %v8568_v44 = vpack.c.bf16 %v475_v33, %v475_v33  ;;  %v8573_v47 = vpack.c.bf16 %v476_v37, %v476_v37 }
  0x4d   : > { %v713_v49 = vld [vmem:[%s8450_s14 + $0x6e0] sm:$0xff]  ;;  %3629 = vmatpush2.bf16.msra.mxu1 %v7191_v51 }
  0x4e   : > { %v7184_v53 = vcombine.high %v709_v48, %v713_v49  ;;  %v573_v55 = vld [vmem:[%s8450_s14 + $0x280] sm:$0xff]  ;;  %3589 = vmatprep.subr.bf16.mxu0 %v7056_v52  ;;  %v7183_v60 = vcombine.low %v709_v48, %v713_v49 }
  0x4f   : > { %v577_v56 = vld [vmem:[%s8450_s14 + $0x2a0] sm:$0xff]  ;;  %3590 = vmatpush2.bf16.msra.mxu0 %v7055_v59 }
  0x50   : > { %v701_v57 = vld [vmem:[%s8450_s14 + $0x680] sm:$0xff]  ;;  %v7048_v61 = vcombine.high %v573_v55, %v577_v56  ;;  %3630 = vmatprep.subr.bf16.mxu1 %v7184_v53  ;;  %v7047_v4 = vcombine.low %v573_v55, %v577_v56 }
  0x51   : > { %v705_v58 = vld [vmem:[%s8450_s14 + $0x6a0] sm:$0xff]  ;;  %3631 = vmatpush2.bf16.msra.mxu1 %v7183_v60 }
  0x52   : > { %v7176_v62 = vcombine.high %v701_v57, %v705_v58  ;;  %v565_v63 = vld [vmem:[%s8450_s14 + $0x240] sm:$0xff]  ;;  %3591 = vmatprep.subr.bf16.mxu0 %v7048_v61  ;;  %v7175_v7 = vcombine.low %v701_v57, %v705_v58 }
  0x53   : > { %v569_v1 = vld [vmem:[%s8450_s14 + $0x260] sm:$0xff]  ;;  %3592 = vmatpush2.bf16.msra.mxu0 %v7047_v4 }
  0x54   : > { %v693_v2 = vld [vmem:[%s8450_s14 + $0x640] sm:$0xff]  ;;  %v7040_v8 = vcombine.high %v565_v63, %v569_v1  ;;  %3632 = vmatprep.subr.bf16.mxu1 %v7176_v62  ;;  %v7039_v16 = vcombine.low %v565_v63, %v569_v1 }
  0x55   : > { %v697_v3 = vld [vmem:[%s8450_s14 + $0x660] sm:$0xff]  ;;  %3633 = vmatpush2.bf16.msra.mxu1 %v7175_v7 }
  0x56   : > { %v7168_v9 = vcombine.high %v693_v2, %v697_v3  ;;  %v557_v10 = vld [vmem:[%s8450_s14 + $0x200] sm:$0xff]  ;;  %3593 = vmatprep.subr.bf16.mxu0 %v7040_v8  ;;  %v7167_v18 = vcombine.low %v693_v2, %v697_v3 }
  0x57   : > { %v561_v11 = vld [vmem:[%s8450_s14 + $0x220] sm:$0xff]  ;;  %3594 = vmatpush2.bf16.msra.mxu0 %v7039_v16 }
  0x58   : > { %v685_v13 = vld [vmem:[%s8450_s14 + $0x600] sm:$0xff]  ;;  %v7032_v19 = vcombine.high %v557_v10, %v561_v11  ;;  %3634 = vmatprep.subr.bf16.mxu1 %v7168_v9  ;;  %v7031_v27 = vcombine.low %v557_v10, %v561_v11 }
  0x59   : > { %v689_v14 = vld [vmem:[%s8450_s14 + $0x620] sm:$0xff]  ;;  %3635 = vmatpush2.bf16.msra.mxu1 %v7167_v18 }
  0x5a   : > { %v7160_v20 = vcombine.high %v685_v13, %v689_v14  ;;  %v805_v21 = vld [vmem:[%s8450_s14 + $0x9c0] sm:$0xff]  ;;  %3595 = vmatprep.subr.bf16.mxu0 %v7032_v19  ;;  %v7159_v28 = vcombine.low %v685_v13, %v689_v14 }
  0x5b   : > { %v809_v22 = vld [vmem:[%s8450_s14 + $0x9e0] sm:$0xff]  ;;  %3596 = vmatpush2.bf16.msra.mxu0 %v7031_v27 }
  0x5c   : > { %v933_v24 = vld [vmem:[%s8450_s14 + $0xdc0] sm:$0xff]  ;;  %v7280_v29 = vcombine.high %v805_v21, %v809_v22  ;;  %3636 = vmatprep.subr.bf16.mxu1 %v7160_v20  ;;  %v7279_v39 = vcombine.low %v805_v21, %v809_v22 }
  0x5d   : > { %v937_v25 = vld [vmem:[%s8450_s14 + $0xde0] sm:$0xff]  ;;  %3637 = vmatpush2.bf16.msra.mxu1 %v7159_v28 }
  0x5e   : > { %v7408_v30 = vcombine.high %v933_v24, %v937_v25  ;;  %v797_v31 = vld [vmem:[%s8450_s14 + $0x980] sm:$0xff]  ;;  %3647 = vmatprep.subr.bf16.mxu0 %v7280_v29  ;;  %v7407_v40 = vcombine.low %v933_v24, %v937_v25  ;;  %3598 = vmatmul.mubr.bf16.vlgmr.msra.gmra.mxu0 %v8556_v34 }
  0x5f   : > { %v801_v32 = vld [vmem:[%s8450_s14 + $0x9a0] sm:$0xff]  ;;  %3648 = vmatpush1.bf16.msra.mxu0 %v7279_v39  ;;  %3679 = vmatprep.mubr.bf16.mxu0 %v8568_v44 }
  0x60   : > { %v925_v35 = vld [vmem:[%s8450_s14 + $0xd80] sm:$0xff]  ;;  %v7272_v41 = vcombine.high %v797_v31, %v801_v32  ;;  %3688 = vmatprep.subr.bf16.mxu1 %v7408_v30  ;;  %3639 = vmatmul.mubr.bf16.vlgmr.msra.gmra.mxu1 %v8564_v38  ;;  %v7271_v48 = vcombine.low %v797_v31, %v801_v32 }
  0x61   : > { %v929_v36 = vld [vmem:[%s8450_s14 + $0xda0] sm:$0xff]  ;;  %3689 = vmatpush1.bf16.msra.mxu1 %v7407_v40  ;;  %3720 = vmatprep.mubr.bf16.mxu1 %v8573_v47 }
  0x62   : > { %v7400_v0 = vcombine.high %v925_v35, %v929_v36  ;;  %v789_v42 = vld [vmem:[%s8450_s14 + $0x940] sm:$0xff]  ;;  %3649 = vmatprep.subr.bf16.mxu0 %v7272_v41  ;;  %v7399_v49 = vcombine.low %v925_v35, %v929_v36 }
  0x63   : > { %v793_v43 = vld [vmem:[%s8450_s14 + $0x960] sm:$0xff]  ;;  %3650 = vmatpush1.bf16.msra.mxu0 %v7271_v48 }
  0x64   : > { %v917_v46 = vld [vmem:[%s8450_s14 + $0xd40] sm:$0xff]  ;;  %v7264_v50 = vcombine.high %v789_v42, %v793_v43  ;;  %3690 = vmatprep.subr.bf16.mxu1 %v7400_v0  ;;  %v7263_v57 = vcombine.low %v789_v42, %v793_v43 }
  0x65   : > { %v921_v6 = vld [vmem:[%s8450_s14 + $0xd60] sm:$0xff]  ;;  %3691 = vmatpush1.bf16.msra.mxu1 %v7399_v49 }
  0x66   : > { %v7392_v51 = vcombine.high %v917_v46, %v921_v6  ;;  %v781_v52 = vld [vmem:[%s8450_s14 + $0x900] sm:$0xff]  ;;  %3651 = vmatprep.subr.bf16.mxu0 %v7264_v50  ;;  %v7391_v58 = vcombine.low %v917_v46, %v921_v6 }
  0x67   : > { %v785_v53 = vld [vmem:[%s8450_s14 + $0x920] sm:$0xff]  ;;  %3652 = vmatpush1.bf16.msra.mxu0 %v7263_v57 }
  0x68   : > { %v909_v55 = vld [vmem:[%s8450_s14 + $0xd00] sm:$0xff]  ;;  %v7256_v59 = vcombine.high %v781_v52, %v785_v53  ;;  %3692 = vmatprep.subr.bf16.mxu1 %v7392_v51  ;;  %v7255_v2 = vcombine.low %v781_v52, %v785_v53 }
  0x69   : > { %v913_v56 = vld [vmem:[%s8450_s14 + $0xd20] sm:$0xff]  ;;  %3693 = vmatpush1.bf16.msra.mxu1 %v7391_v58 }
  0x6a   : > { %v7384_v60 = vcombine.high %v909_v55, %v913_v56  ;;  %v773_v61 = vld [vmem:[%s8450_s14 + $0x8c0] sm:$0xff]  ;;  %3653 = vmatprep.subr.bf16.mxu0 %v7256_v59  ;;  %v7383_v3 = vcombine.low %v909_v55, %v913_v56 }
  0x6b   : > { %v777_v62 = vld [vmem:[%s8450_s14 + $0x8e0] sm:$0xff]  ;;  %3654 = vmatpush1.bf16.msra.mxu0 %v7255_v2 }
  0x6c   : > { %v901_v63 = vld [vmem:[%s8450_s14 + $0xcc0] sm:$0xff]  ;;  %v7248_v4 = vcombine.high %v773_v61, %v777_v62  ;;  %3694 = vmatprep.subr.bf16.mxu1 %v7384_v60  ;;  %v7247_v11 = vcombine.low %v773_v61, %v777_v62 }
  0x6d   : > { %v905_v1 = vld [vmem:[%s8450_s14 + $0xce0] sm:$0xff]  ;;  %3695 = vmatpush1.bf16.msra.mxu1 %v7383_v3 }
  0x6e   : > { %v7376_v5 = vcombine.high %v901_v63, %v905_v1  ;;  %v765_v7 = vld [vmem:[%s8450_s14 + $0x880] sm:$0xff]  ;;  %3655 = vmatprep.subr.bf16.mxu0 %v7248_v4  ;;  %v7375_v13 = vcombine.low %v901_v63, %v905_v1 }
  0x6f   : > { %v769_v8 = vld [vmem:[%s8450_s14 + $0x8a0] sm:$0xff]  ;;  %3656 = vmatpush1.bf16.msra.mxu0 %v7247_v11 }
  0x70   : > { %v893_v9 = vld [vmem:[%s8450_s14 + $0xc80] sm:$0xff]  ;;  %v7240_v14 = vcombine.high %v765_v7, %v769_v8  ;;  %3696 = vmatprep.subr.bf16.mxu1 %v7376_v5  ;;  %v7239_v21 = vcombine.low %v765_v7, %v769_v8 }
  0x71   : > { %v897_v10 = vld [vmem:[%s8450_s14 + $0xca0] sm:$0xff]  ;;  %3697 = vmatpush1.bf16.msra.mxu1 %v7375_v13 }
  0x72   : > { %v7368_v15 = vcombine.high %v893_v9, %v897_v10  ;;  %v757_v16 = vld [vmem:[%s8450_s14 + $0x840] sm:$0xff]  ;;  %3657 = vmatprep.subr.bf16.mxu0 %v7240_v14  ;;  %v7367_v22 = vcombine.low %v893_v9, %v897_v10 }
  0x73   : > { %v761_v18 = vld [vmem:[%s8450_s14 + $0x860] sm:$0xff]  ;;  %3658 = vmatpush1.bf16.msra.mxu0 %v7239_v21 }
  0x74   : > { %v885_v19 = vld [vmem:[%s8450_s14 + $0xc40] sm:$0xff]  ;;  %v7232_v24 = vcombine.high %v757_v16, %v761_v18  ;;  %3698 = vmatprep.subr.bf16.mxu1 %v7368_v15  ;;  %v7231_v31 = vcombine.low %v757_v16, %v761_v18 }
  0x75   : > { %v889_v20 = vld [vmem:[%s8450_s14 + $0xc60] sm:$0xff]  ;;  %3699 = vmatpush1.bf16.msra.mxu1 %v7367_v22 }
  0x76   : > { %v7360_v25 = vcombine.high %v885_v19, %v889_v20  ;;  %v749_v27 = vld [vmem:[%s8450_s14 + $0x800] sm:$0xff]  ;;  %3659 = vmatprep.subr.bf16.mxu0 %v7232_v24  ;;  %v7359_v32 = vcombine.low %v885_v19, %v889_v20 }
  0x77   : > { %v753_v28 = vld [vmem:[%s8450_s14 + $0x820] sm:$0xff]  ;;  %3660 = vmatpush1.bf16.msra.mxu0 %v7231_v31 }
  0x78   : > { %v877_v29 = vld [vmem:[%s8450_s14 + $0xc00] sm:$0xff]  ;;  %v7224_v33 = vcombine.high %v749_v27, %v753_v28  ;;  %3700 = vmatprep.subr.bf16.mxu1 %v7360_v25  ;;  %v7223_v41 = vcombine.low %v749_v27, %v753_v28 }
  0x79   : > { %v881_v30 = vld [vmem:[%s8450_s14 + $0xc20] sm:$0xff]  ;;  %3701 = vmatpush1.bf16.msra.mxu1 %v7359_v32 }
  0x7a   : > { %v7352_v35 = vcombine.high %v877_v29, %v881_v30  ;;  %v869_v36 = vld [vmem:[%s8450_s14 + $0xbc0] sm:$0xff]  ;;  %3661 = vmatprep.subr.bf16.mxu0 %v7224_v33  ;;  %v7351_v0 = vcombine.low %v877_v29, %v881_v30 }
  0x7b   : > { %v873_v37 = vld [vmem:[%s8450_s14 + $0xbe0] sm:$0xff]  ;;  %3662 = vmatpush1.bf16.msra.mxu0 %v7223_v41 }
  0x7c   : > { %v997_v39 = vld [vmem:[%s8450_s14 + $0xfc0] sm:$0xff]  ;;  %v7344_v42 = vcombine.high %v869_v36, %v873_v37  ;;  %3702 = vmatprep.subr.bf16.mxu1 %v7352_v35  ;;  %v7343_v50 = vcombine.low %v869_v36, %v873_v37 }
  0x7d   : > { %v1001_v40 = vld [vmem:[%s8450_s14 + $0xfe0] sm:$0xff]  ;;  %3703 = vmatpush1.bf16.msra.mxu1 %v7351_v0 }
  0x7e   : > { %v7472_v43 = vcombine.high %v997_v39, %v1001_v40  ;;  %v861_v46 = vld [vmem:[%s8450_s14 + $0xb80] sm:$0xff]  ;;  %3663 = vmatprep.subr.bf16.mxu0 %v7344_v42  ;;  %v7471_v51 = vcombine.low %v997_v39, %v1001_v40 }
  0x7f   : > { %v865_v6 = vld [vmem:[%s8450_s14 + $0xba0] sm:$0xff]  ;;  %3664 = vmatpush2.bf16.msra.mxu0 %v7343_v50  ;;  %v678_v50 = vld [vmem:[%s8450_s14 + $0x5c8] sm:$0xff] }
  0x80   : > { %v989_v48 = vld [vmem:[%s8450_s14 + $0xf80] sm:$0xff]  ;;  %v7336_v52 = vcombine.high %v861_v46, %v865_v6  ;;  %3704 = vmatprep.subr.bf16.mxu1 %v7472_v43  ;;  %v7335_v59 = vcombine.low %v861_v46, %v865_v6 }
  0x81   : > { %v993_v49 = vld [vmem:[%s8450_s14 + $0xfa0] sm:$0xff]  ;;  %3705 = vmatpush2.bf16.msra.mxu1 %v7471_v51  ;;  %v682_v51 = vld [vmem:[%s8450_s14 + $0x5e8] sm:$0xff] }
  0x82   : > { %v7464_v53 = vcombine.high %v989_v48, %v993_v49  ;;  %v853_v55 = vld [vmem:[%s8450_s14 + $0xb40] sm:$0xff]  ;;  %3665 = vmatprep.subr.bf16.mxu0 %v7336_v52  ;;  %v7463_v60 = vcombine.low %v989_v48, %v993_v49  ;;  %v550_v48 = vld [vmem:[%s8450_s14 + $0x1c8] sm:$0xff] }
  0x83   : > { %v857_v56 = vld [vmem:[%s8450_s14 + $0xb60] sm:$0xff]  ;;  %3666 = vmatpush2.bf16.msra.mxu0 %v7335_v59  ;;  %v554_v49 = vld [vmem:[%s8450_s14 + $0x1e8] sm:$0xff]  ;;  %v8638_v59 = vpack.c.bf16 %v8543_v23, %v8543_v23 }
  0x84   : > { %v981_v57 = vld [vmem:[%s8450_s14 + $0xf40] sm:$0xff]  ;;  %v7328_v61 = vcombine.high %v853_v55, %v857_v56  ;;  %3706 = vmatprep.subr.bf16.mxu1 %v7464_v53  ;;  %v7327_v4 = vcombine.low %v853_v55, %v857_v56  ;;  %v7026_v55 = vcombine.high %v550_v48, %v554_v49  ;;  %v7154_v56 = vcombine.high %v678_v50, %v682_v51  ;;  %v538_v23 = vld [vmem:[%s8450_s14 + $0x168] sm:$0xff] }
  0x85   : > { %v985_v58 = vld [vmem:[%s8450_s14 + $0xf60] sm:$0xff]  ;;  %3707 = vmatpush2.bf16.msra.mxu1 %v7463_v60  ;;  %v670_v60 = vld [vmem:[%s8450_s14 + $0x588] sm:$0xff] }
  0x86   : > { %v7456_v62 = vcombine.high %v981_v57, %v985_v58  ;;  %v845_v63 = vld [vmem:[%s8450_s14 + $0xb00] sm:$0xff]  ;;  %3667 = vmatprep.subr.bf16.mxu0 %v7328_v61  ;;  %v7455_v5 = vcombine.low %v981_v57, %v985_v58  ;;  %v542_v57 = vld [vmem:[%s8450_s14 + $0x188] sm:$0xff] }
  0x87   : > { %v849_v1 = vld [vmem:[%s8450_s14 + $0xb20] sm:$0xff]  ;;  %3668 = vmatpush2.bf16.msra.mxu0 %v7327_v4  ;;  %v546_v58 = vld [vmem:[%s8450_s14 + $0x1a8] sm:$0xff] }
  0x88   : > { %v973_v2 = vld [vmem:[%s8450_s14 + $0xf00] sm:$0xff]  ;;  %v7320_v7 = vcombine.high %v845_v63, %v849_v1  ;;  %3708 = vmatprep.subr.bf16.mxu1 %v7456_v62  ;;  %v7319_v14 = vcombine.low %v845_v63, %v849_v1  ;;  %v674_v61 = vld [vmem:[%s8450_s14 + $0x5a8] sm:$0xff]  ;;  %v8644_v62 = vpack.c.bf16 %v8548_v26, %v8548_v26  ;;  %v7025_v63 = vcombine.low %v550_v48, %v554_v49 }
  0x89   : > { %v977_v3 = vld [vmem:[%s8450_s14 + $0xf20] sm:$0xff]  ;;  %3709 = vmatpush2.bf16.msra.mxu1 %v7455_v5  ;;  %v7153_v1 = vcombine.low %v678_v50, %v682_v51  ;;  %v534_v4 = vld [vmem:[%s8450_s14 + $0x148] sm:$0xff]  ;;  %v7017_v26 = vcombine.low %v542_v57, %v546_v58 }
  0x8a   : > { %v7448_v8 = vcombine.high %v973_v2, %v977_v3  ;;  %v837_v9 = vld [vmem:[%s8450_s14 + $0xac0] sm:$0xff]  ;;  %3669 = vmatprep.subr.bf16.mxu0 %v7320_v7  ;;  %v7447_v15 = vcombine.low %v973_v2, %v977_v3  ;;  %v7018_v2 = vcombine.high %v542_v57, %v546_v58  ;;  %v7146_v3 = vcombine.high %v670_v60, %v674_v61  ;;  %v662_v5 = vld [vmem:[%s8450_s14 + $0x548] sm:$0xff] }
  0x8b   : > { %v841_v10 = vld [vmem:[%s8450_s14 + $0xae0] sm:$0xff]  ;;  %3670 = vmatpush2.bf16.msra.mxu0 %v7319_v14  ;;  %v666_v7 = vld [vmem:[%s8450_s14 + $0x568] sm:$0xff] }
  0x8c   : > { %v965_v11 = vld [vmem:[%s8450_s14 + $0xec0] sm:$0xff]  ;;  %v7312_v16 = vcombine.high %v837_v9, %v841_v10  ;;  %3710 = vmatprep.subr.bf16.mxu1 %v7448_v8  ;;  %v7311_v24 = vcombine.low %v837_v9, %v841_v10  ;;  %v7145_v8 = vcombine.low %v670_v60, %v674_v61  ;;  %v7010_v9 = vcombine.high %v534_v4, %v538_v23  ;;  %v654_v14 = vld [vmem:[%s8450_s14 + $0x508] sm:$0xff] }
  0x8d   : > { %v969_v13 = vld [vmem:[%s8450_s14 + $0xee0] sm:$0xff]  ;;  %3711 = vmatpush2.bf16.msra.mxu1 %v7447_v15  ;;  %v7138_v10 = vcombine.high %v662_v5, %v666_v7  ;;  %v658_v15 = vld [vmem:[%s8450_s14 + $0x528] sm:$0xff] }
  0x8e   : > { %v7440_v18 = vcombine.high %v965_v11, %v969_v13  ;;  %v829_v19 = vld [vmem:[%s8450_s14 + $0xa80] sm:$0xff]  ;;  %3671 = vmatprep.subr.bf16.mxu0 %v7312_v16  ;;  %v7439_v25 = vcombine.low %v965_v11, %v969_v13  ;;  %v526_v11 = vld [vmem:[%s8450_s14 + $0x108] sm:$0xff]  ;;  %v7009_v16 = vcombine.low %v534_v4, %v538_v23 }
  0x8f   : > { %v833_v20 = vld [vmem:[%s8450_s14 + $0xaa0] sm:$0xff]  ;;  %3672 = vmatpush2.bf16.msra.mxu0 %v7311_v24  ;;  %v530_v13 = vld [vmem:[%s8450_s14 + $0x128] sm:$0xff] }
  0x90   : > { %v957_v21 = vld [vmem:[%s8450_s14 + $0xe80] sm:$0xff]  ;;  %v7304_v27 = vcombine.high %v829_v19, %v833_v20  ;;  %3712 = vmatprep.subr.bf16.mxu1 %v7440_v18  ;;  %v7303_v33 = vcombine.low %v829_v19, %v833_v20  ;;  %v7137_v18 = vcombine.low %v662_v5, %v666_v7  ;;  %v7002_v19 = vcombine.high %v526_v11, %v530_v13  ;;  %v646_v24 = vld [vmem:[%s8450_s14 + $0x4c8] sm:$0xff] }
  0x91   : > { %v961_v22 = vld [vmem:[%s8450_s14 + $0xea0] sm:$0xff]  ;;  %3713 = vmatpush2.bf16.msra.mxu1 %v7439_v25  ;;  %v7130_v20 = vcombine.high %v654_v14, %v658_v15  ;;  %v650_v25 = vld [vmem:[%s8450_s14 + $0x4e8] sm:$0xff] }
  0x92   : > { %v7432_v28 = vcombine.high %v957_v21, %v961_v22  ;;  %v821_v29 = vld [vmem:[%s8450_s14 + $0xa40] sm:$0xff]  ;;  %3673 = vmatprep.subr.bf16.mxu0 %v7304_v27  ;;  %v7431_v35 = vcombine.low %v957_v21, %v961_v22  ;;  %v518_v21 = vld [vmem:[%s8450_s14 + $0xc8] sm:$0xff]  ;;  %v7001_v27 = vcombine.low %v526_v11, %v530_v13 }
  0x93   : > { %v825_v30 = vld [vmem:[%s8450_s14 + $0xa60] sm:$0xff]  ;;  %3674 = vmatpush2.bf16.msra.mxu0 %v7303_v33  ;;  %v522_v22 = vld [vmem:[%s8450_s14 + $0xe8] sm:$0xff] }
  0x94   : > { %v949_v31 = vld [vmem:[%s8450_s14 + $0xe40] sm:$0xff]  ;;  %v7296_v36 = vcombine.high %v821_v29, %v825_v30  ;;  %3714 = vmatprep.subr.bf16.mxu1 %v7432_v28  ;;  %v7295_v42 = vcombine.low %v821_v29, %v825_v30  ;;  %v7129_v28 = vcombine.low %v654_v14, %v658_v15  ;;  %v6994_v29 = vcombine.high %v518_v21, %v522_v22  ;;  %v638_v33 = vld [vmem:[%s8450_s14 + $0x488] sm:$0xff] }
  0x95   : > { %v953_v32 = vld [vmem:[%s8450_s14 + $0xe60] sm:$0xff]  ;;  %3715 = vmatpush2.bf16.msra.mxu1 %v7431_v35  ;;  %v7122_v30 = vcombine.high %v646_v24, %v650_v25  ;;  %v642_v35 = vld [vmem:[%s8450_s14 + $0x4a8] sm:$0xff] }
  0x96   : > { %v7424_v37 = vcombine.high %v949_v31, %v953_v32  ;;  %v813_v39 = vld [vmem:[%s8450_s14 + $0xa00] sm:$0xff]  ;;  %3675 = vmatprep.subr.bf16.mxu0 %v7296_v36  ;;  %v7423_v43 = vcombine.low %v949_v31, %v953_v32  ;;  %v510_v31 = vld [vmem:[%s8450_s14 + $0x88] sm:$0xff]  ;;  %v6993_v36 = vcombine.low %v518_v21, %v522_v22 }
  0x97   : > { %v817_v40 = vld [vmem:[%s8450_s14 + $0xa20] sm:$0xff]  ;;  %3676 = vmatpush2.bf16.msra.mxu0 %v7295_v42  ;;  %v514_v32 = vld [vmem:[%s8450_s14 + $0xa8] sm:$0xff] }
  0x98   : > { %v941_v41 = vld [vmem:[%s8450_s14 + $0xe00] sm:$0xff]  ;;  %v7288_v46 = vcombine.high %v813_v39, %v817_v40  ;;  %3716 = vmatprep.subr.bf16.mxu1 %v7424_v37  ;;  %v7287_v52 = vcombine.low %v813_v39, %v817_v40  ;;  %v7121_v37 = vcombine.low %v646_v24, %v650_v25  ;;  %v6986_v39 = vcombine.high %v510_v31, %v514_v32  ;;  %v630_v42 = vld [vmem:[%s8450_s14 + $0x448] sm:$0xff] }
  0x99   : > { %v945_v0 = vld [vmem:[%s8450_s14 + $0xe20] sm:$0xff]  ;;  %3717 = vmatpush2.bf16.msra.mxu1 %v7423_v43  ;;  %v7114_v40 = vcombine.high %v638_v33, %v642_v35  ;;  %v634_v43 = vld [vmem:[%s8450_s14 + $0x468] sm:$0xff] }
  0x9a   : > { %v7416_v6 = vcombine.high %v941_v41, %v945_v0  ;;  %3677 = vmatprep.subr.bf16.mxu0 %v7288_v46  ;;  %v7415_v53 = vcombine.low %v941_v41, %v945_v0  ;;  %v502_v41 = vld [vmem:[%s8450_s14 + $0x48] sm:$0xff]  ;;  %v6985_v46 = vcombine.low %v510_v31, %v514_v32  ;;  %v7106_v49 = vcombine.high %v630_v42, %v634_v43 }
  0x9b   : > { %3678 = vmatpush2.bf16.msra.mxu0 %v7287_v52  ;;  %v506_v0 = vld [vmem:[%s8450_s14 + $0x68] sm:$0xff] }
  0x9c   : > { %3718 = vmatprep.subr.bf16.mxu1 %v7416_v6  ;;  %3729 = vmatprep.subr.bf16.mxu0 %v7026_v55  ;;  %v7113_v6 = vcombine.low %v638_v33, %v642_v35  ;;  %v6978_v48 = vcombine.high %v502_v41, %v506_v0  ;;  %v494_v50 = vld [vmem:[%s8450_s14 + $0x8] sm:$0xff]  ;;  %v6977_v55 = vcombine.low %v502_v41, %v506_v0 }
  0x9d   : > { %3719 = vmatpush2.bf16.msra.mxu1 %v7415_v53  ;;  %v498_v51 = vld [vmem:[%s8450_s14 + $0x28] sm:$0xff] }
  0x9e   : > { %3770 = vmatprep.subr.bf16.mxu1 %v7154_v56  ;;  %3680 = vmatmul.mubr.bf16.vlgmr.msra.gmra.mxu0 %v8638_v59  ;;  %v622_v52 = vld [vmem:[%s8450_s14 + $0x408] sm:$0xff]  ;;  %v7105_v56 = vcombine.low %v630_v42, %v634_v43  ;;  %v6970_v57 = vcombine.high %v494_v50, %v498_v51 }
  0x9f   : > { %3730 = vmatpush1.bf16.msra.mxu0 %v7025_v63  ;;  %3761 = vmatprep.mubr.bf16.mxu0 %v8501_v12  ;;  %v626_v53 = vld [vmem:[%s8450_s14 + $0x428] sm:$0xff] }
  0xa0   : > { %3721 = vmatmul.mubr.bf16.vlgmr.msra.gmra.mxu1 %v8644_v62  ;;  %3731 = vmatprep.subr.bf16.mxu0 %v7018_v2  ;;  %v7098_v58 = vcombine.high %v622_v52, %v626_v53  ;;  %v614_v60 = vld [vmem:[%s8450_s14 + $0x3c8] sm:$0xff]  ;;  %v6969_v2 = vcombine.low %v494_v50, %v498_v51 }
  0xa1   : > { %3771 = vmatpush1.bf16.msra.mxu1 %v7153_v1  ;;  %3802 = vmatprep.mubr.bf16.mxu1 %v8508_v17  ;;  %v618_v61 = vld [vmem:[%s8450_s14 + $0x3e8] sm:$0xff] }
  0xa2   : > { %3772 = vmatprep.subr.bf16.mxu1 %v7146_v3  ;;  %v742_v63 = vld [vmem:[%s8450_s14 + $0x7c8] sm:$0xff]  ;;  %v7097_v3 = vcombine.low %v622_v52, %v626_v53  ;;  %v7090_v4 = vcombine.high %v614_v60, %v618_v61 }
  0xa3   : > { %3732 = vmatpush1.bf16.msra.mxu0 %v7017_v26  ;;  %v746_v1 = vld [vmem:[%s8450_s14 + $0x7e8] sm:$0xff] }
  0xa4   : > { %3733 = vmatprep.subr.bf16.mxu0 %v7010_v9  ;;  %v7218_v23 = vcombine.high %v742_v63, %v746_v1  ;;  %v606_v5 = vld [vmem:[%s8450_s14 + $0x388] sm:$0xff]  ;;  %v7089_v9 = vcombine.low %v614_v60, %v618_v61 }
  0xa5   : > { %3773 = vmatpush1.bf16.msra.mxu1 %v7145_v8  ;;  %v610_v7 = vld [vmem:[%s8450_s14 + $0x3a8] sm:$0xff] }
  0xa6   : > { %3774 = vmatprep.subr.bf16.mxu1 %v7138_v10  ;;  %v734_v26 = vld [vmem:[%s8450_s14 + $0x788] sm:$0xff]  ;;  %v7217_v10 = vcombine.low %v742_v63, %v746_v1  ;;  %v7082_v11 = vcombine.high %v606_v5, %v610_v7 }
  0xa7   : > { %3734 = vmatpush1.bf16.msra.mxu0 %v7009_v16  ;;  %v738_v8 = vld [vmem:[%s8450_s14 + $0x7a8] sm:$0xff] }
  0xa8   : > { %3735 = vmatprep.subr.bf16.mxu0 %v7002_v19  ;;  %v7210_v13 = vcombine.high %v734_v26, %v738_v8  ;;  %v598_v14 = vld [vmem:[%s8450_s14 + $0x348] sm:$0xff]  ;;  %v7081_v19 = vcombine.low %v606_v5, %v610_v7 }
  0xa9   : > { %3775 = vmatpush1.bf16.msra.mxu1 %v7137_v18  ;;  %v602_v15 = vld [vmem:[%s8450_s14 + $0x368] sm:$0xff] }
  0xaa   : > { %3776 = vmatprep.subr.bf16.mxu1 %v7130_v20  ;;  %v726_v16 = vld [vmem:[%s8450_s14 + $0x748] sm:$0xff]  ;;  %v7209_v20 = vcombine.low %v734_v26, %v738_v8  ;;  %v7074_v21 = vcombine.high %v598_v14, %v602_v15 }
  0xab   : > { %3736 = vmatpush1.bf16.msra.mxu0 %v7001_v27  ;;  %v730_v18 = vld [vmem:[%s8450_s14 + $0x768] sm:$0xff] }
  0xac   : > { %3737 = vmatprep.subr.bf16.mxu0 %v6994_v29  ;;  %v7202_v22 = vcombine.high %v726_v16, %v730_v18  ;;  %v590_v24 = vld [vmem:[%s8450_s14 + $0x308] sm:$0xff]  ;;  %v7073_v29 = vcombine.low %v598_v14, %v602_v15 }
  0xad   : > { %3777 = vmatpush1.bf16.msra.mxu1 %v7129_v28  ;;  %v594_v25 = vld [vmem:[%s8450_s14 + $0x328] sm:$0xff] }
  0xae   : > { %3778 = vmatprep.subr.bf16.mxu1 %v7122_v30  ;;  %v718_v27 = vld [vmem:[%s8450_s14 + $0x708] sm:$0xff]  ;;  %v7201_v30 = vcombine.low %v726_v16, %v730_v18  ;;  %v7066_v31 = vcombine.high %v590_v24, %v594_v25 }
  0xaf   : > { %3738 = vmatpush1.bf16.msra.mxu0 %v6993_v36  ;;  %v722_v28 = vld [vmem:[%s8450_s14 + $0x728] sm:$0xff] }
  0xb0   : > { %3739 = vmatprep.subr.bf16.mxu0 %v6986_v39  ;;  %v7194_v32 = vcombine.high %v718_v27, %v722_v28  ;;  %v582_v33 = vld [vmem:[%s8450_s14 + $0x2c8] sm:$0xff]  ;;  %v7065_v39 = vcombine.low %v590_v24, %v594_v25 }
  0xb1   : > { %3779 = vmatpush1.bf16.msra.mxu1 %v7121_v37  ;;  %v586_v35 = vld [vmem:[%s8450_s14 + $0x2e8] sm:$0xff] }
  0xb2   : > { %3780 = vmatprep.subr.bf16.mxu1 %v7114_v40  ;;  %v710_v36 = vld [vmem:[%s8450_s14 + $0x6c8] sm:$0xff]  ;;  %v7193_v40 = vcombine.low %v718_v27, %v722_v28  ;;  %v7058_v41 = vcombine.high %v582_v33, %v586_v35 }
  0xb3   : > { %3740 = vmatpush1.bf16.msra.mxu0 %v6985_v46  ;;  %v714_v37 = vld [vmem:[%s8450_s14 + $0x6e8] sm:$0xff] }
  0xb4   : > { %3741 = vmatprep.subr.bf16.mxu0 %v6978_v48  ;;  %v7186_v0 = vcombine.high %v710_v36, %v714_v37  ;;  %v574_v42 = vld [vmem:[%s8450_s14 + $0x288] sm:$0xff]  ;;  %v7057_v48 = vcombine.low %v582_v33, %v586_v35 }
  0xb5   : > { %3781 = vmatpush1.bf16.msra.mxu1 %v7113_v6  ;;  %v578_v43 = vld [vmem:[%s8450_s14 + $0x2a8] sm:$0xff] }
  0xb6   : > { %3782 = vmatprep.subr.bf16.mxu1 %v7106_v49  ;;  %v702_v46 = vld [vmem:[%s8450_s14 + $0x688] sm:$0xff]  ;;  %v7185_v49 = vcombine.low %v710_v36, %v714_v37  ;;  %v7050_v50 = vcombine.high %v574_v42, %v578_v43 }
  0xb7   : > { %3742 = vmatpush1.bf16.msra.mxu0 %v6977_v55  ;;  %v706_v6 = vld [vmem:[%s8450_s14 + $0x6a8] sm:$0xff] }
  0xb8   : > { %3743 = vmatprep.subr.bf16.mxu0 %v6970_v57  ;;  %v7178_v51 = vcombine.high %v702_v46, %v706_v6  ;;  %v566_v52 = vld [vmem:[%s8450_s14 + $0x248] sm:$0xff]  ;;  %v7049_v57 = vcombine.low %v574_v42, %v578_v43 }
  0xb9   : > { %3783 = vmatpush1.bf16.msra.mxu1 %v7105_v56  ;;  %v570_v53 = vld [vmem:[%s8450_s14 + $0x268] sm:$0xff] }
  0xba   : > { %3784 = vmatprep.subr.bf16.mxu1 %v7098_v58  ;;  %v694_v55 = vld [vmem:[%s8450_s14 + $0x648] sm:$0xff]  ;;  %v7177_v58 = vcombine.low %v702_v46, %v706_v6  ;;  %v7042_v60 = vcombine.high %v566_v52, %v570_v53 }
  0xbb   : > { %3744 = vmatpush1.bf16.msra.mxu0 %v6969_v2  ;;  %v698_v56 = vld [vmem:[%s8450_s14 + $0x668] sm:$0xff] }
  0xbc   : > { %3745 = vmatprep.subr.bf16.mxu0 %v7090_v4  ;;  %v7170_v61 = vcombine.high %v694_v55, %v698_v56  ;;  %v558_v63 = vld [vmem:[%s8450_s14 + $0x208] sm:$0xff]  ;;  %v7041_v4 = vcombine.low %v566_v52, %v570_v53 }
  0xbd   : > { %3785 = vmatpush1.bf16.msra.mxu1 %v7097_v3  ;;  %v562_v1 = vld [vmem:[%s8450_s14 + $0x228] sm:$0xff] }
  0xbe   : > { %3786 = vmatprep.subr.bf16.mxu1 %v7218_v23  ;;  %v686_v2 = vld [vmem:[%s8450_s14 + $0x608] sm:$0xff]  ;;  %v7169_v23 = vcombine.low %v694_v55, %v698_v56  ;;  %v7034_v5 = vcombine.high %v558_v63, %v562_v1 }
  0xbf   : > { %3746 = vmatpush2.bf16.msra.mxu0 %v7089_v9  ;;  %v690_v3 = vld [vmem:[%s8450_s14 + $0x628] sm:$0xff] }
  0xc0   : > { %3747 = vmatprep.subr.bf16.mxu0 %v7082_v11  ;;  %v7162_v7 = vcombine.high %v686_v2, %v690_v3  ;;  %v806_v26 = vld [vmem:[%s8450_s14 + $0x9c8] sm:$0xff]  ;;  %v7033_v11 = vcombine.low %v558_v63, %v562_v1 }
  0xc1   : > { %3787 = vmatpush2.bf16.msra.mxu1 %v7217_v10  ;;  %v810_v8 = vld [vmem:[%s8450_s14 + $0x9e8] sm:$0xff] }
  0xc2   : > { %3788 = vmatprep.subr.bf16.mxu1 %v7210_v13  ;;  %v934_v9 = vld [vmem:[%s8450_s14 + $0xdc8] sm:$0xff]  ;;  %v7161_v13 = vcombine.low %v686_v2, %v690_v3  ;;  %v7282_v14 = vcombine.high %v806_v26, %v810_v8 }
  0xc3   : > { %3748 = vmatpush2.bf16.msra.mxu0 %v7081_v19  ;;  %v938_v10 = vld [vmem:[%s8450_s14 + $0xde8] sm:$0xff] }
  0xc4   : > { %3749 = vmatprep.subr.bf16.mxu0 %v7074_v21  ;;  %v7410_v15 = vcombine.high %v934_v9, %v938_v10  ;;  %v798_v16 = vld [vmem:[%s8450_s14 + $0x988] sm:$0xff]  ;;  %v7281_v21 = vcombine.low %v806_v26, %v810_v8 }
  0xc5   : > { %3789 = vmatpush2.bf16.msra.mxu1 %v7209_v20  ;;  %v802_v18 = vld [vmem:[%s8450_s14 + $0x9a8] sm:$0xff] }
  0xc6   : > { %3790 = vmatprep.subr.bf16.mxu1 %v7202_v22  ;;  %v926_v19 = vld [vmem:[%s8450_s14 + $0xd88] sm:$0xff]  ;;  %v7409_v22 = vcombine.low %v934_v9, %v938_v10  ;;  %v7274_v24 = vcombine.high %v798_v16, %v802_v18 }
  0xc7   : > { %3750 = vmatpush2.bf16.msra.mxu0 %v7073_v29  ;;  %v930_v20 = vld [vmem:[%s8450_s14 + $0xda8] sm:$0xff] }
  0xc8   : > { %3751 = vmatprep.subr.bf16.mxu0 %v7066_v31  ;;  %v7402_v25 = vcombine.high %v926_v19, %v930_v20  ;;  %v790_v27 = vld [vmem:[%s8450_s14 + $0x948] sm:$0xff]  ;;  %v7273_v31 = vcombine.low %v798_v16, %v802_v18 }
  0xc9   : > { %3791 = vmatpush2.bf16.msra.mxu1 %v7201_v30  ;;  %v794_v28 = vld [vmem:[%s8450_s14 + $0x968] sm:$0xff] }
  0xca   : > { %3792 = vmatprep.subr.bf16.mxu1 %v7194_v32  ;;  %v918_v29 = vld [vmem:[%s8450_s14 + $0xd48] sm:$0xff]  ;;  %v7401_v32 = vcombine.low %v926_v19, %v930_v20  ;;  %v7266_v33 = vcombine.high %v790_v27, %v794_v28 }
  0xcb   : > { %3752 = vmatpush2.bf16.msra.mxu0 %v7065_v39  ;;  %v922_v30 = vld [vmem:[%s8450_s14 + $0xd68] sm:$0xff] }
  0xcc   : > { %3753 = vmatprep.subr.bf16.mxu0 %v7058_v41  ;;  %v7394_v35 = vcombine.high %v918_v29, %v922_v30  ;;  %v782_v36 = vld [vmem:[%s8450_s14 + $0x908] sm:$0xff]  ;;  %v7265_v41 = vcombine.low %v790_v27, %v794_v28 }
  0xcd   : > { %3793 = vmatpush2.bf16.msra.mxu1 %v7193_v40  ;;  %v786_v37 = vld [vmem:[%s8450_s14 + $0x928] sm:$0xff] }
  0xce   : > { %3794 = vmatprep.subr.bf16.mxu1 %v7186_v0  ;;  %v910_v39 = vld [vmem:[%s8450_s14 + $0xd08] sm:$0xff]  ;;  %v7393_v0 = vcombine.low %v918_v29, %v922_v30  ;;  %v7258_v42 = vcombine.high %v782_v36, %v786_v37 }
  0xcf   : > { %3754 = vmatpush2.bf16.msra.mxu0 %v7057_v48  ;;  %v914_v40 = vld [vmem:[%s8450_s14 + $0xd28] sm:$0xff] }
  0xd0   : > { %3755 = vmatprep.subr.bf16.mxu0 %v7050_v50  ;;  %v7386_v43 = vcombine.high %v910_v39, %v914_v40  ;;  %v774_v46 = vld [vmem:[%s8450_s14 + $0x8c8] sm:$0xff]  ;;  %v7257_v50 = vcombine.low %v782_v36, %v786_v37 }
  0xd1   : > { %3795 = vmatpush2.bf16.msra.mxu1 %v7185_v49  ;;  %v778_v6 = vld [vmem:[%s8450_s14 + $0x8e8] sm:$0xff] }
  0xd2   : > { %3796 = vmatprep.subr.bf16.mxu1 %v7178_v51  ;;  %v902_v48 = vld [vmem:[%s8450_s14 + $0xcc8] sm:$0xff]  ;;  %v7385_v51 = vcombine.low %v910_v39, %v914_v40  ;;  %v7250_v52 = vcombine.high %v774_v46, %v778_v6 }
  0xd3   : > { %3756 = vmatpush2.bf16.msra.mxu0 %v7049_v57  ;;  %v906_v49 = vld [vmem:[%s8450_s14 + $0xce8] sm:$0xff] }
  0xd4   : > { %3757 = vmatprep.subr.bf16.mxu0 %v7042_v60  ;;  %v7378_v53 = vcombine.high %v902_v48, %v906_v49  ;;  %v766_v55 = vld [vmem:[%s8450_s14 + $0x888] sm:$0xff]  ;;  %v7249_v60 = vcombine.low %v774_v46, %v778_v6 }
  0xd5   : > { %3797 = vmatpush2.bf16.msra.mxu1 %v7177_v58  ;;  %v770_v56 = vld [vmem:[%s8450_s14 + $0x8a8] sm:$0xff] }
  0xd6   : > { %3798 = vmatprep.subr.bf16.mxu1 %v7170_v61  ;;  %v894_v57 = vld [vmem:[%s8450_s14 + $0xc88] sm:$0xff]  ;;  %v7377_v61 = vcombine.low %v902_v48, %v906_v49  ;;  %v7242_v63 = vcombine.high %v766_v55, %v770_v56 }
  0xd7   : > { %3758 = vmatpush2.bf16.msra.mxu0 %v7041_v4  ;;  %v898_v58 = vld [vmem:[%s8450_s14 + $0xca8] sm:$0xff] }
  0xd8   : > { %3759 = vmatprep.subr.bf16.mxu0 %v7034_v5  ;;  %v7370_v1 = vcombine.high %v894_v57, %v898_v58  ;;  %v758_v2 = vld [vmem:[%s8450_s14 + $0x848] sm:$0xff]  ;;  %v7241_v5 = vcombine.low %v766_v55, %v770_v56 }
  0xd9   : > { %3799 = vmatpush2.bf16.msra.mxu1 %v7169_v23  ;;  %v762_v3 = vld [vmem:[%s8450_s14 + $0x868] sm:$0xff] }
  0xda   : > { %3800 = vmatprep.subr.bf16.mxu1 %v7162_v7  ;;  %v886_v4 = vld [vmem:[%s8450_s14 + $0xc48] sm:$0xff]  ;;  %v7369_v7 = vcombine.low %v894_v57, %v898_v58  ;;  %v7234_v26 = vcombine.high %v758_v2, %v762_v3 }
  0xdb   : > { %3760 = vmatpush2.bf16.msra.mxu0 %v7033_v11  ;;  %v890_v23 = vld [vmem:[%s8450_s14 + $0xc68] sm:$0xff] }
  0xdc   : > { %3811 = vmatprep.subr.bf16.mxu0 %v7282_v14  ;;  %v7362_v8 = vcombine.high %v886_v4, %v890_v23  ;;  %v750_v9 = vld [vmem:[%s8450_s14 + $0x808] sm:$0xff]  ;;  %v7233_v14 = vcombine.low %v758_v2, %v762_v3 }
  0xdd   : > { %3801 = vmatpush2.bf16.msra.mxu1 %v7161_v13  ;;  %v754_v10 = vld [vmem:[%s8450_s14 + $0x828] sm:$0xff] }
  0xde   : > { %3852 = vmatprep.subr.bf16.mxu1 %v7410_v15  ;;  %3762 = vmatmul.mubr.bf16.vlgmr.msra.gmra.mxu0 %v8556_v34  ;;  %v878_v11 = vld [vmem:[%s8450_s14 + $0xc08] sm:$0xff]  ;;  %v7361_v15 = vcombine.low %v886_v4, %v890_v23  ;;  %v7226_v16 = vcombine.high %v750_v9, %v754_v10 }
  0xdf   : > { %3812 = vmatpush1.bf16.msra.mxu0 %v7281_v21  ;;  %3843 = vmatprep.mubr.bf16.mxu0 %v8568_v44  ;;  %v882_v13 = vld [vmem:[%s8450_s14 + $0xc28] sm:$0xff] }
  0xe0   : > { %3803 = vmatmul.mubr.bf16.vlgmr.msra.gmra.mxu1 %v8564_v38  ;;  %3813 = vmatprep.subr.bf16.mxu0 %v7274_v24  ;;  %v7354_v18 = vcombine.high %v878_v11, %v882_v13  ;;  %v870_v19 = vld [vmem:[%s8450_s14 + $0xbc8] sm:$0xff]  ;;  %v7225_v24 = vcombine.low %v750_v9, %v754_v10 }
  0xe1   : > { %3853 = vmatpush1.bf16.msra.mxu1 %v7409_v22  ;;  %3884 = vmatprep.mubr.bf16.mxu1 %v8573_v47  ;;  %v874_v20 = vld [vmem:[%s8450_s14 + $0xbe8] sm:$0xff] }
  0xe2   : > { %3854 = vmatprep.subr.bf16.mxu1 %v7402_v25  ;;  %v998_v21 = vld [vmem:[%s8450_s14 + $0xfc8] sm:$0xff]  ;;  %v7353_v25 = vcombine.low %v878_v11, %v882_v13  ;;  %v7346_v27 = vcombine.high %v870_v19, %v874_v20 }
  0xe3   : > { %3814 = vmatpush1.bf16.msra.mxu0 %v7273_v31  ;;  %v1002_v22 = vld [vmem:[%s8450_s14 + $0xfe8] sm:$0xff] }
  0xe4   : > { %3815 = vmatprep.subr.bf16.mxu0 %v7266_v33  ;;  %v7474_v28 = vcombine.high %v998_v21, %v1002_v22  ;;  %v862_v29 = vld [vmem:[%s8450_s14 + $0xb88] sm:$0xff]  ;;  %v7345_v33 = vcombine.low %v870_v19, %v874_v20 }
  0xe5   : > { %3855 = vmatpush1.bf16.msra.mxu1 %v7401_v32  ;;  %v866_v30 = vld [vmem:[%s8450_s14 + $0xba8] sm:$0xff] }
  0xe6   : > { %3856 = vmatprep.subr.bf16.mxu1 %v7394_v35  ;;  %v990_v31 = vld [vmem:[%s8450_s14 + $0xf88] sm:$0xff]  ;;  %v7473_v35 = vcombine.low %v998_v21, %v1002_v22  ;;  %v7338_v36 = vcombine.high %v862_v29, %v866_v30 }
  0xe7   : > { %3816 = vmatpush1.bf16.msra.mxu0 %v7265_v41  ;;  %v994_v32 = vld [vmem:[%s8450_s14 + $0xfa8] sm:$0xff] }
  0xe8   : > { %3817 = vmatprep.subr.bf16.mxu0 %v7258_v42  ;;  %v7466_v37 = vcombine.high %v990_v31, %v994_v32  ;;  %v854_v39 = vld [vmem:[%s8450_s14 + $0xb48] sm:$0xff]  ;;  %v7337_v42 = vcombine.low %v862_v29, %v866_v30 }
  0xe9   : > { %3857 = vmatpush1.bf16.msra.mxu1 %v7393_v0  ;;  %v858_v40 = vld [vmem:[%s8450_s14 + $0xb68] sm:$0xff] }
  0xea   : > { %3858 = vmatprep.subr.bf16.mxu1 %v7386_v43  ;;  %v982_v41 = vld [vmem:[%s8450_s14 + $0xf48] sm:$0xff]  ;;  %v7465_v43 = vcombine.low %v990_v31, %v994_v32  ;;  %v7330_v46 = vcombine.high %v854_v39, %v858_v40  ;;  %v551_v31 = vld [vmem:[%s8450_s14 + $0x1d0] sm:$0xff] }
  0xeb   : > { %3818 = vmatpush1.bf16.msra.mxu0 %v7257_v50  ;;  %v986_v0 = vld [vmem:[%s8450_s14 + $0xf68] sm:$0xff]  ;;  %v555_v32 = vld [vmem:[%s8450_s14 + $0x1f0] sm:$0xff] }
  0xec   : > { %3819 = vmatprep.subr.bf16.mxu0 %v7250_v52  ;;  %v7458_v6 = vcombine.high %v982_v41, %v986_v0  ;;  %v846_v48 = vld [vmem:[%s8450_s14 + $0xb08] sm:$0xff]  ;;  %v7329_v52 = vcombine.low %v854_v39, %v858_v40  ;;  %v7028_v39 = vcombine.high %v551_v31, %v555_v32 }
  0xed   : > { %3859 = vmatpush1.bf16.msra.mxu1 %v7385_v51  ;;  %v850_v49 = vld [vmem:[%s8450_s14 + $0xb28] sm:$0xff] }
  0xee   : > { %3860 = vmatprep.subr.bf16.mxu1 %v7378_v53  ;;  %v974_v50 = vld [vmem:[%s8450_s14 + $0xf08] sm:$0xff]  ;;  %v7457_v53 = vcombine.low %v982_v41, %v986_v0  ;;  %v7322_v55 = vcombine.high %v846_v48, %v850_v49  ;;  %v543_v41 = vld [vmem:[%s8450_s14 + $0x190] sm:$0xff] }
  0xef   : > { %3820 = vmatpush1.bf16.msra.mxu0 %v7249_v60  ;;  %v978_v51 = vld [vmem:[%s8450_s14 + $0xf28] sm:$0xff]  ;;  %v547_v0 = vld [vmem:[%s8450_s14 + $0x1b0] sm:$0xff] }
  0xf0   : > { %3821 = vmatprep.subr.bf16.mxu0 %v7242_v63  ;;  %v7450_v56 = vcombine.high %v974_v50, %v978_v51  ;;  %v838_v57 = vld [vmem:[%s8450_s14 + $0xac8] sm:$0xff]  ;;  %v7321_v63 = vcombine.low %v846_v48, %v850_v49  ;;  %v7020_v48 = vcombine.high %v543_v41, %v547_v0 }
  0xf1   : > { %3861 = vmatpush1.bf16.msra.mxu1 %v7377_v61  ;;  %v842_v58 = vld [vmem:[%s8450_s14 + $0xae8] sm:$0xff] }
  0xf2   : > { %3862 = vmatprep.subr.bf16.mxu1 %v7370_v1  ;;  %v966_v60 = vld [vmem:[%s8450_s14 + $0xec8] sm:$0xff]  ;;  %v7449_v1 = vcombine.low %v974_v50, %v978_v51  ;;  %v7314_v2 = vcombine.high %v838_v57, %v842_v58  ;;  %v535_v50 = vld [vmem:[%s8450_s14 + $0x150] sm:$0xff] }
  0xf3   : > { %3822 = vmatpush1.bf16.msra.mxu0 %v7241_v5  ;;  %v970_v61 = vld [vmem:[%s8450_s14 + $0xee8] sm:$0xff]  ;;  %v539_v51 = vld [vmem:[%s8450_s14 + $0x170] sm:$0xff] }
  0xf4   : > { %3823 = vmatprep.subr.bf16.mxu0 %v7234_v26  ;;  %v7442_v3 = vcombine.high %v966_v60, %v970_v61  ;;  %v830_v4 = vld [vmem:[%s8450_s14 + $0xa88] sm:$0xff]  ;;  %v7313_v26 = vcombine.low %v838_v57, %v842_v58  ;;  %v7019_v57 = vcombine.low %v543_v41, %v547_v0 }
  0xf5   : > { %3863 = vmatpush1.bf16.msra.mxu1 %v7369_v7  ;;  %v834_v23 = vld [vmem:[%s8450_s14 + $0xaa8] sm:$0xff] }
  0xf6   : > { %3864 = vmatprep.subr.bf16.mxu1 %v7362_v8  ;;  %v958_v5 = vld [vmem:[%s8450_s14 + $0xe88] sm:$0xff]  ;;  %v7441_v8 = vcombine.low %v966_v60, %v970_v61  ;;  %v7306_v9 = vcombine.high %v830_v4, %v834_v23 }
  0xf7   : > { %3824 = vmatpush1.bf16.msra.mxu0 %v7233_v14  ;;  %v962_v7 = vld [vmem:[%s8450_s14 + $0xea8] sm:$0xff] }
  0xf8   : > { %3825 = vmatprep.subr.bf16.mxu0 %v7226_v16  ;;  %v7434_v10 = vcombine.high %v958_v5, %v962_v7  ;;  %v822_v11 = vld [vmem:[%s8450_s14 + $0xa48] sm:$0xff]  ;;  %v7305_v16 = vcombine.low %v830_v4, %v834_v23  ;;  %v531_v4 = vld [vmem:[%s8450_s14 + $0x130] sm:$0xff] }
  0xf9   : > { %3865 = vmatpush1.bf16.msra.mxu1 %v7361_v15  ;;  %v826_v13 = vld [vmem:[%s8450_s14 + $0xa68] sm:$0xff] }
  0xfa   : > { %3866 = vmatprep.subr.bf16.mxu1 %v7354_v18  ;;  %v950_v14 = vld [vmem:[%s8450_s14 + $0xe48] sm:$0xff]  ;;  %v7433_v18 = vcombine.low %v958_v5, %v962_v7  ;;  %v7298_v19 = vcombine.high %v822_v11, %v826_v13  ;;  %v655_v7 = vld [vmem:[%s8450_s14 + $0x510] sm:$0xff] }
  0xfb   : > { %3826 = vmatpush1.bf16.msra.mxu0 %v7225_v24  ;;  %v954_v15 = vld [vmem:[%s8450_s14 + $0xe68] sm:$0xff] }
  0xfc   : > { %3827 = vmatprep.subr.bf16.mxu0 %v7346_v27  ;;  %v7426_v20 = vcombine.high %v950_v14, %v954_v15  ;;  %v814_v21 = vld [vmem:[%s8450_s14 + $0xa08] sm:$0xff]  ;;  %v7297_v27 = vcombine.low %v822_v11, %v826_v13 }
  0xfd   : > { %3867 = vmatpush1.bf16.msra.mxu1 %v7353_v25  ;;  %v818_v22 = vld [vmem:[%s8450_s14 + $0xa28] sm:$0xff] }
  0xfe   : > { %3868 = vmatprep.subr.bf16.mxu1 %v7474_v28  ;;  %v942_v24 = vld [vmem:[%s8450_s14 + $0xe08] sm:$0xff]  ;;  %v7425_v28 = vcombine.low %v950_v14, %v954_v15  ;;  %v7290_v29 = vcombine.high %v814_v21, %v818_v22 }
  0xff   : > { %3828 = vmatpush2.bf16.msra.mxu0 %v7345_v33  ;;  %v946_v25 = vld [vmem:[%s8450_s14 + $0xe28] sm:$0xff]  ;;  %v679_v33 = vld [vmem:[%s8450_s14 + $0x5d0] sm:$0xff] }
 0x100   : > { %3829 = vmatprep.subr.bf16.mxu0 %v7338_v36  ;;  %v7418_v30 = vcombine.high %v942_v24, %v946_v25  ;;  %v7289_v36 = vcombine.low %v814_v21, %v818_v22 }
 0x101   : > { %3869 = vmatpush2.bf16.msra.mxu1 %v7473_v35  ;;  %v683_v35 = vld [vmem:[%s8450_s14 + $0x5f0] sm:$0xff] }
 0x102   : > { %3870 = vmatprep.subr.bf16.mxu1 %v7466_v37  ;;  %v7417_v37 = vcombine.low %v942_v24, %v946_v25  ;;  %v7156_v40 = vcombine.high %v679_v33, %v683_v35 }
 0x103   : > { %3830 = vmatpush2.bf16.msra.mxu0 %v7337_v42  ;;  %v671_v42 = vld [vmem:[%s8450_s14 + $0x590] sm:$0xff] }
 0x104   : > { %3831 = vmatprep.subr.bf16.mxu0 %v7330_v46  ;;  %v7027_v46 = vcombine.low %v551_v31, %v555_v32 }
 0x105   : > { %3871 = vmatpush2.bf16.msra.mxu1 %v7465_v43  ;;  %v675_v43 = vld [vmem:[%s8450_s14 + $0x5b0] sm:$0xff] }
 0x106   : > { %3872 = vmatprep.subr.bf16.mxu1 %v7458_v6  ;;  %v7155_v6 = vcombine.low %v679_v33, %v683_v35  ;;  %v7148_v49 = vcombine.high %v671_v42, %v675_v43  ;;  %v7147_v61 = vcombine.low %v671_v42, %v675_v43 }
 0x107   : > { %3832 = vmatpush2.bf16.msra.mxu0 %v7329_v52 }
 0x108   : > { %3833 = vmatprep.subr.bf16.mxu0 %v7322_v55  ;;  %v667_v55 = vld [vmem:[%s8450_s14 + $0x570] sm:$0xff] }
 0x109   : > { %3873 = vmatpush2.bf16.msra.mxu1 %v7457_v53  ;;  %v663_v53 = vld [vmem:[%s8450_s14 + $0x550] sm:$0xff] }
 0x10a   : > { %3874 = vmatprep.subr.bf16.mxu1 %v7450_v56  ;;  %v7139_v11 = vcombine.low %v663_v53, %v667_v55 }
 0x10b   : > { %3834 = vmatpush2.bf16.msra.mxu0 %v7321_v63  ;;  %v7012_v63 = vcombine.high %v535_v50, %v539_v51 }
 0x10c   : > { %3835 = vmatprep.subr.bf16.mxu0 %v7314_v2  ;;  %v7140_v2 = vcombine.high %v663_v53, %v667_v55  ;;  %v615_v55 = vld [vmem:[%s8450_s14 + $0x3d0] sm:$0xff] }
 0x10d   : > { %3875 = vmatpush2.bf16.msra.mxu1 %v7449_v1 }
 0x10e   : > { %3876 = vmatprep.subr.bf16.mxu1 %v7442_v3  ;;  %v527_v3 = vld [vmem:[%s8450_s14 + $0x110] sm:$0xff] }
 0x10f   : > { %3836 = vmatpush2.bf16.msra.mxu0 %v7313_v26  ;;  %v659_v26 = vld [vmem:[%s8450_s14 + $0x530] sm:$0xff]  ;;  %v7004_v13 = vcombine.high %v527_v3, %v531_v4  ;;  %v7003_v21 = vcombine.low %v527_v3, %v531_v4 }
 0x110   : > { %3837 = vmatprep.subr.bf16.mxu0 %v7306_v9  ;;  %v7011_v9 = vcombine.low %v535_v50, %v539_v51  ;;  %v7132_v15 = vcombine.high %v655_v7, %v659_v26  ;;  %v7131_v22 = vcombine.low %v655_v7, %v659_v26  ;;  %v607_v3 = vld [vmem:[%s8450_s14 + $0x390] sm:$0xff] }
 0x111   : > { %3877 = vmatpush2.bf16.msra.mxu1 %v7441_v8  ;;  %v611_v4 = vld [vmem:[%s8450_s14 + $0x3b0] sm:$0xff] }
 0x112   : > { %3878 = vmatprep.subr.bf16.mxu1 %v7434_v10  ;;  %v739_v7 = vld [vmem:[%s8450_s14 + $0x7b0] sm:$0xff] }
 0x113   : > { %3838 = vmatpush2.bf16.msra.mxu0 %v7305_v16  ;;  %v519_v16 = vld [vmem:[%s8450_s14 + $0xd0] sm:$0xff] }
 0x114   : > { %3839 = vmatprep.subr.bf16.mxu0 %v7298_v19  ;;  %v647_v19 = vld [vmem:[%s8450_s14 + $0x4d0] sm:$0xff] }
 0x115   : > { %3879 = vmatpush2.bf16.msra.mxu1 %v7433_v18  ;;  %v523_v18 = vld [vmem:[%s8450_s14 + $0xf0] sm:$0xff] }
 0x116   : > { %3880 = vmatprep.subr.bf16.mxu1 %v7426_v20  ;;  %v651_v20 = vld [vmem:[%s8450_s14 + $0x4f0] sm:$0xff]  ;;  %v6996_v24 = vcombine.high %v519_v16, %v523_v18  ;;  %v6995_v31 = vcombine.low %v519_v16, %v523_v18  ;;  %v7083_v16 = vcombine.low %v607_v3, %v611_v4 }
 0x117   : > { %3840 = vmatpush2.bf16.msra.mxu0 %v7297_v27  ;;  %v7124_v25 = vcombine.high %v647_v19, %v651_v20  ;;  %v511_v27 = vld [vmem:[%s8450_s14 + $0x90] sm:$0xff]  ;;  %v7123_v32 = vcombine.low %v647_v19, %v651_v20 }
 0x118   : > { %3841 = vmatprep.subr.bf16.mxu0 %v7290_v29  ;;  %v639_v29 = vld [vmem:[%s8450_s14 + $0x490] sm:$0xff] }
 0x119   : > { %3881 = vmatpush2.bf16.msra.mxu1 %v7425_v28  ;;  %v515_v28 = vld [vmem:[%s8450_s14 + $0xb0] sm:$0xff] }
 0x11a   : > { %3882 = vmatprep.subr.bf16.mxu1 %v7418_v30  ;;  %v643_v30 = vld [vmem:[%s8450_s14 + $0x4b0] sm:$0xff]  ;;  %v6988_v33 = vcombine.high %v511_v27, %v515_v28  ;;  %v6987_v41 = vcombine.low %v511_v27, %v515_v28 }
 0x11b   : > { %3842 = vmatpush2.bf16.msra.mxu0 %v7289_v36  ;;  %v7116_v35 = vcombine.high %v639_v29, %v643_v30  ;;  %v503_v36 = vld [vmem:[%s8450_s14 + $0x50] sm:$0xff]  ;;  %v7115_v0 = vcombine.low %v639_v29, %v643_v30 }
 0x11c   : > { %3893 = vmatprep.subr.bf16.mxu0 %v7028_v39  ;;  %v631_v39 = vld [vmem:[%s8450_s14 + $0x450] sm:$0xff] }
 0x11d   : > { %3883 = vmatpush2.bf16.msra.mxu1 %v7417_v37  ;;  %v507_v37 = vld [vmem:[%s8450_s14 + $0x70] sm:$0xff] }
 0x11e   : > { %3934 = vmatprep.subr.bf16.mxu1 %v7156_v40  ;;  %v3599_v52 = vpop.f32.mrf.mxu0  ;;  %3844 = vmatmul.mubr.bf16.vlgmr.msra.gmra.mxu0 %v8638_v59  ;;  %v635_v40 = vld [vmem:[%s8450_s14 + $0x470] sm:$0xff]  ;;  %v6980_v42 = vcombine.high %v503_v36, %v507_v37  ;;  %v6979_v50 = vcombine.low %v503_v36, %v507_v37 }
 0x11f   : > { %3894 = vmatpush1.bf16.msra.mxu0 %v7027_v46  ;;  %3925 = vmatprep.mubr.bf16.mxu0 %v8501_v12  ;;  %v7108_v43 = vcombine.high %v631_v39, %v635_v40  ;;  %v495_v46 = vld [vmem:[%s8450_s14 + $0x10] sm:$0xff]  ;;  %v7107_v51 = vcombine.low %v631_v39, %v635_v40 }
 0x120   : > { %v3640_v56 = vpop.f32.mrf.mxu1  ;;  %3885 = vmatmul.mubr.bf16.vlgmr.msra.gmra.mxu1 %v8644_v62  ;;  %v3601_v60 = vpop.f32.mrf.mxu0  ;;  %3895 = vmatprep.subr.bf16.mxu0 %v7020_v48  ;;  %v623_v48 = vld [vmem:[%s8450_s14 + $0x410] sm:$0xff] }
 0x121   : > { %v8788_v58 = vadd.f32 %v3640_v56, %v3599_v52  ;;  %3935 = vmatpush1.bf16.msra.mxu1 %v7155_v6  ;;  %3966 = vmatprep.mubr.bf16.mxu1 %v8508_v17  ;;  %v499_v6 = vld [vmem:[%s8450_s14 + $0x30] sm:$0xff] }
 0x122   : > { %v3642_v1 = vpop.f32.mrf.mxu1  ;;  %3936 = vmatprep.subr.bf16.mxu1 %v7148_v49  ;;  %v3603_v5 = vpop.f32.mrf.mxu0  ;;  %v627_v49 = vld [vmem:[%s8450_s14 + $0x430] sm:$0xff]  ;;  %v6972_v52 = vcombine.high %v495_v46, %v499_v6 }
 0x123   : > { %v8793_v23 = vadd.f32 %v3642_v1, %v3601_v60  ;;  %3896 = vmatpush1.bf16.msra.mxu0 %v7019_v57  ;;  %v7100_v53 = vcombine.high %v623_v48, %v627_v49  ;;  %v619_v56 = vld [vmem:[%s8450_s14 + $0x3f0] sm:$0xff] }
 0x124   : > { %v3644_v8 = vpop.f32.mrf.mxu1  ;;  %v3604_v10 = vpop.f32.mrf.mxu0  ;;  %3897 = vmatprep.subr.bf16.mxu0 %v7012_v63  ;;  %v743_v57 = vld [vmem:[%s8450_s14 + $0x7d0] sm:$0xff]  ;;  %v7099_v63 = vcombine.low %v623_v48, %v627_v49  ;;  %v7092_v1 = vcombine.high %v615_v55, %v619_v56  ;;  %v7091_v26 = vcombine.low %v615_v55, %v619_v56 }
 0x125   : > { %3937 = vmatpush1.bf16.msra.mxu1 %v7147_v61  ;;  %v747_v60 = vld [vmem:[%s8450_s14 + $0x7f0] sm:$0xff]  ;;  %v6971_v61 = vcombine.low %v495_v46, %v499_v6 }
 0x126   : > { %v3645_v14 = vpop.f32.mrf.mxu1  ;;  %3938 = vmatprep.subr.bf16.mxu1 %v7140_v2  ;;  %v7220_v2 = vcombine.high %v743_v57, %v747_v60  ;;  %v735_v5 = vld [vmem:[%s8450_s14 + $0x790] sm:$0xff]  ;;  %v7219_v8 = vcombine.low %v743_v57, %v747_v60 }
 0x127   : > { %3898 = vmatpush1.bf16.msra.mxu0 %v7011_v9  ;;  %v7084_v9 = vcombine.high %v607_v3, %v611_v4  ;;  %v7212_v10 = vcombine.high %v735_v5, %v739_v7  ;;  %v727_v14 = vld [vmem:[%s8450_s14 + $0x750] sm:$0xff]  ;;  %v7211_v18 = vcombine.low %v735_v5, %v739_v7 }
 0x128   : > { %3899 = vmatprep.subr.bf16.mxu0 %v7004_v13  ;;  %v603_v13 = vld [vmem:[%s8450_s14 + $0x370] sm:$0xff] }
 0x129   : > { %3939 = vmatpush1.bf16.msra.mxu1 %v7139_v11  ;;  %v599_v11 = vld [vmem:[%s8450_s14 + $0x350] sm:$0xff] }
 0x12a   : > { %3940 = vmatprep.subr.bf16.mxu1 %v7132_v15  ;;  %v731_v15 = vld [vmem:[%s8450_s14 + $0x770] sm:$0xff]  ;;  %v7076_v19 = vcombine.high %v599_v11, %v603_v13  ;;  %v7075_v27 = vcombine.low %v599_v11, %v603_v13 }
 0x12b   : > { %3900 = vmatpush1.bf16.msra.mxu0 %v7003_v21  ;;  %v7204_v20 = vcombine.high %v727_v14, %v731_v15  ;;  %v591_v21 = vld [vmem:[%s8450_s14 + $0x310] sm:$0xff]  ;;  %v7203_v28 = vcombine.low %v727_v14, %v731_v15 }
 0x12c   : > { %3901 = vmatprep.subr.bf16.mxu0 %v6996_v24  ;;  %v719_v24 = vld [vmem:[%s8450_s14 + $0x710] sm:$0xff] }
 0x12d   : > { %3941 = vmatpush1.bf16.msra.mxu1 %v7131_v22  ;;  %v595_v22 = vld [vmem:[%s8450_s14 + $0x330] sm:$0xff] }
 0x12e   : > { %3942 = vmatprep.subr.bf16.mxu1 %v7124_v25  ;;  %v723_v25 = vld [vmem:[%s8450_s14 + $0x730] sm:$0xff]  ;;  %v7068_v29 = vcombine.high %v591_v21, %v595_v22  ;;  %v7067_v36 = vcombine.low %v591_v21, %v595_v22 }
 0x12f   : > { %3902 = vmatpush1.bf16.msra.mxu0 %v6995_v31  ;;  %v7196_v30 = vcombine.high %v719_v24, %v723_v25  ;;  %v583_v31 = vld [vmem:[%s8450_s14 + $0x2d0] sm:$0xff]  ;;  %v7195_v37 = vcombine.low %v719_v24, %v723_v25 }
 0x130   : > { %3903 = vmatprep.subr.bf16.mxu0 %v6988_v33  ;;  %v711_v33 = vld [vmem:[%s8450_s14 + $0x6d0] sm:$0xff] }
 0x131   : > { %3943 = vmatpush1.bf16.msra.mxu1 %v7123_v32  ;;  %v587_v32 = vld [vmem:[%s8450_s14 + $0x2f0] sm:$0xff] }
 0x132   : > { %3944 = vmatprep.subr.bf16.mxu1 %v7116_v35  ;;  %v715_v35 = vld [vmem:[%s8450_s14 + $0x6f0] sm:$0xff]  ;;  %v7060_v39 = vcombine.high %v583_v31, %v587_v32  ;;  %v7059_v46 = vcombine.low %v583_v31, %v587_v32 }
 0x133   : > { %3904 = vmatpush1.bf16.msra.mxu0 %v6987_v41  ;;  %v7188_v40 = vcombine.high %v711_v33, %v715_v35  ;;  %v575_v41 = vld [vmem:[%s8450_s14 + $0x290] sm:$0xff]  ;;  %v7187_v6 = vcombine.low %v711_v33, %v715_v35 }
 0x134   : > { %3905 = vmatprep.subr.bf16.mxu0 %v6980_v42  ;;  %v703_v42 = vld [vmem:[%s8450_s14 + $0x690] sm:$0xff] }
 0x135   : > { %3945 = vmatpush1.bf16.msra.mxu1 %v7115_v0  ;;  %v579_v0 = vld [vmem:[%s8450_s14 + $0x2b0] sm:$0xff] }
 0x136   : > { %3946 = vmatprep.subr.bf16.mxu1 %v7108_v43  ;;  %v707_v43 = vld [vmem:[%s8450_s14 + $0x6b0] sm:$0xff]  ;;  %v7052_v48 = vcombine.high %v575_v41, %v579_v0  ;;  %v7051_v55 = vcombine.low %v575_v41, %v579_v0 }
 0x137   : > { %3906 = vmatpush1.bf16.msra.mxu0 %v6979_v50  ;;  %v7180_v49 = vcombine.high %v703_v42, %v707_v43  ;;  %v567_v50 = vld [vmem:[%s8450_s14 + $0x250] sm:$0xff]  ;;  %v7179_v56 = vcombine.low %v703_v42, %v707_v43 }
 0x138   : > { %3907 = vmatprep.subr.bf16.mxu0 %v6972_v52  ;;  %v695_v52 = vld [vmem:[%s8450_s14 + $0x650] sm:$0xff] }
 0x139   : > { %3947 = vmatpush1.bf16.msra.mxu1 %v7107_v51  ;;  %v571_v51 = vld [vmem:[%s8450_s14 + $0x270] sm:$0xff] }
 0x13a   : > { %3948 = vmatprep.subr.bf16.mxu1 %v7100_v53  ;;  %v699_v53 = vld [vmem:[%s8450_s14 + $0x670] sm:$0xff]  ;;  %v7044_v57 = vcombine.high %v567_v50, %v571_v51  ;;  %v7043_v3 = vcombine.low %v567_v50, %v571_v51 }
 0x13b   : > { %3908 = vmatpush1.bf16.msra.mxu0 %v6971_v61  ;;  %v7172_v60 = vcombine.high %v695_v52, %v699_v53  ;;  %v559_v61 = vld [vmem:[%s8450_s14 + $0x210] sm:$0xff]  ;;  %v7171_v4 = vcombine.low %v695_v52, %v699_v53 }
 0x13c   : > { %3909 = vmatprep.subr.bf16.mxu0 %v7092_v1  ;;  %v687_v1 = vld [vmem:[%s8450_s14 + $0x610] sm:$0xff] }
 0x13d   : > { %3949 = vmatpush1.bf16.msra.mxu1 %v7099_v63  ;;  %v563_v63 = vld [vmem:[%s8450_s14 + $0x230] sm:$0xff] }
 0x13e   : > { %3950 = vmatprep.subr.bf16.mxu1 %v7220_v2  ;;  %v691_v2 = vld [vmem:[%s8450_s14 + $0x630] sm:$0xff]  ;;  %v7036_v5 = vcombine.high %v559_v61, %v563_v63  ;;  %v7035_v11 = vcombine.low %v559_v61, %v563_v63 }
 0x13f   : > { %3910 = vmatpush2.bf16.msra.mxu0 %v7091_v26  ;;  %v7164_v7 = vcombine.high %v687_v1, %v691_v2  ;;  %v807_v26 = vld [vmem:[%s8450_s14 + $0x9d0] sm:$0xff]  ;;  %v7163_v13 = vcombine.low %v687_v1, %v691_v2 }
 0x140   : > { %3911 = vmatprep.subr.bf16.mxu0 %v7084_v9  ;;  %v935_v9 = vld [vmem:[%s8450_s14 + $0xdd0] sm:$0xff] }
 0x141   : > { %3951 = vmatpush2.bf16.msra.mxu1 %v7219_v8  ;;  %v811_v8 = vld [vmem:[%s8450_s14 + $0x9f0] sm:$0xff] }
 0x142   : > { %3952 = vmatprep.subr.bf16.mxu1 %v7212_v10  ;;  %v939_v10 = vld [vmem:[%s8450_s14 + $0xdf0] sm:$0xff]  ;;  %v7284_v14 = vcombine.high %v807_v26, %v811_v8  ;;  %v7283_v21 = vcombine.low %v807_v26, %v811_v8 }
 0x143   : > { %3912 = vmatpush2.bf16.msra.mxu0 %v7083_v16  ;;  %v7412_v15 = vcombine.high %v935_v9, %v939_v10  ;;  %v799_v16 = vld [vmem:[%s8450_s14 + $0x990] sm:$0xff]  ;;  %v7411_v22 = vcombine.low %v935_v9, %v939_v10 }
 0x144   : > { %3913 = vmatprep.subr.bf16.mxu0 %v7076_v19  ;;  %v927_v19 = vld [vmem:[%s8450_s14 + $0xd90] sm:$0xff] }
 0x145   : > { %3953 = vmatpush2.bf16.msra.mxu1 %v7211_v18  ;;  %v803_v18 = vld [vmem:[%s8450_s14 + $0x9b0] sm:$0xff] }
 0x146   : > { %3954 = vmatprep.subr.bf16.mxu1 %v7204_v20  ;;  %v931_v20 = vld [vmem:[%s8450_s14 + $0xdb0] sm:$0xff]  ;;  %v7276_v24 = vcombine.high %v799_v16, %v803_v18  ;;  %v7275_v35 = vcombine.low %v799_v16, %v803_v18 }
 0x147   : > { %3914 = vmatpush2.bf16.msra.mxu0 %v7075_v27  ;;  %v7404_v25 = vcombine.high %v927_v19, %v931_v20  ;;  %v791_v27 = vld [vmem:[%s8450_s14 + $0x950] sm:$0xff] }
 0x148   : > { %3915 = vmatprep.subr.bf16.mxu0 %v7068_v29  ;;  %v923_v31 = vld [vmem:[%s8450_s14 + $0xd70] sm:$0xff] }
 0x149   : > { %3955 = vmatpush2.bf16.msra.mxu1 %v7203_v28  ;;  %v795_v28 = vld [vmem:[%s8450_s14 + $0x970] sm:$0xff] }
 0x14a   : > { %3956 = vmatprep.subr.bf16.mxu1 %v7196_v30  ;;  %v919_v30 = vld [vmem:[%s8450_s14 + $0xd50] sm:$0xff] }
 0x14b   : > { %3916 = vmatpush2.bf16.msra.mxu0 %v7067_v36  ;;  %v783_v42 = vld [vmem:[%s8450_s14 + $0x910] sm:$0xff]  ;;  %v7395_v52 = vcombine.low %v919_v30, %v923_v31 }
 0x14c   : > { %3917 = vmatprep.subr.bf16.mxu0 %v7060_v39  ;;  %v7268_v39 = vcombine.high %v791_v27, %v795_v28  ;;  %v787_v43 = vld [vmem:[%s8450_s14 + $0x930] sm:$0xff] }
 0x14d   : > { %3957 = vmatpush2.bf16.msra.mxu1 %v7195_v37  ;;  %v7403_v37 = vcombine.low %v927_v19, %v931_v20  ;;  %v7260_v53 = vcombine.high %v783_v42, %v787_v43  ;;  %v779_v61 = vld [vmem:[%s8450_s14 + $0x8f0] sm:$0xff]  ;;  %v7259_v2 = vcombine.low %v783_v42, %v787_v43 }
 0x14e   : > { %3958 = vmatprep.subr.bf16.mxu1 %v7188_v40  ;;  %v903_v63 = vld [vmem:[%s8450_s14 + $0xcd0] sm:$0xff] }
 0x14f   : > { %3918 = vmatpush2.bf16.msra.mxu0 %v7059_v46  ;;  %v907_v1 = vld [vmem:[%s8450_s14 + $0xcf0] sm:$0xff] }
 0x150   : > { %3919 = vmatprep.subr.bf16.mxu0 %v7052_v48  ;;  %v915_v48 = vld [vmem:[%s8450_s14 + $0xd30] sm:$0xff] }
 0x151   : > { %3959 = vmatpush2.bf16.msra.mxu1 %v7187_v6  ;;  %v911_v6 = vld [vmem:[%s8450_s14 + $0xd10] sm:$0xff] }
 0x152   : > { %3960 = vmatprep.subr.bf16.mxu1 %v7180_v49  ;;  %v771_v26 = vld [vmem:[%s8450_s14 + $0x8b0] sm:$0xff] }
 0x153   : > { %3920 = vmatpush2.bf16.msra.mxu0 %v7051_v55  ;;  %v895_v8 = vld [vmem:[%s8450_s14 + $0xc90] sm:$0xff] }
 0x154   : > { %3921 = vmatprep.subr.bf16.mxu0 %v7044_v57  ;;  %v7388_v57 = vcombine.high %v911_v6, %v915_v48  ;;  %v899_v9 = vld [vmem:[%s8450_s14 + $0xcb0] sm:$0xff] }
 0x155   : > { %3961 = vmatpush2.bf16.msra.mxu1 %v7179_v56  ;;  %v763_v16 = vld [vmem:[%s8450_s14 + $0x870] sm:$0xff] }
 0x156   : > { %3962 = vmatprep.subr.bf16.mxu1 %v7172_v60  ;;  %v775_v60 = vld [vmem:[%s8450_s14 + $0x8d0] sm:$0xff] }
 0x157   : > { %3922 = vmatpush2.bf16.msra.mxu0 %v7043_v3  ;;  %v7387_v3 = vcombine.low %v911_v6, %v915_v48  ;;  %v7251_v10 = vcombine.low %v775_v60, %v779_v61  ;;  %v887_v18 = vld [vmem:[%s8450_s14 + $0xc50] sm:$0xff] }
 0x158   : > { %3923 = vmatprep.subr.bf16.mxu0 %v7036_v5  ;;  %v7380_v5 = vcombine.high %v903_v63, %v907_v1  ;;  %v891_v19 = vld [vmem:[%s8450_s14 + $0xc70] sm:$0xff] }
 0x159   : > { %3963 = vmatpush2.bf16.msra.mxu1 %v7171_v4  ;;  %v7252_v4 = vcombine.high %v775_v60, %v779_v61  ;;  %v863_v43 = vld [vmem:[%s8450_s14 + $0xb90] sm:$0xff] }
 0x15a   : > { %3964 = vmatprep.subr.bf16.mxu1 %v7164_v7  ;;  %v767_v7 = vld [vmem:[%s8450_s14 + $0x890] sm:$0xff] }
 0x15b   : > { %3924 = vmatpush2.bf16.msra.mxu0 %v7035_v11  ;;  %v7379_v11 = vcombine.low %v903_v63, %v907_v1  ;;  %v7243_v20 = vcombine.low %v767_v7, %v771_v26  ;;  %v991_v6 = vld [vmem:[%s8450_s14 + $0xf90] sm:$0xff] }
 0x15c   : > { %3975 = vmatprep.subr.bf16.mxu0 %v7284_v14  ;;  %v7372_v14 = vcombine.high %v895_v8, %v899_v9  ;;  %v995_v48 = vld [vmem:[%s8450_s14 + $0xfb0] sm:$0xff] }
 0x15d   : > { %3965 = vmatpush2.bf16.msra.mxu1 %v7163_v13  ;;  %v7244_v13 = vcombine.high %v767_v7, %v771_v26  ;;  %v987_v60 = vld [vmem:[%s8450_s14 + $0xf70] sm:$0xff]  ;;  %v7467_v63 = vcombine.low %v991_v6, %v995_v48 }
 0x15e   : > { %4016 = vmatprep.subr.bf16.mxu1 %v7412_v15  ;;  %v3681_v29 = vpop.f32.mrf.mxu0  ;;  %3926 = vmatmul.mubr.bf16.vlgmr.msra.gmra.mxu0 %v8556_v34  ;;  %v759_v15 = vld [vmem:[%s8450_s14 + $0x850] sm:$0xff] }
 0x15f   : > { %v3682_v32 = vadd.f32 %v3681_v29, %v8788_v58  ;;  %3976 = vmatpush1.bf16.msra.mxu0 %v7283_v21  ;;  %v7396_v58 = vcombine.high %v919_v30, %v923_v31  ;;  %4007 = vmatprep.mubr.bf16.mxu0 %v8568_v44  ;;  %v7371_v21 = vcombine.low %v895_v8, %v899_v9  ;;  %v883_v29 = vld [vmem:[%s8450_s14 + $0xc30] sm:$0xff] }
 0x160   : > { %v3722_v33 = vpop.f32.mrf.mxu1  ;;  %3967 = vmatmul.mubr.bf16.vlgmr.msra.gmra.mxu1 %v8564_v38  ;;  %v3683_v36 = vpop.f32.mrf.mxu0  ;;  %3977 = vmatprep.subr.bf16.mxu0 %v7276_v24  ;;  %v7364_v24 = vcombine.high %v887_v18, %v891_v19  ;;  %v7235_v30 = vcombine.low %v759_v15, %v763_v16  ;;  %v7363_v31 = vcombine.low %v887_v18, %v891_v19  ;;  %v979_v7 = vld [vmem:[%s8450_s14 + $0xf30] sm:$0xff] }
 0x161   : > { %4017 = vmatpush1.bf16.msra.mxu1 %v7411_v22  ;;  %v8861_v40 = vadd.f32 %v3722_v33, %v3682_v32  ;;  %v3684_v41 = vadd.f32 %v3683_v36, %v8793_v23  ;;  %4048 = vmatprep.mubr.bf16.mxu1 %v8573_v47  ;;  %v7267_v23 = vcombine.low %v791_v27, %v795_v28  ;;  %v755_v27 = vld [vmem:[%s8450_s14 + $0x830] sm:$0xff] }
 0x162   : > { %v3724_v0 = vpop.f32.mrf.mxu1  ;;  %4018 = vmatprep.subr.bf16.mxu1 %v7404_v25  ;;  %v3685_v46 = vpop.f32.mrf.mxu0  ;;  %v7236_v22 = vcombine.high %v759_v15, %v763_v16  ;;  %v751_v25 = vld [vmem:[%s8450_s14 + $0x810] sm:$0xff] }
 0x163   : > { %v8870_v49 = vadd.f32 %v3724_v0, %v3684_v41  ;;  %3978 = vmatpush1.bf16.msra.mxu0 %v7275_v35  ;;  %v879_v28 = vld [vmem:[%s8450_s14 + $0xc10] sm:$0xff]  ;;  %v7228_v32 = vcombine.high %v751_v25, %v755_v27  ;;  %v7227_v41 = vcombine.low %v751_v25, %v755_v27 }
 0x164   : > { %v3726_v50 = vpop.f32.mrf.mxu1  ;;  %v3686_v51 = vpop.f32.mrf.mxu0  ;;  %3979 = vmatprep.subr.bf16.mxu0 %v7268_v39  ;;  %v7356_v33 = vcombine.high %v879_v28, %v883_v29  ;;  %v871_v35 = vld [vmem:[%s8450_s14 + $0xbd0] sm:$0xff]  ;;  %v7355_v0 = vcombine.low %v879_v28, %v883_v29 }
 0x165   : > { %4019 = vmatpush1.bf16.msra.mxu1 %v7403_v37  ;;  %v4229_v55 = vcombine.low %v8861_v40, %v8870_v49  ;;  %v875_v36 = vld [vmem:[%s8450_s14 + $0xbf0] sm:$0xff]  ;;  %v896_v40 = vld [vmem:[%s8450_s14 + $0xc98] sm:$0xff] }
 0x166   : > { %v3727_v56 = vpop.f32.mrf.mxu1  ;;  %4020 = vmatprep.subr.bf16.mxu1 %v7396_v58  ;;  %v999_v37 = vld [vmem:[%s8450_s14 + $0xfd0] sm:$0xff]  ;;  %v7348_v58 = vcombine.high %v871_v35, %v875_v36  ;;  %v7347_v50 = vcombine.low %v871_v35, %v875_v36  ;;  %v900_v49 = vld [vmem:[%s8450_s14 + $0xcb8] sm:$0xff] }
 0x167   : > { %3980 = vmatpush1.bf16.msra.mxu0 %v7267_v23  ;;  %v1003_v39 = vld [vmem:[%s8450_s14 + $0xff0] sm:$0xff] }
 0x168   : > { %3981 = vmatprep.subr.bf16.mxu0 %v7260_v53  ;;  %v7476_v42 = vcombine.high %v999_v37, %v1003_v39  ;;  %v867_v46 = vld [vmem:[%s8450_s14 + $0xbb0] sm:$0xff]  ;;  %v7475_v23 = vcombine.low %v999_v37, %v1003_v39 }
 0x169   : > { %4021 = vmatpush1.bf16.msra.mxu1 %v7395_v52  ;;  %v7340_v51 = vcombine.high %v863_v43, %v867_v46  ;;  %v7468_v52 = vcombine.high %v991_v6, %v995_v48  ;;  %v855_v53 = vld [vmem:[%s8450_s14 + $0xb50] sm:$0xff]  ;;  %v7339_v61 = vcombine.low %v863_v43, %v867_v46 }
 0x16a   : > { %4022 = vmatprep.subr.bf16.mxu1 %v7388_v57  ;;  %v859_v56 = vld [vmem:[%s8450_s14 + $0xb70] sm:$0xff] }
 0x16b   : > { %3982 = vmatpush1.bf16.msra.mxu0 %v7259_v2  ;;  %v983_v57 = vld [vmem:[%s8450_s14 + $0xf50] sm:$0xff]  ;;  %v7332_v1 = vcombine.high %v855_v53, %v859_v56  ;;  %v7331_v26 = vcombine.low %v855_v53, %v859_v56  ;;  %v684_v53 = vld [vmem:[%s8450_s14 + $0x5f8] sm:$0xff] }
 0x16c   : > { %3983 = vmatprep.subr.bf16.mxu0 %v7252_v4  ;;  %v7460_v2 = vcombine.high %v983_v57, %v987_v60  ;;  %v851_v4 = vld [vmem:[%s8450_s14 + $0xb30] sm:$0xff]  ;;  %v7459_v8 = vcombine.low %v983_v57, %v987_v60 }
 0x16d   : > { %4023 = vmatpush1.bf16.msra.mxu1 %v7387_v3  ;;  %v847_v3 = vld [vmem:[%s8450_s14 + $0xb10] sm:$0xff] }
 0x16e   : > { %4024 = vmatprep.subr.bf16.mxu1 %v7380_v5  ;;  %v975_v5 = vld [vmem:[%s8450_s14 + $0xf10] sm:$0xff]  ;;  %v7324_v9 = vcombine.high %v847_v3, %v851_v4  ;;  %v7323_v16 = vcombine.low %v847_v3, %v851_v4  ;;  %v676_v3 = vld [vmem:[%s8450_s14 + $0x5b8] sm:$0xff] }
 0x16f   : > { %3984 = vmatpush1.bf16.msra.mxu0 %v7251_v10  ;;  %v7452_v10 = vcombine.high %v975_v5, %v979_v7  ;;  %v971_v15 = vld [vmem:[%s8450_s14 + $0xef0] sm:$0xff]  ;;  %v7451_v18 = vcombine.low %v975_v5, %v979_v7 }
 0x170   : > { %3985 = vmatprep.subr.bf16.mxu0 %v7244_v13  ;;  %v843_v13 = vld [vmem:[%s8450_s14 + $0xaf0] sm:$0xff] }
 0x171   : > { %4025 = vmatpush1.bf16.msra.mxu1 %v7379_v11  ;;  %v839_v11 = vld [vmem:[%s8450_s14 + $0xad0] sm:$0xff] }
 0x172   : > { %4026 = vmatprep.subr.bf16.mxu1 %v7372_v14  ;;  %v967_v14 = vld [vmem:[%s8450_s14 + $0xed0] sm:$0xff]  ;;  %v7316_v19 = vcombine.high %v839_v11, %v843_v13  ;;  %v7315_v27 = vcombine.low %v839_v11, %v843_v13  ;;  %v664_v11 = vld [vmem:[%s8450_s14 + $0x558] sm:$0xff] }
 0x173   : > { %3986 = vmatpush1.bf16.msra.mxu0 %v7243_v20  ;;  %v7444_v20 = vcombine.high %v967_v14, %v971_v15  ;;  %v963_v25 = vld [vmem:[%s8450_s14 + $0xeb0] sm:$0xff]  ;;  %v7443_v28 = vcombine.low %v967_v14, %v971_v15  ;;  %v668_v13 = vld [vmem:[%s8450_s14 + $0x578] sm:$0xff] }
 0x174   : > { %3987 = vmatprep.subr.bf16.mxu0 %v7236_v22  ;;  %v835_v22 = vld [vmem:[%s8450_s14 + $0xab0] sm:$0xff] }
 0x175   : > { %4027 = vmatpush1.bf16.msra.mxu1 %v7371_v21  ;;  %v831_v21 = vld [vmem:[%s8450_s14 + $0xa90] sm:$0xff] }
 0x176   : > { %4028 = vmatprep.subr.bf16.mxu1 %v7364_v24  ;;  %v959_v24 = vld [vmem:[%s8450_s14 + $0xe90] sm:$0xff]  ;;  %v7308_v29 = vcombine.high %v831_v21, %v835_v22  ;;  %v7307_v36 = vcombine.low %v831_v21, %v835_v22  ;;  %v7142_v21 = vcombine.high %v664_v11, %v668_v13  ;;  %v528_v22 = vld [vmem:[%s8450_s14 + $0x118] sm:$0xff] }
 0x177   : > { %3988 = vmatpush1.bf16.msra.mxu0 %v7235_v30  ;;  %v7436_v30 = vcombine.high %v959_v24, %v963_v25  ;;  %v955_v35 = vld [vmem:[%s8450_s14 + $0xe70] sm:$0xff]  ;;  %v7435_v37 = vcombine.low %v959_v24, %v963_v25  ;;  %v532_v24 = vld [vmem:[%s8450_s14 + $0x138] sm:$0xff] }
 0x178   : > { %3989 = vmatprep.subr.bf16.mxu0 %v7228_v32  ;;  %v827_v32 = vld [vmem:[%s8450_s14 + $0xa70] sm:$0xff] }
 0x179   : > { %4029 = vmatpush1.bf16.msra.mxu1 %v7363_v31  ;;  %v823_v31 = vld [vmem:[%s8450_s14 + $0xa50] sm:$0xff] }
 0x17a   : > { %4030 = vmatprep.subr.bf16.mxu1 %v7356_v33  ;;  %v951_v33 = vld [vmem:[%s8450_s14 + $0xe50] sm:$0xff]  ;;  %v7300_v39 = vcombine.high %v823_v31, %v827_v32  ;;  %v7299_v46 = vcombine.low %v823_v31, %v827_v32  ;;  %v7141_v32 = vcombine.low %v664_v11, %v668_v13  ;;  %v616_v13 = vld [vmem:[%s8450_s14 + $0x3d8] sm:$0xff] }
 0x17b   : > { %3990 = vmatpush1.bf16.msra.mxu0 %v7227_v41  ;;  %v7428_v41 = vcombine.high %v951_v33, %v955_v35  ;;  %v947_v43 = vld [vmem:[%s8450_s14 + $0xe30] sm:$0xff]  ;;  %v7427_v6 = vcombine.low %v951_v33, %v955_v35  ;;  %v7006_v33 = vcombine.high %v528_v22, %v532_v24 }
 0x17c   : > { %3991 = vmatprep.subr.bf16.mxu0 %v7348_v58  ;;  %v819_v58 = vld [vmem:[%s8450_s14 + $0xa30] sm:$0xff] }
 0x17d   : > { %4031 = vmatpush1.bf16.msra.mxu1 %v7355_v0  ;;  %v815_v0 = vld [vmem:[%s8450_s14 + $0xa10] sm:$0xff] }
 0x17e   : > { %4032 = vmatprep.subr.bf16.mxu1 %v7476_v42  ;;  %v943_v42 = vld [vmem:[%s8450_s14 + $0xe10] sm:$0xff]  ;;  %v7292_v48 = vcombine.high %v815_v0, %v819_v58  ;;  %v7291_v56 = vcombine.low %v815_v0, %v819_v58 }
 0x17f   : > { %3992 = vmatpush2.bf16.msra.mxu0 %v7347_v50  ;;  %v7420_v50 = vcombine.high %v943_v42, %v947_v43  ;;  %v7419_v57 = vcombine.low %v943_v42, %v947_v43  ;;  %v512_v43 = vld [vmem:[%s8450_s14 + $0x98] sm:$0xff] }
 0x180   : > { %3993 = vmatprep.subr.bf16.mxu0 %v7340_v51  ;;  %v556_v51 = vld [vmem:[%s8450_s14 + $0x1f8] sm:$0xff] }
 0x181   : > { %4033 = vmatpush2.bf16.msra.mxu1 %v7475_v23  ;;  %v552_v23 = vld [vmem:[%s8450_s14 + $0x1d8] sm:$0xff] }
 0x182   : > { %4034 = vmatprep.subr.bf16.mxu1 %v7468_v52  ;;  %v680_v52 = vld [vmem:[%s8450_s14 + $0x5d8] sm:$0xff]  ;;  %v7030_v60 = vcombine.high %v552_v23, %v556_v51  ;;  %v7029_v4 = vcombine.low %v552_v23, %v556_v51 }
 0x183   : > { %3994 = vmatpush2.bf16.msra.mxu0 %v7339_v61  ;;  %v7158_v61 = vcombine.high %v680_v52, %v684_v53  ;;  %v7157_v5 = vcombine.low %v680_v52, %v684_v53  ;;  %v504_v53 = vld [vmem:[%s8450_s14 + $0x58] sm:$0xff] }
 0x184   : > { %3995 = vmatprep.subr.bf16.mxu0 %v7332_v1  ;;  %v548_v1 = vld [vmem:[%s8450_s14 + $0x1b8] sm:$0xff] }
 0x185   : > { %4035 = vmatpush2.bf16.msra.mxu1 %v7467_v63  ;;  %v544_v63 = vld [vmem:[%s8450_s14 + $0x198] sm:$0xff] }
 0x186   : > { %4036 = vmatprep.subr.bf16.mxu1 %v7460_v2  ;;  %v672_v2 = vld [vmem:[%s8450_s14 + $0x598] sm:$0xff]  ;;  %v7022_v7 = vcombine.high %v544_v63, %v548_v1  ;;  %v7021_v15 = vcombine.low %v544_v63, %v548_v1 }
 0x187   : > { %3996 = vmatpush2.bf16.msra.mxu0 %v7331_v26  ;;  %v7150_v26 = vcombine.high %v672_v2, %v676_v3 }
 0x188   : > { %3997 = vmatprep.subr.bf16.mxu0 %v7324_v9  ;;  %v540_v9 = vld [vmem:[%s8450_s14 + $0x178] sm:$0xff] }
 0x189   : > { %4037 = vmatpush2.bf16.msra.mxu1 %v7459_v8  ;;  %v536_v8 = vld [vmem:[%s8450_s14 + $0x158] sm:$0xff] }
 0x18a   : > { %4038 = vmatprep.subr.bf16.mxu1 %v7452_v10 }
 0x18b   : > { %3998 = vmatpush2.bf16.msra.mxu0 %v7323_v16 }
 0x18c   : > { %3999 = vmatprep.subr.bf16.mxu0 %v7316_v19  ;;  %v7014_v19 = vcombine.high %v536_v8, %v540_v9 }
 0x18d   : > { %4039 = vmatpush2.bf16.msra.mxu1 %v7451_v18  ;;  %v7149_v18 = vcombine.low %v672_v2, %v676_v3  ;;  %v496_v3 = vld [vmem:[%s8450_s14 + $0x18] sm:$0xff] }
 0x18e   : > { %4040 = vmatprep.subr.bf16.mxu1 %v7444_v20 }
 0x18f   : > { %4000 = vmatpush2.bf16.msra.mxu0 %v7315_v27  ;;  %v656_v27 = vld [vmem:[%s8450_s14 + $0x518] sm:$0xff] }
 0x190   : > { %4001 = vmatprep.subr.bf16.mxu0 %v7308_v29 }
 0x191   : > { %4041 = vmatpush2.bf16.msra.mxu1 %v7443_v28  ;;  %v660_v28 = vld [vmem:[%s8450_s14 + $0x538] sm:$0xff] }
 0x192   : > { %4042 = vmatprep.subr.bf16.mxu1 %v7436_v30  ;;  %v7013_v30 = vcombine.low %v536_v8, %v540_v9  ;;  %v7133_v0 = vcombine.low %v656_v27, %v660_v28 }
 0x193   : > { %4002 = vmatpush2.bf16.msra.mxu0 %v7307_v36  ;;  %v520_v36 = vld [vmem:[%s8450_s14 + $0xd8] sm:$0xff] }
 0x194   : > { %4003 = vmatprep.subr.bf16.mxu0 %v7300_v39  ;;  %v648_v39 = vld [vmem:[%s8450_s14 + $0x4d8] sm:$0xff] }
 0x195   : > { %4043 = vmatpush2.bf16.msra.mxu1 %v7435_v37  ;;  %v524_v37 = vld [vmem:[%s8450_s14 + $0xf8] sm:$0xff] }
 0x196   : > { %4044 = vmatprep.subr.bf16.mxu1 %v7428_v41  ;;  %v652_v41 = vld [vmem:[%s8450_s14 + $0x4f8] sm:$0xff]  ;;  %v6998_v58 = vcombine.high %v520_v36, %v524_v37 }
 0x197   : > { %4004 = vmatpush2.bf16.msra.mxu0 %v7299_v46  ;;  %v7126_v42 = vcombine.high %v648_v39, %v652_v41  ;;  %v516_v46 = vld [vmem:[%s8450_s14 + $0xb8] sm:$0xff]  ;;  %v7125_v23 = vcombine.low %v648_v39, %v652_v41 }
 0x198   : > { %4005 = vmatprep.subr.bf16.mxu0 %v7292_v48  ;;  %v644_v48 = vld [vmem:[%s8450_s14 + $0x4b8] sm:$0xff]  ;;  %v6990_v51 = vcombine.high %v512_v43, %v516_v46 }
 0x199   : > { %4045 = vmatpush2.bf16.msra.mxu1 %v7427_v6  ;;  %v640_v6 = vld [vmem:[%s8450_s14 + $0x498] sm:$0xff] }
 0x19a   : > { %4046 = vmatprep.subr.bf16.mxu1 %v7420_v50  ;;  %v6997_v50 = vcombine.low %v520_v36, %v524_v37  ;;  %v7118_v52 = vcombine.high %v640_v6, %v644_v48  ;;  %v7117_v63 = vcombine.low %v640_v6, %v644_v48  ;;  %v604_v36 = vld [vmem:[%s8450_s14 + $0x378] sm:$0xff] }
 0x19b   : > { %4006 = vmatpush2.bf16.msra.mxu0 %v7291_v56  ;;  %v508_v56 = vld [vmem:[%s8450_s14 + $0x78] sm:$0xff] }
 0x19c   : > { %4057 = vmatprep.subr.bf16.mxu0 %v7030_v60  ;;  %v636_v60 = vld [vmem:[%s8450_s14 + $0x478] sm:$0xff]  ;;  %v6982_v1 = vcombine.high %v504_v53, %v508_v56 }
 0x19d   : > { %4047 = vmatpush2.bf16.msra.mxu1 %v7419_v57  ;;  %v632_v57 = vld [vmem:[%s8450_s14 + $0x458] sm:$0xff] }
 0x19e   : > { %4098 = vmatprep.subr.bf16.mxu1 %v7158_v61  ;;  %v8932_v10 = vpop.f32.mrf.mxu0  ;;  %4008 = vmatmul.mubr.bf16.vlgmr.msra.gmra.mxu0 %v8638_v59  ;;  %v6989_v61 = vcombine.low %v512_v43, %v516_v46  ;;  %v7110_v2 = vcombine.high %v632_v57, %v636_v60  ;;  %v7109_v8 = vcombine.low %v632_v57, %v636_v60  ;;  %v728_v37 = vld [vmem:[%s8450_s14 + $0x758] sm:$0xff] }
 0x19f   : > { %4058 = vmatpush1.bf16.msra.mxu0 %v7029_v4  ;;  %4089 = vmatprep.mubr.bf16.mxu0 %v8501_v12  ;;  %v7134_v12 = vcombine.high %v656_v27, %v660_v28  ;;  %v500_v4 = vld [vmem:[%s8450_s14 + $0x38] sm:$0xff] }
 0x1a0   : > { %v8937_v14 = vpop.f32.mrf.mxu1  ;;  %4049 = vmatmul.mubr.bf16.vlgmr.msra.gmra.mxu1 %v8644_v62  ;;  %v8940_v16 = vpop.f32.mrf.mxu0  ;;  %4059 = vmatprep.subr.bf16.mxu0 %v7022_v7  ;;  %v628_v7 = vld [vmem:[%s8450_s14 + $0x438] sm:$0xff]  ;;  %v6974_v9 = vcombine.high %v496_v3, %v500_v4 }
 0x1a1   : > { %4099 = vmatpush1.bf16.msra.mxu1 %v7157_v5  ;;  %4130 = vmatprep.mubr.bf16.mxu1 %v8508_v17  ;;  %v7005_v17 = vcombine.low %v528_v22, %v532_v24  ;;  %v624_v5 = vld [vmem:[%s8450_s14 + $0x418] sm:$0xff] }
 0x1a2   : > { %v8942_v20 = vpop.f32.mrf.mxu1  ;;  %4100 = vmatprep.subr.bf16.mxu1 %v7150_v26  ;;  %v3767_v25 = vpop.f32.mrf.mxu0  ;;  %v6981_v26 = vcombine.low %v504_v53, %v508_v56  ;;  %v7102_v11 = vcombine.high %v624_v5, %v628_v7  ;;  %v7101_v22 = vcombine.low %v624_v5, %v628_v7  ;;  %v608_v27 = vld [vmem:[%s8450_s14 + $0x398] sm:$0xff] }
 0x1a3   : > { %4060 = vmatpush1.bf16.msra.mxu0 %v7021_v15  ;;  %v620_v15 = vld [vmem:[%s8450_s14 + $0x3f8] sm:$0xff] }
 0x1a4   : > { %v3808_v29 = vpop.f32.mrf.mxu1  ;;  %v3768_v31 = vpop.f32.mrf.mxu0  ;;  %4061 = vmatprep.subr.bf16.mxu0 %v7014_v19  ;;  %v748_v19 = vld [vmem:[%s8450_s14 + $0x7f8] sm:$0xff]  ;;  %v7094_v24 = vcombine.high %v616_v13, %v620_v15 }
 0x1a5   : > { %4101 = vmatpush1.bf16.msra.mxu1 %v7149_v18  ;;  %v744_v18 = vld [vmem:[%s8450_s14 + $0x7d8] sm:$0xff]  ;;  %v7093_v31 = vcombine.low %v616_v13, %v620_v15 }
 0x1a6   : > { %v3809_v35 = vpop.f32.mrf.mxu1  ;;  %4102 = vmatprep.subr.bf16.mxu1 %v7142_v21  ;;  %v6973_v21 = vcombine.low %v496_v3, %v500_v4  ;;  %v7222_v25 = vcombine.high %v744_v18, %v748_v19  ;;  %v612_v28 = vld [vmem:[%s8450_s14 + $0x3b8] sm:$0xff] }
 0x1a7   : > { %4062 = vmatpush1.bf16.msra.mxu0 %v7013_v30  ;;  %v736_v29 = vld [vmem:[%s8450_s14 + $0x798] sm:$0xff]  ;;  %v7085_v41 = vcombine.low %v608_v27, %v612_v28 }
 0x1a8   : > { %4063 = vmatprep.subr.bf16.mxu0 %v7006_v33  ;;  %v740_v30 = vld [vmem:[%s8450_s14 + $0x7b8] sm:$0xff]  ;;  %v7086_v33 = vcombine.high %v608_v27, %v612_v28 }
 0x1a9   : > { %4103 = vmatpush1.bf16.msra.mxu1 %v7141_v32  ;;  %v7221_v32 = vcombine.low %v744_v18, %v748_v19  ;;  %v7214_v35 = vcombine.high %v736_v29, %v740_v30  ;;  %v732_v39 = vld [vmem:[%s8450_s14 + $0x778] sm:$0xff] }
 0x1aa   : > { %4104 = vmatprep.subr.bf16.mxu1 %v7134_v12  ;;  %v600_v12 = vld [vmem:[%s8450_s14 + $0x358] sm:$0xff] }
 0x1ab   : > { %4064 = vmatpush1.bf16.msra.mxu0 %v7005_v17  ;;  %v7213_v17 = vcombine.low %v736_v29, %v740_v30  ;;  %v596_v43 = vld [vmem:[%s8450_s14 + $0x338] sm:$0xff]  ;;  %v7077_v48 = vcombine.low %v600_v12, %v604_v36 }
 0x1ac   : > { %4065 = vmatprep.subr.bf16.mxu0 %v6998_v58  ;;  %v7206_v58 = vcombine.high %v728_v37, %v732_v39  ;;  %v720_v46 = vld [vmem:[%s8450_s14 + $0x718] sm:$0xff] }
 0x1ad   : > { %4105 = vmatpush1.bf16.msra.mxu1 %v7133_v0  ;;  %v7078_v0 = vcombine.high %v600_v12, %v604_v36  ;;  %v724_v6 = vld [vmem:[%s8450_s14 + $0x738] sm:$0xff] }
 0x1ae   : > { %4106 = vmatprep.subr.bf16.mxu1 %v7126_v42  ;;  %v592_v42 = vld [vmem:[%s8450_s14 + $0x318] sm:$0xff] }
 0x1af   : > { %4066 = vmatpush1.bf16.msra.mxu0 %v6997_v50  ;;  %v7205_v50 = vcombine.low %v728_v37, %v732_v39  ;;  %v588_v53 = vld [vmem:[%s8450_s14 + $0x2f8] sm:$0xff]  ;;  %v7069_v60 = vcombine.low %v592_v42, %v596_v43 }
 0x1b0   : > { %4067 = vmatprep.subr.bf16.mxu0 %v6990_v51  ;;  %v7198_v51 = vcombine.high %v720_v46, %v724_v6  ;;  %v712_v56 = vld [vmem:[%s8450_s14 + $0x6d8] sm:$0xff] }
 0x1b1   : > { %4107 = vmatpush1.bf16.msra.mxu1 %v7125_v23  ;;  %v7070_v23 = vcombine.high %v592_v42, %v596_v43  ;;  %v716_v57 = vld [vmem:[%s8450_s14 + $0x6f8] sm:$0xff] }
 0x1b2   : > { %4108 = vmatprep.subr.bf16.mxu1 %v7118_v52  ;;  %v584_v52 = vld [vmem:[%s8450_s14 + $0x2d8] sm:$0xff] }
 0x1b3   : > { %4068 = vmatpush1.bf16.msra.mxu0 %v6989_v61  ;;  %v7197_v61 = vcombine.low %v720_v46, %v724_v6  ;;  %v580_v3 = vld [vmem:[%s8450_s14 + $0x2b8] sm:$0xff]  ;;  %v7061_v7 = vcombine.low %v584_v52, %v588_v53 }
 0x1b4   : > { %4069 = vmatprep.subr.bf16.mxu0 %v6982_v1  ;;  %v7190_v1 = vcombine.high %v712_v56, %v716_v57  ;;  %v704_v4 = vld [vmem:[%s8450_s14 + $0x698] sm:$0xff] }
 0x1b5   : > { %4109 = vmatpush1.bf16.msra.mxu1 %v7117_v63  ;;  %v7062_v63 = vcombine.high %v584_v52, %v588_v53  ;;  %v708_v5 = vld [vmem:[%s8450_s14 + $0x6b8] sm:$0xff] }
 0x1b6   : > { %4110 = vmatprep.subr.bf16.mxu1 %v7110_v2  ;;  %v576_v2 = vld [vmem:[%s8450_s14 + $0x298] sm:$0xff] }
 0x1b7   : > { %4070 = vmatpush1.bf16.msra.mxu0 %v6981_v26  ;;  %v7189_v26 = vcombine.low %v712_v56, %v716_v57  ;;  %v572_v13 = vld [vmem:[%s8450_s14 + $0x278] sm:$0xff]  ;;  %v7053_v19 = vcombine.low %v576_v2, %v580_v3 }
 0x1b8   : > { %4071 = vmatprep.subr.bf16.mxu0 %v6974_v9  ;;  %v7182_v9 = vcombine.high %v704_v4, %v708_v5  ;;  %v696_v15 = vld [vmem:[%s8450_s14 + $0x658] sm:$0xff] }
 0x1b9   : > { %4111 = vmatpush1.bf16.msra.mxu1 %v7109_v8  ;;  %v7054_v8 = vcombine.high %v576_v2, %v580_v3  ;;  %v700_v18 = vld [vmem:[%s8450_s14 + $0x678] sm:$0xff] }
 0x1ba   : > { %4112 = vmatprep.subr.bf16.mxu1 %v7102_v11  ;;  %v568_v11 = vld [vmem:[%s8450_s14 + $0x258] sm:$0xff] }
 0x1bb   : > { %4072 = vmatpush1.bf16.msra.mxu0 %v6973_v21  ;;  %v7181_v21 = vcombine.low %v704_v4, %v708_v5  ;;  %v564_v27 = vld [vmem:[%s8450_s14 + $0x238] sm:$0xff]  ;;  %v7045_v30 = vcombine.low %v568_v11, %v572_v13 }
 0x1bc   : > { %4073 = vmatprep.subr.bf16.mxu0 %v7094_v24  ;;  %v7174_v24 = vcombine.high %v696_v15, %v700_v18  ;;  %v688_v28 = vld [vmem:[%s8450_s14 + $0x618] sm:$0xff] }
 0x1bd   : > { %4113 = vmatpush1.bf16.msra.mxu1 %v7101_v22  ;;  %v7046_v22 = vcombine.high %v568_v11, %v572_v13  ;;  %v692_v29 = vld [vmem:[%s8450_s14 + $0x638] sm:$0xff] }
 0x1be   : > { %4114 = vmatprep.subr.bf16.mxu1 %v7222_v25  ;;  %v560_v25 = vld [vmem:[%s8450_s14 + $0x218] sm:$0xff] }
 0x1bf   : > { %4074 = vmatpush2.bf16.msra.mxu0 %v7093_v31  ;;  %v7173_v31 = vcombine.low %v696_v15, %v700_v18  ;;  %v812_v12 = vld [vmem:[%s8450_s14 + $0x9f8] sm:$0xff]  ;;  %v7037_v39 = vcombine.low %v560_v25, %v564_v27 }
 0x1c0   : > { %4075 = vmatprep.subr.bf16.mxu0 %v7086_v33  ;;  %v7166_v33 = vcombine.high %v688_v28, %v692_v29  ;;  %v936_v36 = vld [vmem:[%s8450_s14 + $0xdd8] sm:$0xff] }
 0x1c1   : > { %4115 = vmatpush2.bf16.msra.mxu1 %v7221_v32  ;;  %v7038_v32 = vcombine.high %v560_v25, %v564_v27  ;;  %v940_v37 = vld [vmem:[%s8450_s14 + $0xdf8] sm:$0xff] }
 0x1c2   : > { %4116 = vmatprep.subr.bf16.mxu1 %v7214_v35  ;;  %v808_v35 = vld [vmem:[%s8450_s14 + $0x9d8] sm:$0xff] }
 0x1c3   : > { %4076 = vmatpush2.bf16.msra.mxu0 %v7085_v41  ;;  %v7165_v41 = vcombine.low %v688_v28, %v692_v29  ;;  %v804_v42 = vld [vmem:[%s8450_s14 + $0x9b8] sm:$0xff]  ;;  %v7285_v6 = vcombine.low %v808_v35, %v812_v12  ;;  %v4237_v28 = vrot.slane %v4229_v55, %v8482_v54 }
 0x1c4   : > { %4077 = vmatprep.subr.bf16.mxu0 %v7078_v0  ;;  %v7414_v0 = vcombine.high %v936_v36, %v940_v37  ;;  %v928_v43 = vld [vmem:[%s8450_s14 + $0xd98] sm:$0xff] }
 0x1c5   : > { %4117 = vmatpush2.bf16.msra.mxu1 %v7213_v17  ;;  %v7286_v17 = vcombine.high %v808_v35, %v812_v12  ;;  %v932_v46 = vld [vmem:[%s8450_s14 + $0xdb8] sm:$0xff] }
 0x1c6   : > { %4118 = vmatprep.subr.bf16.mxu1 %v7206_v58  ;;  %v800_v58 = vld [vmem:[%s8450_s14 + $0x998] sm:$0xff]  ;;  %v7405_v2 = vcombine.low %v928_v43, %v932_v46 }
 0x1c7   : > { %4078 = vmatpush2.bf16.msra.mxu0 %v7077_v48  ;;  %v7413_v48 = vcombine.low %v936_v36, %v940_v37  ;;  %v792_v52 = vld [vmem:[%s8450_s14 + $0x958] sm:$0xff] }
 0x1c8   : > { %4079 = vmatprep.subr.bf16.mxu0 %v7070_v23  ;;  %v3805_v23 = vadd.f32 %v8937_v14, %v8932_v10  ;;  %v796_v53 = vld [vmem:[%s8450_s14 + $0x978] sm:$0xff]  ;;  %v7277_v10 = vcombine.low %v800_v58, %v804_v42 }
 0x1c9   : > { %4119 = vmatpush2.bf16.msra.mxu1 %v7205_v50  ;;  %v7278_v50 = vcombine.high %v800_v58, %v804_v42  ;;  %v920_v57 = vld [vmem:[%s8450_s14 + $0xd58] sm:$0xff]  ;;  %v7269_v13 = vcombine.low %v792_v52, %v796_v53 }
 0x1ca   : > { %4120 = vmatprep.subr.bf16.mxu1 %v7198_v51  ;;  %v7406_v51 = vcombine.high %v928_v43, %v932_v46  ;;  %v904_v25 = vld [vmem:[%s8450_s14 + $0xcd8] sm:$0xff] }
 0x1cb   : > { %4080 = vmatpush2.bf16.msra.mxu0 %v7069_v60  ;;  %v924_v60 = vld [vmem:[%s8450_s14 + $0xd78] sm:$0xff] }
 0x1cc   : > { %4081 = vmatprep.subr.bf16.mxu0 %v7062_v63  ;;  %v7398_v5 = vcombine.high %v920_v57, %v924_v60  ;;  %v7397_v18 = vcombine.low %v920_v57, %v924_v60  ;;  %v908_v27 = vld [vmem:[%s8450_s14 + $0xcf8] sm:$0xff] }
 0x1cd   : > { %4121 = vmatpush2.bf16.msra.mxu1 %v7197_v61  ;;  %v3807_v61 = vadd.f32 %v8942_v20, %v8940_v16  ;;  %v788_v16 = vld [vmem:[%s8450_s14 + $0x938] sm:$0xff]  ;;  %v7382_v12 = vcombine.high %v904_v25, %v908_v27 }
 0x1ce   : > { %4122 = vmatprep.subr.bf16.mxu1 %v7190_v1  ;;  %v768_v36 = vld [vmem:[%s8450_s14 + $0x898] sm:$0xff] }
 0x1cf   : > { %4082 = vmatpush2.bf16.msra.mxu0 %v7061_v7  ;;  %v784_v7 = vld [vmem:[%s8450_s14 + $0x918] sm:$0xff] }
 0x1d0   : > { %4083 = vmatprep.subr.bf16.mxu0 %v7054_v8  ;;  %v772_v37 = vld [vmem:[%s8450_s14 + $0x8b8] sm:$0xff] }
 0x1d1   : > { %4123 = vmatpush2.bf16.msra.mxu1 %v7189_v26  ;;  %v912_v26 = vld [vmem:[%s8450_s14 + $0xd18] sm:$0xff] }
 0x1d2   : > { %4124 = vmatprep.subr.bf16.mxu1 %v7182_v9  ;;  %v760_v58 = vld [vmem:[%s8450_s14 + $0x858] sm:$0xff] }
 0x1d3   : > { %4084 = vmatpush2.bf16.msra.mxu0 %v7053_v19  ;;  %v7262_v19 = vcombine.high %v784_v7, %v788_v16  ;;  %v764_v42 = vld [vmem:[%s8450_s14 + $0x878] sm:$0xff] }
 0x1d4   : > { %4085 = vmatprep.subr.bf16.mxu0 %v7046_v22  ;;  %v888_v43 = vld [vmem:[%s8450_s14 + $0xc58] sm:$0xff]  ;;  %v7237_v57 = vcombine.low %v760_v58, %v764_v42 }
 0x1d5   : > { %4125 = vmatpush2.bf16.msra.mxu1 %v7181_v21  ;;  %v892_v46 = vld [vmem:[%s8450_s14 + $0xc78] sm:$0xff] }
 0x1d6   : > { %4126 = vmatprep.subr.bf16.mxu1 %v7174_v24  ;;  %v776_v24 = vld [vmem:[%s8450_s14 + $0x8d8] sm:$0xff]  ;;  %v7365_v60 = vcombine.low %v888_v43, %v892_v46 }
 0x1d7   : > { %4086 = vmatpush2.bf16.msra.mxu0 %v7045_v30  ;;  %v7261_v30 = vcombine.low %v784_v7, %v788_v16  ;;  %v864_v7 = vld [vmem:[%s8450_s14 + $0xb98] sm:$0xff] }
 0x1d8   : > { %4087 = vmatprep.subr.bf16.mxu0 %v7038_v32  ;;  %v868_v16 = vld [vmem:[%s8450_s14 + $0xbb8] sm:$0xff] }
 0x1d9   : > { %4127 = vmatpush2.bf16.msra.mxu1 %v7173_v31  ;;  %v437_v31 = vld [vmem:[#allocation2] sm:$0xff] }
 0x1da   : > { %4128 = vmatprep.subr.bf16.mxu1 %v7166_v33 }
 0x1db   : > { %4088 = vmatpush2.bf16.msra.mxu0 %v7037_v39 }
 0x1dc   : > { %4139 = vmatprep.subr.bf16.mxu0 %v7286_v17  ;;  %v7246_v17 = vcombine.high %v768_v36, %v772_v37 }
 0x1dd   : > { %4129 = vmatpush2.bf16.msra.mxu1 %v7165_v41  ;;  %v7381_v41 = vcombine.low %v904_v25, %v908_v27  ;;  %v852_v25 = vld [vmem:[%s8450_s14 + $0xb38] sm:$0xff] }
 0x1de   : > { %4180 = vmatprep.subr.bf16.mxu1 %v7414_v0  ;;  %v3845_v56 = vpop.f32.mrf.mxu0  ;;  %4090 = vmatmul.mubr.bf16.vlgmr.msra.gmra.mxu0 %v8556_v34  ;;  %v7270_v34 = vcombine.high %v792_v52, %v796_v53  ;;  %v7374_v0 = vcombine.high %v896_v40, %v900_v49  ;;  %v756_v52 = vld [vmem:[%s8450_s14 + $0x838] sm:$0xff] }
 0x1df   : > { %v3846_v63 = vadd.f32 %v3845_v56, %v3805_v23  ;;  %4140 = vmatpush1.bf16.msra.mxu0 %v7285_v6  ;;  %4171 = vmatprep.mubr.bf16.mxu0 %v8568_v44  ;;  %v7245_v6 = vcombine.low %v768_v36, %v772_v37  ;;  %v7366_v23 = vcombine.high %v888_v43, %v892_v46  ;;  %v880_v53 = vld [vmem:[%s8450_s14 + $0xc18] sm:$0xff] }
 0x1e0   : > { %v3886_v1 = vpop.f32.mrf.mxu1  ;;  %4131 = vmatmul.mubr.bf16.vlgmr.msra.gmra.mxu1 %v8564_v38  ;;  %v3847_v14 = vpop.f32.mrf.mxu0  ;;  %4141 = vmatprep.subr.bf16.mxu0 %v7278_v50  ;;  %v916_v38 = vld [vmem:[%s8450_s14 + $0xd38] sm:$0xff]  ;;  %v7238_v50 = vcombine.high %v760_v58, %v764_v42 }
 0x1e1   : > { %4181 = vmatpush1.bf16.msra.mxu1 %v7413_v48  ;;  %v3848_v3 = vadd.f32 %v3847_v14, %v3807_v61  ;;  %4212 = vmatprep.mubr.bf16.mxu1 %v8573_v47  ;;  %v3887_v8 = vadd.f32 %v3886_v1, %v3846_v63  ;;  %v7390_v22 = vcombine.high %v912_v26, %v916_v38  ;;  %v780_v47 = vld [vmem:[%s8450_s14 + $0x8f8] sm:$0xff] }
 0x1e2   : > { %v3888_v4 = vpop.f32.mrf.mxu1  ;;  %4182 = vmatprep.subr.bf16.mxu1 %v7406_v51  ;;  %v3849_v20 = vpop.f32.mrf.mxu0  ;;  %v7389_v32 = vcombine.low %v912_v26, %v916_v38  ;;  %v7254_v33 = vcombine.high %v776_v24, %v780_v47  ;;  %v7253_v39 = vcombine.low %v776_v24, %v780_v47  ;;  %v7373_v48 = vcombine.low %v896_v40, %v900_v49  ;;  %v752_v51 = vld [vmem:[%s8450_s14 + $0x818] sm:$0xff] }
 0x1e3   : > { %v3889_v9 = vadd.f32 %v3888_v4, %v3848_v3  ;;  %4142 = vmatpush1.bf16.msra.mxu0 %v7277_v10  ;;  %v884_v56 = vld [vmem:[%s8450_s14 + $0xc38] sm:$0xff]  ;;  %v7230_v61 = vcombine.high %v752_v51, %v756_v52 }
 0x1e4   : > { %v3890_v11 = vpop.f32.mrf.mxu1  ;;  %v3850_v15 = vpop.f32.mrf.mxu0  ;;  %4143 = vmatprep.subr.bf16.mxu0 %v7270_v34  ;;  %v7358_v63 = vcombine.high %v880_v53, %v884_v56  ;;  %v872_v1 = vld [vmem:[%s8450_s14 + $0xbd8] sm:$0xff]  ;;  %v7229_v34 = vcombine.low %v752_v51, %v756_v52  ;;  %v7357_v3 = vcombine.low %v880_v53, %v884_v56 }
 0x1e5   : > { %4183 = vmatpush1.bf16.msra.mxu1 %v7405_v2  ;;  %v4230_v44 = vcombine.low %v3887_v8, %v3889_v9  ;;  %v876_v10 = vld [vmem:[%s8450_s14 + $0xbf8] sm:$0xff]  ;;  %v7342_v9 = vcombine.high %v864_v7, %v868_v16 }
 0x1e6   : > { %v3891_v21 = vpop.f32.mrf.mxu1  ;;  %4184 = vmatprep.subr.bf16.mxu1 %v7398_v5  ;;  %v1000_v14 = vld [vmem:[%s8450_s14 + $0xfd8] sm:$0xff]  ;;  %v7350_v4 = vcombine.high %v872_v1, %v876_v10  ;;  %v7349_v38 = vcombine.low %v872_v1, %v876_v10 }
 0x1e7   : > { %v4244_v29 = vrot.slane %v4230_v44, %v8482_v54  ;;  %4144 = vmatpush1.bf16.msra.mxu0 %v7269_v13  ;;  %v1004_v2 = vld [vmem:[%s8450_s14 + $0xff8] sm:$0xff]  ;;  %v7341_v44 = vcombine.low %v864_v7, %v868_v16 }
 0x1e8   : > { %4145 = vmatprep.subr.bf16.mxu0 %v7262_v19  ;;  %v7478_v5 = vcombine.high %v1000_v14, %v1004_v2  ;;  %v992_v20 = vld [vmem:[%s8450_s14 + $0xf98] sm:$0xff]  ;;  %v7477_v8 = vcombine.low %v1000_v14, %v1004_v2 }
 0x1e9   : > { %4185 = vmatpush1.bf16.msra.mxu1 %v7397_v18  ;;  %v4245_v35 = vcombine.low %v4237_v28, %v4244_v29  ;;  %v996_v26 = vld [vmem:[%s8450_s14 + $0xfb8] sm:$0xff] }
 0x1ea   : > { %4186 = vmatprep.subr.bf16.mxu1 %v7390_v22  ;;  %v7470_v11 = vcombine.high %v992_v20, %v996_v26  ;;  %v856_v13 = vld [vmem:[%s8450_s14 + $0xb58] sm:$0xff]  ;;  %v7469_v21 = vcombine.low %v992_v20, %v996_v26 }
 0x1eb   : > { %v4265_v55 = vadd.f32 %v4245_v35, %v437_v31  ;;  %4146 = vmatpush1.bf16.msra.mxu0 %v7261_v30  ;;  %v860_v15 = vld [vmem:[%s8450_s14 + $0xb78] sm:$0xff] }
 0x1ec   : > { %4147 = vmatprep.subr.bf16.mxu0 %v7254_v33  ;;  %v984_v18 = vld [vmem:[%s8450_s14 + $0xf58] sm:$0xff]  ;;  %v7334_v22 = vcombine.high %v856_v13, %v860_v15  ;;  %v7333_v29 = vcombine.low %v856_v13, %v860_v15 }
 0x1ed   : > { %4187 = vmatpush1.bf16.msra.mxu1 %v7389_v32  ;;  %4267 = vst [vmem:[#allocation2] sm:$0xff] %v4265_v55  ;;  %v988_v19 = vld [vmem:[%s8450_s14 + $0xf78] sm:$0xff] }
 0x1ee   : > { %4188 = vmatprep.subr.bf16.mxu1 %v7382_v12  ;;  %v7462_v24 = vcombine.high %v984_v18, %v988_v19  ;;  %v848_v47 = vld [vmem:[%s8450_s14 + $0xb18] sm:$0xff]  ;;  %v7461_v30 = vcombine.low %v984_v18, %v988_v19 }
 0x1ef   : > { %4148 = vmatpush1.bf16.msra.mxu0 %v7253_v39  ;;  %v976_v27 = vld [vmem:[%s8450_s14 + $0xf18] sm:$0xff]  ;;  %v7326_v31 = vcombine.high %v848_v47, %v852_v25  ;;  %v7325_v37 = vcombine.low %v848_v47, %v852_v25 }
 0x1f0   : > { %4149 = vmatprep.subr.bf16.mxu0 %v7246_v17  ;;  %v980_v28 = vld [vmem:[%s8450_s14 + $0xf38] sm:$0xff] }
 0x1f1   : > { %4189 = vmatpush1.bf16.msra.mxu1 %v7381_v41  ;;  %v7454_v32 = vcombine.high %v976_v27, %v980_v28  ;;  %v840_v33 = vld [vmem:[%s8450_s14 + $0xad8] sm:$0xff]  ;;  %v7453_v40 = vcombine.low %v976_v27, %v980_v28 }
 0x1f2   : > { %4190 = vmatprep.subr.bf16.mxu1 %v7374_v0  ;;  %v844_v35 = vld [vmem:[%s8450_s14 + $0xaf8] sm:$0xff] }
 0x1f3   : > { %4150 = vmatpush1.bf16.msra.mxu0 %v7245_v6  ;;  %v968_v12 = vld [vmem:[%s8450_s14 + $0xed8] sm:$0xff]  ;;  %v7318_v49 = vcombine.high %v840_v33, %v844_v35  ;;  %v7317_v58 = vcombine.low %v840_v33, %v844_v35 }
 0x1f4   : > { %4151 = vmatprep.subr.bf16.mxu0 %v7238_v50  ;;  %v972_v36 = vld [vmem:[%s8450_s14 + $0xef8] sm:$0xff] }
 0x1f5   : > { %4191 = vmatpush1.bf16.msra.mxu1 %v7373_v48  ;;  %v7446_v55 = vcombine.high %v968_v12, %v972_v36  ;;  %v832_v39 = vld [vmem:[%s8450_s14 + $0xa98] sm:$0xff]  ;;  %v7445_v42 = vcombine.low %v968_v12, %v972_v36 }
 0x1f6   : > { %4192 = vmatprep.subr.bf16.mxu1 %v7366_v23  ;;  %v836_v41 = vld [vmem:[%s8450_s14 + $0xab8] sm:$0xff] }
 0x1f7   : > { %4152 = vmatpush1.bf16.msra.mxu0 %v7237_v57  ;;  %v960_v17 = vld [vmem:[%s8450_s14 + $0xe98] sm:$0xff]  ;;  %v7310_v43 = vcombine.high %v832_v39, %v836_v41  ;;  %v7309_v51 = vcombine.low %v832_v39, %v836_v41 }
 0x1f8   : > { %4153 = vmatprep.subr.bf16.mxu0 %v7230_v61  ;;  %v964_v0 = vld [vmem:[%s8450_s14 + $0xeb8] sm:$0xff] }
 0x1f9   : > { %4193 = vmatpush1.bf16.msra.mxu1 %v7365_v60  ;;  %v7438_v46 = vcombine.high %v960_v17, %v964_v0  ;;  %v824_v6 = vld [vmem:[%s8450_s14 + $0xa58] sm:$0xff]  ;;  %v7437_v52 = vcombine.low %v960_v17, %v964_v0 }
 0x1fa   : > { %4194 = vmatprep.subr.bf16.mxu1 %v7358_v63  ;;  %v828_v48 = vld [vmem:[%s8450_s14 + $0xa78] sm:$0xff] }
 0x1fb   : > { %4154 = vmatpush1.bf16.msra.mxu0 %v7229_v34  ;;  %v952_v50 = vld [vmem:[%s8450_s14 + $0xe58] sm:$0xff]  ;;  %v7302_v53 = vcombine.high %v824_v6, %v828_v48  ;;  %v7301_v1 = vcombine.low %v824_v6, %v828_v48 }
 0x1fc   : > { %4155 = vmatprep.subr.bf16.mxu0 %v7350_v4  ;;  %v956_v23 = vld [vmem:[%s8450_s14 + $0xe78] sm:$0xff] }
 0x1fd   : > { %4195 = vmatpush1.bf16.msra.mxu1 %v7357_v3  ;;  %v7430_v56 = vcombine.high %v952_v50, %v956_v23  ;;  %v816_v57 = vld [vmem:[%s8450_s14 + $0xa18] sm:$0xff]  ;;  %v7429_v10 = vcombine.low %v952_v50, %v956_v23 }
 0x1fe   : > { %4196 = vmatprep.subr.bf16.mxu1 %v7478_v5  ;;  %v820_v60 = vld [vmem:[%s8450_s14 + $0xa38] sm:$0xff] }
 0x1ff   : > { %4156 = vmatpush2.bf16.msra.mxu0 %v7349_v38  ;;  %v944_v61 = vld [vmem:[%s8450_s14 + $0xe18] sm:$0xff]  ;;  %v7294_v14 = vcombine.high %v816_v57, %v820_v60  ;;  %v7293_v34 = vcombine.low %v816_v57, %v820_v60 }
 0x200   : > { %4157 = vmatprep.subr.bf16.mxu0 %v7342_v9  ;;  %v948_v63 = vld [vmem:[%s8450_s14 + $0xe38] sm:$0xff] }
 0x201   : > { %4197 = vmatpush2.bf16.msra.mxu1 %v7477_v8  ;;  %v7422_v2 = vcombine.high %v944_v61, %v948_v63  ;;  %v7421_v3 = vcombine.low %v944_v61, %v948_v63 }
 0x202   : > { %4198 = vmatprep.subr.bf16.mxu1 %v7470_v11 }
 0x203   : > { %4158 = vmatpush2.bf16.msra.mxu0 %v7341_v44 }
 0x204   : > { %4159 = vmatprep.subr.bf16.mxu0 %v7334_v22 }
 0x205   : > { %4199 = vmatpush2.bf16.msra.mxu1 %v7469_v21 }
 0x206   : > { %4200 = vmatprep.subr.bf16.mxu1 %v7462_v24 }
 0x207   : > { %4160 = vmatpush2.bf16.msra.mxu0 %v7333_v29 }
 0x208   : > { %4161 = vmatprep.subr.bf16.mxu0 %v7326_v31 }
 0x209   : > { %4201 = vmatpush2.bf16.msra.mxu1 %v7461_v30 }
 0x20a   : > { %4202 = vmatprep.subr.bf16.mxu1 %v7454_v32 }
 0x20b   : > { %4162 = vmatpush2.bf16.msra.mxu0 %v7325_v37 }
 0x20c   : > { %4163 = vmatprep.subr.bf16.mxu0 %v7318_v49 }
 0x20d   : > { %4203 = vmatpush2.bf16.msra.mxu1 %v7453_v40 }
 0x20e   : > { %4204 = vmatprep.subr.bf16.mxu1 %v7446_v55 }
 0x20f   : > { %4164 = vmatpush2.bf16.msra.mxu0 %v7317_v58 }
 0x210   : > { %4165 = vmatprep.subr.bf16.mxu0 %v7310_v43 }
 0x211   : > { %4205 = vmatpush2.bf16.msra.mxu1 %v7445_v42 }
 0x212   : > { %4206 = vmatprep.subr.bf16.mxu1 %v7438_v46 }
 0x213   : > { %4166 = vmatpush2.bf16.msra.mxu0 %v7309_v51  ;;  %v438_v51 = vld [vmem:[#allocation2 + $0x8] sm:$0xff] }
 0x214   : > { %4167 = vmatprep.subr.bf16.mxu0 %v7302_v53 }
 0x215   : > { %4207 = vmatpush2.bf16.msra.mxu1 %v7437_v52 }
 0x216   : > { %4208 = vmatprep.subr.bf16.mxu1 %v7430_v56 }
 0x217   : > { %4168 = vmatpush2.bf16.msra.mxu0 %v7301_v1 }
 0x218   : > { %4169 = vmatprep.subr.bf16.mxu0 %v7294_v14 }
 0x219   : > { %4209 = vmatpush2.bf16.msra.mxu1 %v7429_v10 }
 0x21a   : > { %4210 = vmatprep.subr.bf16.mxu1 %v7422_v2 }
 0x21b   : > { %4170 = vmatpush2.bf16.msra.mxu0 %v7293_v34 }
 0x21d   : > { %4211 = vmatpush2.bf16.msra.mxu1 %v7421_v3 }
 0x21e   : > { %v3927_v4 = vpop.f32.mrf.mxu0  ;;  %4172 = vmatmul.mubr.bf16.vlgmr.msra.gmra.mxu0 %v8638_v59 }
 0x220   : > { %v3968_v5 = vpop.f32.mrf.mxu1  ;;  %4213 = vmatmul.mubr.bf16.vlgmr.msra.gmra.mxu1 %v8644_v62  ;;  %v3929_v16 = vpop.f32.mrf.mxu0 }
 0x221   : > { %v3969_v7 = vadd.f32 %v3968_v5, %v3927_v4 }
 0x222   : > { %v3970_v20 = vpop.f32.mrf.mxu1  ;;  %v3931_v38 = vpop.f32.mrf.mxu0 }
 0x223   : > { %v3971_v26 = vadd.f32 %v3970_v20, %v3929_v16 }
 0x224   : > { %v3972_v8 = vpop.f32.mrf.mxu1  ;;  %v3932_v9 = vpop.f32.mrf.mxu0 }
 0x226   : > { %v3973_v11 = vpop.f32.mrf.mxu1 }
 0x25e   : > { %v4009_v13 = vpop.f32.mrf.mxu0 }
 0x25f   : > { %v4010_v15 = vadd.f32 %v4009_v13, %v3969_v7 }
 0x260   : > { %v4050_v18 = vpop.f32.mrf.mxu1  ;;  %v4011_v19 = vpop.f32.mrf.mxu0 }
 0x261   : > { %v4051_v44 = vadd.f32 %v4050_v18, %v4010_v15  ;;  %v4012_v21 = vadd.f32 %v4011_v19, %v3971_v26 }
 0x262   : > { %v4052_v22 = vpop.f32.mrf.mxu1  ;;  %v4013_v24 = vpop.f32.mrf.mxu0 }
 0x263   : > { %v4053_v59 = vadd.f32 %v4052_v22, %v4012_v21 }
 0x264   : > { %v4054_v47 = vpop.f32.mrf.mxu1  ;;  %v4014_v25 = vpop.f32.mrf.mxu0 }
 0x265   : > { %v4246_v62 = vcombine.low %v4051_v44, %v4053_v59 }
 0x266   : > { %v4055_v27 = vpop.f32.mrf.mxu1 }
 0x267   : > { %v4254_v50 = vrot.slane %v4246_v62, %v8482_v54 }
 0x29e   : > { %v4091_v28 = vpop.f32.mrf.mxu0 }
 0x2a0   : > { %v4132_v29 = vpop.f32.mrf.mxu1  ;;  %v4093_v30 = vpop.f32.mrf.mxu0 }
 0x2a1   : > { %v4133_v36 = vadd.f32 %v4132_v29, %v4091_v28 }
 0x2a2   : > { %v4134_v31 = vpop.f32.mrf.mxu1  ;;  %v4095_v32 = vpop.f32.mrf.mxu0 }
 0x2a3   : > { %v4135_v40 = vadd.f32 %v4134_v31, %v4093_v30 }
 0x2a4   : > { %v4136_v33 = vpop.f32.mrf.mxu1  ;;  %v4096_v35 = vpop.f32.mrf.mxu0 }
 0x2a6   : > { %v4137_v12 = vpop.f32.mrf.mxu1 }
 0x2de   : > { %v4173_v37 = vpop.f32.mrf.mxu0 }
 0x2df   : > { %v4174_v49 = vadd.f32 %v4173_v37, %v4133_v36 }
 0x2e0   : > { %v4214_v55 = vpop.f32.mrf.mxu1  ;;  %v4175_v39 = vpop.f32.mrf.mxu0 }
 0x2e1   : > { %v4176_v41 = vadd.f32 %v4175_v39, %v4135_v40  ;;  %v4215_v58 = vadd.f32 %v4214_v55, %v4174_v49 }
 0x2e2   : > { %v4216_v17 = vpop.f32.mrf.mxu1  ;;  %v4177_v0 = vpop.f32.mrf.mxu0 }
 0x2e3   : > { %v4217_v42 = vadd.f32 %v4216_v17, %v4176_v41 }
 0x2e4   : > { %v4218_v43 = vpop.f32.mrf.mxu1  ;;  %v4178_v46 = vpop.f32.mrf.mxu0 }
 0x2e5   : > { %v4247_v6 = vcombine.low %v4215_v58, %v4217_v42 }
 0x2e6   : > { %v4219_v48 = vpop.f32.mrf.mxu1 }
 0x2e7   : > { %v4261_v23 = vrot.slane %v4247_v6, %v8482_v54 }
 0x2e9   : > { %v4262_v52 = vcombine.low %v4254_v50, %v4261_v23  ;;  %4279 = sbr.rel (%p7479_p6) target bundleno = 1462 (0x5b6), region = 68 }
 0x2eb   : > { %v4266_v53 = vadd.f32 %v4262_v52, %v438_v51 }
 0x2ed   : > { %4275 = vst.msk [vmem:[#allocation2 + $0x8] sm:$0xff] %vm4274_vm13, %v4266_v53 }
 0x2ee   : > { %v7868_v56 = vld [vmem:[%s10152_s3 + $0xe4] ss:$16 sps:$4 sm:$0xff]   ;;  %v7872_v60 = vld [vmem:[%s10152_s3 + $0xe0] ss:$16 sps:$4 sm:$0xff]   ;;  %v4286_v40 = vsub.s32 0, %v8475_v45  ;;  %v4290_v55 = vsub.s32 1, %v8475_v45 }
 0x2ef   : > { %v7870_v57 = vld [vmem:[%s10152_s3 + $0x2e4] ss:$16 sps:$4 sm:$0xff]   ;;  %5947 = vmatprep.subr.bf16.mxu0 %v7868_v56  ;;  %v7873_v61 = vld [vmem:[%s10152_s3 + $0x2e0] ss:$16 sps:$4 sm:$0xff]   ;;  %v4294_v39 = vsub.s32 2, %v8475_v45  ;;  %v4298_v17 = vsub.s32 3, %v8475_v45 }
 0x2f0   : > { %5988 = vmatprep.subr.bf16.mxu1 %v7870_v57  ;;  %v7874_v63 = vld [vmem:[%s10152_s3 + $0xc4] ss:$16 sps:$4 sm:$0xff]   ;;  %5948 = vmatpush1.bf16.msra.mxu0 %v7872_v60  ;;  %v7878_v10 = vld [vmem:[%s10152_s3 + $0xc0] ss:$16 sps:$4 sm:$0xff]   ;;  %vm5930_vm14 = vcmask 850944   ;;  %vm5934_vm15 = vcmask 1043456  }
 0x2f1   : > { %5989 = vmatpush1.bf16.msra.mxu1 %v7873_v61  ;;  %v7876_v1 = vld [vmem:[%s10152_s3 + $0x2c4] ss:$16 sps:$4 sm:$0xff]   ;;  %5949 = vmatprep.subr.bf16.mxu0 %v7874_v63  ;;  %v7879_v14 = vld [vmem:[%s10152_s3 + $0x2c0] ss:$16 sps:$4 sm:$0xff]   ;;  %vm6490_vm0 = vcmask 130048   ;;  %vm6861_vm1 = vcmask 156672  }
 0x2f2   : > { %5990 = vmatprep.subr.bf16.mxu1 %v7876_v1  ;;  %v7880_v2 = vld [vmem:[%s10152_s3 + $0xa4] ss:$16 sps:$4 sm:$0xff]   ;;  %v7884_v3 = vld [vmem:[%s10152_s3 + $0xa0] ss:$16 sps:$4 sm:$0xff]  }
 0x2f3   : > { %v7882_v34 = vld [vmem:[%s10152_s3 + $0x2a4] ss:$16 sps:$4 sm:$0xff]   ;;  %v7885_v4 = vld [vmem:[%s10152_s3 + $0x2a0] ss:$16 sps:$4 sm:$0xff]  }
 0x2f4   : > { %5950 = vmatpush1.bf16.msra.mxu0 %v7878_v10  ;;  %v7886_v5 = vld [vmem:[%s10152_s3 + $0x84] ss:$16 sps:$4 sm:$0xff]   ;;  %v7890_v16 = vld [vmem:[%s10152_s3 + $0x80] ss:$16 sps:$4 sm:$0xff]  }
 0x2f5   : > { %5991 = vmatpush1.bf16.msra.mxu1 %v7879_v14  ;;  %5951 = vmatprep.subr.bf16.mxu0 %v7880_v2  ;;  %v7888_v7 = vld [vmem:[%s10152_s3 + $0x284] ss:$16 sps:$4 sm:$0xff]   ;;  %v7891_v20 = vld [vmem:[%s10152_s3 + $0x280] ss:$16 sps:$4 sm:$0xff]  }
 0x2f6   : > { %5992 = vmatprep.subr.bf16.mxu1 %v7882_v34  ;;  %v7892_v26 = vld [vmem:[%s10152_s3 + $0x64] ss:$16 sps:$4 sm:$0xff]   ;;  %v7896_v8 = vld [vmem:[%s10152_s3 + $0x60] ss:$16 sps:$4 sm:$0xff]  }
 0x2f7   : > { %v7894_v38 = vld [vmem:[%s10152_s3 + $0x264] ss:$16 sps:$4 sm:$0xff]   ;;  %v7897_v9 = vld [vmem:[%s10152_s3 + $0x260] ss:$16 sps:$4 sm:$0xff]  }
 0x2f8   : > { %5952 = vmatpush1.bf16.msra.mxu0 %v7884_v3  ;;  %v7898_v11 = vld [vmem:[%s10152_s3 + $0x44] ss:$16 sps:$4 sm:$0xff]   ;;  %v7902_v15 = vld [vmem:[%s10152_s3 + $0x40] ss:$16 sps:$4 sm:$0xff]  }
 0x2f9   : > { %5993 = vmatpush1.bf16.msra.mxu1 %v7885_v4  ;;  %5953 = vmatprep.subr.bf16.mxu0 %v7886_v5  ;;  %v7900_v13 = vld [vmem:[%s10152_s3 + $0x244] ss:$16 sps:$4 sm:$0xff]   ;;  %v7903_v18 = vld [vmem:[%s10152_s3 + $0x240] ss:$16 sps:$4 sm:$0xff]  }
 0x2fa   : > { %5994 = vmatprep.subr.bf16.mxu1 %v7888_v7  ;;  %v7904_v19 = vld [vmem:[%s10152_s3 + $0x24] ss:$16 sps:$4 sm:$0xff]   ;;  %v7908_v21 = vld [vmem:[%s10152_s3 + $0x20] ss:$16 sps:$4 sm:$0xff]  }
 0x2fb   : > { %v7906_v44 = vld [vmem:[%s10152_s3 + $0x224] ss:$16 sps:$4 sm:$0xff]   ;;  %v7909_v22 = vld [vmem:[%s10152_s3 + $0x220] ss:$16 sps:$4 sm:$0xff]  }
 0x2fc   : > { %5954 = vmatpush1.bf16.msra.mxu0 %v7890_v16  ;;  %v7910_v24 = vld [vmem:[%s10152_s3 + $0x4] ss:$16 sps:$4 sm:$0xff]   ;;  %v7914_v47 = vld [vmem:[%s10152_s3] ss:$16 sps:$4 sm:$0xff]  }
 0x2fd   : > { %5995 = vmatpush1.bf16.msra.mxu1 %v7891_v20  ;;  %5955 = vmatprep.subr.bf16.mxu0 %v7892_v26  ;;  %v7912_v59 = vld [vmem:[%s10152_s3 + $0x204] ss:$16 sps:$4 sm:$0xff]   ;;  %v7915_v25 = vld [vmem:[%s10152_s3 + $0x200] ss:$16 sps:$4 sm:$0xff]  }
 0x2fe   : > { %5996 = vmatprep.subr.bf16.mxu1 %v7894_v38  ;;  %v7916_v62 = vld [vmem:[%s10152_s3 + $0x1e4] ss:$16 sps:$4 sm:$0xff]   ;;  %v7920_v28 = vld [vmem:[%s10152_s3 + $0x1e0] ss:$16 sps:$4 sm:$0xff]  }
 0x2ff   : > { %v7918_v27 = vld [vmem:[%s10152_s3 + $0x3e4] ss:$16 sps:$4 sm:$0xff]   ;;  %v7921_v29 = vld [vmem:[%s10152_s3 + $0x3e0] ss:$16 sps:$4 sm:$0xff]  }
 0x300   : > { %5956 = vmatpush1.bf16.msra.mxu0 %v7896_v8  ;;  %v7922_v30 = vld [vmem:[%s10152_s3 + $0x1c4] ss:$16 sps:$4 sm:$0xff]   ;;  %v7926_v32 = vld [vmem:[%s10152_s3 + $0x1c0] ss:$16 sps:$4 sm:$0xff]  }
 0x301   : > { %5997 = vmatpush1.bf16.msra.mxu1 %v7897_v9  ;;  %5957 = vmatprep.subr.bf16.mxu0 %v7898_v11  ;;  %v7924_v31 = vld [vmem:[%s10152_s3 + $0x3c4] ss:$16 sps:$4 sm:$0xff]   ;;  %v7927_v33 = vld [vmem:[%s10152_s3 + $0x3c0] ss:$16 sps:$4 sm:$0xff]  }
 0x302   : > { %5998 = vmatprep.subr.bf16.mxu1 %v7900_v13  ;;  %v7928_v35 = vld [vmem:[%s10152_s3 + $0x1a4] ss:$16 sps:$4 sm:$0xff]   ;;  %v7932_v36 = vld [vmem:[%s10152_s3 + $0x1a0] ss:$16 sps:$4 sm:$0xff]  }
 0x303   : > { %v7930_v12 = vld [vmem:[%s10152_s3 + $0x3a4] ss:$16 sps:$4 sm:$0xff]   ;;  %v7933_v37 = vld [vmem:[%s10152_s3 + $0x3a0] ss:$16 sps:$4 sm:$0xff]  }
 0x304   : > { %5958 = vmatpush1.bf16.msra.mxu0 %v7902_v15  ;;  %v7934_v49 = vld [vmem:[%s10152_s3 + $0x184] ss:$16 sps:$4 sm:$0xff]   ;;  %v7938_v58 = vld [vmem:[%s10152_s3 + $0x180] ss:$16 sps:$4 sm:$0xff]  }
 0x305   : > { %5999 = vmatpush1.bf16.msra.mxu1 %v7903_v18  ;;  %5959 = vmatprep.subr.bf16.mxu0 %v7904_v19  ;;  %v7936_v41 = vld [vmem:[%s10152_s3 + $0x384] ss:$16 sps:$4 sm:$0xff]   ;;  %v7939_v42 = vld [vmem:[%s10152_s3 + $0x380] ss:$16 sps:$4 sm:$0xff]  }
 0x306   : > { %6000 = vmatprep.subr.bf16.mxu1 %v7906_v44  ;;  %v9225_v0 = vld [vmem:[%s10151_s2] sm:$0xff] }
 0x307   : > { %v4287_v43 = vrot.slane %v9225_v0, %v4286_v40  ;;  %v4291_v46 = vrot.slane %v9225_v0, %v4290_v55  ;;  %v4295_v6 = vrot.slane %v9225_v0, %v4294_v39  ;;  %v7940_v48 = vld [vmem:[%s10152_s3 + $0x164] ss:$16 sps:$4 sm:$0xff]   ;;  %v4299_v23 = vrot.slane %v9225_v0, %v4298_v17  ;;  %v7944_v53 = vld [vmem:[%s10152_s3 + $0x160] ss:$16 sps:$4 sm:$0xff]  }
 0x308   : > { %5960 = vmatpush1.bf16.msra.mxu0 %v7908_v21  ;;  %v7942_v50 = vld [vmem:[%s10152_s3 + $0x364] ss:$16 sps:$4 sm:$0xff]   ;;  %v7945_v56 = vld [vmem:[%s10152_s3 + $0x360] ss:$16 sps:$4 sm:$0xff]   ;;  %v4302_v21 = vsub.s32 4, %v8475_v45 }
 0x309   : > { %6001 = vmatpush1.bf16.msra.mxu1 %v7909_v22  ;;  %5961 = vmatprep.subr.bf16.mxu0 %v7910_v24  ;;  %v4316_v51 = vcombine.low %v4287_v43, %v4291_v46  ;;  %v4317_v52 = vcombine.low %v4295_v6, %v4299_v23  ;;  %v7946_v60 = vld [vmem:[%s10152_s3 + $0x144] ss:$16 sps:$4 sm:$0xff]   ;;  %v7950_v14 = vld [vmem:[%s10152_s3 + $0x140] ss:$16 sps:$4 sm:$0xff]   ;;  %v4306_v24 = vsub.s32 5, %v8475_v45 }
 0x30a   : > { %6002 = vmatprep.subr.bf16.mxu1 %v7912_v59  ;;  %v7948_v61 = vld [vmem:[%s10152_s3 + $0x344] ss:$16 sps:$4 sm:$0xff]   ;;  %v7951_v2 = vld [vmem:[%s10152_s3 + $0x340] ss:$16 sps:$4 sm:$0xff]   ;;  %v4310_v59 = vsub.s32 6, %v8475_v45 }
 0x30b   : > { %v4324_v57 = vrot.slane %v4316_v51, %v8482_v54  ;;  %v4331_v63 = vrot.slane %v4317_v52, %v8482_v54  ;;  %v4280_v1 = vld [vmem:[#allocation2] sm:$0xff] }
 0x30c   : > { %5962 = vmatpush1.bf16.msra.mxu0 %v7914_v47  ;;  %v7952_v34 = vld [vmem:[%s10152_s3 + $0x124] ss:$16 sps:$4 sm:$0xff]   ;;  %v7956_v7 = vld [vmem:[%s10152_s3 + $0x120] ss:$16 sps:$4 sm:$0xff]  }
 0x30d   : > { %6003 = vmatpush1.bf16.msra.mxu1 %v7915_v25  ;;  %5963 = vmatprep.subr.bf16.mxu0 %v7916_v62  ;;  %v4332_v10 = vcombine.low %v4324_v57, %v4331_v63  ;;  %v7954_v3 = vld [vmem:[%s10152_s3 + $0x324] ss:$16 sps:$4 sm:$0xff]   ;;  %v7957_v16 = vld [vmem:[%s10152_s3 + $0x320] ss:$16 sps:$4 sm:$0xff]  }
 0x30e   : > { %6004 = vmatprep.subr.bf16.mxu1 %v7918_v27  ;;  %v7958_v20 = vld [vmem:[%s10152_s3 + $0x104] ss:$16 sps:$4 sm:$0xff]   ;;  %v7962_v13 = vld [vmem:[%s10152_s3 + $0x100] ss:$16 sps:$4 sm:$0xff]   ;;  %v4314_v27 = vsub.s32 7, %v8475_v45 }
 0x30f   : > { %v4352_v4 = vadd.f32 %v4332_v10, %v4280_v1  ;;  %v7960_v26 = vld [vmem:[%s10152_s3 + $0x304] ss:$16 sps:$4 sm:$0xff]   ;;  %v7963_v15 = vld [vmem:[%s10152_s3 + $0x300] ss:$16 sps:$4 sm:$0xff]   ;;  %v4281_v1 = vld [vmem:[#allocation2 + $0x8] sm:$0xff] }
 0x310   : > { %5964 = vmatpush2.bf16.msra.mxu0 %v7920_v28  ;;  %v7966_v44 = vld [vmem:[%s10152_s3 + $0x4e4] ss:$16 sps:$4 sm:$0xff]   ;;  %v7964_v28 = vld [vmem:[%s10152_s3 + $0x4e0] ss:$16 sps:$4 sm:$0xff]  }
 0x311   : > { %6005 = vmatpush2.bf16.msra.mxu1 %v7921_v29  ;;  %5965 = vmatprep.subr.bf16.mxu0 %v7922_v30  ;;  %v4354_v5 = vmax.f32 %v4352_v4, 0.0  ;;  %v7969_v22 = vld [vmem:[%s10152_s3 + $0x6e4] ss:$16 sps:$4 sm:$0xff]   ;;  %v7967_v29 = vld [vmem:[%s10152_s3 + $0x6e0] ss:$16 sps:$4 sm:$0xff]  }
 0x312   : > { %6006 = vmatprep.subr.bf16.mxu1 %v7924_v31  ;;  %v7972_v30 = vld [vmem:[%s10152_s3 + $0x4c4] ss:$16 sps:$4 sm:$0xff]   ;;  %v7979_v43 = vld [vmem:[%s10152_s3 + $0x6a0] ss:$16 sps:$4 sm:$0xff]  }
 0x313   : > { %v4365_v38 = vrot.slane %v4354_v5, %v8482_v54  ;;  %v4358_v8 = vcombine.high %v4354_v5, %v4354_v5  ;;  %v7975_v31 = vld [vmem:[%s10152_s3 + $0x6c4] ss:$16 sps:$4 sm:$0xff]   ;;  %v7985_v51 = vld [vmem:[%s10152_s3 + $0x680] ss:$16 sps:$4 sm:$0xff]  }
 0x314   : > { %5966 = vmatpush2.bf16.msra.mxu0 %v7926_v32  ;;  %v4303_v32 = vrot.slane %v9225_v0, %v4302_v21  ;;  %v7984_v46 = vld [vmem:[%s10152_s3 + $0x484] ss:$16 sps:$4 sm:$0xff]   ;;  %v7994_v10 = vld [vmem:[%s10152_s3 + $0x440] ss:$16 sps:$4 sm:$0xff]  }
 0x315   : > { %6007 = vmatpush2.bf16.msra.mxu1 %v7927_v33  ;;  %5967 = vmatprep.subr.bf16.mxu0 %v7928_v35  ;;  %v4373_v9 = vcombine.high %v4365_v38, %v4365_v38  ;;  %v4372_v11 = vrot.slane %v4358_v8, %v8482_v54  ;;  %v9311_v25 = vpack.c.bf16 %v4365_v38, %v4365_v38  ;;  %v7970_v33 = vld [vmem:[%s10152_s3 + $0x4c0] ss:$16 sps:$4 sm:$0xff]   ;;  %v7987_v6 = vld [vmem:[%s10152_s3 + $0x684] ss:$16 sps:$4 sm:$0xff]  }
 0x316   : > { %6008 = vmatprep.subr.bf16.mxu1 %v7930_v12  ;;  %v4307_v35 = vrot.slane %v9225_v0, %v4306_v24  ;;  %v4311_v12 = vrot.slane %v9225_v0, %v4310_v59  ;;  %v7990_v52 = vld [vmem:[%s10152_s3 + $0x464] ss:$16 sps:$4 sm:$0xff]   ;;  %v8000_v5 = vld [vmem:[%s10152_s3 + $0x420] ss:$16 sps:$4 sm:$0xff]  }
 0x317   : > { %v9297_v18 = vpack.c.bf16 %v4373_v9, %v4373_v9  ;;  %v4374_v19 = vcombine.high %v4372_v11, %v4372_v11  ;;  %v9313_v62 = vpack.c.bf16 %v4372_v11, %v4372_v11  ;;  %v7999_v63 = vld [vmem:[%s10152_s3 + $0x644] ss:$16 sps:$4 sm:$0xff]   ;;  %v8012_v59 = vld [vmem:[%s10152_s3 + $0x5e0] ss:$16 sps:$4 sm:$0xff]  }
 0x318   : > { %5968 = vmatpush2.bf16.msra.mxu0 %v7932_v36  ;;  %v4315_v36 = vrot.slane %v9225_v0, %v4314_v27  ;;  %v7976_v0 = vld [vmem:[%s10152_s3 + $0x4a0] ss:$16 sps:$4 sm:$0xff]   ;;  %v8011_v38 = vld [vmem:[%s10152_s3 + $0x604] ss:$16 sps:$4 sm:$0xff]  }
 0x319   : > { %6009 = vmatpush2.bf16.msra.mxu1 %v7933_v37  ;;  %5969 = vmatprep.subr.bf16.mxu0 %v7934_v49  ;;  %v9309_v47 = vpack.c.bf16 %v4374_v19, %v4374_v19  ;;  %v7973_v37 = vld [vmem:[%s10152_s3 + $0x6c0] ss:$16 sps:$4 sm:$0xff]   ;;  %v7978_v49 = vld [vmem:[%s10152_s3 + $0x4a4] ss:$16 sps:$4 sm:$0xff]  }
 0x31a   : > { %6010 = vmatprep.subr.bf16.mxu1 %v7936_v41  ;;  %5979 = vmatprep.mubr.bf16.mxu0 %v9297_v18  ;;  %v7981_v41 = vld [vmem:[%s10152_s3 + $0x6a4] ss:$16 sps:$4 sm:$0xff]  }
 0x31b   : > { %6020 = vmatprep.mubr.bf16.mxu1 %v9309_v47  ;;  %v4656_v11 = vld [vmem:[%s10152_s3 + $0x7c0] sm:$0xff] }
 0x31c   : > { %5970 = vmatpush2.bf16.msra.mxu0 %v7938_v58  ;;  %v4333_v58 = vcombine.low %v4303_v32, %v4307_v35  ;;  %v7729_v21 = vcombine.high %v4656_v11, %v4656_v11  ;;  %v8019_v27 = vld [vmem:[%s10152_s3 + $0x5c4] ss:$16 sps:$4 sm:$0xff]   ;;  %v8023_v35 = vld [vmem:[%s10152_s3 + $0x5a0] ss:$16 sps:$4 sm:$0xff]  }
 0x31d   : > { %6011 = vmatpush2.bf16.msra.mxu1 %v7939_v42  ;;  %5971 = vmatprep.subr.bf16.mxu0 %v7940_v48  ;;  %v4334_v42 = vcombine.low %v4311_v12, %v4315_v36  ;;  %v7982_v48 = vld [vmem:[%s10152_s3 + $0x480] ss:$16 sps:$4 sm:$0xff]   ;;  %v8025_v32 = vld [vmem:[%s10152_s3 + $0x5a4] ss:$16 sps:$4 sm:$0xff]  }
 0x31e   : > { %6012 = vmatprep.subr.bf16.mxu1 %v7942_v50  ;;  %v4341_v50 = vrot.slane %v4333_v58, %v8482_v54  ;;  %v8026_v12 = vld [vmem:[%s10152_s3 + $0x780] ss:$16 sps:$4 sm:$0xff]   ;;  %v8031_v36 = vld [vmem:[%s10152_s3 + $0x584] ss:$16 sps:$4 sm:$0xff]  }
 0x31f   : > { %v4348_v23 = vrot.slane %v4334_v42, %v8482_v54  ;;  %v8040_v58 = vld [vmem:[%s10152_s3 + $0x744] ss:$16 sps:$4 sm:$0xff]   ;;  %v8035_v42 = vld [vmem:[%s10152_s3 + $0x560] ss:$16 sps:$4 sm:$0xff]  }
 0x320   : > { %5972 = vmatpush2.bf16.msra.mxu0 %v7944_v53  ;;  %v7993_v53 = vld [vmem:[%s10152_s3 + $0x664] ss:$16 sps:$4 sm:$0xff]  }
 0x321   : > { %6013 = vmatpush2.bf16.msra.mxu1 %v7945_v56  ;;  %5973 = vmatprep.subr.bf16.mxu0 %v7946_v60  ;;  %v7988_v56 = vld [vmem:[%s10152_s3 + $0x460] ss:$16 sps:$4 sm:$0xff]   ;;  %v4349_v57 = vcombine.low %v4341_v50, %v4348_v23  ;;  %v8049_v23 = vld [vmem:[%s10152_s3 + $0x524] ss:$16 sps:$4 sm:$0xff]  }
 0x322   : > { %6014 = vmatprep.subr.bf16.mxu1 %v7948_v61  ;;  %v7991_v60 = vld [vmem:[%s10152_s3 + $0x660] ss:$16 sps:$4 sm:$0xff]   ;;  %v7996_v61 = vld [vmem:[%s10152_s3 + $0x444] ss:$16 sps:$4 sm:$0xff]  }
 0x323   : > { %v8044_v50 = vld [vmem:[%s10152_s3 + $0x720] ss:$16 sps:$4 sm:$0xff]  }
 0x324   : > { %5974 = vmatpush2.bf16.msra.mxu0 %v7950_v14  ;;  %v7997_v14 = vld [vmem:[%s10152_s3 + $0x640] ss:$16 sps:$4 sm:$0xff]  }
 0x325   : > { %6015 = vmatpush2.bf16.msra.mxu1 %v7951_v2  ;;  %5975 = vmatprep.subr.bf16.mxu0 %v7952_v34  ;;  %v4353_v2 = vadd.f32 %v4349_v57, %v4281_v1  ;;  %v8002_v34 = vld [vmem:[%s10152_s3 + $0x424] ss:$16 sps:$4 sm:$0xff]   ;;  %v8058_v57 = vld [vmem:[%s10152_s3 + $0xec] ss:$16 sps:$4 sm:$0xff]  }
 0x326   : > { %6016 = vmatprep.subr.bf16.mxu1 %v7954_v3  ;;  %v8005_v3 = vld [vmem:[%s10152_s3 + $0x624] ss:$16 sps:$4 sm:$0xff]   ;;  %v8061_v1 = vld [vmem:[%s10152_s3 + $0xcc] ss:$16 sps:$4 sm:$0xff]  }
 0x327   : > { %v4355_v4 = vmax.f32 %v4353_v2, 0.0  ;;  %v8059_v2 = vld [vmem:[%s10152_s3 + $0xc8] ss:$16 sps:$4 sm:$0xff]  }
 0x328   : > { %5976 = vmatpush2.bf16.msra.mxu0 %v7956_v7  ;;  %v8003_v7 = vld [vmem:[%s10152_s3 + $0x620] ss:$16 sps:$4 sm:$0xff]  }
 0x329   : > { %6017 = vmatpush2.bf16.msra.mxu1 %v7957_v16  ;;  %5977 = vmatprep.subr.bf16.mxu0 %v7958_v20  ;;  %v4375_v16 = vcombine.high %v4355_v4, %v4355_v4  ;;  %v9404_v20 = vrot.slane %v4355_v4, %v8482_v54  ;;  %v8070_v4 = vld [vmem:[%s10152_s3 + $0x2cc] ss:$16 sps:$4 sm:$0xff]  }
 0x32a   : > { %6018 = vmatprep.subr.bf16.mxu1 %v7960_v26  ;;  %v8008_v26 = vld [vmem:[%s10152_s3 + $0x404] ss:$16 sps:$4 sm:$0xff]  }
 0x32b   : > { %v9413_v8 = vrot.slane %v4375_v16, %v8482_v54  ;;  %v4390_v9 = vcombine.high %v9404_v20, %v9404_v20  ;;  %v8009_v54 = vld [vmem:[%s10152_s3 + $0x600] ss:$16 sps:$4 sm:$0xff]   ;;  %v8073_v16 = vld [vmem:[%s10152_s3 + $0x8c] ss:$16 sps:$4 sm:$0xff]  }
 0x32c   : > { %5978 = vmatpush2.bf16.msra.mxu0 %v7962_v13  ;;  %v8006_v13 = vld [vmem:[%s10152_s3 + $0x400] ss:$16 sps:$4 sm:$0xff]  }
 0x32d   : > { %6019 = vmatpush2.bf16.msra.mxu1 %v7963_v15  ;;  %6029 = vmatprep.subr.bf16.mxu0 %v7966_v44  ;;  %v4391_v15 = vcombine.high %v9413_v8, %v9413_v8  ;;  %v9425_v19 = vpack.c.bf16 %v4390_v9, %v4390_v9  ;;  %v8014_v44 = vld [vmem:[%s10152_s3 + $0x5e4] ss:$16 sps:$4 sm:$0xff]   ;;  %v8080_v9 = vld [vmem:[%s10152_s3 + $0x288] ss:$16 sps:$4 sm:$0xff]  }
 0x32e   : > { %6070 = vmatprep.subr.bf16.mxu1 %v7969_v22  ;;  %v7728_v22 = vcombine.low %v4656_v11, %v4656_v11  ;;  %v8085_v11 = vld [vmem:[%s10152_s3 + $0x4c] ss:$16 sps:$4 sm:$0xff]  }
 0x32f   : > { %5980 = vmatmul.mubr.bf16.vlgmr.msra.gmra.mxu0 %v9311_v25  ;;  %v9433_v24 = vpack.c.bf16 %v4391_v15, %v4391_v15  ;;  %v8083_v15 = vld [vmem:[%s10152_s3 + $0x48] ss:$16 sps:$4 sm:$0xff]  }
 0x330   : > { %6021 = vmatmul.mubr.bf16.vlgmr.msra.gmra.mxu1 %v9313_v62  ;;  %6030 = vmatpush1.bf16.msra.mxu0 %v7964_v28  ;;  %v5936_v28 = vsel %vm5934_vm15, %v7728_v22, 0  ;;  %v8089_v22 = vld [vmem:[%s10152_s3 + $0x28] ss:$16 sps:$4 sm:$0xff]  }
 0x331   : > { %6071 = vmatpush1.bf16.msra.mxu1 %v7967_v29  ;;  %6031 = vmatprep.subr.bf16.mxu0 %v7972_v30  ;;  %v8022_v29 = vld [vmem:[%s10152_s3 + $0x7a4] ss:$16 sps:$4 sm:$0xff]   ;;  %v8017_v30 = vld [vmem:[%s10152_s3 + $0x5c0] ss:$16 sps:$4 sm:$0xff]  }
 0x332   : > { %6072 = vmatprep.subr.bf16.mxu1 %v7975_v31  ;;  %6061 = vmatprep.mubr.bf16.mxu0 %v9425_v19  ;;  %v8020_v31 = vld [vmem:[%s10152_s3 + $0x7a0] ss:$16 sps:$4 sm:$0xff]  }
 0x333   : > { %7733 = vmatprep.mubr.msk.bf16.mxu1 %vm5930_vm14, %v9433_v24 }
 0x334   : > { %6032 = vmatpush1.bf16.msra.mxu0 %v7970_v33  ;;  %v8028_v33 = vld [vmem:[%s10152_s3 + $0x784] ss:$16 sps:$4 sm:$0xff]  }
 0x335   : > { %6073 = vmatpush1.bf16.msra.mxu1 %v7973_v37  ;;  %6033 = vmatprep.subr.bf16.mxu0 %v7978_v49  ;;  %v8034_v37 = vld [vmem:[%s10152_s3 + $0x764] ss:$16 sps:$4 sm:$0xff]   ;;  %v8029_v49 = vld [vmem:[%s10152_s3 + $0x580] ss:$16 sps:$4 sm:$0xff]  }
 0x336   : > { %6074 = vmatprep.subr.bf16.mxu1 %v7981_v41  ;;  %v8032_v41 = vld [vmem:[%s10152_s3 + $0x760] ss:$16 sps:$4 sm:$0xff]  }
 0x338   : > { %6034 = vmatpush1.bf16.msra.mxu0 %v7976_v0  ;;  %v8037_v0 = vld [vmem:[%s10152_s3 + $0x564] ss:$16 sps:$4 sm:$0xff]  }
 0x339   : > { %6075 = vmatpush1.bf16.msra.mxu1 %v7979_v43  ;;  %6035 = vmatprep.subr.bf16.mxu0 %v7984_v46  ;;  %v8038_v43 = vld [vmem:[%s10152_s3 + $0x740] ss:$16 sps:$4 sm:$0xff]   ;;  %v8043_v46 = vld [vmem:[%s10152_s3 + $0x544] ss:$16 sps:$4 sm:$0xff]  }
 0x33a   : > { %6076 = vmatprep.subr.bf16.mxu1 %v7987_v6  ;;  %v8046_v6 = vld [vmem:[%s10152_s3 + $0x724] ss:$16 sps:$4 sm:$0xff]  }
 0x33c   : > { %6036 = vmatpush1.bf16.msra.mxu0 %v7982_v48  ;;  %v8041_v48 = vld [vmem:[%s10152_s3 + $0x540] ss:$16 sps:$4 sm:$0xff]  }
 0x33d   : > { %6077 = vmatpush1.bf16.msra.mxu1 %v7985_v51  ;;  %6037 = vmatprep.subr.bf16.mxu0 %v7990_v52  ;;  %v8052_v51 = vld [vmem:[%s10152_s3 + $0x704] ss:$16 sps:$4 sm:$0xff]   ;;  %v8047_v52 = vld [vmem:[%s10152_s3 + $0x520] ss:$16 sps:$4 sm:$0xff]  }
 0x33e   : > { %6078 = vmatprep.subr.bf16.mxu1 %v7993_v53  ;;  %v8050_v53 = vld [vmem:[%s10152_s3 + $0x700] ss:$16 sps:$4 sm:$0xff]  }
 0x340   : > { %6038 = vmatpush1.bf16.msra.mxu0 %v7988_v56  ;;  %v8055_v56 = vld [vmem:[%s10152_s3 + $0x504] ss:$16 sps:$4 sm:$0xff]  }
 0x341   : > { %6079 = vmatpush1.bf16.msra.mxu1 %v7991_v60  ;;  %6039 = vmatprep.subr.bf16.mxu0 %v7996_v61  ;;  %v8053_v60 = vld [vmem:[%s10152_s3 + $0x500] ss:$16 sps:$4 sm:$0xff]   ;;  %v9526_v61 = vpack.c.bf16 %v9413_v8, %v9413_v8  ;;  %v8077_v8 = vld [vmem:[%s10152_s3 + $0x68] ss:$16 sps:$4 sm:$0xff]  }
 0x342   : > { %6080 = vmatprep.subr.bf16.mxu1 %v7999_v63  ;;  %v8056_v63 = vld [vmem:[%s10152_s3 + $0xe8] ss:$16 sps:$4 sm:$0xff]  }
 0x344   : > { %6040 = vmatpush1.bf16.msra.mxu0 %v7994_v10  ;;  %v8064_v10 = vld [vmem:[%s10152_s3 + $0x2ec] ss:$16 sps:$4 sm:$0xff]  }
 0x345   : > { %6081 = vmatpush1.bf16.msra.mxu1 %v7997_v14  ;;  %6041 = vmatprep.subr.bf16.mxu0 %v8002_v34  ;;  %v9540_v14 = vpack.c.bf16 %v9404_v20, %v9404_v20  ;;  %v8062_v34 = vld [vmem:[%s10152_s3 + $0x2e8] ss:$16 sps:$4 sm:$0xff]  }
 0x346   : > { %6082 = vmatprep.subr.bf16.mxu1 %v8005_v3  ;;  %v8067_v3 = vld [vmem:[%s10152_s3 + $0xac] ss:$16 sps:$4 sm:$0xff]   ;;  %v8071_v20 = vld [vmem:[%s10152_s3 + $0x88] ss:$16 sps:$4 sm:$0xff]  }
 0x348   : > { %6042 = vmatpush1.bf16.msra.mxu0 %v8000_v5  ;;  %v8065_v5 = vld [vmem:[%s10152_s3 + $0xa8] ss:$16 sps:$4 sm:$0xff]  }
 0x349   : > { %6083 = vmatpush1.bf16.msra.mxu1 %v8003_v7  ;;  %6043 = vmatprep.subr.bf16.mxu0 %v8008_v26  ;;  %v8068_v7 = vld [vmem:[%s10152_s3 + $0x2c8] ss:$16 sps:$4 sm:$0xff]  }
 0x34a   : > { %6084 = vmatprep.subr.bf16.mxu1 %v8011_v38  ;;  %v8074_v26 = vld [vmem:[%s10152_s3 + $0x2a8] ss:$16 sps:$4 sm:$0xff]   ;;  %v8079_v38 = vld [vmem:[%s10152_s3 + $0x6c] ss:$16 sps:$4 sm:$0xff]  }
 0x34c   : > { %6044 = vmatpush1.bf16.msra.mxu0 %v8006_v13  ;;  %v8088_v13 = vld [vmem:[%s10152_s3 + $0x26c] ss:$16 sps:$4 sm:$0xff]  }
 0x34d   : > { %6085 = vmatpush1.bf16.msra.mxu1 %v8009_v54  ;;  %6045 = vmatprep.subr.bf16.mxu0 %v8014_v44  ;;  %v8086_v54 = vld [vmem:[%s10152_s3 + $0x268] ss:$16 sps:$4 sm:$0xff]   ;;  %v8091_v44 = vld [vmem:[%s10152_s3 + $0x2c] ss:$16 sps:$4 sm:$0xff]  }
 0x34e   : > { %7732 = vmatprep.subr.msk.bf16.mxu1 %vm5934_vm15, %v7729_v21  ;;  %v8094_v21 = vld [vmem:[%s10152_s3 + $0x24c] ss:$16 sps:$4 sm:$0xff]  }
 0x350   : > { %6046 = vmatpush2.bf16.msra.mxu0 %v8012_v59  ;;  %v8092_v59 = vld [vmem:[%s10152_s3 + $0x248] ss:$16 sps:$4 sm:$0xff]  }
 0x351   : > { %6089 = vmatpush2.bf16.msra.mxu1 %v5936_v28  ;;  %6047 = vmatprep.subr.bf16.mxu0 %v8019_v27  ;;  %v8097_v27 = vld [vmem:[%s10152_s3 + $0xc] ss:$16 sps:$4 sm:$0xff]  }
 0x352   : > { %6090 = vmatprep.subr.bf16.mxu1 %v8022_v29  ;;  %v8100_v28 = vld [vmem:[%s10152_s3 + $0x22c] ss:$16 sps:$4 sm:$0xff]   ;;  %v8095_v29 = vld [vmem:[%s10152_s3 + $0x8] ss:$16 sps:$4 sm:$0xff]  }
 0x354   : > { %6048 = vmatpush2.bf16.msra.mxu0 %v8017_v30  ;;  %v8098_v30 = vld [vmem:[%s10152_s3 + $0x228] ss:$16 sps:$4 sm:$0xff]  }
 0x355   : > { %6091 = vmatpush2.bf16.msra.mxu1 %v8020_v31  ;;  %6049 = vmatprep.subr.bf16.mxu0 %v8025_v32  ;;  %v8103_v31 = vld [vmem:[%s10152_s3 + $0x1ec] ss:$16 sps:$4 sm:$0xff]  }
 0x356   : > { %6092 = vmatprep.subr.bf16.mxu1 %v8028_v33  ;;  %v8106_v32 = vld [vmem:[%s10152_s3 + $0x20c] ss:$16 sps:$4 sm:$0xff]   ;;  %v8101_v33 = vld [vmem:[%s10152_s3 + $0x1e8] ss:$16 sps:$4 sm:$0xff]  }
 0x358   : > { %6050 = vmatpush2.bf16.msra.mxu0 %v8023_v35  ;;  %v8104_v35 = vld [vmem:[%s10152_s3 + $0x208] ss:$16 sps:$4 sm:$0xff]  }
 0x359   : > { %6093 = vmatpush2.bf16.msra.mxu1 %v8026_v12  ;;  %6051 = vmatprep.subr.bf16.mxu0 %v8031_v36  ;;  %v8109_v12 = vld [vmem:[%s10152_s3 + $0x1cc] ss:$16 sps:$4 sm:$0xff]  }
 0x35a   : > { %6094 = vmatprep.subr.bf16.mxu1 %v8034_v37  ;;  %v8112_v36 = vld [vmem:[%s10152_s3 + $0x3ec] ss:$16 sps:$4 sm:$0xff]   ;;  %v8107_v37 = vld [vmem:[%s10152_s3 + $0x1c8] ss:$16 sps:$4 sm:$0xff]  }
 0x35c   : > { %6052 = vmatpush2.bf16.msra.mxu0 %v8029_v49  ;;  %v8110_v49 = vld [vmem:[%s10152_s3 + $0x3e8] ss:$16 sps:$4 sm:$0xff]  }
 0x35d   : > { %6095 = vmatpush2.bf16.msra.mxu1 %v8032_v41  ;;  %6053 = vmatprep.subr.bf16.mxu0 %v8037_v0  ;;  %v8115_v41 = vld [vmem:[%s10152_s3 + $0x1ac] ss:$16 sps:$4 sm:$0xff]  }
 0x35e   : > { %6096 = vmatprep.subr.bf16.mxu1 %v8040_v58  ;;  %v8118_v0 = vld [vmem:[%s10152_s3 + $0x3cc] ss:$16 sps:$4 sm:$0xff]   ;;  %v8113_v58 = vld [vmem:[%s10152_s3 + $0x1a8] ss:$16 sps:$4 sm:$0xff]  }
 0x360   : > { %6054 = vmatpush2.bf16.msra.mxu0 %v8035_v42  ;;  %v8116_v42 = vld [vmem:[%s10152_s3 + $0x3c8] ss:$16 sps:$4 sm:$0xff]  }
 0x361   : > { %6097 = vmatpush2.bf16.msra.mxu1 %v8038_v43  ;;  %6055 = vmatprep.subr.bf16.mxu0 %v8043_v46  ;;  %v8121_v43 = vld [vmem:[%s10152_s3 + $0x18c] ss:$16 sps:$4 sm:$0xff]  }
 0x362   : > { %6098 = vmatprep.subr.bf16.mxu1 %v8046_v6  ;;  %v8124_v46 = vld [vmem:[%s10152_s3 + $0x3ac] ss:$16 sps:$4 sm:$0xff]   ;;  %v8119_v6 = vld [vmem:[%s10152_s3 + $0x188] ss:$16 sps:$4 sm:$0xff]  }
 0x364   : > { %6056 = vmatpush2.bf16.msra.mxu0 %v8041_v48  ;;  %v8122_v48 = vld [vmem:[%s10152_s3 + $0x3a8] ss:$16 sps:$4 sm:$0xff]  }
 0x365   : > { %6099 = vmatpush2.bf16.msra.mxu1 %v8044_v50  ;;  %6057 = vmatprep.subr.bf16.mxu0 %v8049_v23  ;;  %v8127_v50 = vld [vmem:[%s10152_s3 + $0x16c] ss:$16 sps:$4 sm:$0xff]  }
 0x366   : > { %6100 = vmatprep.subr.bf16.mxu1 %v8052_v51  ;;  %v8130_v23 = vld [vmem:[%s10152_s3 + $0x38c] ss:$16 sps:$4 sm:$0xff]   ;;  %v8125_v51 = vld [vmem:[%s10152_s3 + $0x168] ss:$16 sps:$4 sm:$0xff]  }
 0x368   : > { %6058 = vmatpush2.bf16.msra.mxu0 %v8047_v52  ;;  %v8128_v52 = vld [vmem:[%s10152_s3 + $0x388] ss:$16 sps:$4 sm:$0xff]  }
 0x369   : > { %6101 = vmatpush2.bf16.msra.mxu1 %v8050_v53  ;;  %6059 = vmatprep.subr.bf16.mxu0 %v8055_v56  ;;  %v8133_v53 = vld [vmem:[%s10152_s3 + $0x14c] ss:$16 sps:$4 sm:$0xff]  }
 0x36a   : > { %6111 = vmatprep.subr.bf16.mxu1 %v8058_v57  ;;  %v8136_v56 = vld [vmem:[%s10152_s3 + $0x36c] ss:$16 sps:$4 sm:$0xff]   ;;  %v8131_v57 = vld [vmem:[%s10152_s3 + $0x148] ss:$16 sps:$4 sm:$0xff]  }
 0x36c   : > { %6103 = vmatmul.mubr.bf16.vlgmr.msra.gmra.mxu1 %v9526_v61  ;;  %6060 = vmatpush2.bf16.msra.mxu0 %v8053_v60  ;;  %v8134_v60 = vld [vmem:[%s10152_s3 + $0x368] ss:$16 sps:$4 sm:$0xff]  }
 0x36d   : > { %6112 = vmatpush1.bf16.msra.mxu1 %v8056_v63  ;;  %6152 = vmatprep.subr.bf16.mxu0 %v8064_v10  ;;  %v8139_v63 = vld [vmem:[%s10152_s3 + $0x12c] ss:$16 sps:$4 sm:$0xff]   ;;  %v8137_v10 = vld [vmem:[%s10152_s3 + $0x128] ss:$16 sps:$4 sm:$0xff]  }
 0x36e   : > { %6113 = vmatprep.subr.bf16.mxu1 %v8061_v1  ;;  %6143 = vmatprep.mubr.bf16.mxu1 %v9297_v18  ;;  %v8076_v18 = vld [vmem:[%s10152_s3 + $0x2ac] ss:$16 sps:$4 sm:$0xff]  }
 0x36f   : > { %6062 = vmatmul.mubr.bf16.vlgmr.msra.gmra.mxu0 %v9540_v14  ;;  %v8142_v1 = vld [vmem:[%s10152_s3 + $0x34c] ss:$16 sps:$4 sm:$0xff]  }
 0x370   : > { %6153 = vmatpush1.bf16.msra.mxu0 %v8062_v34  ;;  %6184 = vmatprep.mubr.bf16.mxu0 %v9309_v47  ;;  %v8082_v47 = vld [vmem:[%s10152_s3 + $0x28c] ss:$16 sps:$4 sm:$0xff]  }
 0x371   : > { %6114 = vmatpush1.bf16.msra.mxu1 %v8059_v2  ;;  %6154 = vmatprep.subr.bf16.mxu0 %v8070_v4  ;;  %v8140_v2 = vld [vmem:[%s10152_s3 + $0x348] ss:$16 sps:$4 sm:$0xff]   ;;  %v8145_v34 = vld [vmem:[%s10152_s3 + $0x10c] ss:$16 sps:$4 sm:$0xff]  }
 0x372   : > { %6115 = vmatprep.subr.bf16.mxu1 %v8067_v3  ;;  %v8148_v3 = vld [vmem:[%s10152_s3 + $0x32c] ss:$16 sps:$4 sm:$0xff]   ;;  %v8143_v4 = vld [vmem:[%s10152_s3 + $0x108] ss:$16 sps:$4 sm:$0xff]  }
 0x374   : > { %6155 = vmatpush1.bf16.msra.mxu0 %v8068_v7  ;;  %v8151_v7 = vld [vmem:[%s10152_s3 + $0x30c] ss:$16 sps:$4 sm:$0xff]  }
 0x375   : > { %6116 = vmatpush1.bf16.msra.mxu1 %v8065_v5  ;;  %6156 = vmatprep.subr.bf16.mxu0 %v8076_v18  ;;  %v8146_v5 = vld [vmem:[%s10152_s3 + $0x328] ss:$16 sps:$4 sm:$0xff]  }
 0x376   : > { %6117 = vmatprep.subr.bf16.mxu1 %v8073_v16  ;;  %v8154_v16 = vld [vmem:[%s10152_s3 + $0x4ec] ss:$16 sps:$4 sm:$0xff]   ;;  %v8149_v18 = vld [vmem:[%s10152_s3 + $0x308] ss:$16 sps:$4 sm:$0xff]  }
 0x378   : > { %6157 = vmatpush1.bf16.msra.mxu0 %v8074_v26  ;;  %v8157_v26 = vld [vmem:[%s10152_s3 + $0x4cc] ss:$16 sps:$4 sm:$0xff]  }
 0x379   : > { %6118 = vmatpush1.bf16.msra.mxu1 %v8071_v20  ;;  %6158 = vmatprep.subr.bf16.mxu0 %v8082_v47  ;;  %v8152_v20 = vld [vmem:[%s10152_s3 + $0x4e8] ss:$16 sps:$4 sm:$0xff]  }
 0x37a   : > { %6119 = vmatprep.subr.bf16.mxu1 %v8079_v38  ;;  %v8160_v38 = vld [vmem:[%s10152_s3 + $0x6ec] ss:$16 sps:$4 sm:$0xff]   ;;  %v8155_v47 = vld [vmem:[%s10152_s3 + $0x4c8] ss:$16 sps:$4 sm:$0xff]  }
 0x37c   : > { %6159 = vmatpush1.bf16.msra.mxu0 %v8080_v9  ;;  %v8163_v9 = vld [vmem:[%s10152_s3 + $0x4ac] ss:$16 sps:$4 sm:$0xff]  }
 0x37d   : > { %6120 = vmatpush1.bf16.msra.mxu1 %v8077_v8  ;;  %6160 = vmatprep.subr.bf16.mxu0 %v8088_v13  ;;  %v8158_v8 = vld [vmem:[%s10152_s3 + $0x6e8] ss:$16 sps:$4 sm:$0xff]  }
 0x37e   : > { %6121 = vmatprep.subr.bf16.mxu1 %v8085_v11  ;;  %v8166_v11 = vld [vmem:[%s10152_s3 + $0x6cc] ss:$16 sps:$4 sm:$0xff]   ;;  %v8161_v13 = vld [vmem:[%s10152_s3 + $0x4a8] ss:$16 sps:$4 sm:$0xff]  }
 0x380   : > { %6161 = vmatpush1.bf16.msra.mxu0 %v8086_v54  ;;  %v8172_v54 = vld [vmem:[%s10152_s3 + $0x6ac] ss:$16 sps:$4 sm:$0xff]  }
 0x381   : > { %6122 = vmatpush1.bf16.msra.mxu1 %v8083_v15  ;;  %6162 = vmatprep.subr.bf16.mxu0 %v8094_v21  ;;  %v8169_v15 = vld [vmem:[%s10152_s3 + $0x48c] ss:$16 sps:$4 sm:$0xff]  }
 0x382   : > { %6123 = vmatprep.subr.bf16.mxu1 %v8091_v44  ;;  %v8167_v44 = vld [vmem:[%s10152_s3 + $0x488] ss:$16 sps:$4 sm:$0xff]   ;;  %v8178_v21 = vld [vmem:[%s10152_s3 + $0x68c] ss:$16 sps:$4 sm:$0xff]  }
 0x384   : > { %6163 = vmatpush1.bf16.msra.mxu0 %v8092_v59  ;;  %v8181_v59 = vld [vmem:[%s10152_s3 + $0x44c] ss:$16 sps:$4 sm:$0xff]  }
 0x385   : > { %6124 = vmatpush1.bf16.msra.mxu1 %v8089_v22  ;;  %6164 = vmatprep.subr.bf16.mxu0 %v8100_v28  ;;  %v8173_v22 = vld [vmem:[%s10152_s3 + $0x468] ss:$16 sps:$4 sm:$0xff]  }
 0x386   : > { %6125 = vmatprep.subr.bf16.mxu1 %v8097_v27  ;;  %v8184_v27 = vld [vmem:[%s10152_s3 + $0x66c] ss:$16 sps:$4 sm:$0xff]   ;;  %v8179_v28 = vld [vmem:[%s10152_s3 + $0x448] ss:$16 sps:$4 sm:$0xff]  }
 0x388   : > { %6165 = vmatpush1.bf16.msra.mxu0 %v8098_v30  ;;  %v8187_v30 = vld [vmem:[%s10152_s3 + $0x42c] ss:$16 sps:$4 sm:$0xff]  }
 0x389   : > { %6126 = vmatpush1.bf16.msra.mxu1 %v8095_v29  ;;  %6166 = vmatprep.subr.bf16.mxu0 %v8106_v32  ;;  %v8182_v29 = vld [vmem:[%s10152_s3 + $0x668] ss:$16 sps:$4 sm:$0xff]  }
 0x38a   : > { %6127 = vmatprep.subr.bf16.mxu1 %v8103_v31  ;;  %v8190_v31 = vld [vmem:[%s10152_s3 + $0x64c] ss:$16 sps:$4 sm:$0xff]   ;;  %v8185_v32 = vld [vmem:[%s10152_s3 + $0x428] ss:$16 sps:$4 sm:$0xff]  }
 0x38c   : > { %6167 = vmatpush1.bf16.msra.mxu0 %v8104_v35  ;;  %v8193_v35 = vld [vmem:[%s10152_s3 + $0x40c] ss:$16 sps:$4 sm:$0xff]  }
 0x38d   : > { %6128 = vmatpush2.bf16.msra.mxu1 %v8101_v33  ;;  %6168 = vmatprep.subr.bf16.mxu0 %v8112_v36  ;;  %v8188_v33 = vld [vmem:[%s10152_s3 + $0x648] ss:$16 sps:$4 sm:$0xff]  }
 0x38e   : > { %6129 = vmatprep.subr.bf16.mxu1 %v8109_v12  ;;  %v8196_v12 = vld [vmem:[%s10152_s3 + $0x62c] ss:$16 sps:$4 sm:$0xff]   ;;  %v8191_v36 = vld [vmem:[%s10152_s3 + $0x408] ss:$16 sps:$4 sm:$0xff]  }
 0x390   : > { %6169 = vmatpush2.bf16.msra.mxu0 %v8110_v49  ;;  %v8199_v49 = vld [vmem:[%s10152_s3 + $0x5ec] ss:$16 sps:$4 sm:$0xff]  }
 0x391   : > { %6130 = vmatpush2.bf16.msra.mxu1 %v8107_v37  ;;  %6170 = vmatprep.subr.bf16.mxu0 %v8118_v0  ;;  %v8194_v37 = vld [vmem:[%s10152_s3 + $0x628] ss:$16 sps:$4 sm:$0xff]  }
 0x392   : > { %6131 = vmatprep.subr.bf16.mxu1 %v8115_v41  ;;  %v8202_v41 = vld [vmem:[%s10152_s3 + $0x60c] ss:$16 sps:$4 sm:$0xff]  }
 0x393   : > { %v4657_v0 = vld [vmem:[%s10152_s3 + $0x7c8] sm:$0xff] }
 0x394   : > { %6171 = vmatpush2.bf16.msra.mxu0 %v8116_v42  ;;  %v8200_v42 = vld [vmem:[%s10152_s3 + $0x608] ss:$16 sps:$4 sm:$0xff]  }
 0x395   : > { %6132 = vmatpush2.bf16.msra.mxu1 %v8113_v58  ;;  %6172 = vmatprep.subr.bf16.mxu0 %v8124_v46  ;;  %v8197_v58 = vld [vmem:[%s10152_s3 + $0x5e8] ss:$16 sps:$4 sm:$0xff]   ;;  %v7731_v46 = vcombine.high %v4657_v0, %v4657_v0 }
 0x396   : > { %6133 = vmatprep.subr.bf16.mxu1 %v8121_v43  ;;  %v8205_v43 = vld [vmem:[%s10152_s3 + $0x5cc] ss:$16 sps:$4 sm:$0xff]  }
 0x398   : > { %6173 = vmatpush2.bf16.msra.mxu0 %v8122_v48  ;;  %v8203_v48 = vld [vmem:[%s10152_s3 + $0x5c8] ss:$16 sps:$4 sm:$0xff]  }
 0x399   : > { %6134 = vmatpush2.bf16.msra.mxu1 %v8119_v6  ;;  %6174 = vmatprep.subr.bf16.mxu0 %v8130_v23  ;;  %v7730_v6 = vcombine.low %v4657_v0, %v4657_v0  ;;  %v8210_v23 = vld [vmem:[%s10152_s3 + $0x5ac] ss:$16 sps:$4 sm:$0xff]   ;;  %v8258_v0 = vld [vmem:[%s10154_s5 + $0x40] sm:$0xff]  }
 0x39a   : > { %6135 = vmatprep.subr.bf16.mxu1 %v8127_v50 }
 0x39b   : > { %v5942_v50 = vsel %vm5934_vm15, %v7730_v6, 0  ;;  %v10000_v6 = vld [vmem:[%s10153_s4] sm:$0xf] }
 0x39c   : > { %6175 = vmatpush2.bf16.msra.mxu0 %v8128_v52  ;;  %v8208_v52 = vld [vmem:[%s10152_s3 + $0x5a8] ss:$16 sps:$4 sm:$0xff]  }
 0x39d   : > { %6136 = vmatpush2.bf16.msra.mxu1 %v8125_v51  ;;  %6176 = vmatprep.subr.bf16.mxu0 %v8136_v56  ;;  %v8213_v51 = vld [vmem:[%s10152_s3 + $0x7ac] ss:$16 sps:$4 sm:$0xff]  }
 0x39e   : > { %6137 = vmatprep.subr.bf16.mxu1 %v8133_v53  ;;  %v8211_v53 = vld [vmem:[%s10152_s3 + $0x7a8] ss:$16 sps:$4 sm:$0xff]   ;;  %v8216_v56 = vld [vmem:[%s10152_s3 + $0x58c] ss:$16 sps:$4 sm:$0xff]  }
 0x3a0   : > { %6177 = vmatpush2.bf16.msra.mxu0 %v8134_v60  ;;  %v8214_v60 = vld [vmem:[%s10152_s3 + $0x588] ss:$16 sps:$4 sm:$0xff]  }
 0x3a1   : > { %6138 = vmatpush2.bf16.msra.mxu1 %v8131_v57  ;;  %6178 = vmatprep.subr.bf16.mxu0 %v8142_v1  ;;  %v8219_v57 = vld [vmem:[%s10152_s3 + $0x78c] ss:$16 sps:$4 sm:$0xff]  }
 0x3a2   : > { %6139 = vmatprep.subr.bf16.mxu1 %v8139_v63  ;;  %v8217_v63 = vld [vmem:[%s10152_s3 + $0x788] ss:$16 sps:$4 sm:$0xff]   ;;  %v8222_v1 = vld [vmem:[%s10152_s3 + $0x56c] ss:$16 sps:$4 sm:$0xff]  }
 0x3a4   : > { %6179 = vmatpush2.bf16.msra.mxu0 %v8140_v2  ;;  %v8220_v2 = vld [vmem:[%s10152_s3 + $0x568] ss:$16 sps:$4 sm:$0xff]  }
 0x3a5   : > { %6140 = vmatpush2.bf16.msra.mxu1 %v8137_v10  ;;  %6180 = vmatprep.subr.bf16.mxu0 %v8148_v3  ;;  %v8225_v10 = vld [vmem:[%s10152_s3 + $0x76c] ss:$16 sps:$4 sm:$0xff]  }
 0x3a6   : > { %6141 = vmatprep.subr.bf16.mxu1 %v8145_v34  ;;  %v8223_v34 = vld [vmem:[%s10152_s3 + $0x768] ss:$16 sps:$4 sm:$0xff]   ;;  %v8228_v3 = vld [vmem:[%s10152_s3 + $0x54c] ss:$16 sps:$4 sm:$0xff]  }
 0x3a8   : > { %6181 = vmatpush2.bf16.msra.mxu0 %v8146_v5  ;;  %v8226_v5 = vld [vmem:[%s10152_s3 + $0x548] ss:$16 sps:$4 sm:$0xff]  }
 0x3a9   : > { %6142 = vmatpush2.bf16.msra.mxu1 %v8143_v4  ;;  %6182 = vmatprep.subr.bf16.mxu0 %v8151_v7  ;;  %v8231_v4 = vld [vmem:[%s10152_s3 + $0x74c] ss:$16 sps:$4 sm:$0xff]   ;;  %v8229_v7 = vld [vmem:[%s10152_s3 + $0x748] ss:$16 sps:$4 sm:$0xff]  }
 0x3aa   : > { %6193 = vmatprep.subr.bf16.mxu1 %v8154_v16  ;;  %v8234_v16 = vld [vmem:[%s10152_s3 + $0x52c] ss:$16 sps:$4 sm:$0xff]  }
 0x3ac   : > { %6144 = vmatmul.mubr.bf16.vlgmr.msra.gmra.mxu1 %v9311_v25  ;;  %6183 = vmatpush2.bf16.msra.mxu0 %v8149_v18  ;;  %v8164_v25 = vld [vmem:[%s10152_s3 + $0x6c8] ss:$16 sps:$4 sm:$0xff]   ;;  %v8237_v18 = vld [vmem:[%s10152_s3 + $0x72c] ss:$16 sps:$4 sm:$0xff]  }
 0x3ad   : > { %6194 = vmatpush1.bf16.msra.mxu1 %v8152_v20  ;;  %6234 = vmatprep.subr.bf16.mxu0 %v8160_v38  ;;  %v8232_v20 = vld [vmem:[%s10152_s3 + $0x528] ss:$16 sps:$4 sm:$0xff]   ;;  %v8240_v38 = vld [vmem:[%s10152_s3 + $0x50c] ss:$16 sps:$4 sm:$0xff]  }
 0x3ae   : > { %6195 = vmatprep.subr.bf16.mxu1 %v8157_v26  ;;  %6225 = vmatprep.mubr.bf16.mxu1 %v9425_v19  ;;  %v8175_v19 = vld [vmem:[%s10152_s3 + $0x46c] ss:$16 sps:$4 sm:$0xff]   ;;  %v8235_v26 = vld [vmem:[%s10152_s3 + $0x728] ss:$16 sps:$4 sm:$0xff]  }
 0x3af   : > { %6185 = vmatmul.mubr.bf16.vlgmr.msra.gmra.mxu0 %v9313_v62  ;;  %v8170_v62 = vld [vmem:[%s10152_s3 + $0x6a8] ss:$16 sps:$4 sm:$0xff]  }
 0x3b0   : > { %6235 = vmatpush1.bf16.msra.mxu0 %v8158_v8  ;;  %7735 = vmatprep.mubr.msk.bf16.mxu0 %vm5930_vm14, %v9433_v24  ;;  %v8176_v24 = vld [vmem:[%s10152_s3 + $0x688] ss:$16 sps:$4 sm:$0xff]  }
 0x3b1   : > { %6196 = vmatpush1.bf16.msra.mxu1 %v8155_v47  ;;  %6236 = vmatprep.subr.bf16.mxu0 %v8166_v11  ;;  %v8243_v47 = vld [vmem:[%s10152_s3 + $0x70c] ss:$16 sps:$4 sm:$0xff]   ;;  %v8238_v8 = vld [vmem:[%s10152_s3 + $0x508] ss:$16 sps:$4 sm:$0xff]  }
 0x3b2   : > { %6197 = vmatprep.subr.bf16.mxu1 %v8163_v9  ;;  %v8241_v9 = vld [vmem:[%s10152_s3 + $0x708] ss:$16 sps:$4 sm:$0xff]  }
 0x3b3   : > { %v8244_v11 = vld [vmem:[%s10154_s5 + $0x78] sm:$0xff]  }
 0x3b4   : > { %6237 = vmatpush1.bf16.msra.mxu0 %v8164_v25  ;;  %v8246_v25 = vld [vmem:[%s10154_s5 + $0x70] sm:$0xff]  }
 0x3b5   : > { %6198 = vmatpush1.bf16.msra.mxu1 %v8161_v13  ;;  %6238 = vmatprep.subr.bf16.mxu0 %v8172_v54  ;;  %v8245_v13 = vld [vmem:[%s10154_s5 + $0x38] sm:$0xff]   ;;  %v8248_v54 = vld [vmem:[%s10154_s5 + $0x68] sm:$0xff]  }
 0x3b6   : > { %6199 = vmatprep.subr.bf16.mxu1 %v8169_v15  ;;  %v8247_v15 = vld [vmem:[%s10154_s5 + $0x30] sm:$0xff]  }
 0x3b8   : > { %6239 = vmatpush1.bf16.msra.mxu0 %v8170_v62 }
 0x3b9   : > { %6200 = vmatpush1.bf16.msra.mxu1 %v8167_v44  ;;  %6240 = vmatprep.subr.bf16.mxu0 %v8178_v21  ;;  %v8250_v21 = vld [vmem:[%s10154_s5 + $0x60] sm:$0xff]  }
 0x3ba   : > { %6201 = vmatprep.subr.bf16.mxu1 %v8175_v19 }
 0x3bc   : > { %6241 = vmatpush1.bf16.msra.mxu0 %v8176_v24 }
 0x3bd   : > { %6202 = vmatpush1.bf16.msra.mxu1 %v8173_v22  ;;  %6242 = vmatprep.subr.bf16.mxu0 %v8184_v27 }
 0x3be   : > { %6203 = vmatprep.subr.bf16.mxu1 %v8181_v59  ;;  %v8251_v59 = vld [vmem:[%s10154_s5 + $0x20] sm:$0xff]  }
 0x3c0   : > { %6243 = vmatpush1.bf16.msra.mxu0 %v8182_v29  ;;  %v8252_v29 = vld [vmem:[%s10154_s5 + $0x58] sm:$0xff]  }
 0x3c1   : > { %6204 = vmatpush1.bf16.msra.mxu1 %v8179_v28  ;;  %6244 = vmatprep.subr.bf16.mxu0 %v8190_v31  ;;  %v8362_v31 = vmov 0  }
 0x3c2   : > { %6205 = vmatprep.subr.bf16.mxu1 %v8187_v30  ;;  %v8276_v30 = vld [vmem:[%s10154_s5 + $0xb8] sm:$0xff]  }
 0x3c4   : > { %6245 = vmatpush1.bf16.msra.mxu0 %v8188_v33  ;;  %v8253_v33 = vld [vmem:[%s10154_s5 + $0x18] sm:$0xff]  }
 0x3c5   : > { %6206 = vmatpush1.bf16.msra.mxu1 %v8185_v32  ;;  %6246 = vmatprep.subr.bf16.mxu0 %v8196_v12  ;;  %v8277_v32 = vld [vmem:[%s10154_s5 + $0xb0] sm:$0xff]   ;;  %v8278_v12 = vld [vmem:[%s10154_s5 + $0xa8] sm:$0xff]  }
 0x3c6   : > { %6207 = vmatprep.subr.bf16.mxu1 %v8193_v35  ;;  %v8254_v35 = vld [vmem:[%s10154_s5 + $0x50] sm:$0xff]  }
 0x3c8   : > { %6247 = vmatpush1.bf16.msra.mxu0 %v8194_v37  ;;  %v8256_v37 = vld [vmem:[%s10154_s5 + $0x48] sm:$0xff]  }
 0x3c9   : > { %6208 = vmatpush1.bf16.msra.mxu1 %v8191_v36  ;;  %6248 = vmatprep.subr.bf16.mxu0 %v8202_v41  ;;  %v8255_v36 = vld [vmem:[%s10154_s5 + $0x10] sm:$0xff]   ;;  %v8257_v41 = vld [vmem:[%s10154_s5 + $0x8] sm:$0xff]  }
 0x3ca   : > { %6209 = vmatprep.subr.bf16.mxu1 %v8199_v49  ;;  %v8279_v49 = vld [vmem:[%s10154_s5 + $0xa0] sm:$0xff]  }
 0x3cc   : > { %6249 = vmatpush1.bf16.msra.mxu0 %v8200_v42  ;;  %v8259_v42 = vld [vmem:[%s10154_s5] sm:$0xff]  }
 0x3cd   : > { %6210 = vmatpush2.bf16.msra.mxu1 %v8197_v58  ;;  %7734 = vmatprep.subr.msk.bf16.mxu0 %vm5934_vm15, %v7731_v46  ;;  %v8280_v58 = vld [vmem:[%s10154_s5 + $0x98] sm:$0xff]   ;;  %v8281_v46 = vld [vmem:[%s10154_s5 + $0x90] sm:$0xff]  }
 0x3ce   : > { %6211 = vmatprep.subr.bf16.mxu1 %v8205_v43  ;;  %v8260_v43 = vld [vmem:[%s10156_s7 + $0x78] sm:$0xff]  }
 0x3d0   : > { %6253 = vmatpush2.bf16.msra.mxu0 %v5942_v50  ;;  %v4667_v50 = vrot.slane %v10000_v6, %v4290_v55 }
 0x3d1   : > { %6212 = vmatpush2.bf16.msra.mxu1 %v8203_v48  ;;  %6254 = vmatprep.subr.bf16.mxu0 %v8213_v51  ;;  %v4663_v48 = vrot.slane %v10000_v6, %v4286_v40  ;;  %v8282_v51 = vld [vmem:[%s10154_s5 + $0x88] sm:$0xff]   ;;  %v8283_v40 = vld [vmem:[%s10154_s5 + $0x80] sm:$0xff]  }
 0x3d2   : > { %6213 = vmatprep.subr.bf16.mxu1 %v8210_v23 }
 0x3d4   : > { %6255 = vmatpush2.bf16.msra.mxu0 %v8211_v53 }
 0x3d5   : > { %6214 = vmatpush2.bf16.msra.mxu1 %v8208_v52  ;;  %6256 = vmatprep.subr.bf16.mxu0 %v8219_v57 }
 0x3d6   : > { %6215 = vmatprep.subr.bf16.mxu1 %v8216_v56 }
 0x3d8   : > { %6257 = vmatpush2.bf16.msra.mxu0 %v8217_v63 }
 0x3d9   : > { %6216 = vmatpush2.bf16.msra.mxu1 %v8214_v60  ;;  %6258 = vmatprep.subr.bf16.mxu0 %v8225_v10 }
 0x3da   : > { %6217 = vmatprep.subr.bf16.mxu1 %v8222_v1 }
 0x3dc   : > { %6259 = vmatpush2.bf16.msra.mxu0 %v8223_v34 }
 0x3dd   : > { %6218 = vmatpush2.bf16.msra.mxu1 %v8220_v2  ;;  %6260 = vmatprep.subr.bf16.mxu0 %v8231_v4  ;;  %v8284_v4 = vld [vmem:[%s10154_s5 + $0xc0] sm:$0xff]  }
 0x3de   : > { %6219 = vmatprep.subr.bf16.mxu1 %v8228_v3 }
 0x3e0   : > { %6261 = vmatpush2.bf16.msra.mxu0 %v8229_v7 }
 0x3e1   : > { %6220 = vmatpush2.bf16.msra.mxu1 %v8226_v5  ;;  %6262 = vmatprep.subr.bf16.mxu0 %v8237_v18 }
 0x3e2   : > { %6221 = vmatprep.subr.bf16.mxu1 %v8234_v16 }
 0x3e4   : > { %6263 = vmatpush2.bf16.msra.mxu0 %v8235_v26 }
 0x3e5   : > { %6222 = vmatpush2.bf16.msra.mxu1 %v8232_v20  ;;  %6264 = vmatprep.subr.bf16.mxu0 %v8243_v47 }
 0x3e6   : > { %6223 = vmatprep.subr.bf16.mxu1 %v8240_v38  ;;  %v8261_v38 = vld [vmem:[%s10156_s7 + $0x38] sm:$0xff]  }
 0x3e8   : > { %6265 = vmatpush2.bf16.msra.mxu0 %v8241_v9  ;;  %v8263_v9 = vld [vmem:[%s10156_s7 + $0x30] sm:$0xff]  }
 0x3e9   : > { %6224 = vmatpush2.bf16.msra.mxu1 %v8238_v8  ;;  %7797 = vmatprep.subr.bf16.mxu0 %v8244_v11  ;;  %v8262_v8 = vld [vmem:[%s10156_s7 + $0x70] sm:$0xff]   ;;  %v8264_v11 = vld [vmem:[%s10156_s7 + $0x68] sm:$0xff]  }
 0x3ea   : > { %6534 = vmatprep.subr.bf16.mxu1 %v8362_v31 }
 0x3eb   : > { %6267 = vmatmul.mubr.bf16.vlgmr.msra.gmra.mxu0 %v9526_v61 }
 0x3ec   : > { %6226 = vmatmul.mubr.bf16.vlgmr.msra.gmra.mxu1 %v9540_v14  ;;  %7798 = vmatpush3.bf16.msra.mxu0 %v8245_v13  ;;  %v8249_v14 = vld [vmem:[%s10154_s5 + $0x28] sm:$0xff]  }
 0x3ed   : > { %7799 = vmatprep.subr.bf16.mxu0 %v8246_v25  ;;  %6535 = vmatpush1.bf16.msra.mxu1 %v8276_v30  ;;  %v8265_v13 = vld [vmem:[%s10156_s7 + $0x28] sm:$0xff]   ;;  %v8266_v25 = vld [vmem:[%s10156_s7 + $0x60] sm:$0xff]  }
 0x3ee   : > { %6536 = vmatprep.subr.bf16.mxu1 %v8362_v31 }
 0x3ef   : > { %v5981_v44 = vpop.f32.mrf.mxu0 }
 0x3f0   : > { %v9932_v62 = vpop.f32.mrf.mxu1  ;;  %7800 = vmatpush3.bf16.msra.mxu0 %v8247_v15  ;;  %v5982_v23 = vadd.f32 %v5981_v44, %v4663_v48  ;;  %v8267_v15 = vld [vmem:[%s10156_s7 + $0x20] sm:$0xff]   ;;  %v8269_v44 = vld [vmem:[%s10156_s7 + $0x18] sm:$0xff]  }
 0x3f1   : > { %v5983_v19 = vpop.f32.mrf.mxu0  ;;  %7801 = vmatprep.subr.bf16.mxu0 %v8248_v54  ;;  %6537 = vmatpush1.bf16.msra.mxu1 %v8277_v32  ;;  %v8268_v54 = vld [vmem:[%s10156_s7 + $0x58] sm:$0xff]  }
 0x3f2   : > { %v9937_v61 = vpop.f32.mrf.mxu1  ;;  %6538 = vmatprep.subr.bf16.mxu1 %v8362_v31  ;;  %v5984_v53 = vadd.f32 %v5983_v19, %v4667_v50  ;;  %v6023_v57 = vadd.f32 %v9932_v62, %v5982_v23  ;;  %v8270_v62 = vld [vmem:[%s10156_s7 + $0x50] sm:$0xff]   ;;  %v8272_v19 = vld [vmem:[%s10156_s7 + $0x48] sm:$0xff]  }
 0x3f3   : > { %v5985_v22 = vpop.f32.mrf.mxu0 }
 0x3f4   : > { %v6026_v24 = vpop.f32.mrf.mxu1  ;;  %7802 = vmatpush3.bf16.msra.mxu0 %v8249_v14  ;;  %v6025_v55 = vadd.f32 %v9937_v61, %v5984_v53  ;;  %v8271_v14 = vld [vmem:[%s10156_s7 + $0x10] sm:$0xff]   ;;  %v8273_v61 = vld [vmem:[%s10156_s7 + $0x8] sm:$0xff]   ;;  %v8275_v22 = vld [vmem:[%s10156_s7] sm:$0xff]  }
 0x3f5   : > { %v5986_v27 = vpop.f32.mrf.mxu0  ;;  %7803 = vmatprep.subr.bf16.mxu0 %v8250_v21  ;;  %6539 = vmatpush1.bf16.msra.mxu1 %v8278_v12  ;;  %v8274_v21 = vld [vmem:[%s10156_s7 + $0x40] sm:$0xff]  }
 0x3f6   : > { %v6027_v28 = vpop.f32.mrf.mxu1  ;;  %6540 = vmatprep.subr.bf16.mxu1 %v8362_v31 }
 0x3f8   : > { %7804 = vmatpush3.bf16.msra.mxu0 %v8251_v59 }
 0x3f9   : > { %7805 = vmatprep.subr.bf16.mxu0 %v8252_v29  ;;  %6541 = vmatpush1.bf16.msra.mxu1 %v8279_v49 }
 0x3fa   : > { %6542 = vmatprep.subr.bf16.mxu1 %v8362_v31 }
 0x3fc   : > { %7806 = vmatpush3.bf16.msra.mxu0 %v8253_v33 }
 0x3fd   : > { %7807 = vmatprep.subr.bf16.mxu0 %v8254_v35  ;;  %6543 = vmatpush1.bf16.msra.mxu1 %v8280_v58  ;;  %v4671_v35 = vrot.slane %v10000_v6, %v4294_v39 }
 0x3fe   : > { %6544 = vmatprep.subr.bf16.mxu1 %v8362_v31 }
 0x400   : > { %7808 = vmatpush3.bf16.msra.mxu0 %v8255_v36  ;;  %v4675_v36 = vrot.slane %v10000_v6, %v4298_v17  ;;  %v8285_v17 = vld [vmem:[%s10156_s7 + $0xb8] sm:$0xff]  }
 0x401   : > { %7809 = vmatprep.subr.bf16.mxu0 %v8256_v37  ;;  %6545 = vmatpush1.bf16.msra.mxu1 %v8281_v46 }
 0x402   : > { %6546 = vmatprep.subr.bf16.mxu1 %v8362_v31 }
 0x404   : > { %7810 = vmatpush3.bf16.msra.mxu0 %v8257_v41 }
 0x405   : > { %7811 = vmatprep.subr.bf16.mxu0 %v8258_v0  ;;  %6547 = vmatpush1.bf16.msra.mxu1 %v8282_v51 }
 0x406   : > { %6548 = vmatprep.subr.bf16.mxu1 %v8362_v31 }
 0x408   : > { %7812 = vmatpush3.bf16.msra.mxu0 %v8259_v42 }
 0x409   : > { %7819 = vmatprep.subr.bf16.mxu0 %v8260_v43  ;;  %6549 = vmatpush1.bf16.msra.mxu1 %v8283_v40  ;;  %v8286_v40 = vld [vmem:[%s10156_s7 + $0xb0] sm:$0xff]  }
 0x40a   : > { %6564 = vmatprep.subr.bf16.mxu1 %v8362_v31 }
 0x40d   : > { %6565 = vmatpush2.bf16.msra.mxu1 %v8284_v4 }
 0x40e   : > { %6821 = vmatprep.subr.bf16.mxu1 %v8362_v31 }
 0x42c   : > { %v6104_v52 = vpop.f32.mrf.mxu1 }
 0x42e   : > { %v6106_v56 = vpop.f32.mrf.mxu1 }
 0x42f   : > { %v6063_v60 = vpop.f32.mrf.mxu0 }
 0x430   : > { %v6108_v63 = vpop.f32.mrf.mxu1  ;;  %v6064_v1 = vadd.f32 %v6063_v60, %v6023_v57  ;;  %v8287_v60 = vld [vmem:[%s10156_s7 + $0xa8] sm:$0xff]  }
 0x431   : > { %v6065_v10 = vpop.f32.mrf.mxu0  ;;  %v8288_v63 = vld [vmem:[%s10156_s7 + $0xa0] sm:$0xff]  }
 0x432   : > { %v6109_v2 = vpop.f32.mrf.mxu1  ;;  %v6105_v34 = vadd.f32 %v6104_v52, %v6064_v1  ;;  %v6066_v3 = vadd.f32 %v6065_v10, %v6025_v55  ;;  %v8289_v55 = vld [vmem:[%s10156_s7 + $0x98] sm:$0xff]   ;;  %v8290_v1 = vld [vmem:[%s10156_s7 + $0x90] sm:$0xff]   ;;  %v8291_v10 = vld [vmem:[%s10156_s7 + $0x88] sm:$0xff]  }
 0x433   : > { %v6067_v5 = vpop.f32.mrf.mxu0  ;;  %v8292_v2 = vld [vmem:[%s10156_s7 + $0x80] sm:$0xff]  }
 0x434   : > { %v6107_v7 = vadd.f32 %v6106_v56, %v6066_v3  ;;  %v6275_v16 = vmax.f32 %v6105_v34, 0.0  ;;  %v8293_v34 = vld [vmem:[%s10156_s7 + $0xc0] sm:$0xff]  }
 0x435   : > { %v6068_v18 = vpop.f32.mrf.mxu0 }
 0x436   : > { %v6276_v20 = vmax.f32 %v6107_v7, 0.0  ;;  %v6279_v47 = vpack.c.bf16 %v6275_v16, %v6275_v16 }
 0x438   : > { %v6280_v26 = vpack.c.bf16 %v6276_v20, %v6276_v20 }
 0x43a   : > { %6526 = vmatprep.mubr.bf16.mxu0 %v6280_v26 }
 0x43b   : > { %6527 = vmatmul.mubr.bf16.vlgmr.msra.gmra.mxu0 %v6279_v47 }
 0x43c   : > { %7820 = vmatpush3.bf16.msra.mxu0 %v8261_v38  ;;  %6813 = vmatprep.mubr.bf16.mxu0 %v6280_v26 }
 0x43d   : > { %7821 = vmatprep.subr.bf16.mxu0 %v8262_v8  ;;  %v7736_v8 = vld [vmem:[%s10155_s6] ss:$0 sm:$0xff] }
 0x440   : > { %7822 = vmatpush3.bf16.msra.mxu0 %v8263_v9 }
 0x441   : > { %7823 = vmatprep.subr.bf16.mxu0 %v8264_v11 }
 0x444   : > { %7824 = vmatpush3.bf16.msra.mxu0 %v8265_v13 }
 0x445   : > { %7825 = vmatprep.subr.bf16.mxu0 %v8266_v25 }
 0x448   : > { %7826 = vmatpush3.bf16.msra.mxu0 %v8267_v15 }
 0x449   : > { %7827 = vmatprep.subr.bf16.mxu0 %v8268_v54  ;;  %v7763_v54 = vld [vmem:[%s10157_s8] ss:$0 sm:$0xff] }
 0x44c   : > { %7828 = vmatpush3.bf16.msra.mxu0 %v8269_v44 }
 0x44d   : > { %7829 = vmatprep.subr.bf16.mxu0 %v8270_v62 }
 0x450   : > { %7830 = vmatpush3.bf16.msra.mxu0 %v8271_v14 }
 0x451   : > { %7831 = vmatprep.subr.bf16.mxu0 %v8272_v19 }
 0x454   : > { %7832 = vmatpush3.bf16.msra.mxu0 %v8273_v61 }
 0x455   : > { %7833 = vmatprep.subr.bf16.mxu0 %v8274_v21 }
 0x458   : > { %7834 = vmatpush3.bf16.msra.mxu0 %v8275_v22 }
 0x45b   : > { %6814 = vmatmul.mubr.bf16.vlgmr.msra.gmra.mxu0 %v6279_v47 }
 0x46c   : > { %v6145_v24 = vpop.f32.mrf.mxu1 }
 0x46d   : > { %v6146_v12 = vadd.f32 %v6145_v24, %v4671_v35 }
 0x46e   : > { %v6147_v59 = vpop.f32.mrf.mxu1 }
 0x46f   : > { %v6186_v28 = vpop.f32.mrf.mxu0  ;;  %v6148_v37 = vadd.f32 %v6147_v59, %v4675_v36  ;;  %v6864_v59 = vld [vmem:[%s10158_s9] sm:$0x3] }
 0x470   : > { %v6149_v27 = vpop.f32.mrf.mxu1  ;;  %v6187_v49 = vadd.f32 %v6186_v28, %v6146_v12 }
 0x471   : > { %v6188_v30 = vpop.f32.mrf.mxu0 }
 0x472   : > { %v6150_v29 = vpop.f32.mrf.mxu1  ;;  %v6189_v58 = vadd.f32 %v6188_v30, %v6148_v37 }
 0x473   : > { %v6190_v32 = vpop.f32.mrf.mxu0 }
 0x475   : > { %v6191_v33 = vpop.f32.mrf.mxu0 }
 0x4ab   : > { %v6268_v0 = vpop.f32.mrf.mxu0 }
 0x4ac   : > { %v6227_v41 = vpop.f32.mrf.mxu1 }
 0x4ad   : > { %v6228_v42 = vadd.f32 %v6227_v41, %v6187_v49  ;;  %v6270_v46 = vpop.f32.mrf.mxu0 }
 0x4ae   : > { %v6229_v43 = vpop.f32.mrf.mxu1 }
 0x4af   : > { %v6269_v48 = vadd.f32 %v6268_v0, %v6228_v42  ;;  %v6230_v50 = vadd.f32 %v6229_v43, %v6189_v58  ;;  %v6272_v51 = vpop.f32.mrf.mxu0 }
 0x4b0   : > { %v6231_v23 = vpop.f32.mrf.mxu1 }
 0x4b1   : > { %v6271_v52 = vadd.f32 %v6270_v46, %v6230_v50  ;;  %v6277_v53 = vmax.f32 %v6269_v48, 0.0  ;;  %v6273_v56 = vpop.f32.mrf.mxu0 }
 0x4b2   : > { %v6232_v39 = vpop.f32.mrf.mxu1 }
 0x4b3   : > { %v6278_v57 = vmax.f32 %v6271_v52, 0.0  ;;  %v6281_v6 = vpack.c.bf16 %v6277_v53, %v6277_v53 }
 0x4b5   : > { %v6282_v45 = vpack.c.bf16 %v6278_v57, %v6278_v57 }
 0x4b7   : > { %7762 = vmatprep.mubr.msk.bf16.mxu1 %vm6490_vm0, %v6282_v45 }
 0x4b8   : > { %6567 = vmatmul.mubr.bf16.vlgmr.msra.gmra.mxu1 %v6281_v6 }
 0x4b9   : > { %6822 = vmatpush1.bf16.msra.mxu1 %v8285_v17  ;;  %7789 = vmatprep.mubr.msk.bf16.mxu1 %vm6490_vm0, %v6282_v45 }
 0x4ba   : > { %6823 = vmatprep.subr.bf16.mxu1 %v8362_v31 }
 0x4bd   : > { %6824 = vmatpush1.bf16.msra.mxu1 %v8286_v40 }
 0x4be   : > { %6825 = vmatprep.subr.bf16.mxu1 %v8362_v31 }
 0x4c1   : > { %6826 = vmatpush1.bf16.msra.mxu1 %v8287_v60 }
 0x4c2   : > { %6827 = vmatprep.subr.bf16.mxu1 %v8362_v31 }
 0x4c5   : > { %6828 = vmatpush1.bf16.msra.mxu1 %v8288_v63 }
 0x4c6   : > { %6829 = vmatprep.subr.bf16.mxu1 %v8362_v31 }
 0x4c9   : > { %6830 = vmatpush1.bf16.msra.mxu1 %v8289_v55 }
 0x4ca   : > { %6831 = vmatprep.subr.bf16.mxu1 %v8362_v31 }
 0x4cd   : > { %6832 = vmatpush1.bf16.msra.mxu1 %v8290_v1 }
 0x4ce   : > { %6833 = vmatprep.subr.bf16.mxu1 %v8362_v31 }
 0x4d1   : > { %6834 = vmatpush1.bf16.msra.mxu1 %v8291_v10 }
 0x4d2   : > { %6835 = vmatprep.subr.bf16.mxu1 %v8362_v31 }
 0x4d5   : > { %6836 = vmatpush1.bf16.msra.mxu1 %v8292_v2 }
 0x4d6   : > { %6851 = vmatprep.subr.bf16.mxu1 %v8362_v31 }
 0x4d9   : > { %6852 = vmatpush2.bf16.msra.mxu1 %v8293_v34 }
 0x4dc   : > { %6854 = vmatmul.mubr.bf16.vlgmr.msra.gmra.mxu1 %v6281_v6 }
 0x4fb   : > { %v7813_v3 = vpop.f32.mrf.mxu0 }
 0x4fd   : > { %v7814_v4 = vpop.f32.mrf.mxu0 }
 0x4fe   : > { %v7815_v5 = vadd.f32 %v7814_v4, %v7813_v3 }
 0x4ff   : > { %v7816_v7 = vpop.f32.mrf.mxu0 }
 0x500   : > { %v6529_v9 = vadd.f32 %v7815_v5, %v7736_v8 }
 0x501   : > { %v7817_v16 = vpop.f32.mrf.mxu0 }
 0x51b   : > { %v7835_v18 = vpop.f32.mrf.mxu0 }
 0x51d   : > { %v7836_v20 = vpop.f32.mrf.mxu0 }
 0x51e   : > { %v7837_v26 = vadd.f32 %v7836_v20, %v7835_v18 }
 0x51f   : > { %v7838_v38 = vpop.f32.mrf.mxu0 }
 0x520   : > { %v6816_v44 = vadd.f32 %v7837_v26, %v7763_v54 }
 0x521   : > { %v7839_v47 = vpop.f32.mrf.mxu0 }
 0x578   : > { %v6568_v11 = vpop.f32.mrf.mxu1 }
 0x579   : > { %v6569_v31 = vadd.f32 %v6568_v11, %v6529_v9 }
 0x57a   : > { %v6570_v13 = vpop.f32.mrf.mxu1 }
 0x57b   : > { %6862 = vst.msk [vmem:[#allocation3] sm:$0x3] %vm6861_vm1, %v6569_v31 }
 0x57c   : > { %v6571_v25 = vpop.f32.mrf.mxu1 }
 0x57e   : > { %v6572_v15 = vpop.f32.mrf.mxu1 }
 0x59c   : > { %v6855_v62 = vpop.f32.mrf.mxu1 }
 0x59d   : > { %v6856_v14 = vadd.f32 %v6855_v62, %v6816_v44 }
 0x59e   : > { %v6857_v19 = vpop.f32.mrf.mxu1 }
 0x59f   : > { %6863 = vst.msk [vmem:[#allocation5] sm:$0x3] %vm6861_vm1, %v6856_v14  ;;  %v6865_v61 = vmul.f32 0.5, %v6856_v14 }
 0x5a0   : > { %v6858_v21 = vpop.f32.mrf.mxu1 }
 0x5a1   : > { %v6866_v22 = vmul.f32 1.442695, %v6865_v61 }
 0x5a2   : > { %v6859_v24 = vpop.f32.mrf.mxu1 }
 0x5a3   : > { %8294 = vpow2.f32 %v6866_v22 }
 0x5b0   : > { %v8295_v27 = vpop.eup %8294 }
 0x5b1   : > { %v6868_v28 = vmul.f32 %v8295_v27, %v6864_v59 }
 0x5b3   : > { %v6869_v29 = vadd.f32 %v6868_v28, %v6569_v31 }
 0x5b5   : > { %6870 = vst.msk [vmem:[%s10161_s12] sm:$0x3] %vm6861_vm1, %v6869_v29 }
 0x5b6 PF: > { %p7849_p7 = scmp.eq.s32.totalorder %s8436_s22, 2  ;;  %s8363_s19 = smov [#allocation3]  }
 0x5b7   : > { %s6878_s20 = sshll.u32 %s8363_s19, 4  ;;  %s8364_s23 = smov [#allocation5]   ;;  %s6879_s20 = int_to_ptr.vmem [resolvable:$true] %s6878_s20 }
 0x5b8   : > { %s6889_s24 = sshll.u32 %s8364_s23, 4  ;;  %s8296_s25 = scalar_lea.vmem %s6879_s20, 32  ;;  %s6890_s24 = int_to_ptr.vmem [resolvable:$true] %s6889_s24 }
 0x5b9   : > { %p8297_p8 = scmp.ne.s32.totalorder %s6879_s20, %s8296_s25  ;;  %p8303_p11 = scmp.lt.s32.totalorder %s6879_s20, %s6879_s20 }
 0x5ba   : > { %p8304_p12 = scmp.lt.s32.totalorder %s8296_s25, %s8296_s25 }
 0x5bb   : > { %p8298_p9 = pnand %p8297_p8, %p7849_p7 }
 0x5bc   : > { %p8305_p13 = por %p8304_p12, %p8303_p11 }
 0x5bd   : > { %p8299_p10 = pneg %p8298_p9 }
 0x5bf   : > { %p8306_p0 = pnand %p8305_p13, %p8299_p10 }
 0x5c1   : > { %8309 = shalt.err (!%p8306_p0)
}
 0x5c2   : > { %7842 = dma.vmem_to_hbm [thread:$0]  (%p7849_p7), %s6879_s20, 32, %s10159_s10, [#allocation4]  }
 0x5c3   : > { %s8320_s28 = scalar_lea.vmem %s6890_s24, 32  ;;  %p8327_p4 = scmp.lt.s32.totalorder %s6890_s24, %s6890_s24 }
 0x5c4   : > { %p8321_p1 = scmp.ne.s32.totalorder %s6890_s24, %s8320_s28  ;;  %p8328_p5 = scmp.lt.s32.totalorder %s8320_s28, %s8320_s28 }
 0x5c6   : > { %p8322_p2 = pnand %p8321_p1, %p7849_p7  ;;  %p8329_p6 = por %p8328_p5, %p8327_p4 }
 0x5c8   : > { %p8323_p3 = pneg %p8322_p2 }
 0x5ca   : > { %p8330_p8 = pnand %p8329_p6, %p8323_p3 }
 0x5cc   : > { %8333 = shalt.err (!%p8330_p8)
}
 0x5cd   : > { %7844 = dma.vmem_to_hbm [thread:$0]  (%p7849_p7), %s6890_s24, 32, %s10160_s11, [#allocation6]  }
 0x5ce   : > { %8349 = dma.done.wait (%p7849_p7), [#allocation4], 32  }
 0x5cf   : > { %8351 = vsyncadd (%p7849_p7), [#allocation4], 4294967264 }
 0x5d0   : > { %8353 = dma.done.wait (%p7849_p7), [#allocation6], 32  }
 0x5d1   : > { %8355 = vsyncadd (%p7849_p7), [#allocation6], 4294967264 }
 0x5d2 PF: > { %s25_s21 = sadd.s32 1, %s8358_s21  }
 0x5d3   : > { %p22_p9 = scmp.ge.s32.totalorder %s25_s21, 5  }
 0x5d5   :  { %24 = sbr.rel (!%p22_p9) target bundleno = 2 (0x2), region = 114 }
 0x5da   :  { %6912 = vsyncpa [#allocation4], 1 }
 0x5db   :  { %6914 = vsyncpa [#allocation4 + $0x1], 1 }
 0x5dc   :  { %6915 = vsyncpa [#allocation6], 1 }

// kernel: vae_forward.3
= control target key start
LH: loop header
LB: loop body
LE: loop exit
PB: predicated region body
PF: predicated region fallthrough
CT: control target
= control target key end

     0   :  { %12 = vsyncpa [#allocation4], 0  ;;  %s14997_s0 = inlined_call_operand.vmem [shape: f32[2,20], index: 0, kind: input, shape index: {}]   ;;  %s14998_s1 = inlined_call_operand.vmem [shape: bf16[20,400], index: 1, kind: input, shape index: {}]   ;;  %s14999_s2 = inlined_call_operand.vmem [shape: f32[1,400], index: 2, kind: input, shape index: {}]   ;;  %s15000_s3 = inlined_call_operand.vmem [shape: bf16[400,1000], index: 3, kind: input, shape index: {}]   ;;  %s15001_s4 = inlined_call_operand.vmem [shape: f32[1,1000], index: 4, kind: input, shape index: {}]   ;;  %s15002_s5 = inlined_call_operand.vmem [shape: bf16[1000,3072], index: 5, kind: input, shape index: {}]   ;;  %s15003_s6 = inlined_call_operand.vmem [shape: f32[1,3072], index: 6, kind: input, shape index: {}]   ;;  %s15004_s7 = inlined_call_operand.hbm [shape: f32[2,3072], index: 7, kind: output, shape index: {}]  }
   0x1   :  { %14 = vsyncpa [#allocation4 + $0x1], 0  ;;  %s11725_s24 = smov 0   ;;  %s11727_s25 = smov 0  }
   0x2   :  { %s11729_s26 = smov 0   ;;  %s11731_s27 = smov 0  }
   0x3 LB: > { %s11746_s28 = sadd.s32 4294967295, %s11680_s27   ;;  %s9393_s29 = sadd.s32 4294967294, %s11680_s27   ;;  %s11680_s27 = sphi %s11731_s27, %s15012_s27   ;;  %s11676_s26 = sphi %s11729_s26, %s15011_s26   ;;  %s11672_s25 = sphi %s11727_s25, %s15010_s25   ;;  %s11668_s24 = sphi %s11725_s24, %s15009_s24  }
   0x4   : > { %s11750_s30 = sadd.s32 1, %s11680_s27   ;;  %s132_s8 = sadd.s32 1, %s11676_s26 }
   0x5   : > { %s129_s9 = ssub.s32 %s11680_s27, %s11750_s30  ;;  %p139_p0 = scmp.ne.s32.totalorder %s11676_s26, %s11672_s25 }
   0x6   : > { %p130_p1 = scmp.eq.s32.totalorder %s129_s9, 0  ;;  %p140_p2 = scmp.eq.s32.totalorder %s11680_s27, 0 }
   0x7   : > { %p195_p3 = scmp.eq.s32.totalorder %s11746_s28, 1  ;;  %p200_p4 = scmp.ne.s32.totalorder %s11672_s25, %s11668_s24 }
   0x8   : > { %s11762_s10 = scalar_select %p130_p1, %s11676_s26, %s132_s8  }
   0x9   : > { %p141_p5 = por %p140_p2, %p139_p0  ;;  %p11764_p6 = por %p195_p3, %p139_p0 }
   0xa   : > { %p201_p7 = scmp.eq.s32.totalorder %s9393_s29, 1  ;;  %p15005_p9 = scmp.ge.s32.totalorder %s11680_s27, 2 }
   0xc   : > { %p11768_p8 = por %p201_p7, %p200_p4  ;;  %232 = sbr.rel (%p15005_p9) target bundleno = 397 (0x18d), region = 36 }
  0x11   : > { %235 = sbr.rel (!%p141_p5) target bundleno = 397 (0x18d), region = 40  ;;  %s237_s13 = sand.u32 (%p141_p5), 1, %s11676_s26  }
  0x12   : > { %s10385_s14 = smul.u32 (%p141_p5), 48, %s11680_s27 }
  0x13   : > { %s10387_s15 = smul.u32 (%p141_p5), 6000, %s237_s13 }
  0x14   : > { %s11780_s18 = scalar_lea.vmem (%p141_p5), %s15002_s5, %s10385_s14 }
  0x15   : > { %v255_v0 = vld [vmem:[%s11780_s18] sm:$0xff] (%p141_p5)  ;;  %v257_v1 = vld [vmem:[%s11780_s18 + $0x8] sm:$0xff] (%p141_p5)  ;;  %v259_v2 = vld [vmem:[%s11780_s18 + $0x10] sm:$0xff] (%p141_p5)  ;;  %s11785_s19 = scalar_lea.vmem (%p141_p5), [#allocation2], %s10387_s15 }
  0x16   : > { %256 = vst [vmem:[%s11785_s19] sm:$0xff] %v255_v0  ;;  %258 = vst [vmem:[%s11785_s19 + $0x8] sm:$0xff] %v257_v1  ;;  %v261_v3 = vld [vmem:[%s11780_s18 + $0x18] sm:$0xff]  ;;  %v263_v4 = vld [vmem:[%s11780_s18 + $0x20] sm:$0xff] }
  0x17   : > { %260 = vst [vmem:[%s11785_s19 + $0x10] sm:$0xff] %v259_v2  ;;  %v265_v5 = vld [vmem:[%s11780_s18 + $0x28] sm:$0xff]  ;;  %262 = vst [vmem:[%s11785_s19 + $0x18] sm:$0xff] %v261_v3  ;;  %v267_v6 = vld [vmem:[%s11780_s18 + $0x60] sm:$0xff] }
  0x18   : > { %264 = vst [vmem:[%s11785_s19 + $0x20] sm:$0xff] %v263_v4  ;;  %266 = vst [vmem:[%s11785_s19 + $0x28] sm:$0xff] %v265_v5  ;;  %v269_v7 = vld [vmem:[%s11780_s18 + $0x68] sm:$0xff]  ;;  %v271_v8 = vld [vmem:[%s11780_s18 + $0x70] sm:$0xff] }
  0x19   : > { %268 = vst [vmem:[%s11785_s19 + $0x30] sm:$0xff] %v267_v6  ;;  %270 = vst [vmem:[%s11785_s19 + $0x38] sm:$0xff] %v269_v7  ;;  %v273_v9 = vld [vmem:[%s11780_s18 + $0x78] sm:$0xff]  ;;  %v275_v10 = vld [vmem:[%s11780_s18 + $0x80] sm:$0xff] }
  0x1a   : > { %272 = vst [vmem:[%s11785_s19 + $0x40] sm:$0xff] %v271_v8  ;;  %v277_v11 = vld [vmem:[%s11780_s18 + $0x88] sm:$0xff]  ;;  %274 = vst [vmem:[%s11785_s19 + $0x48] sm:$0xff] %v273_v9  ;;  %v279_v12 = vld [vmem:[%s11780_s18 + $0xc0] sm:$0xff] }
  0x1b   : > { %276 = vst [vmem:[%s11785_s19 + $0x50] sm:$0xff] %v275_v10  ;;  %278 = vst [vmem:[%s11785_s19 + $0x58] sm:$0xff] %v277_v11  ;;  %v281_v13 = vld [vmem:[%s11780_s18 + $0xc8] sm:$0xff]  ;;  %v283_v14 = vld [vmem:[%s11780_s18 + $0xd0] sm:$0xff] }
  0x1c   : > { %280 = vst [vmem:[%s11785_s19 + $0x60] sm:$0xff] %v279_v12  ;;  %282 = vst [vmem:[%s11785_s19 + $0x68] sm:$0xff] %v281_v13  ;;  %v285_v15 = vld [vmem:[%s11780_s18 + $0xd8] sm:$0xff]  ;;  %v287_v16 = vld [vmem:[%s11780_s18 + $0xe0] sm:$0xff] }
  0x1d   : > { %284 = vst [vmem:[%s11785_s19 + $0x70] sm:$0xff] %v283_v14  ;;  %v289_v17 = vld [vmem:[%s11780_s18 + $0xe8] sm:$0xff]  ;;  %286 = vst [vmem:[%s11785_s19 + $0x78] sm:$0xff] %v285_v15  ;;  %v291_v18 = vld [vmem:[%s11780_s18 + $0x120] sm:$0xff] }
  0x1e   : > { %288 = vst [vmem:[%s11785_s19 + $0x80] sm:$0xff] %v287_v16  ;;  %290 = vst [vmem:[%s11785_s19 + $0x88] sm:$0xff] %v289_v17  ;;  %v293_v19 = vld [vmem:[%s11780_s18 + $0x128] sm:$0xff]  ;;  %v295_v20 = vld [vmem:[%s11780_s18 + $0x130] sm:$0xff] }
  0x1f   : > { %292 = vst [vmem:[%s11785_s19 + $0x90] sm:$0xff] %v291_v18  ;;  %294 = vst [vmem:[%s11785_s19 + $0x98] sm:$0xff] %v293_v19  ;;  %v297_v21 = vld [vmem:[%s11780_s18 + $0x138] sm:$0xff]  ;;  %v299_v22 = vld [vmem:[%s11780_s18 + $0x140] sm:$0xff] }
  0x20   : > { %296 = vst [vmem:[%s11785_s19 + $0xa0] sm:$0xff] %v295_v20  ;;  %v301_v23 = vld [vmem:[%s11780_s18 + $0x148] sm:$0xff]  ;;  %298 = vst [vmem:[%s11785_s19 + $0xa8] sm:$0xff] %v297_v21  ;;  %v303_v24 = vld [vmem:[%s11780_s18 + $0x180] sm:$0xff] }
  0x21   : > { %300 = vst [vmem:[%s11785_s19 + $0xb0] sm:$0xff] %v299_v22  ;;  %302 = vst [vmem:[%s11785_s19 + $0xb8] sm:$0xff] %v301_v23  ;;  %v305_v25 = vld [vmem:[%s11780_s18 + $0x188] sm:$0xff]  ;;  %v307_v26 = vld [vmem:[%s11780_s18 + $0x190] sm:$0xff] }
  0x22   : > { %304 = vst [vmem:[%s11785_s19 + $0xc0] sm:$0xff] %v303_v24  ;;  %306 = vst [vmem:[%s11785_s19 + $0xc8] sm:$0xff] %v305_v25  ;;  %v309_v27 = vld [vmem:[%s11780_s18 + $0x198] sm:$0xff]  ;;  %v311_v28 = vld [vmem:[%s11780_s18 + $0x1a0] sm:$0xff] }
  0x23   : > { %308 = vst [vmem:[%s11785_s19 + $0xd0] sm:$0xff] %v307_v26  ;;  %v313_v29 = vld [vmem:[%s11780_s18 + $0x1a8] sm:$0xff]  ;;  %310 = vst [vmem:[%s11785_s19 + $0xd8] sm:$0xff] %v309_v27  ;;  %v315_v30 = vld [vmem:[%s11780_s18 + $0x1e0] sm:$0xff] }
  0x24   : > { %312 = vst [vmem:[%s11785_s19 + $0xe0] sm:$0xff] %v311_v28  ;;  %314 = vst [vmem:[%s11785_s19 + $0xe8] sm:$0xff] %v313_v29  ;;  %v317_v31 = vld [vmem:[%s11780_s18 + $0x1e8] sm:$0xff]  ;;  %v319_v32 = vld [vmem:[%s11780_s18 + $0x1f0] sm:$0xff] }
  0x25   : > { %316 = vst [vmem:[%s11785_s19 + $0xf0] sm:$0xff] %v315_v30  ;;  %318 = vst [vmem:[%s11785_s19 + $0xf8] sm:$0xff] %v317_v31  ;;  %v321_v33 = vld [vmem:[%s11780_s18 + $0x1f8] sm:$0xff]  ;;  %v323_v34 = vld [vmem:[%s11780_s18 + $0x200] sm:$0xff] }
  0x26   : > { %320 = vst [vmem:[%s11785_s19 + $0x100] sm:$0xff] %v319_v32  ;;  %v325_v35 = vld [vmem:[%s11780_s18 + $0x208] sm:$0xff]  ;;  %322 = vst [vmem:[%s11785_s19 + $0x108] sm:$0xff] %v321_v33  ;;  %v327_v36 = vld [vmem:[%s11780_s18 + $0x240] sm:$0xff] }
  0x27   : > { %324 = vst [vmem:[%s11785_s19 + $0x110] sm:$0xff] %v323_v34  ;;  %326 = vst [vmem:[%s11785_s19 + $0x118] sm:$0xff] %v325_v35  ;;  %v329_v37 = vld [vmem:[%s11780_s18 + $0x248] sm:$0xff]  ;;  %v331_v38 = vld [vmem:[%s11780_s18 + $0x250] sm:$0xff] }
  0x28   : > { %328 = vst [vmem:[%s11785_s19 + $0x120] sm:$0xff] %v327_v36  ;;  %330 = vst [vmem:[%s11785_s19 + $0x128] sm:$0xff] %v329_v37  ;;  %v333_v39 = vld [vmem:[%s11780_s18 + $0x258] sm:$0xff]  ;;  %v335_v40 = vld [vmem:[%s11780_s18 + $0x260] sm:$0xff] }
  0x29   : > { %332 = vst [vmem:[%s11785_s19 + $0x130] sm:$0xff] %v331_v38  ;;  %v337_v41 = vld [vmem:[%s11780_s18 + $0x268] sm:$0xff]  ;;  %334 = vst [vmem:[%s11785_s19 + $0x138] sm:$0xff] %v333_v39  ;;  %v339_v42 = vld [vmem:[%s11780_s18 + $0x2a0] sm:$0xff] }
  0x2a   : > { %336 = vst [vmem:[%s11785_s19 + $0x140] sm:$0xff] %v335_v40  ;;  %338 = vst [vmem:[%s11785_s19 + $0x148] sm:$0xff] %v337_v41  ;;  %v341_v43 = vld [vmem:[%s11780_s18 + $0x2a8] sm:$0xff]  ;;  %v343_v44 = vld [vmem:[%s11780_s18 + $0x2b0] sm:$0xff] }
  0x2b   : > { %340 = vst [vmem:[%s11785_s19 + $0x150] sm:$0xff] %v339_v42  ;;  %342 = vst [vmem:[%s11785_s19 + $0x158] sm:$0xff] %v341_v43  ;;  %v345_v45 = vld [vmem:[%s11780_s18 + $0x2b8] sm:$0xff]  ;;  %v347_v46 = vld [vmem:[%s11780_s18 + $0x2c0] sm:$0xff] }
  0x2c   : > { %344 = vst [vmem:[%s11785_s19 + $0x160] sm:$0xff] %v343_v44  ;;  %v349_v47 = vld [vmem:[%s11780_s18 + $0x2c8] sm:$0xff]  ;;  %346 = vst [vmem:[%s11785_s19 + $0x168] sm:$0xff] %v345_v45  ;;  %v351_v48 = vld [vmem:[%s11780_s18 + $0x300] sm:$0xff] }
  0x2d   : > { %348 = vst [vmem:[%s11785_s19 + $0x170] sm:$0xff] %v347_v46  ;;  %350 = vst [vmem:[%s11785_s19 + $0x178] sm:$0xff] %v349_v47  ;;  %v353_v49 = vld [vmem:[%s11780_s18 + $0x308] sm:$0xff]  ;;  %v355_v50 = vld [vmem:[%s11780_s18 + $0x310] sm:$0xff] }
  0x2e   : > { %352 = vst [vmem:[%s11785_s19 + $0x180] sm:$0xff] %v351_v48  ;;  %354 = vst [vmem:[%s11785_s19 + $0x188] sm:$0xff] %v353_v49  ;;  %v357_v51 = vld [vmem:[%s11780_s18 + $0x318] sm:$0xff]  ;;  %v359_v52 = vld [vmem:[%s11780_s18 + $0x320] sm:$0xff] }
  0x2f   : > { %356 = vst [vmem:[%s11785_s19 + $0x190] sm:$0xff] %v355_v50  ;;  %v361_v53 = vld [vmem:[%s11780_s18 + $0x328] sm:$0xff]  ;;  %358 = vst [vmem:[%s11785_s19 + $0x198] sm:$0xff] %v357_v51  ;;  %v363_v54 = vld [vmem:[%s11780_s18 + $0x360] sm:$0xff] }
  0x30   : > { %360 = vst [vmem:[%s11785_s19 + $0x1a0] sm:$0xff] %v359_v52  ;;  %362 = vst [vmem:[%s11785_s19 + $0x1a8] sm:$0xff] %v361_v53  ;;  %v365_v55 = vld [vmem:[%s11780_s18 + $0x368] sm:$0xff]  ;;  %v367_v56 = vld [vmem:[%s11780_s18 + $0x370] sm:$0xff] }
  0x31   : > { %364 = vst [vmem:[%s11785_s19 + $0x1b0] sm:$0xff] %v363_v54  ;;  %366 = vst [vmem:[%s11785_s19 + $0x1b8] sm:$0xff] %v365_v55  ;;  %v369_v57 = vld [vmem:[%s11780_s18 + $0x378] sm:$0xff]  ;;  %v371_v58 = vld [vmem:[%s11780_s18 + $0x380] sm:$0xff] }
  0x32   : > { %368 = vst [vmem:[%s11785_s19 + $0x1c0] sm:$0xff] %v367_v56  ;;  %v373_v59 = vld [vmem:[%s11780_s18 + $0x388] sm:$0xff]  ;;  %370 = vst [vmem:[%s11785_s19 + $0x1c8] sm:$0xff] %v369_v57  ;;  %v375_v60 = vld [vmem:[%s11780_s18 + $0x3c0] sm:$0xff] }
  0x33   : > { %372 = vst [vmem:[%s11785_s19 + $0x1d0] sm:$0xff] %v371_v58  ;;  %374 = vst [vmem:[%s11785_s19 + $0x1d8] sm:$0xff] %v373_v59  ;;  %v377_v61 = vld [vmem:[%s11780_s18 + $0x3c8] sm:$0xff]  ;;  %v379_v62 = vld [vmem:[%s11780_s18 + $0x3d0] sm:$0xff] }
  0x34   : > { %376 = vst [vmem:[%s11785_s19 + $0x1e0] sm:$0xff] %v375_v60  ;;  %378 = vst [vmem:[%s11785_s19 + $0x1e8] sm:$0xff] %v377_v61  ;;  %v381_v63 = vld [vmem:[%s11780_s18 + $0x3d8] sm:$0xff]  ;;  %v383_v0 = vld [vmem:[%s11780_s18 + $0x3e0] sm:$0xff] }
  0x35   : > { %380 = vst [vmem:[%s11785_s19 + $0x1f0] sm:$0xff] %v379_v62  ;;  %v385_v1 = vld [vmem:[%s11780_s18 + $0x3e8] sm:$0xff]  ;;  %382 = vst [vmem:[%s11785_s19 + $0x1f8] sm:$0xff] %v381_v63  ;;  %v387_v2 = vld [vmem:[%s11780_s18 + $0x420] sm:$0xff] }
  0x36   : > { %384 = vst [vmem:[%s11785_s19 + $0x200] sm:$0xff] %v383_v0  ;;  %386 = vst [vmem:[%s11785_s19 + $0x208] sm:$0xff] %v385_v1  ;;  %v389_v3 = vld [vmem:[%s11780_s18 + $0x428] sm:$0xff]  ;;  %v391_v4 = vld [vmem:[%s11780_s18 + $0x430] sm:$0xff] }
  0x37   : > { %388 = vst [vmem:[%s11785_s19 + $0x210] sm:$0xff] %v387_v2  ;;  %390 = vst [vmem:[%s11785_s19 + $0x218] sm:$0xff] %v389_v3  ;;  %v393_v5 = vld [vmem:[%s11780_s18 + $0x438] sm:$0xff]  ;;  %v395_v6 = vld [vmem:[%s11780_s18 + $0x440] sm:$0xff] }
  0x38   : > { %392 = vst [vmem:[%s11785_s19 + $0x220] sm:$0xff] %v391_v4  ;;  %v397_v7 = vld [vmem:[%s11780_s18 + $0x448] sm:$0xff]  ;;  %394 = vst [vmem:[%s11785_s19 + $0x228] sm:$0xff] %v393_v5  ;;  %v399_v8 = vld [vmem:[%s11780_s18 + $0x480] sm:$0xff] }
  0x39   : > { %396 = vst [vmem:[%s11785_s19 + $0x230] sm:$0xff] %v395_v6  ;;  %398 = vst [vmem:[%s11785_s19 + $0x238] sm:$0xff] %v397_v7  ;;  %v401_v9 = vld [vmem:[%s11780_s18 + $0x488] sm:$0xff]  ;;  %v403_v10 = vld [vmem:[%s11780_s18 + $0x490] sm:$0xff] }
  0x3a   : > { %400 = vst [vmem:[%s11785_s19 + $0x240] sm:$0xff] %v399_v8  ;;  %402 = vst [vmem:[%s11785_s19 + $0x248] sm:$0xff] %v401_v9  ;;  %v405_v11 = vld [vmem:[%s11780_s18 + $0x498] sm:$0xff]  ;;  %v407_v12 = vld [vmem:[%s11780_s18 + $0x4a0] sm:$0xff] }
  0x3b   : > { %404 = vst [vmem:[%s11785_s19 + $0x250] sm:$0xff] %v403_v10  ;;  %v409_v13 = vld [vmem:[%s11780_s18 + $0x4a8] sm:$0xff]  ;;  %406 = vst [vmem:[%s11785_s19 + $0x258] sm:$0xff] %v405_v11  ;;  %v411_v14 = vld [vmem:[%s11780_s18 + $0x4e0] sm:$0xff] }
  0x3c   : > { %408 = vst [vmem:[%s11785_s19 + $0x260] sm:$0xff] %v407_v12  ;;  %410 = vst [vmem:[%s11785_s19 + $0x268] sm:$0xff] %v409_v13  ;;  %v413_v15 = vld [vmem:[%s11780_s18 + $0x4e8] sm:$0xff]  ;;  %v415_v16 = vld [vmem:[%s11780_s18 + $0x4f0] sm:$0xff] }
  0x3d   : > { %412 = vst [vmem:[%s11785_s19 + $0x270] sm:$0xff] %v411_v14  ;;  %414 = vst [vmem:[%s11785_s19 + $0x278] sm:$0xff] %v413_v15  ;;  %v417_v17 = vld [vmem:[%s11780_s18 + $0x4f8] sm:$0xff]  ;;  %v419_v18 = vld [vmem:[%s11780_s18 + $0x500] sm:$0xff] }
  0x3e   : > { %416 = vst [vmem:[%s11785_s19 + $0x280] sm:$0xff] %v415_v16  ;;  %v421_v19 = vld [vmem:[%s11780_s18 + $0x508] sm:$0xff]  ;;  %418 = vst [vmem:[%s11785_s19 + $0x288] sm:$0xff] %v417_v17  ;;  %v423_v20 = vld [vmem:[%s11780_s18 + $0x540] sm:$0xff] }
  0x3f   : > { %420 = vst [vmem:[%s11785_s19 + $0x290] sm:$0xff] %v419_v18  ;;  %422 = vst [vmem:[%s11785_s19 + $0x298] sm:$0xff] %v421_v19  ;;  %v425_v21 = vld [vmem:[%s11780_s18 + $0x548] sm:$0xff]  ;;  %v427_v22 = vld [vmem:[%s11780_s18 + $0x550] sm:$0xff] }
  0x40   : > { %424 = vst [vmem:[%s11785_s19 + $0x2a0] sm:$0xff] %v423_v20  ;;  %426 = vst [vmem:[%s11785_s19 + $0x2a8] sm:$0xff] %v425_v21  ;;  %v429_v23 = vld [vmem:[%s11780_s18 + $0x558] sm:$0xff]  ;;  %v431_v24 = vld [vmem:[%s11780_s18 + $0x560] sm:$0xff] }
  0x41   : > { %428 = vst [vmem:[%s11785_s19 + $0x2b0] sm:$0xff] %v427_v22  ;;  %v433_v25 = vld [vmem:[%s11780_s18 + $0x568] sm:$0xff]  ;;  %430 = vst [vmem:[%s11785_s19 + $0x2b8] sm:$0xff] %v429_v23  ;;  %v435_v26 = vld [vmem:[%s11780_s18 + $0x5a0] sm:$0xff] }
  0x42   : > { %432 = vst [vmem:[%s11785_s19 + $0x2c0] sm:$0xff] %v431_v24  ;;  %434 = vst [vmem:[%s11785_s19 + $0x2c8] sm:$0xff] %v433_v25  ;;  %v437_v27 = vld [vmem:[%s11780_s18 + $0x5a8] sm:$0xff]  ;;  %v439_v28 = vld [vmem:[%s11780_s18 + $0x5b0] sm:$0xff] }
  0x43   : > { %436 = vst [vmem:[%s11785_s19 + $0x2d0] sm:$0xff] %v435_v26  ;;  %438 = vst [vmem:[%s11785_s19 + $0x2d8] sm:$0xff] %v437_v27  ;;  %v441_v29 = vld [vmem:[%s11780_s18 + $0x5b8] sm:$0xff]  ;;  %v443_v30 = vld [vmem:[%s11780_s18 + $0x5c0] sm:$0xff] }
  0x44   : > { %440 = vst [vmem:[%s11785_s19 + $0x2e0] sm:$0xff] %v439_v28  ;;  %v445_v31 = vld [vmem:[%s11780_s18 + $0x5c8] sm:$0xff]  ;;  %442 = vst [vmem:[%s11785_s19 + $0x2e8] sm:$0xff] %v441_v29  ;;  %v447_v32 = vld [vmem:[%s11780_s18 + $0x600] sm:$0xff] }
  0x45   : > { %444 = vst [vmem:[%s11785_s19 + $0x2f0] sm:$0xff] %v443_v30  ;;  %446 = vst [vmem:[%s11785_s19 + $0x2f8] sm:$0xff] %v445_v31  ;;  %v449_v33 = vld [vmem:[%s11780_s18 + $0x608] sm:$0xff]  ;;  %v451_v34 = vld [vmem:[%s11780_s18 + $0x610] sm:$0xff] }
  0x46   : > { %448 = vst [vmem:[%s11785_s19 + $0x300] sm:$0xff] %v447_v32  ;;  %450 = vst [vmem:[%s11785_s19 + $0x308] sm:$0xff] %v449_v33  ;;  %v453_v35 = vld [vmem:[%s11780_s18 + $0x618] sm:$0xff]  ;;  %v455_v36 = vld [vmem:[%s11780_s18 + $0x620] sm:$0xff] }
  0x47   : > { %452 = vst [vmem:[%s11785_s19 + $0x310] sm:$0xff] %v451_v34  ;;  %v457_v37 = vld [vmem:[%s11780_s18 + $0x628] sm:$0xff]  ;;  %454 = vst [vmem:[%s11785_s19 + $0x318] sm:$0xff] %v453_v35  ;;  %v459_v38 = vld [vmem:[%s11780_s18 + $0x660] sm:$0xff] }
  0x48   : > { %456 = vst [vmem:[%s11785_s19 + $0x320] sm:$0xff] %v455_v36  ;;  %458 = vst [vmem:[%s11785_s19 + $0x328] sm:$0xff] %v457_v37  ;;  %v461_v39 = vld [vmem:[%s11780_s18 + $0x668] sm:$0xff]  ;;  %v463_v40 = vld [vmem:[%s11780_s18 + $0x670] sm:$0xff] }
  0x49   : > { %460 = vst [vmem:[%s11785_s19 + $0x330] sm:$0xff] %v459_v38  ;;  %462 = vst [vmem:[%s11785_s19 + $0x338] sm:$0xff] %v461_v39  ;;  %v465_v41 = vld [vmem:[%s11780_s18 + $0x678] sm:$0xff]  ;;  %v467_v42 = vld [vmem:[%s11780_s18 + $0x680] sm:$0xff] }
  0x4a   : > { %464 = vst [vmem:[%s11785_s19 + $0x340] sm:$0xff] %v463_v40  ;;  %v469_v43 = vld [vmem:[%s11780_s18 + $0x688] sm:$0xff]  ;;  %466 = vst [vmem:[%s11785_s19 + $0x348] sm:$0xff] %v465_v41  ;;  %v471_v44 = vld [vmem:[%s11780_s18 + $0x6c0] sm:$0xff] }
  0x4b   : > { %468 = vst [vmem:[%s11785_s19 + $0x350] sm:$0xff] %v467_v42  ;;  %470 = vst [vmem:[%s11785_s19 + $0x358] sm:$0xff] %v469_v43  ;;  %v473_v45 = vld [vmem:[%s11780_s18 + $0x6c8] sm:$0xff]  ;;  %v475_v46 = vld [vmem:[%s11780_s18 + $0x6d0] sm:$0xff] }
  0x4c   : > { %472 = vst [vmem:[%s11785_s19 + $0x360] sm:$0xff] %v471_v44  ;;  %474 = vst [vmem:[%s11785_s19 + $0x368] sm:$0xff] %v473_v45  ;;  %v477_v47 = vld [vmem:[%s11780_s18 + $0x6d8] sm:$0xff]  ;;  %v479_v48 = vld [vmem:[%s11780_s18 + $0x6e0] sm:$0xff] }
  0x4d   : > { %476 = vst [vmem:[%s11785_s19 + $0x370] sm:$0xff] %v475_v46  ;;  %v481_v49 = vld [vmem:[%s11780_s18 + $0x6e8] sm:$0xff]  ;;  %478 = vst [vmem:[%s11785_s19 + $0x378] sm:$0xff] %v477_v47  ;;  %v483_v50 = vld [vmem:[%s11780_s18 + $0x720] sm:$0xff] }
  0x4e   : > { %480 = vst [vmem:[%s11785_s19 + $0x380] sm:$0xff] %v479_v48  ;;  %482 = vst [vmem:[%s11785_s19 + $0x388] sm:$0xff] %v481_v49  ;;  %v485_v51 = vld [vmem:[%s11780_s18 + $0x728] sm:$0xff]  ;;  %v487_v52 = vld [vmem:[%s11780_s18 + $0x730] sm:$0xff] }
  0x4f   : > { %484 = vst [vmem:[%s11785_s19 + $0x390] sm:$0xff] %v483_v50  ;;  %486 = vst [vmem:[%s11785_s19 + $0x398] sm:$0xff] %v485_v51  ;;  %v489_v53 = vld [vmem:[%s11780_s18 + $0x738] sm:$0xff]  ;;  %v491_v54 = vld [vmem:[%s11780_s18 + $0x740] sm:$0xff] }
  0x50   : > { %488 = vst [vmem:[%s11785_s19 + $0x3a0] sm:$0xff] %v487_v52  ;;  %v493_v55 = vld [vmem:[%s11780_s18 + $0x748] sm:$0xff]  ;;  %490 = vst [vmem:[%s11785_s19 + $0x3a8] sm:$0xff] %v489_v53  ;;  %v495_v56 = vld [vmem:[%s11780_s18 + $0x780] sm:$0xff] }
  0x51   : > { %492 = vst [vmem:[%s11785_s19 + $0x3b0] sm:$0xff] %v491_v54  ;;  %494 = vst [vmem:[%s11785_s19 + $0x3b8] sm:$0xff] %v493_v55  ;;  %v497_v57 = vld [vmem:[%s11780_s18 + $0x788] sm:$0xff]  ;;  %v499_v58 = vld [vmem:[%s11780_s18 + $0x790] sm:$0xff] }
  0x52   : > { %496 = vst [vmem:[%s11785_s19 + $0x3c0] sm:$0xff] %v495_v56  ;;  %498 = vst [vmem:[%s11785_s19 + $0x3c8] sm:$0xff] %v497_v57  ;;  %v501_v59 = vld [vmem:[%s11780_s18 + $0x798] sm:$0xff]  ;;  %v503_v60 = vld [vmem:[%s11780_s18 + $0x7a0] sm:$0xff] }
  0x53   : > { %500 = vst [vmem:[%s11785_s19 + $0x3d0] sm:$0xff] %v499_v58  ;;  %v505_v61 = vld [vmem:[%s11780_s18 + $0x7a8] sm:$0xff]  ;;  %502 = vst [vmem:[%s11785_s19 + $0x3d8] sm:$0xff] %v501_v59  ;;  %v507_v62 = vld [vmem:[%s11780_s18 + $0x7e0] sm:$0xff] }
  0x54   : > { %504 = vst [vmem:[%s11785_s19 + $0x3e0] sm:$0xff] %v503_v60  ;;  %506 = vst [vmem:[%s11785_s19 + $0x3e8] sm:$0xff] %v505_v61  ;;  %v509_v63 = vld [vmem:[%s11780_s18 + $0x7e8] sm:$0xff]  ;;  %v511_v0 = vld [vmem:[%s11780_s18 + $0x7f0] sm:$0xff] }
  0x55   : > { %508 = vst [vmem:[%s11785_s19 + $0x3f0] sm:$0xff] %v507_v62  ;;  %510 = vst [vmem:[%s11785_s19 + $0x3f8] sm:$0xff] %v509_v63  ;;  %v513_v1 = vld [vmem:[%s11780_s18 + $0x7f8] sm:$0xff]  ;;  %v515_v2 = vld [vmem:[%s11780_s18 + $0x800] sm:$0xff] }
  0x56   : > { %512 = vst [vmem:[%s11785_s19 + $0x400] sm:$0xff] %v511_v0  ;;  %v517_v3 = vld [vmem:[%s11780_s18 + $0x808] sm:$0xff]  ;;  %514 = vst [vmem:[%s11785_s19 + $0x408] sm:$0xff] %v513_v1  ;;  %v519_v4 = vld [vmem:[%s11780_s18 + $0x840] sm:$0xff] }
  0x57   : > { %516 = vst [vmem:[%s11785_s19 + $0x410] sm:$0xff] %v515_v2  ;;  %518 = vst [vmem:[%s11785_s19 + $0x418] sm:$0xff] %v517_v3  ;;  %v521_v5 = vld [vmem:[%s11780_s18 + $0x848] sm:$0xff]  ;;  %v523_v6 = vld [vmem:[%s11780_s18 + $0x850] sm:$0xff] }
  0x58   : > { %520 = vst [vmem:[%s11785_s19 + $0x420] sm:$0xff] %v519_v4  ;;  %522 = vst [vmem:[%s11785_s19 + $0x428] sm:$0xff] %v521_v5  ;;  %v525_v7 = vld [vmem:[%s11780_s18 + $0x858] sm:$0xff]  ;;  %v527_v8 = vld [vmem:[%s11780_s18 + $0x860] sm:$0xff] }
  0x59   : > { %524 = vst [vmem:[%s11785_s19 + $0x430] sm:$0xff] %v523_v6  ;;  %v529_v9 = vld [vmem:[%s11780_s18 + $0x868] sm:$0xff]  ;;  %526 = vst [vmem:[%s11785_s19 + $0x438] sm:$0xff] %v525_v7  ;;  %v531_v10 = vld [vmem:[%s11780_s18 + $0x8a0] sm:$0xff] }
  0x5a   : > { %528 = vst [vmem:[%s11785_s19 + $0x440] sm:$0xff] %v527_v8  ;;  %530 = vst [vmem:[%s11785_s19 + $0x448] sm:$0xff] %v529_v9  ;;  %v533_v11 = vld [vmem:[%s11780_s18 + $0x8a8] sm:$0xff]  ;;  %v535_v12 = vld [vmem:[%s11780_s18 + $0x8b0] sm:$0xff] }
  0x5b   : > { %532 = vst [vmem:[%s11785_s19 + $0x450] sm:$0xff] %v531_v10  ;;  %534 = vst [vmem:[%s11785_s19 + $0x458] sm:$0xff] %v533_v11  ;;  %v537_v13 = vld [vmem:[%s11780_s18 + $0x8b8] sm:$0xff]  ;;  %v539_v14 = vld [vmem:[%s11780_s18 + $0x8c0] sm:$0xff] }
  0x5c   : > { %536 = vst [vmem:[%s11785_s19 + $0x460] sm:$0xff] %v535_v12  ;;  %v541_v15 = vld [vmem:[%s11780_s18 + $0x8c8] sm:$0xff]  ;;  %538 = vst [vmem:[%s11785_s19 + $0x468] sm:$0xff] %v537_v13  ;;  %v543_v16 = vld [vmem:[%s11780_s18 + $0x900] sm:$0xff] }
  0x5d   : > { %540 = vst [vmem:[%s11785_s19 + $0x470] sm:$0xff] %v539_v14  ;;  %542 = vst [vmem:[%s11785_s19 + $0x478] sm:$0xff] %v541_v15  ;;  %v545_v17 = vld [vmem:[%s11780_s18 + $0x908] sm:$0xff]  ;;  %v547_v18 = vld [vmem:[%s11780_s18 + $0x910] sm:$0xff] }
  0x5e   : > { %544 = vst [vmem:[%s11785_s19 + $0x480] sm:$0xff] %v543_v16  ;;  %546 = vst [vmem:[%s11785_s19 + $0x488] sm:$0xff] %v545_v17  ;;  %v549_v19 = vld [vmem:[%s11780_s18 + $0x918] sm:$0xff]  ;;  %v551_v20 = vld [vmem:[%s11780_s18 + $0x920] sm:$0xff] }
  0x5f   : > { %548 = vst [vmem:[%s11785_s19 + $0x490] sm:$0xff] %v547_v18  ;;  %v553_v21 = vld [vmem:[%s11780_s18 + $0x928] sm:$0xff]  ;;  %550 = vst [vmem:[%s11785_s19 + $0x498] sm:$0xff] %v549_v19  ;;  %v555_v22 = vld [vmem:[%s11780_s18 + $0x960] sm:$0xff] }
  0x60   : > { %552 = vst [vmem:[%s11785_s19 + $0x4a0] sm:$0xff] %v551_v20  ;;  %554 = vst [vmem:[%s11785_s19 + $0x4a8] sm:$0xff] %v553_v21  ;;  %v557_v23 = vld [vmem:[%s11780_s18 + $0x968] sm:$0xff]  ;;  %v559_v24 = vld [vmem:[%s11780_s18 + $0x970] sm:$0xff] }
  0x61   : > { %556 = vst [vmem:[%s11785_s19 + $0x4b0] sm:$0xff] %v555_v22  ;;  %558 = vst [vmem:[%s11785_s19 + $0x4b8] sm:$0xff] %v557_v23  ;;  %v561_v25 = vld [vmem:[%s11780_s18 + $0x978] sm:$0xff]  ;;  %v563_v26 = vld [vmem:[%s11780_s18 + $0x980] sm:$0xff] }
  0x62   : > { %560 = vst [vmem:[%s11785_s19 + $0x4c0] sm:$0xff] %v559_v24  ;;  %v565_v27 = vld [vmem:[%s11780_s18 + $0x988] sm:$0xff]  ;;  %562 = vst [vmem:[%s11785_s19 + $0x4c8] sm:$0xff] %v561_v25  ;;  %v567_v28 = vld [vmem:[%s11780_s18 + $0x9c0] sm:$0xff] }
  0x63   : > { %564 = vst [vmem:[%s11785_s19 + $0x4d0] sm:$0xff] %v563_v26  ;;  %566 = vst [vmem:[%s11785_s19 + $0x4d8] sm:$0xff] %v565_v27  ;;  %v569_v29 = vld [vmem:[%s11780_s18 + $0x9c8] sm:$0xff]  ;;  %v571_v30 = vld [vmem:[%s11780_s18 + $0x9d0] sm:$0xff] }
  0x64   : > { %568 = vst [vmem:[%s11785_s19 + $0x4e0] sm:$0xff] %v567_v28  ;;  %570 = vst [vmem:[%s11785_s19 + $0x4e8] sm:$0xff] %v569_v29  ;;  %v573_v31 = vld [vmem:[%s11780_s18 + $0x9d8] sm:$0xff]  ;;  %v575_v32 = vld [vmem:[%s11780_s18 + $0x9e0] sm:$0xff] }
  0x65   : > { %572 = vst [vmem:[%s11785_s19 + $0x4f0] sm:$0xff] %v571_v30  ;;  %v577_v33 = vld [vmem:[%s11780_s18 + $0x9e8] sm:$0xff]  ;;  %574 = vst [vmem:[%s11785_s19 + $0x4f8] sm:$0xff] %v573_v31  ;;  %v579_v34 = vld [vmem:[%s11780_s18 + $0xa20] sm:$0xff] }
  0x66   : > { %576 = vst [vmem:[%s11785_s19 + $0x500] sm:$0xff] %v575_v32  ;;  %578 = vst [vmem:[%s11785_s19 + $0x508] sm:$0xff] %v577_v33  ;;  %v581_v35 = vld [vmem:[%s11780_s18 + $0xa28] sm:$0xff]  ;;  %v583_v36 = vld [vmem:[%s11780_s18 + $0xa30] sm:$0xff] }
  0x67   : > { %580 = vst [vmem:[%s11785_s19 + $0x510] sm:$0xff] %v579_v34  ;;  %582 = vst [vmem:[%s11785_s19 + $0x518] sm:$0xff] %v581_v35  ;;  %v585_v37 = vld [vmem:[%s11780_s18 + $0xa38] sm:$0xff]  ;;  %v587_v38 = vld [vmem:[%s11780_s18 + $0xa40] sm:$0xff] }
  0x68   : > { %584 = vst [vmem:[%s11785_s19 + $0x520] sm:$0xff] %v583_v36  ;;  %v589_v39 = vld [vmem:[%s11780_s18 + $0xa48] sm:$0xff]  ;;  %586 = vst [vmem:[%s11785_s19 + $0x528] sm:$0xff] %v585_v37  ;;  %v591_v40 = vld [vmem:[%s11780_s18 + $0xa80] sm:$0xff] }
  0x69   : > { %588 = vst [vmem:[%s11785_s19 + $0x530] sm:$0xff] %v587_v38  ;;  %590 = vst [vmem:[%s11785_s19 + $0x538] sm:$0xff] %v589_v39  ;;  %v593_v41 = vld [vmem:[%s11780_s18 + $0xa88] sm:$0xff]  ;;  %v595_v42 = vld [vmem:[%s11780_s18 + $0xa90] sm:$0xff] }
  0x6a   : > { %592 = vst [vmem:[%s11785_s19 + $0x540] sm:$0xff] %v591_v40  ;;  %594 = vst [vmem:[%s11785_s19 + $0x548] sm:$0xff] %v593_v41  ;;  %v597_v43 = vld [vmem:[%s11780_s18 + $0xa98] sm:$0xff]  ;;  %v599_v44 = vld [vmem:[%s11780_s18 + $0xaa0] sm:$0xff] }
  0x6b   : > { %596 = vst [vmem:[%s11785_s19 + $0x550] sm:$0xff] %v595_v42  ;;  %v601_v45 = vld [vmem:[%s11780_s18 + $0xaa8] sm:$0xff]  ;;  %598 = vst [vmem:[%s11785_s19 + $0x558] sm:$0xff] %v597_v43  ;;  %v603_v46 = vld [vmem:[%s11780_s18 + $0xae0] sm:$0xff] }
  0x6c   : > { %600 = vst [vmem:[%s11785_s19 + $0x560] sm:$0xff] %v599_v44  ;;  %602 = vst [vmem:[%s11785_s19 + $0x568] sm:$0xff] %v601_v45  ;;  %v605_v47 = vld [vmem:[%s11780_s18 + $0xae8] sm:$0xff]  ;;  %v607_v48 = vld [vmem:[%s11780_s18 + $0xaf0] sm:$0xff] }
  0x6d   : > { %604 = vst [vmem:[%s11785_s19 + $0x570] sm:$0xff] %v603_v46  ;;  %606 = vst [vmem:[%s11785_s19 + $0x578] sm:$0xff] %v605_v47  ;;  %v609_v49 = vld [vmem:[%s11780_s18 + $0xaf8] sm:$0xff]  ;;  %v611_v50 = vld [vmem:[%s11780_s18 + $0xb00] sm:$0xff] }
  0x6e   : > { %608 = vst [vmem:[%s11785_s19 + $0x580] sm:$0xff] %v607_v48  ;;  %v613_v51 = vld [vmem:[%s11780_s18 + $0xb08] sm:$0xff]  ;;  %610 = vst [vmem:[%s11785_s19 + $0x588] sm:$0xff] %v609_v49  ;;  %v615_v52 = vld [vmem:[%s11780_s18 + $0xb40] sm:$0xff] }
  0x6f   : > { %612 = vst [vmem:[%s11785_s19 + $0x590] sm:$0xff] %v611_v50  ;;  %614 = vst [vmem:[%s11785_s19 + $0x598] sm:$0xff] %v613_v51  ;;  %v617_v53 = vld [vmem:[%s11780_s18 + $0xb48] sm:$0xff]  ;;  %v619_v54 = vld [vmem:[%s11780_s18 + $0xb50] sm:$0xff] }
  0x70   : > { %616 = vst [vmem:[%s11785_s19 + $0x5a0] sm:$0xff] %v615_v52  ;;  %618 = vst [vmem:[%s11785_s19 + $0x5a8] sm:$0xff] %v617_v53  ;;  %v621_v55 = vld [vmem:[%s11780_s18 + $0xb58] sm:$0xff]  ;;  %v623_v56 = vld [vmem:[%s11780_s18 + $0xb60] sm:$0xff] }
  0x71   : > { %620 = vst [vmem:[%s11785_s19 + $0x5b0] sm:$0xff] %v619_v54  ;;  %v625_v57 = vld [vmem:[%s11780_s18 + $0xb68] sm:$0xff]  ;;  %622 = vst [vmem:[%s11785_s19 + $0x5b8] sm:$0xff] %v621_v55  ;;  %v627_v58 = vld [vmem:[%s11780_s18 + $0xba0] sm:$0xff] }
  0x72   : > { %624 = vst [vmem:[%s11785_s19 + $0x5c0] sm:$0xff] %v623_v56  ;;  %626 = vst [vmem:[%s11785_s19 + $0x5c8] sm:$0xff] %v625_v57  ;;  %v629_v59 = vld [vmem:[%s11780_s18 + $0xba8] sm:$0xff]  ;;  %v631_v60 = vld [vmem:[%s11780_s18 + $0xbb0] sm:$0xff] }
  0x73   : > { %628 = vst [vmem:[%s11785_s19 + $0x5d0] sm:$0xff] %v627_v58  ;;  %630 = vst [vmem:[%s11785_s19 + $0x5d8] sm:$0xff] %v629_v59  ;;  %v633_v61 = vld [vmem:[%s11780_s18 + $0xbb8] sm:$0xff]  ;;  %v635_v62 = vld [vmem:[%s11780_s18 + $0xbc0] sm:$0xff] }
  0x74   : > { %632 = vst [vmem:[%s11785_s19 + $0x5e0] sm:$0xff] %v631_v60  ;;  %v637_v63 = vld [vmem:[%s11780_s18 + $0xbc8] sm:$0xff]  ;;  %634 = vst [vmem:[%s11785_s19 + $0x5e8] sm:$0xff] %v633_v61  ;;  %v639_v0 = vld [vmem:[%s11780_s18 + $0xc00] sm:$0xff] }
  0x75   : > { %636 = vst [vmem:[%s11785_s19 + $0x5f0] sm:$0xff] %v635_v62  ;;  %638 = vst [vmem:[%s11785_s19 + $0x5f8] sm:$0xff] %v637_v63  ;;  %v641_v1 = vld [vmem:[%s11780_s18 + $0xc08] sm:$0xff]  ;;  %v643_v2 = vld [vmem:[%s11780_s18 + $0xc10] sm:$0xff] }
  0x76   : > { %640 = vst [vmem:[%s11785_s19 + $0x600] sm:$0xff] %v639_v0  ;;  %642 = vst [vmem:[%s11785_s19 + $0x608] sm:$0xff] %v641_v1  ;;  %v645_v3 = vld [vmem:[%s11780_s18 + $0xc18] sm:$0xff]  ;;  %v647_v4 = vld [vmem:[%s11780_s18 + $0xc20] sm:$0xff] }
  0x77   : > { %644 = vst [vmem:[%s11785_s19 + $0x610] sm:$0xff] %v643_v2  ;;  %v649_v5 = vld [vmem:[%s11780_s18 + $0xc28] sm:$0xff]  ;;  %646 = vst [vmem:[%s11785_s19 + $0x618] sm:$0xff] %v645_v3  ;;  %v651_v6 = vld [vmem:[%s11780_s18 + $0xc60] sm:$0xff] }
  0x78   : > { %648 = vst [vmem:[%s11785_s19 + $0x620] sm:$0xff] %v647_v4  ;;  %650 = vst [vmem:[%s11785_s19 + $0x628] sm:$0xff] %v649_v5  ;;  %v653_v7 = vld [vmem:[%s11780_s18 + $0xc68] sm:$0xff]  ;;  %v655_v8 = vld [vmem:[%s11780_s18 + $0xc70] sm:$0xff] }
  0x79   : > { %652 = vst [vmem:[%s11785_s19 + $0x630] sm:$0xff] %v651_v6  ;;  %654 = vst [vmem:[%s11785_s19 + $0x638] sm:$0xff] %v653_v7  ;;  %v657_v9 = vld [vmem:[%s11780_s18 + $0xc78] sm:$0xff]  ;;  %v659_v10 = vld [vmem:[%s11780_s18 + $0xc80] sm:$0xff] }
  0x7a   : > { %656 = vst [vmem:[%s11785_s19 + $0x640] sm:$0xff] %v655_v8  ;;  %v661_v11 = vld [vmem:[%s11780_s18 + $0xc88] sm:$0xff]  ;;  %658 = vst [vmem:[%s11785_s19 + $0x648] sm:$0xff] %v657_v9  ;;  %v663_v12 = vld [vmem:[%s11780_s18 + $0xcc0] sm:$0xff] }
  0x7b   : > { %660 = vst [vmem:[%s11785_s19 + $0x650] sm:$0xff] %v659_v10  ;;  %662 = vst [vmem:[%s11785_s19 + $0x658] sm:$0xff] %v661_v11  ;;  %v665_v13 = vld [vmem:[%s11780_s18 + $0xcc8] sm:$0xff]  ;;  %v667_v14 = vld [vmem:[%s11780_s18 + $0xcd0] sm:$0xff] }
  0x7c   : > { %664 = vst [vmem:[%s11785_s19 + $0x660] sm:$0xff] %v663_v12  ;;  %666 = vst [vmem:[%s11785_s19 + $0x668] sm:$0xff] %v665_v13  ;;  %v669_v15 = vld [vmem:[%s11780_s18 + $0xcd8] sm:$0xff]  ;;  %v671_v16 = vld [vmem:[%s11780_s18 + $0xce0] sm:$0xff] }
  0x7d   : > { %668 = vst [vmem:[%s11785_s19 + $0x670] sm:$0xff] %v667_v14  ;;  %v673_v17 = vld [vmem:[%s11780_s18 + $0xce8] sm:$0xff]  ;;  %670 = vst [vmem:[%s11785_s19 + $0x678] sm:$0xff] %v669_v15  ;;  %v675_v18 = vld [vmem:[%s11780_s18 + $0xd20] sm:$0xff] }
  0x7e   : > { %672 = vst [vmem:[%s11785_s19 + $0x680] sm:$0xff] %v671_v16  ;;  %674 = vst [vmem:[%s11785_s19 + $0x688] sm:$0xff] %v673_v17  ;;  %v677_v19 = vld [vmem:[%s11780_s18 + $0xd28] sm:$0xff]  ;;  %v679_v20 = vld [vmem:[%s11780_s18 + $0xd30] sm:$0xff] }
  0x7f   : > { %676 = vst [vmem:[%s11785_s19 + $0x690] sm:$0xff] %v675_v18  ;;  %678 = vst [vmem:[%s11785_s19 + $0x698] sm:$0xff] %v677_v19  ;;  %v681_v21 = vld [vmem:[%s11780_s18 + $0xd38] sm:$0xff]  ;;  %v683_v22 = vld [vmem:[%s11780_s18 + $0xd40] sm:$0xff] }
  0x80   : > { %680 = vst [vmem:[%s11785_s19 + $0x6a0] sm:$0xff] %v679_v20  ;;  %v685_v23 = vld [vmem:[%s11780_s18 + $0xd48] sm:$0xff]  ;;  %682 = vst [vmem:[%s11785_s19 + $0x6a8] sm:$0xff] %v681_v21  ;;  %v687_v24 = vld [vmem:[%s11780_s18 + $0xd80] sm:$0xff] }
  0x81   : > { %684 = vst [vmem:[%s11785_s19 + $0x6b0] sm:$0xff] %v683_v22  ;;  %686 = vst [vmem:[%s11785_s19 + $0x6b8] sm:$0xff] %v685_v23  ;;  %v689_v25 = vld [vmem:[%s11780_s18 + $0xd88] sm:$0xff]  ;;  %v691_v26 = vld [vmem:[%s11780_s18 + $0xd90] sm:$0xff] }
  0x82   : > { %688 = vst [vmem:[%s11785_s19 + $0x6c0] sm:$0xff] %v687_v24  ;;  %690 = vst [vmem:[%s11785_s19 + $0x6c8] sm:$0xff] %v689_v25  ;;  %v693_v27 = vld [vmem:[%s11780_s18 + $0xd98] sm:$0xff]  ;;  %v695_v28 = vld [vmem:[%s11780_s18 + $0xda0] sm:$0xff] }
  0x83   : > { %692 = vst [vmem:[%s11785_s19 + $0x6d0] sm:$0xff] %v691_v26  ;;  %v697_v29 = vld [vmem:[%s11780_s18 + $0xda8] sm:$0xff]  ;;  %694 = vst [vmem:[%s11785_s19 + $0x6d8] sm:$0xff] %v693_v27  ;;  %v699_v30 = vld [vmem:[%s11780_s18 + $0xde0] sm:$0xff] }
  0x84   : > { %696 = vst [vmem:[%s11785_s19 + $0x6e0] sm:$0xff] %v695_v28  ;;  %698 = vst [vmem:[%s11785_s19 + $0x6e8] sm:$0xff] %v697_v29  ;;  %v701_v31 = vld [vmem:[%s11780_s18 + $0xde8] sm:$0xff]  ;;  %v703_v32 = vld [vmem:[%s11780_s18 + $0xdf0] sm:$0xff] }
  0x85   : > { %700 = vst [vmem:[%s11785_s19 + $0x6f0] sm:$0xff] %v699_v30  ;;  %702 = vst [vmem:[%s11785_s19 + $0x6f8] sm:$0xff] %v701_v31  ;;  %v705_v33 = vld [vmem:[%s11780_s18 + $0xdf8] sm:$0xff]  ;;  %v707_v34 = vld [vmem:[%s11780_s18 + $0xe00] sm:$0xff] }
  0x86   : > { %704 = vst [vmem:[%s11785_s19 + $0x700] sm:$0xff] %v703_v32  ;;  %v709_v35 = vld [vmem:[%s11780_s18 + $0xe08] sm:$0xff]  ;;  %706 = vst [vmem:[%s11785_s19 + $0x708] sm:$0xff] %v705_v33  ;;  %v711_v36 = vld [vmem:[%s11780_s18 + $0xe40] sm:$0xff] }
  0x87   : > { %708 = vst [vmem:[%s11785_s19 + $0x710] sm:$0xff] %v707_v34  ;;  %710 = vst [vmem:[%s11785_s19 + $0x718] sm:$0xff] %v709_v35  ;;  %v713_v37 = vld [vmem:[%s11780_s18 + $0xe48] sm:$0xff]  ;;  %v715_v38 = vld [vmem:[%s11780_s18 + $0xe50] sm:$0xff] }
  0x88   : > { %712 = vst [vmem:[%s11785_s19 + $0x720] sm:$0xff] %v711_v36  ;;  %714 = vst [vmem:[%s11785_s19 + $0x728] sm:$0xff] %v713_v37  ;;  %v717_v39 = vld [vmem:[%s11780_s18 + $0xe58] sm:$0xff]  ;;  %v719_v40 = vld [vmem:[%s11780_s18 + $0xe60] sm:$0xff] }
  0x89   : > { %716 = vst [vmem:[%s11785_s19 + $0x730] sm:$0xff] %v715_v38  ;;  %v721_v41 = vld [vmem:[%s11780_s18 + $0xe68] sm:$0xff]  ;;  %718 = vst [vmem:[%s11785_s19 + $0x738] sm:$0xff] %v717_v39  ;;  %v723_v42 = vld [vmem:[%s11780_s18 + $0xea0] sm:$0xff] }
  0x8a   : > { %720 = vst [vmem:[%s11785_s19 + $0x740] sm:$0xff] %v719_v40  ;;  %722 = vst [vmem:[%s11785_s19 + $0x748] sm:$0xff] %v721_v41  ;;  %v725_v43 = vld [vmem:[%s11780_s18 + $0xea8] sm:$0xff]  ;;  %v727_v44 = vld [vmem:[%s11780_s18 + $0xeb0] sm:$0xff] }
  0x8b   : > { %724 = vst [vmem:[%s11785_s19 + $0x750] sm:$0xff] %v723_v42  ;;  %726 = vst [vmem:[%s11785_s19 + $0x758] sm:$0xff] %v725_v43  ;;  %v729_v45 = vld [vmem:[%s11780_s18 + $0xeb8] sm:$0xff]  ;;  %v731_v46 = vld [vmem:[%s11780_s18 + $0xec0] sm:$0xff] }
  0x8c   : > { %728 = vst [vmem:[%s11785_s19 + $0x760] sm:$0xff] %v727_v44  ;;  %v733_v47 = vld [vmem:[%s11780_s18 + $0xec8] sm:$0xff]  ;;  %730 = vst [vmem:[%s11785_s19 + $0x768] sm:$0xff] %v729_v45  ;;  %v735_v48 = vld [vmem:[%s11780_s18 + $0xf00] sm:$0xff] }
  0x8d   : > { %732 = vst [vmem:[%s11785_s19 + $0x770] sm:$0xff] %v731_v46  ;;  %734 = vst [vmem:[%s11785_s19 + $0x778] sm:$0xff] %v733_v47  ;;  %v737_v49 = vld [vmem:[%s11780_s18 + $0xf08] sm:$0xff]  ;;  %v739_v50 = vld [vmem:[%s11780_s18 + $0xf10] sm:$0xff] }
  0x8e   : > { %736 = vst [vmem:[%s11785_s19 + $0x780] sm:$0xff] %v735_v48  ;;  %738 = vst [vmem:[%s11785_s19 + $0x788] sm:$0xff] %v737_v49  ;;  %v741_v51 = vld [vmem:[%s11780_s18 + $0xf18] sm:$0xff]  ;;  %v743_v52 = vld [vmem:[%s11780_s18 + $0xf20] sm:$0xff] }
  0x8f   : > { %740 = vst [vmem:[%s11785_s19 + $0x790] sm:$0xff] %v739_v50  ;;  %v745_v53 = vld [vmem:[%s11780_s18 + $0xf28] sm:$0xff]  ;;  %742 = vst [vmem:[%s11785_s19 + $0x798] sm:$0xff] %v741_v51  ;;  %v747_v54 = vld [vmem:[%s11780_s18 + $0xf60] sm:$0xff] }
  0x90   : > { %744 = vst [vmem:[%s11785_s19 + $0x7a0] sm:$0xff] %v743_v52  ;;  %746 = vst [vmem:[%s11785_s19 + $0x7a8] sm:$0xff] %v745_v53  ;;  %v749_v55 = vld [vmem:[%s11780_s18 + $0xf68] sm:$0xff]  ;;  %v751_v56 = vld [vmem:[%s11780_s18 + $0xf70] sm:$0xff] }
  0x91   : > { %748 = vst [vmem:[%s11785_s19 + $0x7b0] sm:$0xff] %v747_v54  ;;  %750 = vst [vmem:[%s11785_s19 + $0x7b8] sm:$0xff] %v749_v55  ;;  %v753_v57 = vld [vmem:[%s11780_s18 + $0xf78] sm:$0xff]  ;;  %v755_v58 = vld [vmem:[%s11780_s18 + $0xf80] sm:$0xff] }
  0x92   : > { %752 = vst [vmem:[%s11785_s19 + $0x7c0] sm:$0xff] %v751_v56  ;;  %v757_v59 = vld [vmem:[%s11780_s18 + $0xf88] sm:$0xff]  ;;  %754 = vst [vmem:[%s11785_s19 + $0x7c8] sm:$0xff] %v753_v57  ;;  %v759_v60 = vld [vmem:[%s11780_s18 + $0xfc0] sm:$0xff] }
  0x93   : > { %756 = vst [vmem:[%s11785_s19 + $0x7d0] sm:$0xff] %v755_v58  ;;  %758 = vst [vmem:[%s11785_s19 + $0x7d8] sm:$0xff] %v757_v59  ;;  %v761_v61 = vld [vmem:[%s11780_s18 + $0xfc8] sm:$0xff]  ;;  %v763_v62 = vld [vmem:[%s11780_s18 + $0xfd0] sm:$0xff] }
  0x94   : > { %760 = vst [vmem:[%s11785_s19 + $0x7e0] sm:$0xff] %v759_v60  ;;  %762 = vst [vmem:[%s11785_s19 + $0x7e8] sm:$0xff] %v761_v61  ;;  %v765_v63 = vld [vmem:[%s11780_s18 + $0xfd8] sm:$0xff]  ;;  %v767_v0 = vld [vmem:[%s11780_s18 + $0xfe0] sm:$0xff] }
  0x95   : > { %764 = vst [vmem:[%s11785_s19 + $0x7f0] sm:$0xff] %v763_v62  ;;  %v769_v1 = vld [vmem:[%s11780_s18 + $0xfe8] sm:$0xff]  ;;  %766 = vst [vmem:[%s11785_s19 + $0x7f8] sm:$0xff] %v765_v63  ;;  %v771_v2 = vld [vmem:[%s11780_s18 + $0x1020] sm:$0xff] }
  0x96   : > { %768 = vst [vmem:[%s11785_s19 + $0x800] sm:$0xff] %v767_v0  ;;  %770 = vst [vmem:[%s11785_s19 + $0x808] sm:$0xff] %v769_v1  ;;  %v773_v3 = vld [vmem:[%s11780_s18 + $0x1028] sm:$0xff]  ;;  %v775_v4 = vld [vmem:[%s11780_s18 + $0x1030] sm:$0xff] }
  0x97   : > { %772 = vst [vmem:[%s11785_s19 + $0x810] sm:$0xff] %v771_v2  ;;  %774 = vst [vmem:[%s11785_s19 + $0x818] sm:$0xff] %v773_v3  ;;  %v777_v5 = vld [vmem:[%s11780_s18 + $0x1038] sm:$0xff]  ;;  %v779_v6 = vld [vmem:[%s11780_s18 + $0x1040] sm:$0xff] }
  0x98   : > { %776 = vst [vmem:[%s11785_s19 + $0x820] sm:$0xff] %v775_v4  ;;  %v781_v7 = vld [vmem:[%s11780_s18 + $0x1048] sm:$0xff]  ;;  %778 = vst [vmem:[%s11785_s19 + $0x828] sm:$0xff] %v777_v5  ;;  %v783_v8 = vld [vmem:[%s11780_s18 + $0x1080] sm:$0xff] }
  0x99   : > { %780 = vst [vmem:[%s11785_s19 + $0x830] sm:$0xff] %v779_v6  ;;  %782 = vst [vmem:[%s11785_s19 + $0x838] sm:$0xff] %v781_v7  ;;  %v785_v9 = vld [vmem:[%s11780_s18 + $0x1088] sm:$0xff]  ;;  %v787_v10 = vld [vmem:[%s11780_s18 + $0x1090] sm:$0xff] }
  0x9a   : > { %784 = vst [vmem:[%s11785_s19 + $0x840] sm:$0xff] %v783_v8  ;;  %786 = vst [vmem:[%s11785_s19 + $0x848] sm:$0xff] %v785_v9  ;;  %v789_v11 = vld [vmem:[%s11780_s18 + $0x1098] sm:$0xff]  ;;  %v791_v12 = vld [vmem:[%s11780_s18 + $0x10a0] sm:$0xff] }
  0x9b   : > { %788 = vst [vmem:[%s11785_s19 + $0x850] sm:$0xff] %v787_v10  ;;  %v793_v13 = vld [vmem:[%s11780_s18 + $0x10a8] sm:$0xff]  ;;  %790 = vst [vmem:[%s11785_s19 + $0x858] sm:$0xff] %v789_v11  ;;  %v795_v14 = vld [vmem:[%s11780_s18 + $0x10e0] sm:$0xff] }
  0x9c   : > { %792 = vst [vmem:[%s11785_s19 + $0x860] sm:$0xff] %v791_v12  ;;  %794 = vst [vmem:[%s11785_s19 + $0x868] sm:$0xff] %v793_v13  ;;  %v797_v15 = vld [vmem:[%s11780_s18 + $0x10e8] sm:$0xff]  ;;  %v799_v16 = vld [vmem:[%s11780_s18 + $0x10f0] sm:$0xff] }
  0x9d   : > { %796 = vst [vmem:[%s11785_s19 + $0x870] sm:$0xff] %v795_v14  ;;  %798 = vst [vmem:[%s11785_s19 + $0x878] sm:$0xff] %v797_v15  ;;  %v801_v17 = vld [vmem:[%s11780_s18 + $0x10f8] sm:$0xff]  ;;  %v803_v18 = vld [vmem:[%s11780_s18 + $0x1100] sm:$0xff] }
  0x9e   : > { %800 = vst [vmem:[%s11785_s19 + $0x880] sm:$0xff] %v799_v16  ;;  %v805_v19 = vld [vmem:[%s11780_s18 + $0x1108] sm:$0xff]  ;;  %802 = vst [vmem:[%s11785_s19 + $0x888] sm:$0xff] %v801_v17  ;;  %v807_v20 = vld [vmem:[%s11780_s18 + $0x1140] sm:$0xff] }
  0x9f   : > { %804 = vst [vmem:[%s11785_s19 + $0x890] sm:$0xff] %v803_v18  ;;  %806 = vst [vmem:[%s11785_s19 + $0x898] sm:$0xff] %v805_v19  ;;  %v809_v21 = vld [vmem:[%s11780_s18 + $0x1148] sm:$0xff]  ;;  %v811_v22 = vld [vmem:[%s11780_s18 + $0x1150] sm:$0xff] }
  0xa0   : > { %808 = vst [vmem:[%s11785_s19 + $0x8a0] sm:$0xff] %v807_v20  ;;  %810 = vst [vmem:[%s11785_s19 + $0x8a8] sm:$0xff] %v809_v21  ;;  %v813_v23 = vld [vmem:[%s11780_s18 + $0x1158] sm:$0xff]  ;;  %v815_v24 = vld [vmem:[%s11780_s18 + $0x1160] sm:$0xff] }
  0xa1   : > { %812 = vst [vmem:[%s11785_s19 + $0x8b0] sm:$0xff] %v811_v22  ;;  %v817_v25 = vld [vmem:[%s11780_s18 + $0x1168] sm:$0xff]  ;;  %814 = vst [vmem:[%s11785_s19 + $0x8b8] sm:$0xff] %v813_v23  ;;  %v819_v26 = vld [vmem:[%s11780_s18 + $0x11a0] sm:$0xff] }
  0xa2   : > { %816 = vst [vmem:[%s11785_s19 + $0x8c0] sm:$0xff] %v815_v24  ;;  %818 = vst [vmem:[%s11785_s19 + $0x8c8] sm:$0xff] %v817_v25  ;;  %v821_v27 = vld [vmem:[%s11780_s18 + $0x11a8] sm:$0xff]  ;;  %v823_v28 = vld [vmem:[%s11780_s18 + $0x11b0] sm:$0xff] }
  0xa3   : > { %820 = vst [vmem:[%s11785_s19 + $0x8d0] sm:$0xff] %v819_v26  ;;  %822 = vst [vmem:[%s11785_s19 + $0x8d8] sm:$0xff] %v821_v27  ;;  %v825_v29 = vld [vmem:[%s11780_s18 + $0x11b8] sm:$0xff]  ;;  %v827_v30 = vld [vmem:[%s11780_s18 + $0x11c0] sm:$0xff] }
  0xa4   : > { %824 = vst [vmem:[%s11785_s19 + $0x8e0] sm:$0xff] %v823_v28  ;;  %v829_v31 = vld [vmem:[%s11780_s18 + $0x11c8] sm:$0xff]  ;;  %826 = vst [vmem:[%s11785_s19 + $0x8e8] sm:$0xff] %v825_v29  ;;  %v831_v32 = vld [vmem:[%s11780_s18 + $0x1200] sm:$0xff] }
  0xa5   : > { %828 = vst [vmem:[%s11785_s19 + $0x8f0] sm:$0xff] %v827_v30  ;;  %830 = vst [vmem:[%s11785_s19 + $0x8f8] sm:$0xff] %v829_v31  ;;  %v833_v33 = vld [vmem:[%s11780_s18 + $0x1208] sm:$0xff]  ;;  %v835_v34 = vld [vmem:[%s11780_s18 + $0x1210] sm:$0xff] }
  0xa6   : > { %832 = vst [vmem:[%s11785_s19 + $0x900] sm:$0xff] %v831_v32  ;;  %834 = vst [vmem:[%s11785_s19 + $0x908] sm:$0xff] %v833_v33  ;;  %v837_v35 = vld [vmem:[%s11780_s18 + $0x1218] sm:$0xff]  ;;  %v839_v36 = vld [vmem:[%s11780_s18 + $0x1220] sm:$0xff] }
  0xa7   : > { %836 = vst [vmem:[%s11785_s19 + $0x910] sm:$0xff] %v835_v34  ;;  %v841_v37 = vld [vmem:[%s11780_s18 + $0x1228] sm:$0xff]  ;;  %838 = vst [vmem:[%s11785_s19 + $0x918] sm:$0xff] %v837_v35  ;;  %v843_v38 = vld [vmem:[%s11780_s18 + $0x1260] sm:$0xff] }
  0xa8   : > { %840 = vst [vmem:[%s11785_s19 + $0x920] sm:$0xff] %v839_v36  ;;  %842 = vst [vmem:[%s11785_s19 + $0x928] sm:$0xff] %v841_v37  ;;  %v845_v39 = vld [vmem:[%s11780_s18 + $0x1268] sm:$0xff]  ;;  %v847_v40 = vld [vmem:[%s11780_s18 + $0x1270] sm:$0xff] }
  0xa9   : > { %844 = vst [vmem:[%s11785_s19 + $0x930] sm:$0xff] %v843_v38  ;;  %846 = vst [vmem:[%s11785_s19 + $0x938] sm:$0xff] %v845_v39  ;;  %v849_v41 = vld [vmem:[%s11780_s18 + $0x1278] sm:$0xff]  ;;  %v851_v42 = vld [vmem:[%s11780_s18 + $0x1280] sm:$0xff] }
  0xaa   : > { %848 = vst [vmem:[%s11785_s19 + $0x940] sm:$0xff] %v847_v40  ;;  %v853_v43 = vld [vmem:[%s11780_s18 + $0x1288] sm:$0xff]  ;;  %850 = vst [vmem:[%s11785_s19 + $0x948] sm:$0xff] %v849_v41  ;;  %v855_v44 = vld [vmem:[%s11780_s18 + $0x12c0] sm:$0xff] }
  0xab   : > { %852 = vst [vmem:[%s11785_s19 + $0x950] sm:$0xff] %v851_v42  ;;  %854 = vst [vmem:[%s11785_s19 + $0x958] sm:$0xff] %v853_v43  ;;  %v857_v45 = vld [vmem:[%s11780_s18 + $0x12c8] sm:$0xff]  ;;  %v859_v46 = vld [vmem:[%s11780_s18 + $0x12d0] sm:$0xff] }
  0xac   : > { %856 = vst [vmem:[%s11785_s19 + $0x960] sm:$0xff] %v855_v44  ;;  %858 = vst [vmem:[%s11785_s19 + $0x968] sm:$0xff] %v857_v45  ;;  %v861_v47 = vld [vmem:[%s11780_s18 + $0x12d8] sm:$0xff]  ;;  %v863_v48 = vld [vmem:[%s11780_s18 + $0x12e0] sm:$0xff] }
  0xad   : > { %860 = vst [vmem:[%s11785_s19 + $0x970] sm:$0xff] %v859_v46  ;;  %v865_v49 = vld [vmem:[%s11780_s18 + $0x12e8] sm:$0xff]  ;;  %862 = vst [vmem:[%s11785_s19 + $0x978] sm:$0xff] %v861_v47  ;;  %v867_v50 = vld [vmem:[%s11780_s18 + $0x1320] sm:$0xff] }
  0xae   : > { %864 = vst [vmem:[%s11785_s19 + $0x980] sm:$0xff] %v863_v48  ;;  %866 = vst [vmem:[%s11785_s19 + $0x988] sm:$0xff] %v865_v49  ;;  %v869_v51 = vld [vmem:[%s11780_s18 + $0x1328] sm:$0xff]  ;;  %v871_v52 = vld [vmem:[%s11780_s18 + $0x1330] sm:$0xff] }
  0xaf   : > { %868 = vst [vmem:[%s11785_s19 + $0x990] sm:$0xff] %v867_v50  ;;  %870 = vst [vmem:[%s11785_s19 + $0x998] sm:$0xff] %v869_v51  ;;  %v873_v53 = vld [vmem:[%s11780_s18 + $0x1338] sm:$0xff]  ;;  %v875_v54 = vld [vmem:[%s11780_s18 + $0x1340] sm:$0xff] }
  0xb0   : > { %872 = vst [vmem:[%s11785_s19 + $0x9a0] sm:$0xff] %v871_v52  ;;  %v877_v55 = vld [vmem:[%s11780_s18 + $0x1348] sm:$0xff]  ;;  %874 = vst [vmem:[%s11785_s19 + $0x9a8] sm:$0xff] %v873_v53  ;;  %v879_v56 = vld [vmem:[%s11780_s18 + $0x1380] sm:$0xff] }
  0xb1   : > { %876 = vst [vmem:[%s11785_s19 + $0x9b0] sm:$0xff] %v875_v54  ;;  %878 = vst [vmem:[%s11785_s19 + $0x9b8] sm:$0xff] %v877_v55  ;;  %v881_v57 = vld [vmem:[%s11780_s18 + $0x1388] sm:$0xff]  ;;  %v883_v58 = vld [vmem:[%s11780_s18 + $0x1390] sm:$0xff] }
  0xb2   : > { %880 = vst [vmem:[%s11785_s19 + $0x9c0] sm:$0xff] %v879_v56  ;;  %882 = vst [vmem:[%s11785_s19 + $0x9c8] sm:$0xff] %v881_v57  ;;  %v885_v59 = vld [vmem:[%s11780_s18 + $0x1398] sm:$0xff]  ;;  %v887_v60 = vld [vmem:[%s11780_s18 + $0x13a0] sm:$0xff] }
  0xb3   : > { %884 = vst [vmem:[%s11785_s19 + $0x9d0] sm:$0xff] %v883_v58  ;;  %v889_v61 = vld [vmem:[%s11780_s18 + $0x13a8] sm:$0xff]  ;;  %886 = vst [vmem:[%s11785_s19 + $0x9d8] sm:$0xff] %v885_v59  ;;  %v891_v62 = vld [vmem:[%s11780_s18 + $0x13e0] sm:$0xff] }
  0xb4   : > { %888 = vst [vmem:[%s11785_s19 + $0x9e0] sm:$0xff] %v887_v60  ;;  %890 = vst [vmem:[%s11785_s19 + $0x9e8] sm:$0xff] %v889_v61  ;;  %v893_v63 = vld [vmem:[%s11780_s18 + $0x13e8] sm:$0xff]  ;;  %v895_v0 = vld [vmem:[%s11780_s18 + $0x13f0] sm:$0xff] }
  0xb5   : > { %892 = vst [vmem:[%s11785_s19 + $0x9f0] sm:$0xff] %v891_v62  ;;  %894 = vst [vmem:[%s11785_s19 + $0x9f8] sm:$0xff] %v893_v63  ;;  %v897_v1 = vld [vmem:[%s11780_s18 + $0x13f8] sm:$0xff]  ;;  %v899_v2 = vld [vmem:[%s11780_s18 + $0x1400] sm:$0xff] }
  0xb6   : > { %896 = vst [vmem:[%s11785_s19 + $0xa00] sm:$0xff] %v895_v0  ;;  %v901_v3 = vld [vmem:[%s11780_s18 + $0x1408] sm:$0xff]  ;;  %898 = vst [vmem:[%s11785_s19 + $0xa08] sm:$0xff] %v897_v1  ;;  %v903_v4 = vld [vmem:[%s11780_s18 + $0x1440] sm:$0xff] }
  0xb7   : > { %900 = vst [vmem:[%s11785_s19 + $0xa10] sm:$0xff] %v899_v2  ;;  %902 = vst [vmem:[%s11785_s19 + $0xa18] sm:$0xff] %v901_v3  ;;  %v905_v5 = vld [vmem:[%s11780_s18 + $0x1448] sm:$0xff]  ;;  %v907_v6 = vld [vmem:[%s11780_s18 + $0x1450] sm:$0xff] }
  0xb8   : > { %904 = vst [vmem:[%s11785_s19 + $0xa20] sm:$0xff] %v903_v4  ;;  %906 = vst [vmem:[%s11785_s19 + $0xa28] sm:$0xff] %v905_v5  ;;  %v909_v7 = vld [vmem:[%s11780_s18 + $0x1458] sm:$0xff]  ;;  %v911_v8 = vld [vmem:[%s11780_s18 + $0x1460] sm:$0xff] }
  0xb9   : > { %908 = vst [vmem:[%s11785_s19 + $0xa30] sm:$0xff] %v907_v6  ;;  %v913_v9 = vld [vmem:[%s11780_s18 + $0x1468] sm:$0xff]  ;;  %910 = vst [vmem:[%s11785_s19 + $0xa38] sm:$0xff] %v909_v7  ;;  %v915_v10 = vld [vmem:[%s11780_s18 + $0x14a0] sm:$0xff] }
  0xba   : > { %912 = vst [vmem:[%s11785_s19 + $0xa40] sm:$0xff] %v911_v8  ;;  %914 = vst [vmem:[%s11785_s19 + $0xa48] sm:$0xff] %v913_v9  ;;  %v917_v11 = vld [vmem:[%s11780_s18 + $0x14a8] sm:$0xff]  ;;  %v919_v12 = vld [vmem:[%s11780_s18 + $0x14b0] sm:$0xff] }
  0xbb   : > { %916 = vst [vmem:[%s11785_s19 + $0xa50] sm:$0xff] %v915_v10  ;;  %918 = vst [vmem:[%s11785_s19 + $0xa58] sm:$0xff] %v917_v11  ;;  %v921_v13 = vld [vmem:[%s11780_s18 + $0x14b8] sm:$0xff]  ;;  %v923_v14 = vld [vmem:[%s11780_s18 + $0x14c0] sm:$0xff] }
  0xbc   : > { %920 = vst [vmem:[%s11785_s19 + $0xa60] sm:$0xff] %v919_v12  ;;  %v925_v15 = vld [vmem:[%s11780_s18 + $0x14c8] sm:$0xff]  ;;  %922 = vst [vmem:[%s11785_s19 + $0xa68] sm:$0xff] %v921_v13  ;;  %v927_v16 = vld [vmem:[%s11780_s18 + $0x1500] sm:$0xff] }
  0xbd   : > { %924 = vst [vmem:[%s11785_s19 + $0xa70] sm:$0xff] %v923_v14  ;;  %926 = vst [vmem:[%s11785_s19 + $0xa78] sm:$0xff] %v925_v15  ;;  %v929_v17 = vld [vmem:[%s11780_s18 + $0x1508] sm:$0xff]  ;;  %v931_v18 = vld [vmem:[%s11780_s18 + $0x1510] sm:$0xff] }
  0xbe   : > { %928 = vst [vmem:[%s11785_s19 + $0xa80] sm:$0xff] %v927_v16  ;;  %930 = vst [vmem:[%s11785_s19 + $0xa88] sm:$0xff] %v929_v17  ;;  %v933_v19 = vld [vmem:[%s11780_s18 + $0x1518] sm:$0xff]  ;;  %v935_v20 = vld [vmem:[%s11780_s18 + $0x1520] sm:$0xff] }
  0xbf   : > { %932 = vst [vmem:[%s11785_s19 + $0xa90] sm:$0xff] %v931_v18  ;;  %v937_v21 = vld [vmem:[%s11780_s18 + $0x1528] sm:$0xff]  ;;  %934 = vst [vmem:[%s11785_s19 + $0xa98] sm:$0xff] %v933_v19  ;;  %v939_v22 = vld [vmem:[%s11780_s18 + $0x1560] sm:$0xff] }
  0xc0   : > { %936 = vst [vmem:[%s11785_s19 + $0xaa0] sm:$0xff] %v935_v20  ;;  %938 = vst [vmem:[%s11785_s19 + $0xaa8] sm:$0xff] %v937_v21  ;;  %v941_v23 = vld [vmem:[%s11780_s18 + $0x1568] sm:$0xff]  ;;  %v943_v24 = vld [vmem:[%s11780_s18 + $0x1570] sm:$0xff] }
  0xc1   : > { %940 = vst [vmem:[%s11785_s19 + $0xab0] sm:$0xff] %v939_v22  ;;  %942 = vst [vmem:[%s11785_s19 + $0xab8] sm:$0xff] %v941_v23  ;;  %v945_v25 = vld [vmem:[%s11780_s18 + $0x1578] sm:$0xff]  ;;  %v947_v26 = vld [vmem:[%s11780_s18 + $0x1580] sm:$0xff] }
  0xc2   : > { %944 = vst [vmem:[%s11785_s19 + $0xac0] sm:$0xff] %v943_v24  ;;  %v949_v27 = vld [vmem:[%s11780_s18 + $0x1588] sm:$0xff]  ;;  %946 = vst [vmem:[%s11785_s19 + $0xac8] sm:$0xff] %v945_v25  ;;  %v951_v28 = vld [vmem:[%s11780_s18 + $0x15c0] sm:$0xff] }
  0xc3   : > { %948 = vst [vmem:[%s11785_s19 + $0xad0] sm:$0xff] %v947_v26  ;;  %950 = vst [vmem:[%s11785_s19 + $0xad8] sm:$0xff] %v949_v27  ;;  %v953_v29 = vld [vmem:[%s11780_s18 + $0x15c8] sm:$0xff]  ;;  %v955_v30 = vld [vmem:[%s11780_s18 + $0x15d0] sm:$0xff] }
  0xc4   : > { %952 = vst [vmem:[%s11785_s19 + $0xae0] sm:$0xff] %v951_v28  ;;  %954 = vst [vmem:[%s11785_s19 + $0xae8] sm:$0xff] %v953_v29  ;;  %v957_v31 = vld [vmem:[%s11780_s18 + $0x15d8] sm:$0xff]  ;;  %v959_v32 = vld [vmem:[%s11780_s18 + $0x15e0] sm:$0xff] }
  0xc5   : > { %956 = vst [vmem:[%s11785_s19 + $0xaf0] sm:$0xff] %v955_v30  ;;  %v961_v33 = vld [vmem:[%s11780_s18 + $0x15e8] sm:$0xff]  ;;  %958 = vst [vmem:[%s11785_s19 + $0xaf8] sm:$0xff] %v957_v31  ;;  %v963_v34 = vld [vmem:[%s11780_s18 + $0x1620] sm:$0xff] }
  0xc6   : > { %960 = vst [vmem:[%s11785_s19 + $0xb00] sm:$0xff] %v959_v32  ;;  %962 = vst [vmem:[%s11785_s19 + $0xb08] sm:$0xff] %v961_v33  ;;  %v965_v35 = vld [vmem:[%s11780_s18 + $0x1628] sm:$0xff]  ;;  %v967_v36 = vld [vmem:[%s11780_s18 + $0x1630] sm:$0xff] }
  0xc7   : > { %964 = vst [vmem:[%s11785_s19 + $0xb10] sm:$0xff] %v963_v34  ;;  %966 = vst [vmem:[%s11785_s19 + $0xb18] sm:$0xff] %v965_v35  ;;  %v969_v37 = vld [vmem:[%s11780_s18 + $0x1638] sm:$0xff]  ;;  %v971_v38 = vld [vmem:[%s11780_s18 + $0x1640] sm:$0xff] }
  0xc8   : > { %968 = vst [vmem:[%s11785_s19 + $0xb20] sm:$0xff] %v967_v36  ;;  %v973_v39 = vld [vmem:[%s11780_s18 + $0x1648] sm:$0xff]  ;;  %970 = vst [vmem:[%s11785_s19 + $0xb28] sm:$0xff] %v969_v37  ;;  %v975_v40 = vld [vmem:[%s11780_s18 + $0x1680] sm:$0xff] }
  0xc9   : > { %972 = vst [vmem:[%s11785_s19 + $0xb30] sm:$0xff] %v971_v38  ;;  %974 = vst [vmem:[%s11785_s19 + $0xb38] sm:$0xff] %v973_v39  ;;  %v977_v41 = vld [vmem:[%s11780_s18 + $0x1688] sm:$0xff]  ;;  %v979_v42 = vld [vmem:[%s11780_s18 + $0x1690] sm:$0xff] }
  0xca   : > { %976 = vst [vmem:[%s11785_s19 + $0xb40] sm:$0xff] %v975_v40  ;;  %978 = vst [vmem:[%s11785_s19 + $0xb48] sm:$0xff] %v977_v41  ;;  %v981_v43 = vld [vmem:[%s11780_s18 + $0x1698] sm:$0xff]  ;;  %v983_v44 = vld [vmem:[%s11780_s18 + $0x16a0] sm:$0xff] }
  0xcb   : > { %980 = vst [vmem:[%s11785_s19 + $0xb50] sm:$0xff] %v979_v42  ;;  %v985_v45 = vld [vmem:[%s11780_s18 + $0x16a8] sm:$0xff]  ;;  %982 = vst [vmem:[%s11785_s19 + $0xb58] sm:$0xff] %v981_v43  ;;  %v987_v46 = vld [vmem:[%s11780_s18 + $0x16e0] sm:$0xff] }
  0xcc   : > { %984 = vst [vmem:[%s11785_s19 + $0xb60] sm:$0xff] %v983_v44  ;;  %986 = vst [vmem:[%s11785_s19 + $0xb68] sm:$0xff] %v985_v45  ;;  %v989_v47 = vld [vmem:[%s11780_s18 + $0x16e8] sm:$0xff]  ;;  %v991_v48 = vld [vmem:[%s11780_s18 + $0x16f0] sm:$0xff] }
  0xcd   : > { %988 = vst [vmem:[%s11785_s19 + $0xb70] sm:$0xff] %v987_v46  ;;  %990 = vst [vmem:[%s11785_s19 + $0xb78] sm:$0xff] %v989_v47  ;;  %v993_v49 = vld [vmem:[%s11780_s18 + $0x16f8] sm:$0xff]  ;;  %v995_v50 = vld [vmem:[%s11780_s18 + $0x1700] sm:$0xff] }
  0xce   : > { %992 = vst [vmem:[%s11785_s19 + $0xb80] sm:$0xff] %v991_v48  ;;  %v997_v51 = vld [vmem:[%s11780_s18 + $0x1708] sm:$0xff]  ;;  %994 = vst [vmem:[%s11785_s19 + $0xb88] sm:$0xff] %v993_v49  ;;  %v999_v52 = vld [vmem:[%s11780_s18 + $0x1740] sm:$0xff] }
  0xcf   : > { %996 = vst [vmem:[%s11785_s19 + $0xb90] sm:$0xff] %v995_v50  ;;  %998 = vst [vmem:[%s11785_s19 + $0xb98] sm:$0xff] %v997_v51  ;;  %v1001_v53 = vld [vmem:[%s11780_s18 + $0x1748] sm:$0xff]  ;;  %v1003_v54 = vld [vmem:[%s11780_s18 + $0x1750] sm:$0xff] }
  0xd0   : > { %1000 = vst [vmem:[%s11785_s19 + $0xba0] sm:$0xff] %v999_v52  ;;  %1002 = vst [vmem:[%s11785_s19 + $0xba8] sm:$0xff] %v1001_v53  ;;  %v1005_v55 = vld [vmem:[%s11780_s18 + $0x1758] sm:$0xff]  ;;  %v1007_v56 = vld [vmem:[%s11780_s18 + $0x1760] sm:$0xff] }
  0xd1   : > { %1004 = vst [vmem:[%s11785_s19 + $0xbb0] sm:$0xff] %v1003_v54  ;;  %v1009_v57 = vld [vmem:[%s11780_s18 + $0x1768] sm:$0xff]  ;;  %1006 = vst [vmem:[%s11785_s19 + $0xbb8] sm:$0xff] %v1005_v55  ;;  %v1011_v58 = vld [vmem:[%s11780_s18 + $0x17a0] sm:$0xff] }
  0xd2   : > { %1008 = vst [vmem:[%s11785_s19 + $0xbc0] sm:$0xff] %v1007_v56  ;;  %1010 = vst [vmem:[%s11785_s19 + $0xbc8] sm:$0xff] %v1009_v57  ;;  %v1013_v59 = vld [vmem:[%s11780_s18 + $0x17a8] sm:$0xff]  ;;  %v1015_v60 = vld [vmem:[%s11780_s18 + $0x17b0] sm:$0xff] }
  0xd3   : > { %1012 = vst [vmem:[%s11785_s19 + $0xbd0] sm:$0xff] %v1011_v58  ;;  %1014 = vst [vmem:[%s11785_s19 + $0xbd8] sm:$0xff] %v1013_v59  ;;  %v1017_v61 = vld [vmem:[%s11780_s18 + $0x17b8] sm:$0xff]  ;;  %v1019_v62 = vld [vmem:[%s11780_s18 + $0x17c0] sm:$0xff] }
  0xd4   : > { %1016 = vst [vmem:[%s11785_s19 + $0xbe0] sm:$0xff] %v1015_v60  ;;  %v1021_v63 = vld [vmem:[%s11780_s18 + $0x17c8] sm:$0xff]  ;;  %1018 = vst [vmem:[%s11785_s19 + $0xbe8] sm:$0xff] %v1017_v61  ;;  %v1023_v0 = vld [vmem:[%s11780_s18 + $0x1800] sm:$0xff] }
  0xd5   : > { %1020 = vst [vmem:[%s11785_s19 + $0xbf0] sm:$0xff] %v1019_v62  ;;  %1022 = vst [vmem:[%s11785_s19 + $0xbf8] sm:$0xff] %v1021_v63  ;;  %v1025_v1 = vld [vmem:[%s11780_s18 + $0x1808] sm:$0xff]  ;;  %v1027_v2 = vld [vmem:[%s11780_s18 + $0x1810] sm:$0xff] }
  0xd6   : > { %1024 = vst [vmem:[%s11785_s19 + $0xc00] sm:$0xff] %v1023_v0  ;;  %1026 = vst [vmem:[%s11785_s19 + $0xc08] sm:$0xff] %v1025_v1  ;;  %v1029_v3 = vld [vmem:[%s11780_s18 + $0x1818] sm:$0xff]  ;;  %v1031_v4 = vld [vmem:[%s11780_s18 + $0x1820] sm:$0xff] }
  0xd7   : > { %1028 = vst [vmem:[%s11785_s19 + $0xc10] sm:$0xff] %v1027_v2  ;;  %v1033_v5 = vld [vmem:[%s11780_s18 + $0x1828] sm:$0xff]  ;;  %1030 = vst [vmem:[%s11785_s19 + $0xc18] sm:$0xff] %v1029_v3  ;;  %v1035_v6 = vld [vmem:[%s11780_s18 + $0x1860] sm:$0xff] }
  0xd8   : > { %1032 = vst [vmem:[%s11785_s19 + $0xc20] sm:$0xff] %v1031_v4  ;;  %1034 = vst [vmem:[%s11785_s19 + $0xc28] sm:$0xff] %v1033_v5  ;;  %v1037_v7 = vld [vmem:[%s11780_s18 + $0x1868] sm:$0xff]  ;;  %v1039_v8 = vld [vmem:[%s11780_s18 + $0x1870] sm:$0xff] }
  0xd9   : > { %1036 = vst [vmem:[%s11785_s19 + $0xc30] sm:$0xff] %v1035_v6  ;;  %1038 = vst [vmem:[%s11785_s19 + $0xc38] sm:$0xff] %v1037_v7  ;;  %v1041_v9 = vld [vmem:[%s11780_s18 + $0x1878] sm:$0xff]  ;;  %v1043_v10 = vld [vmem:[%s11780_s18 + $0x1880] sm:$0xff] }
  0xda   : > { %1040 = vst [vmem:[%s11785_s19 + $0xc40] sm:$0xff] %v1039_v8  ;;  %v1045_v11 = vld [vmem:[%s11780_s18 + $0x1888] sm:$0xff]  ;;  %1042 = vst [vmem:[%s11785_s19 + $0xc48] sm:$0xff] %v1041_v9  ;;  %v1047_v12 = vld [vmem:[%s11780_s18 + $0x18c0] sm:$0xff] }
  0xdb   : > { %1044 = vst [vmem:[%s11785_s19 + $0xc50] sm:$0xff] %v1043_v10  ;;  %1046 = vst [vmem:[%s11785_s19 + $0xc58] sm:$0xff] %v1045_v11  ;;  %v1049_v13 = vld [vmem:[%s11780_s18 + $0x18c8] sm:$0xff]  ;;  %v1051_v14 = vld [vmem:[%s11780_s18 + $0x18d0] sm:$0xff] }
  0xdc   : > { %1048 = vst [vmem:[%s11785_s19 + $0xc60] sm:$0xff] %v1047_v12  ;;  %1050 = vst [vmem:[%s11785_s19 + $0xc68] sm:$0xff] %v1049_v13  ;;  %v1053_v15 = vld [vmem:[%s11780_s18 + $0x18d8] sm:$0xff]  ;;  %v1055_v16 = vld [vmem:[%s11780_s18 + $0x18e0] sm:$0xff] }
  0xdd   : > { %1052 = vst [vmem:[%s11785_s19 + $0xc70] sm:$0xff] %v1051_v14  ;;  %v1057_v17 = vld [vmem:[%s11780_s18 + $0x18e8] sm:$0xff]  ;;  %1054 = vst [vmem:[%s11785_s19 + $0xc78] sm:$0xff] %v1053_v15  ;;  %v1059_v18 = vld [vmem:[%s11780_s18 + $0x1920] sm:$0xff] }
  0xde   : > { %1056 = vst [vmem:[%s11785_s19 + $0xc80] sm:$0xff] %v1055_v16  ;;  %1058 = vst [vmem:[%s11785_s19 + $0xc88] sm:$0xff] %v1057_v17  ;;  %v1061_v19 = vld [vmem:[%s11780_s18 + $0x1928] sm:$0xff]  ;;  %v1063_v20 = vld [vmem:[%s11780_s18 + $0x1930] sm:$0xff] }
  0xdf   : > { %1060 = vst [vmem:[%s11785_s19 + $0xc90] sm:$0xff] %v1059_v18  ;;  %1062 = vst [vmem:[%s11785_s19 + $0xc98] sm:$0xff] %v1061_v19  ;;  %v1065_v21 = vld [vmem:[%s11780_s18 + $0x1938] sm:$0xff]  ;;  %v1067_v22 = vld [vmem:[%s11780_s18 + $0x1940] sm:$0xff] }
  0xe0   : > { %1064 = vst [vmem:[%s11785_s19 + $0xca0] sm:$0xff] %v1063_v20  ;;  %v1069_v23 = vld [vmem:[%s11780_s18 + $0x1948] sm:$0xff]  ;;  %1066 = vst [vmem:[%s11785_s19 + $0xca8] sm:$0xff] %v1065_v21  ;;  %v1071_v24 = vld [vmem:[%s11780_s18 + $0x1980] sm:$0xff] }
  0xe1   : > { %1068 = vst [vmem:[%s11785_s19 + $0xcb0] sm:$0xff] %v1067_v22  ;;  %1070 = vst [vmem:[%s11785_s19 + $0xcb8] sm:$0xff] %v1069_v23  ;;  %v1073_v25 = vld [vmem:[%s11780_s18 + $0x1988] sm:$0xff]  ;;  %v1075_v26 = vld [vmem:[%s11780_s18 + $0x1990] sm:$0xff] }
  0xe2   : > { %1072 = vst [vmem:[%s11785_s19 + $0xcc0] sm:$0xff] %v1071_v24  ;;  %1074 = vst [vmem:[%s11785_s19 + $0xcc8] sm:$0xff] %v1073_v25  ;;  %v1077_v27 = vld [vmem:[%s11780_s18 + $0x1998] sm:$0xff]  ;;  %v1079_v28 = vld [vmem:[%s11780_s18 + $0x19a0] sm:$0xff] }
  0xe3   : > { %1076 = vst [vmem:[%s11785_s19 + $0xcd0] sm:$0xff] %v1075_v26  ;;  %v1081_v29 = vld [vmem:[%s11780_s18 + $0x19a8] sm:$0xff]  ;;  %1078 = vst [vmem:[%s11785_s19 + $0xcd8] sm:$0xff] %v1077_v27  ;;  %v1083_v30 = vld [vmem:[%s11780_s18 + $0x19e0] sm:$0xff] }
  0xe4   : > { %1080 = vst [vmem:[%s11785_s19 + $0xce0] sm:$0xff] %v1079_v28  ;;  %1082 = vst [vmem:[%s11785_s19 + $0xce8] sm:$0xff] %v1081_v29  ;;  %v1085_v31 = vld [vmem:[%s11780_s18 + $0x19e8] sm:$0xff]  ;;  %v1087_v32 = vld [vmem:[%s11780_s18 + $0x19f0] sm:$0xff] }
  0xe5   : > { %1084 = vst [vmem:[%s11785_s19 + $0xcf0] sm:$0xff] %v1083_v30  ;;  %1086 = vst [vmem:[%s11785_s19 + $0xcf8] sm:$0xff] %v1085_v31  ;;  %v1089_v33 = vld [vmem:[%s11780_s18 + $0x19f8] sm:$0xff]  ;;  %v1091_v34 = vld [vmem:[%s11780_s18 + $0x1a00] sm:$0xff] }
  0xe6   : > { %1088 = vst [vmem:[%s11785_s19 + $0xd00] sm:$0xff] %v1087_v32  ;;  %v1093_v35 = vld [vmem:[%s11780_s18 + $0x1a08] sm:$0xff]  ;;  %1090 = vst [vmem:[%s11785_s19 + $0xd08] sm:$0xff] %v1089_v33  ;;  %v1095_v36 = vld [vmem:[%s11780_s18 + $0x1a40] sm:$0xff] }
  0xe7   : > { %1092 = vst [vmem:[%s11785_s19 + $0xd10] sm:$0xff] %v1091_v34  ;;  %1094 = vst [vmem:[%s11785_s19 + $0xd18] sm:$0xff] %v1093_v35  ;;  %v1097_v37 = vld [vmem:[%s11780_s18 + $0x1a48] sm:$0xff]  ;;  %v1099_v38 = vld [vmem:[%s11780_s18 + $0x1a50] sm:$0xff] }
  0xe8   : > { %1096 = vst [vmem:[%s11785_s19 + $0xd20] sm:$0xff] %v1095_v36  ;;  %1098 = vst [vmem:[%s11785_s19 + $0xd28] sm:$0xff] %v1097_v37  ;;  %v1101_v39 = vld [vmem:[%s11780_s18 + $0x1a58] sm:$0xff]  ;;  %v1103_v40 = vld [vmem:[%s11780_s18 + $0x1a60] sm:$0xff] }
  0xe9   : > { %1100 = vst [vmem:[%s11785_s19 + $0xd30] sm:$0xff] %v1099_v38  ;;  %v1105_v41 = vld [vmem:[%s11780_s18 + $0x1a68] sm:$0xff]  ;;  %1102 = vst [vmem:[%s11785_s19 + $0xd38] sm:$0xff] %v1101_v39  ;;  %v1107_v42 = vld [vmem:[%s11780_s18 + $0x1aa0] sm:$0xff] }
  0xea   : > { %1104 = vst [vmem:[%s11785_s19 + $0xd40] sm:$0xff] %v1103_v40  ;;  %1106 = vst [vmem:[%s11785_s19 + $0xd48] sm:$0xff] %v1105_v41  ;;  %v1109_v43 = vld [vmem:[%s11780_s18 + $0x1aa8] sm:$0xff]  ;;  %v1111_v44 = vld [vmem:[%s11780_s18 + $0x1ab0] sm:$0xff] }
  0xeb   : > { %1108 = vst [vmem:[%s11785_s19 + $0xd50] sm:$0xff] %v1107_v42  ;;  %1110 = vst [vmem:[%s11785_s19 + $0xd58] sm:$0xff] %v1109_v43  ;;  %v1113_v45 = vld [vmem:[%s11780_s18 + $0x1ab8] sm:$0xff]  ;;  %v1115_v46 = vld [vmem:[%s11780_s18 + $0x1ac0] sm:$0xff] }
  0xec   : > { %1112 = vst [vmem:[%s11785_s19 + $0xd60] sm:$0xff] %v1111_v44  ;;  %v1117_v47 = vld [vmem:[%s11780_s18 + $0x1ac8] sm:$0xff]  ;;  %1114 = vst [vmem:[%s11785_s19 + $0xd68] sm:$0xff] %v1113_v45  ;;  %v1119_v48 = vld [vmem:[%s11780_s18 + $0x1b00] sm:$0xff] }
  0xed   : > { %1116 = vst [vmem:[%s11785_s19 + $0xd70] sm:$0xff] %v1115_v46  ;;  %1118 = vst [vmem:[%s11785_s19 + $0xd78] sm:$0xff] %v1117_v47  ;;  %v1121_v49 = vld [vmem:[%s11780_s18 + $0x1b08] sm:$0xff]  ;;  %v1123_v50 = vld [vmem:[%s11780_s18 + $0x1b10] sm:$0xff] }
  0xee   : > { %1120 = vst [vmem:[%s11785_s19 + $0xd80] sm:$0xff] %v1119_v48  ;;  %1122 = vst [vmem:[%s11785_s19 + $0xd88] sm:$0xff] %v1121_v49  ;;  %v1125_v51 = vld [vmem:[%s11780_s18 + $0x1b18] sm:$0xff]  ;;  %v1127_v52 = vld [vmem:[%s11780_s18 + $0x1b20] sm:$0xff] }
  0xef   : > { %1124 = vst [vmem:[%s11785_s19 + $0xd90] sm:$0xff] %v1123_v50  ;;  %v1129_v53 = vld [vmem:[%s11780_s18 + $0x1b28] sm:$0xff]  ;;  %1126 = vst [vmem:[%s11785_s19 + $0xd98] sm:$0xff] %v1125_v51  ;;  %v1131_v54 = vld [vmem:[%s11780_s18 + $0x1b60] sm:$0xff] }
  0xf0   : > { %1128 = vst [vmem:[%s11785_s19 + $0xda0] sm:$0xff] %v1127_v52  ;;  %1130 = vst [vmem:[%s11785_s19 + $0xda8] sm:$0xff] %v1129_v53  ;;  %v1133_v55 = vld [vmem:[%s11780_s18 + $0x1b68] sm:$0xff]  ;;  %v1135_v56 = vld [vmem:[%s11780_s18 + $0x1b70] sm:$0xff] }
  0xf1   : > { %1132 = vst [vmem:[%s11785_s19 + $0xdb0] sm:$0xff] %v1131_v54  ;;  %1134 = vst [vmem:[%s11785_s19 + $0xdb8] sm:$0xff] %v1133_v55  ;;  %v1137_v57 = vld [vmem:[%s11780_s18 + $0x1b78] sm:$0xff]  ;;  %v1139_v58 = vld [vmem:[%s11780_s18 + $0x1b80] sm:$0xff] }
  0xf2   : > { %1136 = vst [vmem:[%s11785_s19 + $0xdc0] sm:$0xff] %v1135_v56  ;;  %v1141_v59 = vld [vmem:[%s11780_s18 + $0x1b88] sm:$0xff]  ;;  %1138 = vst [vmem:[%s11785_s19 + $0xdc8] sm:$0xff] %v1137_v57  ;;  %v1143_v60 = vld [vmem:[%s11780_s18 + $0x1bc0] sm:$0xff] }
  0xf3   : > { %1140 = vst [vmem:[%s11785_s19 + $0xdd0] sm:$0xff] %v1139_v58  ;;  %1142 = vst [vmem:[%s11785_s19 + $0xdd8] sm:$0xff] %v1141_v59  ;;  %v1145_v61 = vld [vmem:[%s11780_s18 + $0x1bc8] sm:$0xff]  ;;  %v1147_v62 = vld [vmem:[%s11780_s18 + $0x1bd0] sm:$0xff] }
  0xf4   : > { %1144 = vst [vmem:[%s11785_s19 + $0xde0] sm:$0xff] %v1143_v60  ;;  %1146 = vst [vmem:[%s11785_s19 + $0xde8] sm:$0xff] %v1145_v61  ;;  %v1149_v63 = vld [vmem:[%s11780_s18 + $0x1bd8] sm:$0xff]  ;;  %v1151_v0 = vld [vmem:[%s11780_s18 + $0x1be0] sm:$0xff] }
  0xf5   : > { %1148 = vst [vmem:[%s11785_s19 + $0xdf0] sm:$0xff] %v1147_v62  ;;  %v1153_v1 = vld [vmem:[%s11780_s18 + $0x1be8] sm:$0xff]  ;;  %1150 = vst [vmem:[%s11785_s19 + $0xdf8] sm:$0xff] %v1149_v63  ;;  %v1155_v2 = vld [vmem:[%s11780_s18 + $0x1c20] sm:$0xff] }
  0xf6   : > { %1152 = vst [vmem:[%s11785_s19 + $0xe00] sm:$0xff] %v1151_v0  ;;  %1154 = vst [vmem:[%s11785_s19 + $0xe08] sm:$0xff] %v1153_v1  ;;  %v1157_v3 = vld [vmem:[%s11780_s18 + $0x1c28] sm:$0xff]  ;;  %v1159_v4 = vld [vmem:[%s11780_s18 + $0x1c30] sm:$0xff] }
  0xf7   : > { %1156 = vst [vmem:[%s11785_s19 + $0xe10] sm:$0xff] %v1155_v2  ;;  %1158 = vst [vmem:[%s11785_s19 + $0xe18] sm:$0xff] %v1157_v3  ;;  %v1161_v5 = vld [vmem:[%s11780_s18 + $0x1c38] sm:$0xff]  ;;  %v1163_v6 = vld [vmem:[%s11780_s18 + $0x1c40] sm:$0xff] }
  0xf8   : > { %1160 = vst [vmem:[%s11785_s19 + $0xe20] sm:$0xff] %v1159_v4  ;;  %v1165_v7 = vld [vmem:[%s11780_s18 + $0x1c48] sm:$0xff]  ;;  %1162 = vst [vmem:[%s11785_s19 + $0xe28] sm:$0xff] %v1161_v5  ;;  %v1167_v8 = vld [vmem:[%s11780_s18 + $0x1c80] sm:$0xff] }
  0xf9   : > { %1164 = vst [vmem:[%s11785_s19 + $0xe30] sm:$0xff] %v1163_v6  ;;  %1166 = vst [vmem:[%s11785_s19 + $0xe38] sm:$0xff] %v1165_v7  ;;  %v1169_v9 = vld [vmem:[%s11780_s18 + $0x1c88] sm:$0xff]  ;;  %v1171_v10 = vld [vmem:[%s11780_s18 + $0x1c90] sm:$0xff] }
  0xfa   : > { %1168 = vst [vmem:[%s11785_s19 + $0xe40] sm:$0xff] %v1167_v8  ;;  %1170 = vst [vmem:[%s11785_s19 + $0xe48] sm:$0xff] %v1169_v9  ;;  %v1173_v11 = vld [vmem:[%s11780_s18 + $0x1c98] sm:$0xff]  ;;  %v1175_v12 = vld [vmem:[%s11780_s18 + $0x1ca0] sm:$0xff] }
  0xfb   : > { %1172 = vst [vmem:[%s11785_s19 + $0xe50] sm:$0xff] %v1171_v10  ;;  %v1177_v13 = vld [vmem:[%s11780_s18 + $0x1ca8] sm:$0xff]  ;;  %1174 = vst [vmem:[%s11785_s19 + $0xe58] sm:$0xff] %v1173_v11  ;;  %v1179_v14 = vld [vmem:[%s11780_s18 + $0x1ce0] sm:$0xff] }
  0xfc   : > { %1176 = vst [vmem:[%s11785_s19 + $0xe60] sm:$0xff] %v1175_v12  ;;  %1178 = vst [vmem:[%s11785_s19 + $0xe68] sm:$0xff] %v1177_v13  ;;  %v1181_v15 = vld [vmem:[%s11780_s18 + $0x1ce8] sm:$0xff]  ;;  %v1183_v16 = vld [vmem:[%s11780_s18 + $0x1cf0] sm:$0xff] }
  0xfd   : > { %1180 = vst [vmem:[%s11785_s19 + $0xe70] sm:$0xff] %v1179_v14  ;;  %1182 = vst [vmem:[%s11785_s19 + $0xe78] sm:$0xff] %v1181_v15  ;;  %v1185_v17 = vld [vmem:[%s11780_s18 + $0x1cf8] sm:$0xff]  ;;  %v1187_v18 = vld [vmem:[%s11780_s18 + $0x1d00] sm:$0xff] }
  0xfe   : > { %1184 = vst [vmem:[%s11785_s19 + $0xe80] sm:$0xff] %v1183_v16  ;;  %v1189_v19 = vld [vmem:[%s11780_s18 + $0x1d08] sm:$0xff]  ;;  %1186 = vst [vmem:[%s11785_s19 + $0xe88] sm:$0xff] %v1185_v17  ;;  %v1191_v20 = vld [vmem:[%s11780_s18 + $0x1d40] sm:$0xff] }
  0xff   : > { %1188 = vst [vmem:[%s11785_s19 + $0xe90] sm:$0xff] %v1187_v18  ;;  %1190 = vst [vmem:[%s11785_s19 + $0xe98] sm:$0xff] %v1189_v19  ;;  %v1193_v21 = vld [vmem:[%s11780_s18 + $0x1d48] sm:$0xff]  ;;  %v1195_v22 = vld [vmem:[%s11780_s18 + $0x1d50] sm:$0xff] }
 0x100   : > { %1192 = vst [vmem:[%s11785_s19 + $0xea0] sm:$0xff] %v1191_v20  ;;  %1194 = vst [vmem:[%s11785_s19 + $0xea8] sm:$0xff] %v1193_v21  ;;  %v1197_v23 = vld [vmem:[%s11780_s18 + $0x1d58] sm:$0xff]  ;;  %v1199_v24 = vld [vmem:[%s11780_s18 + $0x1d60] sm:$0xff] }
 0x101   : > { %1196 = vst [vmem:[%s11785_s19 + $0xeb0] sm:$0xff] %v1195_v22  ;;  %v1201_v25 = vld [vmem:[%s11780_s18 + $0x1d68] sm:$0xff]  ;;  %1198 = vst [vmem:[%s11785_s19 + $0xeb8] sm:$0xff] %v1197_v23  ;;  %v1203_v26 = vld [vmem:[%s11780_s18 + $0x1da0] sm:$0xff] }
 0x102   : > { %1200 = vst [vmem:[%s11785_s19 + $0xec0] sm:$0xff] %v1199_v24  ;;  %1202 = vst [vmem:[%s11785_s19 + $0xec8] sm:$0xff] %v1201_v25  ;;  %v1205_v27 = vld [vmem:[%s11780_s18 + $0x1da8] sm:$0xff]  ;;  %v1207_v28 = vld [vmem:[%s11780_s18 + $0x1db0] sm:$0xff] }
 0x103   : > { %1204 = vst [vmem:[%s11785_s19 + $0xed0] sm:$0xff] %v1203_v26  ;;  %1206 = vst [vmem:[%s11785_s19 + $0xed8] sm:$0xff] %v1205_v27  ;;  %v1209_v29 = vld [vmem:[%s11780_s18 + $0x1db8] sm:$0xff]  ;;  %v1211_v30 = vld [vmem:[%s11780_s18 + $0x1dc0] sm:$0xff] }
 0x104   : > { %1208 = vst [vmem:[%s11785_s19 + $0xee0] sm:$0xff] %v1207_v28  ;;  %v1213_v31 = vld [vmem:[%s11780_s18 + $0x1dc8] sm:$0xff]  ;;  %1210 = vst [vmem:[%s11785_s19 + $0xee8] sm:$0xff] %v1209_v29  ;;  %v1215_v32 = vld [vmem:[%s11780_s18 + $0x1e00] sm:$0xff] }
 0x105   : > { %1212 = vst [vmem:[%s11785_s19 + $0xef0] sm:$0xff] %v1211_v30  ;;  %1214 = vst [vmem:[%s11785_s19 + $0xef8] sm:$0xff] %v1213_v31  ;;  %v1217_v33 = vld [vmem:[%s11780_s18 + $0x1e08] sm:$0xff]  ;;  %v1219_v34 = vld [vmem:[%s11780_s18 + $0x1e10] sm:$0xff] }
 0x106   : > { %1216 = vst [vmem:[%s11785_s19 + $0xf00] sm:$0xff] %v1215_v32  ;;  %1218 = vst [vmem:[%s11785_s19 + $0xf08] sm:$0xff] %v1217_v33  ;;  %v1221_v35 = vld [vmem:[%s11780_s18 + $0x1e18] sm:$0xff]  ;;  %v1223_v36 = vld [vmem:[%s11780_s18 + $0x1e20] sm:$0xff] }
 0x107   : > { %1220 = vst [vmem:[%s11785_s19 + $0xf10] sm:$0xff] %v1219_v34  ;;  %v1225_v37 = vld [vmem:[%s11780_s18 + $0x1e28] sm:$0xff]  ;;  %1222 = vst [vmem:[%s11785_s19 + $0xf18] sm:$0xff] %v1221_v35  ;;  %v1227_v38 = vld [vmem:[%s11780_s18 + $0x1e60] sm:$0xff] }
 0x108   : > { %1224 = vst [vmem:[%s11785_s19 + $0xf20] sm:$0xff] %v1223_v36  ;;  %1226 = vst [vmem:[%s11785_s19 + $0xf28] sm:$0xff] %v1225_v37  ;;  %v1229_v39 = vld [vmem:[%s11780_s18 + $0x1e68] sm:$0xff]  ;;  %v1231_v40 = vld [vmem:[%s11780_s18 + $0x1e70] sm:$0xff] }
 0x109   : > { %1228 = vst [vmem:[%s11785_s19 + $0xf30] sm:$0xff] %v1227_v38  ;;  %1230 = vst [vmem:[%s11785_s19 + $0xf38] sm:$0xff] %v1229_v39  ;;  %v1233_v41 = vld [vmem:[%s11780_s18 + $0x1e78] sm:$0xff]  ;;  %v1235_v42 = vld [vmem:[%s11780_s18 + $0x1e80] sm:$0xff] }
 0x10a   : > { %1232 = vst [vmem:[%s11785_s19 + $0xf40] sm:$0xff] %v1231_v40  ;;  %v1237_v43 = vld [vmem:[%s11780_s18 + $0x1e88] sm:$0xff]  ;;  %1234 = vst [vmem:[%s11785_s19 + $0xf48] sm:$0xff] %v1233_v41  ;;  %v1239_v44 = vld [vmem:[%s11780_s18 + $0x1ec0] sm:$0xff] }
 0x10b   : > { %1236 = vst [vmem:[%s11785_s19 + $0xf50] sm:$0xff] %v1235_v42  ;;  %1238 = vst [vmem:[%s11785_s19 + $0xf58] sm:$0xff] %v1237_v43  ;;  %v1241_v45 = vld [vmem:[%s11780_s18 + $0x1ec8] sm:$0xff]  ;;  %v1243_v46 = vld [vmem:[%s11780_s18 + $0x1ed0] sm:$0xff] }
 0x10c   : > { %1240 = vst [vmem:[%s11785_s19 + $0xf60] sm:$0xff] %v1239_v44  ;;  %1242 = vst [vmem:[%s11785_s19 + $0xf68] sm:$0xff] %v1241_v45  ;;  %v1245_v47 = vld [vmem:[%s11780_s18 + $0x1ed8] sm:$0xff]  ;;  %v1247_v48 = vld [vmem:[%s11780_s18 + $0x1ee0] sm:$0xff] }
 0x10d   : > { %1244 = vst [vmem:[%s11785_s19 + $0xf70] sm:$0xff] %v1243_v46  ;;  %v1249_v49 = vld [vmem:[%s11780_s18 + $0x1ee8] sm:$0xff]  ;;  %1246 = vst [vmem:[%s11785_s19 + $0xf78] sm:$0xff] %v1245_v47  ;;  %v1251_v50 = vld [vmem:[%s11780_s18 + $0x1f20] sm:$0xff] }
 0x10e   : > { %1248 = vst [vmem:[%s11785_s19 + $0xf80] sm:$0xff] %v1247_v48  ;;  %1250 = vst [vmem:[%s11785_s19 + $0xf88] sm:$0xff] %v1249_v49  ;;  %v1253_v51 = vld [vmem:[%s11780_s18 + $0x1f28] sm:$0xff]  ;;  %v1255_v52 = vld [vmem:[%s11780_s18 + $0x1f30] sm:$0xff] }
 0x10f   : > { %1252 = vst [vmem:[%s11785_s19 + $0xf90] sm:$0xff] %v1251_v50  ;;  %1254 = vst [vmem:[%s11785_s19 + $0xf98] sm:$0xff] %v1253_v51  ;;  %v1257_v53 = vld [vmem:[%s11780_s18 + $0x1f38] sm:$0xff]  ;;  %v1259_v54 = vld [vmem:[%s11780_s18 + $0x1f40] sm:$0xff] }
 0x110   : > { %1256 = vst [vmem:[%s11785_s19 + $0xfa0] sm:$0xff] %v1255_v52  ;;  %v1261_v55 = vld [vmem:[%s11780_s18 + $0x1f48] sm:$0xff]  ;;  %1258 = vst [vmem:[%s11785_s19 + $0xfa8] sm:$0xff] %v1257_v53  ;;  %v1263_v56 = vld [vmem:[%s11780_s18 + $0x1f80] sm:$0xff] }
 0x111   : > { %1260 = vst [vmem:[%s11785_s19 + $0xfb0] sm:$0xff] %v1259_v54  ;;  %1262 = vst [vmem:[%s11785_s19 + $0xfb8] sm:$0xff] %v1261_v55  ;;  %v1265_v57 = vld [vmem:[%s11780_s18 + $0x1f88] sm:$0xff]  ;;  %v1267_v58 = vld [vmem:[%s11780_s18 + $0x1f90] sm:$0xff] }
 0x112   : > { %1264 = vst [vmem:[%s11785_s19 + $0xfc0] sm:$0xff] %v1263_v56  ;;  %1266 = vst [vmem:[%s11785_s19 + $0xfc8] sm:$0xff] %v1265_v57  ;;  %v1269_v59 = vld [vmem:[%s11780_s18 + $0x1f98] sm:$0xff]  ;;  %v1271_v60 = vld [vmem:[%s11780_s18 + $0x1fa0] sm:$0xff] }
 0x113   : > { %1268 = vst [vmem:[%s11785_s19 + $0xfd0] sm:$0xff] %v1267_v58  ;;  %v1273_v61 = vld [vmem:[%s11780_s18 + $0x1fa8] sm:$0xff]  ;;  %1270 = vst [vmem:[%s11785_s19 + $0xfd8] sm:$0xff] %v1269_v59  ;;  %v1275_v62 = vld [vmem:[%s11780_s18 + $0x1fe0] sm:$0xff] }
 0x114   : > { %1272 = vst [vmem:[%s11785_s19 + $0xfe0] sm:$0xff] %v1271_v60  ;;  %1274 = vst [vmem:[%s11785_s19 + $0xfe8] sm:$0xff] %v1273_v61  ;;  %v1277_v63 = vld [vmem:[%s11780_s18 + $0x1fe8] sm:$0xff]  ;;  %v1279_v0 = vld [vmem:[%s11780_s18 + $0x1ff0] sm:$0xff] }
 0x115   : > { %1276 = vst [vmem:[%s11785_s19 + $0xff0] sm:$0xff] %v1275_v62  ;;  %1278 = vst [vmem:[%s11785_s19 + $0xff8] sm:$0xff] %v1277_v63  ;;  %v1281_v1 = vld [vmem:[%s11780_s18 + $0x1ff8] sm:$0xff]  ;;  %v1283_v2 = vld [vmem:[%s11780_s18 + $0x2000] sm:$0xff] }
 0x116   : > { %1280 = vst [vmem:[%s11785_s19 + $0x1000] sm:$0xff] %v1279_v0  ;;  %v1285_v3 = vld [vmem:[%s11780_s18 + $0x2008] sm:$0xff]  ;;  %1282 = vst [vmem:[%s11785_s19 + $0x1008] sm:$0xff] %v1281_v1  ;;  %v1287_v4 = vld [vmem:[%s11780_s18 + $0x2040] sm:$0xff] }
 0x117   : > { %1284 = vst [vmem:[%s11785_s19 + $0x1010] sm:$0xff] %v1283_v2  ;;  %1286 = vst [vmem:[%s11785_s19 + $0x1018] sm:$0xff] %v1285_v3  ;;  %v1289_v5 = vld [vmem:[%s11780_s18 + $0x2048] sm:$0xff]  ;;  %v1291_v6 = vld [vmem:[%s11780_s18 + $0x2050] sm:$0xff] }
 0x118   : > { %1288 = vst [vmem:[%s11785_s19 + $0x1020] sm:$0xff] %v1287_v4  ;;  %1290 = vst [vmem:[%s11785_s19 + $0x1028] sm:$0xff] %v1289_v5  ;;  %v1293_v7 = vld [vmem:[%s11780_s18 + $0x2058] sm:$0xff]  ;;  %v1295_v8 = vld [vmem:[%s11780_s18 + $0x2060] sm:$0xff] }
 0x119   : > { %1292 = vst [vmem:[%s11785_s19 + $0x1030] sm:$0xff] %v1291_v6  ;;  %v1297_v9 = vld [vmem:[%s11780_s18 + $0x2068] sm:$0xff]  ;;  %1294 = vst [vmem:[%s11785_s19 + $0x1038] sm:$0xff] %v1293_v7  ;;  %v1299_v10 = vld [vmem:[%s11780_s18 + $0x20a0] sm:$0xff] }
 0x11a   : > { %1296 = vst [vmem:[%s11785_s19 + $0x1040] sm:$0xff] %v1295_v8  ;;  %1298 = vst [vmem:[%s11785_s19 + $0x1048] sm:$0xff] %v1297_v9  ;;  %v1301_v11 = vld [vmem:[%s11780_s18 + $0x20a8] sm:$0xff]  ;;  %v1303_v12 = vld [vmem:[%s11780_s18 + $0x20b0] sm:$0xff] }
 0x11b   : > { %1300 = vst [vmem:[%s11785_s19 + $0x1050] sm:$0xff] %v1299_v10  ;;  %1302 = vst [vmem:[%s11785_s19 + $0x1058] sm:$0xff] %v1301_v11  ;;  %v1305_v13 = vld [vmem:[%s11780_s18 + $0x20b8] sm:$0xff]  ;;  %v1307_v14 = vld [vmem:[%s11780_s18 + $0x20c0] sm:$0xff] }
 0x11c   : > { %1304 = vst [vmem:[%s11785_s19 + $0x1060] sm:$0xff] %v1303_v12  ;;  %v1309_v15 = vld [vmem:[%s11780_s18 + $0x20c8] sm:$0xff]  ;;  %1306 = vst [vmem:[%s11785_s19 + $0x1068] sm:$0xff] %v1305_v13  ;;  %v1311_v16 = vld [vmem:[%s11780_s18 + $0x2100] sm:$0xff] }
 0x11d   : > { %1308 = vst [vmem:[%s11785_s19 + $0x1070] sm:$0xff] %v1307_v14  ;;  %1310 = vst [vmem:[%s11785_s19 + $0x1078] sm:$0xff] %v1309_v15  ;;  %v1313_v17 = vld [vmem:[%s11780_s18 + $0x2108] sm:$0xff]  ;;  %v1315_v18 = vld [vmem:[%s11780_s18 + $0x2110] sm:$0xff] }
 0x11e   : > { %1312 = vst [vmem:[%s11785_s19 + $0x1080] sm:$0xff] %v1311_v16  ;;  %1314 = vst [vmem:[%s11785_s19 + $0x1088] sm:$0xff] %v1313_v17  ;;  %v1317_v19 = vld [vmem:[%s11780_s18 + $0x2118] sm:$0xff]  ;;  %v1319_v20 = vld [vmem:[%s11780_s18 + $0x2120] sm:$0xff] }
 0x11f   : > { %1316 = vst [vmem:[%s11785_s19 + $0x1090] sm:$0xff] %v1315_v18  ;;  %v1321_v21 = vld [vmem:[%s11780_s18 + $0x2128] sm:$0xff]  ;;  %1318 = vst [vmem:[%s11785_s19 + $0x1098] sm:$0xff] %v1317_v19  ;;  %v1323_v22 = vld [vmem:[%s11780_s18 + $0x2160] sm:$0xff] }
 0x120   : > { %1320 = vst [vmem:[%s11785_s19 + $0x10a0] sm:$0xff] %v1319_v20  ;;  %1322 = vst [vmem:[%s11785_s19 + $0x10a8] sm:$0xff] %v1321_v21  ;;  %v1325_v23 = vld [vmem:[%s11780_s18 + $0x2168] sm:$0xff]  ;;  %v1327_v24 = vld [vmem:[%s11780_s18 + $0x2170] sm:$0xff] }
 0x121   : > { %1324 = vst [vmem:[%s11785_s19 + $0x10b0] sm:$0xff] %v1323_v22  ;;  %1326 = vst [vmem:[%s11785_s19 + $0x10b8] sm:$0xff] %v1325_v23  ;;  %v1329_v25 = vld [vmem:[%s11780_s18 + $0x2178] sm:$0xff]  ;;  %v1331_v26 = vld [vmem:[%s11780_s18 + $0x2180] sm:$0xff] }
 0x122   : > { %1328 = vst [vmem:[%s11785_s19 + $0x10c0] sm:$0xff] %v1327_v24  ;;  %v1333_v27 = vld [vmem:[%s11780_s18 + $0x2188] sm:$0xff]  ;;  %1330 = vst [vmem:[%s11785_s19 + $0x10c8] sm:$0xff] %v1329_v25  ;;  %v1335_v28 = vld [vmem:[%s11780_s18 + $0x21c0] sm:$0xff] }
 0x123   : > { %1332 = vst [vmem:[%s11785_s19 + $0x10d0] sm:$0xff] %v1331_v26  ;;  %1334 = vst [vmem:[%s11785_s19 + $0x10d8] sm:$0xff] %v1333_v27  ;;  %v1337_v29 = vld [vmem:[%s11780_s18 + $0x21c8] sm:$0xff]  ;;  %v1339_v30 = vld [vmem:[%s11780_s18 + $0x21d0] sm:$0xff] }
 0x124   : > { %1336 = vst [vmem:[%s11785_s19 + $0x10e0] sm:$0xff] %v1335_v28  ;;  %1338 = vst [vmem:[%s11785_s19 + $0x10e8] sm:$0xff] %v1337_v29  ;;  %v1341_v31 = vld [vmem:[%s11780_s18 + $0x21d8] sm:$0xff]  ;;  %v1343_v32 = vld [vmem:[%s11780_s18 + $0x21e0] sm:$0xff] }
 0x125   : > { %1340 = vst [vmem:[%s11785_s19 + $0x10f0] sm:$0xff] %v1339_v30  ;;  %v1345_v33 = vld [vmem:[%s11780_s18 + $0x21e8] sm:$0xff]  ;;  %1342 = vst [vmem:[%s11785_s19 + $0x10f8] sm:$0xff] %v1341_v31  ;;  %v1347_v34 = vld [vmem:[%s11780_s18 + $0x2220] sm:$0xff] }
 0x126   : > { %1344 = vst [vmem:[%s11785_s19 + $0x1100] sm:$0xff] %v1343_v32  ;;  %1346 = vst [vmem:[%s11785_s19 + $0x1108] sm:$0xff] %v1345_v33  ;;  %v1349_v35 = vld [vmem:[%s11780_s18 + $0x2228] sm:$0xff]  ;;  %v1351_v36 = vld [vmem:[%s11780_s18 + $0x2230] sm:$0xff] }
 0x127   : > { %1348 = vst [vmem:[%s11785_s19 + $0x1110] sm:$0xff] %v1347_v34  ;;  %1350 = vst [vmem:[%s11785_s19 + $0x1118] sm:$0xff] %v1349_v35  ;;  %v1353_v37 = vld [vmem:[%s11780_s18 + $0x2238] sm:$0xff]  ;;  %v1355_v38 = vld [vmem:[%s11780_s18 + $0x2240] sm:$0xff] }
 0x128   : > { %1352 = vst [vmem:[%s11785_s19 + $0x1120] sm:$0xff] %v1351_v36  ;;  %v1357_v39 = vld [vmem:[%s11780_s18 + $0x2248] sm:$0xff]  ;;  %1354 = vst [vmem:[%s11785_s19 + $0x1128] sm:$0xff] %v1353_v37  ;;  %v1359_v40 = vld [vmem:[%s11780_s18 + $0x2280] sm:$0xff] }
 0x129   : > { %1356 = vst [vmem:[%s11785_s19 + $0x1130] sm:$0xff] %v1355_v38  ;;  %1358 = vst [vmem:[%s11785_s19 + $0x1138] sm:$0xff] %v1357_v39  ;;  %v1361_v41 = vld [vmem:[%s11780_s18 + $0x2288] sm:$0xff]  ;;  %v1363_v42 = vld [vmem:[%s11780_s18 + $0x2290] sm:$0xff] }
 0x12a   : > { %1360 = vst [vmem:[%s11785_s19 + $0x1140] sm:$0xff] %v1359_v40  ;;  %1362 = vst [vmem:[%s11785_s19 + $0x1148] sm:$0xff] %v1361_v41  ;;  %v1365_v43 = vld [vmem:[%s11780_s18 + $0x2298] sm:$0xff]  ;;  %v1367_v44 = vld [vmem:[%s11780_s18 + $0x22a0] sm:$0xff] }
 0x12b   : > { %1364 = vst [vmem:[%s11785_s19 + $0x1150] sm:$0xff] %v1363_v42  ;;  %v1369_v45 = vld [vmem:[%s11780_s18 + $0x22a8] sm:$0xff]  ;;  %1366 = vst [vmem:[%s11785_s19 + $0x1158] sm:$0xff] %v1365_v43  ;;  %v1371_v46 = vld [vmem:[%s11780_s18 + $0x22e0] sm:$0xff] }
 0x12c   : > { %1368 = vst [vmem:[%s11785_s19 + $0x1160] sm:$0xff] %v1367_v44  ;;  %1370 = vst [vmem:[%s11785_s19 + $0x1168] sm:$0xff] %v1369_v45  ;;  %v1373_v47 = vld [vmem:[%s11780_s18 + $0x22e8] sm:$0xff]  ;;  %v1375_v48 = vld [vmem:[%s11780_s18 + $0x22f0] sm:$0xff] }
 0x12d   : > { %1372 = vst [vmem:[%s11785_s19 + $0x1170] sm:$0xff] %v1371_v46  ;;  %1374 = vst [vmem:[%s11785_s19 + $0x1178] sm:$0xff] %v1373_v47  ;;  %v1377_v49 = vld [vmem:[%s11780_s18 + $0x22f8] sm:$0xff]  ;;  %v1379_v50 = vld [vmem:[%s11780_s18 + $0x2300] sm:$0xff] }
 0x12e   : > { %1376 = vst [vmem:[%s11785_s19 + $0x1180] sm:$0xff] %v1375_v48  ;;  %v1381_v51 = vld [vmem:[%s11780_s18 + $0x2308] sm:$0xff]  ;;  %1378 = vst [vmem:[%s11785_s19 + $0x1188] sm:$0xff] %v1377_v49  ;;  %v1383_v52 = vld [vmem:[%s11780_s18 + $0x2340] sm:$0xff] }
 0x12f   : > { %1380 = vst [vmem:[%s11785_s19 + $0x1190] sm:$0xff] %v1379_v50  ;;  %1382 = vst [vmem:[%s11785_s19 + $0x1198] sm:$0xff] %v1381_v51  ;;  %v1385_v53 = vld [vmem:[%s11780_s18 + $0x2348] sm:$0xff]  ;;  %v1387_v54 = vld [vmem:[%s11780_s18 + $0x2350] sm:$0xff] }
 0x130   : > { %1384 = vst [vmem:[%s11785_s19 + $0x11a0] sm:$0xff] %v1383_v52  ;;  %1386 = vst [vmem:[%s11785_s19 + $0x11a8] sm:$0xff] %v1385_v53  ;;  %v1389_v55 = vld [vmem:[%s11780_s18 + $0x2358] sm:$0xff]  ;;  %v1391_v56 = vld [vmem:[%s11780_s18 + $0x2360] sm:$0xff] }
 0x131   : > { %1388 = vst [vmem:[%s11785_s19 + $0x11b0] sm:$0xff] %v1387_v54  ;;  %v1393_v57 = vld [vmem:[%s11780_s18 + $0x2368] sm:$0xff]  ;;  %1390 = vst [vmem:[%s11785_s19 + $0x11b8] sm:$0xff] %v1389_v55  ;;  %v1395_v58 = vld [vmem:[%s11780_s18 + $0x23a0] sm:$0xff] }
 0x132   : > { %1392 = vst [vmem:[%s11785_s19 + $0x11c0] sm:$0xff] %v1391_v56  ;;  %1394 = vst [vmem:[%s11785_s19 + $0x11c8] sm:$0xff] %v1393_v57  ;;  %v1397_v59 = vld [vmem:[%s11780_s18 + $0x23a8] sm:$0xff]  ;;  %v1399_v60 = vld [vmem:[%s11780_s18 + $0x23b0] sm:$0xff] }
 0x133   : > { %1396 = vst [vmem:[%s11785_s19 + $0x11d0] sm:$0xff] %v1395_v58  ;;  %1398 = vst [vmem:[%s11785_s19 + $0x11d8] sm:$0xff] %v1397_v59  ;;  %v1401_v61 = vld [vmem:[%s11780_s18 + $0x23b8] sm:$0xff]  ;;  %v1403_v62 = vld [vmem:[%s11780_s18 + $0x23c0] sm:$0xff] }
 0x134   : > { %1400 = vst [vmem:[%s11785_s19 + $0x11e0] sm:$0xff] %v1399_v60  ;;  %v1405_v63 = vld [vmem:[%s11780_s18 + $0x23c8] sm:$0xff]  ;;  %1402 = vst [vmem:[%s11785_s19 + $0x11e8] sm:$0xff] %v1401_v61  ;;  %v1407_v0 = vld [vmem:[%s11780_s18 + $0x2400] sm:$0xff] }
 0x135   : > { %1404 = vst [vmem:[%s11785_s19 + $0x11f0] sm:$0xff] %v1403_v62  ;;  %1406 = vst [vmem:[%s11785_s19 + $0x11f8] sm:$0xff] %v1405_v63  ;;  %v1409_v1 = vld [vmem:[%s11780_s18 + $0x2408] sm:$0xff]  ;;  %v1411_v2 = vld [vmem:[%s11780_s18 + $0x2410] sm:$0xff] }
 0x136   : > { %1408 = vst [vmem:[%s11785_s19 + $0x1200] sm:$0xff] %v1407_v0  ;;  %1410 = vst [vmem:[%s11785_s19 + $0x1208] sm:$0xff] %v1409_v1  ;;  %v1413_v3 = vld [vmem:[%s11780_s18 + $0x2418] sm:$0xff]  ;;  %v1415_v4 = vld [vmem:[%s11780_s18 + $0x2420] sm:$0xff] }
 0x137   : > { %1412 = vst [vmem:[%s11785_s19 + $0x1210] sm:$0xff] %v1411_v2  ;;  %v1417_v5 = vld [vmem:[%s11780_s18 + $0x2428] sm:$0xff]  ;;  %1414 = vst [vmem:[%s11785_s19 + $0x1218] sm:$0xff] %v1413_v3  ;;  %v1419_v6 = vld [vmem:[%s11780_s18 + $0x2460] sm:$0xff] }
 0x138   : > { %1416 = vst [vmem:[%s11785_s19 + $0x1220] sm:$0xff] %v1415_v4  ;;  %1418 = vst [vmem:[%s11785_s19 + $0x1228] sm:$0xff] %v1417_v5  ;;  %v1421_v7 = vld [vmem:[%s11780_s18 + $0x2468] sm:$0xff]  ;;  %v1423_v8 = vld [vmem:[%s11780_s18 + $0x2470] sm:$0xff] }
 0x139   : > { %1420 = vst [vmem:[%s11785_s19 + $0x1230] sm:$0xff] %v1419_v6  ;;  %1422 = vst [vmem:[%s11785_s19 + $0x1238] sm:$0xff] %v1421_v7  ;;  %v1425_v9 = vld [vmem:[%s11780_s18 + $0x2478] sm:$0xff]  ;;  %v1427_v10 = vld [vmem:[%s11780_s18 + $0x2480] sm:$0xff] }
 0x13a   : > { %1424 = vst [vmem:[%s11785_s19 + $0x1240] sm:$0xff] %v1423_v8  ;;  %v1429_v11 = vld [vmem:[%s11780_s18 + $0x2488] sm:$0xff]  ;;  %1426 = vst [vmem:[%s11785_s19 + $0x1248] sm:$0xff] %v1425_v9  ;;  %v1431_v12 = vld [vmem:[%s11780_s18 + $0x24c0] sm:$0xff] }
 0x13b   : > { %1428 = vst [vmem:[%s11785_s19 + $0x1250] sm:$0xff] %v1427_v10  ;;  %1430 = vst [vmem:[%s11785_s19 + $0x1258] sm:$0xff] %v1429_v11  ;;  %v1433_v13 = vld [vmem:[%s11780_s18 + $0x24c8] sm:$0xff]  ;;  %v1435_v14 = vld [vmem:[%s11780_s18 + $0x24d0] sm:$0xff] }
 0x13c   : > { %1432 = vst [vmem:[%s11785_s19 + $0x1260] sm:$0xff] %v1431_v12  ;;  %1434 = vst [vmem:[%s11785_s19 + $0x1268] sm:$0xff] %v1433_v13  ;;  %v1437_v15 = vld [vmem:[%s11780_s18 + $0x24d8] sm:$0xff]  ;;  %v1439_v16 = vld [vmem:[%s11780_s18 + $0x24e0] sm:$0xff] }
 0x13d   : > { %1436 = vst [vmem:[%s11785_s19 + $0x1270] sm:$0xff] %v1435_v14  ;;  %v1441_v17 = vld [vmem:[%s11780_s18 + $0x24e8] sm:$0xff]  ;;  %1438 = vst [vmem:[%s11785_s19 + $0x1278] sm:$0xff] %v1437_v15  ;;  %v1443_v18 = vld [vmem:[%s11780_s18 + $0x2520] sm:$0xff] }
 0x13e   : > { %1440 = vst [vmem:[%s11785_s19 + $0x1280] sm:$0xff] %v1439_v16  ;;  %1442 = vst [vmem:[%s11785_s19 + $0x1288] sm:$0xff] %v1441_v17  ;;  %v1445_v19 = vld [vmem:[%s11780_s18 + $0x2528] sm:$0xff]  ;;  %v1447_v20 = vld [vmem:[%s11780_s18 + $0x2530] sm:$0xff] }
 0x13f   : > { %1444 = vst [vmem:[%s11785_s19 + $0x1290] sm:$0xff] %v1443_v18  ;;  %1446 = vst [vmem:[%s11785_s19 + $0x1298] sm:$0xff] %v1445_v19  ;;  %v1449_v21 = vld [vmem:[%s11780_s18 + $0x2538] sm:$0xff]  ;;  %v1451_v22 = vld [vmem:[%s11780_s18 + $0x2540] sm:$0xff] }
 0x140   : > { %1448 = vst [vmem:[%s11785_s19 + $0x12a0] sm:$0xff] %v1447_v20  ;;  %v1453_v23 = vld [vmem:[%s11780_s18 + $0x2548] sm:$0xff]  ;;  %1450 = vst [vmem:[%s11785_s19 + $0x12a8] sm:$0xff] %v1449_v21  ;;  %v1455_v24 = vld [vmem:[%s11780_s18 + $0x2580] sm:$0xff] }
 0x141   : > { %1452 = vst [vmem:[%s11785_s19 + $0x12b0] sm:$0xff] %v1451_v22  ;;  %1454 = vst [vmem:[%s11785_s19 + $0x12b8] sm:$0xff] %v1453_v23  ;;  %v1457_v25 = vld [vmem:[%s11780_s18 + $0x2588] sm:$0xff]  ;;  %v1459_v26 = vld [vmem:[%s11780_s18 + $0x2590] sm:$0xff] }
 0x142   : > { %1456 = vst [vmem:[%s11785_s19 + $0x12c0] sm:$0xff] %v1455_v24  ;;  %1458 = vst [vmem:[%s11785_s19 + $0x12c8] sm:$0xff] %v1457_v25  ;;  %v1461_v27 = vld [vmem:[%s11780_s18 + $0x2598] sm:$0xff]  ;;  %v1463_v28 = vld [vmem:[%s11780_s18 + $0x25a0] sm:$0xff] }
 0x143   : > { %1460 = vst [vmem:[%s11785_s19 + $0x12d0] sm:$0xff] %v1459_v26  ;;  %v1465_v29 = vld [vmem:[%s11780_s18 + $0x25a8] sm:$0xff]  ;;  %1462 = vst [vmem:[%s11785_s19 + $0x12d8] sm:$0xff] %v1461_v27  ;;  %v1467_v30 = vld [vmem:[%s11780_s18 + $0x25e0] sm:$0xff] }
 0x144   : > { %1464 = vst [vmem:[%s11785_s19 + $0x12e0] sm:$0xff] %v1463_v28  ;;  %1466 = vst [vmem:[%s11785_s19 + $0x12e8] sm:$0xff] %v1465_v29  ;;  %v1469_v31 = vld [vmem:[%s11780_s18 + $0x25e8] sm:$0xff]  ;;  %v1471_v32 = vld [vmem:[%s11780_s18 + $0x25f0] sm:$0xff] }
 0x145   : > { %1468 = vst [vmem:[%s11785_s19 + $0x12f0] sm:$0xff] %v1467_v30  ;;  %1470 = vst [vmem:[%s11785_s19 + $0x12f8] sm:$0xff] %v1469_v31  ;;  %v1473_v33 = vld [vmem:[%s11780_s18 + $0x25f8] sm:$0xff]  ;;  %v1475_v34 = vld [vmem:[%s11780_s18 + $0x2600] sm:$0xff] }
 0x146   : > { %1472 = vst [vmem:[%s11785_s19 + $0x1300] sm:$0xff] %v1471_v32  ;;  %v1477_v35 = vld [vmem:[%s11780_s18 + $0x2608] sm:$0xff]  ;;  %1474 = vst [vmem:[%s11785_s19 + $0x1308] sm:$0xff] %v1473_v33  ;;  %v1479_v36 = vld [vmem:[%s11780_s18 + $0x2640] sm:$0xff] }
 0x147   : > { %1476 = vst [vmem:[%s11785_s19 + $0x1310] sm:$0xff] %v1475_v34  ;;  %1478 = vst [vmem:[%s11785_s19 + $0x1318] sm:$0xff] %v1477_v35  ;;  %v1481_v37 = vld [vmem:[%s11780_s18 + $0x2648] sm:$0xff]  ;;  %v1483_v38 = vld [vmem:[%s11780_s18 + $0x2650] sm:$0xff] }
 0x148   : > { %1480 = vst [vmem:[%s11785_s19 + $0x1320] sm:$0xff] %v1479_v36  ;;  %1482 = vst [vmem:[%s11785_s19 + $0x1328] sm:$0xff] %v1481_v37  ;;  %v1485_v39 = vld [vmem:[%s11780_s18 + $0x2658] sm:$0xff]  ;;  %v1487_v40 = vld [vmem:[%s11780_s18 + $0x2660] sm:$0xff] }
 0x149   : > { %1484 = vst [vmem:[%s11785_s19 + $0x1330] sm:$0xff] %v1483_v38  ;;  %v1489_v41 = vld [vmem:[%s11780_s18 + $0x2668] sm:$0xff]  ;;  %1486 = vst [vmem:[%s11785_s19 + $0x1338] sm:$0xff] %v1485_v39  ;;  %v1491_v42 = vld [vmem:[%s11780_s18 + $0x26a0] sm:$0xff] }
 0x14a   : > { %1488 = vst [vmem:[%s11785_s19 + $0x1340] sm:$0xff] %v1487_v40  ;;  %1490 = vst [vmem:[%s11785_s19 + $0x1348] sm:$0xff] %v1489_v41  ;;  %v1493_v43 = vld [vmem:[%s11780_s18 + $0x26a8] sm:$0xff]  ;;  %v1495_v44 = vld [vmem:[%s11780_s18 + $0x26b0] sm:$0xff] }
 0x14b   : > { %1492 = vst [vmem:[%s11785_s19 + $0x1350] sm:$0xff] %v1491_v42  ;;  %1494 = vst [vmem:[%s11785_s19 + $0x1358] sm:$0xff] %v1493_v43  ;;  %v1497_v45 = vld [vmem:[%s11780_s18 + $0x26b8] sm:$0xff]  ;;  %v1499_v46 = vld [vmem:[%s11780_s18 + $0x26c0] sm:$0xff] }
 0x14c   : > { %1496 = vst [vmem:[%s11785_s19 + $0x1360] sm:$0xff] %v1495_v44  ;;  %v1501_v47 = vld [vmem:[%s11780_s18 + $0x26c8] sm:$0xff]  ;;  %1498 = vst [vmem:[%s11785_s19 + $0x1368] sm:$0xff] %v1497_v45  ;;  %v1503_v48 = vld [vmem:[%s11780_s18 + $0x2700] sm:$0xff] }
 0x14d   : > { %1500 = vst [vmem:[%s11785_s19 + $0x1370] sm:$0xff] %v1499_v46  ;;  %1502 = vst [vmem:[%s11785_s19 + $0x1378] sm:$0xff] %v1501_v47  ;;  %v1505_v49 = vld [vmem:[%s11780_s18 + $0x2708] sm:$0xff]  ;;  %v1507_v50 = vld [vmem:[%s11780_s18 + $0x2710] sm:$0xff] }
 0x14e   : > { %1504 = vst [vmem:[%s11785_s19 + $0x1380] sm:$0xff] %v1503_v48  ;;  %1506 = vst [vmem:[%s11785_s19 + $0x1388] sm:$0xff] %v1505_v49  ;;  %v1509_v51 = vld [vmem:[%s11780_s18 + $0x2718] sm:$0xff]  ;;  %v1511_v52 = vld [vmem:[%s11780_s18 + $0x2720] sm:$0xff] }
 0x14f   : > { %1508 = vst [vmem:[%s11785_s19 + $0x1390] sm:$0xff] %v1507_v50  ;;  %v1513_v53 = vld [vmem:[%s11780_s18 + $0x2728] sm:$0xff]  ;;  %1510 = vst [vmem:[%s11785_s19 + $0x1398] sm:$0xff] %v1509_v51  ;;  %v1515_v54 = vld [vmem:[%s11780_s18 + $0x2760] sm:$0xff] }
 0x150   : > { %1512 = vst [vmem:[%s11785_s19 + $0x13a0] sm:$0xff] %v1511_v52  ;;  %1514 = vst [vmem:[%s11785_s19 + $0x13a8] sm:$0xff] %v1513_v53  ;;  %v1517_v55 = vld [vmem:[%s11780_s18 + $0x2768] sm:$0xff]  ;;  %v1519_v56 = vld [vmem:[%s11780_s18 + $0x2770] sm:$0xff] }
 0x151   : > { %1516 = vst [vmem:[%s11785_s19 + $0x13b0] sm:$0xff] %v1515_v54  ;;  %1518 = vst [vmem:[%s11785_s19 + $0x13b8] sm:$0xff] %v1517_v55  ;;  %v1521_v57 = vld [vmem:[%s11780_s18 + $0x2778] sm:$0xff]  ;;  %v1523_v58 = vld [vmem:[%s11780_s18 + $0x2780] sm:$0xff] }
 0x152   : > { %1520 = vst [vmem:[%s11785_s19 + $0x13c0] sm:$0xff] %v1519_v56  ;;  %v1525_v59 = vld [vmem:[%s11780_s18 + $0x2788] sm:$0xff]  ;;  %1522 = vst [vmem:[%s11785_s19 + $0x13c8] sm:$0xff] %v1521_v57  ;;  %v1527_v60 = vld [vmem:[%s11780_s18 + $0x27c0] sm:$0xff] }
 0x153   : > { %1524 = vst [vmem:[%s11785_s19 + $0x13d0] sm:$0xff] %v1523_v58  ;;  %1526 = vst [vmem:[%s11785_s19 + $0x13d8] sm:$0xff] %v1525_v59  ;;  %v1529_v61 = vld [vmem:[%s11780_s18 + $0x27c8] sm:$0xff]  ;;  %v1531_v62 = vld [vmem:[%s11780_s18 + $0x27d0] sm:$0xff] }
 0x154   : > { %1528 = vst [vmem:[%s11785_s19 + $0x13e0] sm:$0xff] %v1527_v60  ;;  %1530 = vst [vmem:[%s11785_s19 + $0x13e8] sm:$0xff] %v1529_v61  ;;  %v1533_v63 = vld [vmem:[%s11780_s18 + $0x27d8] sm:$0xff]  ;;  %v1535_v0 = vld [vmem:[%s11780_s18 + $0x27e0] sm:$0xff] }
 0x155   : > { %1532 = vst [vmem:[%s11785_s19 + $0x13f0] sm:$0xff] %v1531_v62  ;;  %v1537_v1 = vld [vmem:[%s11780_s18 + $0x27e8] sm:$0xff]  ;;  %1534 = vst [vmem:[%s11785_s19 + $0x13f8] sm:$0xff] %v1533_v63  ;;  %v1539_v2 = vld [vmem:[%s11780_s18 + $0x2820] sm:$0xff] }
 0x156   : > { %1536 = vst [vmem:[%s11785_s19 + $0x1400] sm:$0xff] %v1535_v0  ;;  %1538 = vst [vmem:[%s11785_s19 + $0x1408] sm:$0xff] %v1537_v1  ;;  %v1541_v3 = vld [vmem:[%s11780_s18 + $0x2828] sm:$0xff]  ;;  %v1543_v4 = vld [vmem:[%s11780_s18 + $0x2830] sm:$0xff] }
 0x157   : > { %1540 = vst [vmem:[%s11785_s19 + $0x1410] sm:$0xff] %v1539_v2  ;;  %1542 = vst [vmem:[%s11785_s19 + $0x1418] sm:$0xff] %v1541_v3  ;;  %v1545_v5 = vld [vmem:[%s11780_s18 + $0x2838] sm:$0xff]  ;;  %v1547_v6 = vld [vmem:[%s11780_s18 + $0x2840] sm:$0xff] }
 0x158   : > { %1544 = vst [vmem:[%s11785_s19 + $0x1420] sm:$0xff] %v1543_v4  ;;  %v1549_v7 = vld [vmem:[%s11780_s18 + $0x2848] sm:$0xff]  ;;  %1546 = vst [vmem:[%s11785_s19 + $0x1428] sm:$0xff] %v1545_v5  ;;  %v1551_v8 = vld [vmem:[%s11780_s18 + $0x2880] sm:$0xff] }
 0x159   : > { %1548 = vst [vmem:[%s11785_s19 + $0x1430] sm:$0xff] %v1547_v6  ;;  %1550 = vst [vmem:[%s11785_s19 + $0x1438] sm:$0xff] %v1549_v7  ;;  %v1553_v9 = vld [vmem:[%s11780_s18 + $0x2888] sm:$0xff]  ;;  %v1555_v10 = vld [vmem:[%s11780_s18 + $0x2890] sm:$0xff] }
 0x15a   : > { %1552 = vst [vmem:[%s11785_s19 + $0x1440] sm:$0xff] %v1551_v8  ;;  %1554 = vst [vmem:[%s11785_s19 + $0x1448] sm:$0xff] %v1553_v9  ;;  %v1557_v11 = vld [vmem:[%s11780_s18 + $0x2898] sm:$0xff]  ;;  %v1559_v12 = vld [vmem:[%s11780_s18 + $0x28a0] sm:$0xff] }
 0x15b   : > { %1556 = vst [vmem:[%s11785_s19 + $0x1450] sm:$0xff] %v1555_v10  ;;  %v1561_v13 = vld [vmem:[%s11780_s18 + $0x28a8] sm:$0xff]  ;;  %1558 = vst [vmem:[%s11785_s19 + $0x1458] sm:$0xff] %v1557_v11  ;;  %v1563_v14 = vld [vmem:[%s11780_s18 + $0x28e0] sm:$0xff] }
 0x15c   : > { %1560 = vst [vmem:[%s11785_s19 + $0x1460] sm:$0xff] %v1559_v12  ;;  %1562 = vst [vmem:[%s11785_s19 + $0x1468] sm:$0xff] %v1561_v13  ;;  %v1565_v15 = vld [vmem:[%s11780_s18 + $0x28e8] sm:$0xff]  ;;  %v1567_v16 = vld [vmem:[%s11780_s18 + $0x28f0] sm:$0xff] }
 0x15d   : > { %1564 = vst [vmem:[%s11785_s19 + $0x1470] sm:$0xff] %v1563_v14  ;;  %1566 = vst [vmem:[%s11785_s19 + $0x1478] sm:$0xff] %v1565_v15  ;;  %v1569_v17 = vld [vmem:[%s11780_s18 + $0x28f8] sm:$0xff]  ;;  %v1571_v18 = vld [vmem:[%s11780_s18 + $0x2900] sm:$0xff] }
 0x15e   : > { %1568 = vst [vmem:[%s11785_s19 + $0x1480] sm:$0xff] %v1567_v16  ;;  %v1573_v19 = vld [vmem:[%s11780_s18 + $0x2908] sm:$0xff]  ;;  %1570 = vst [vmem:[%s11785_s19 + $0x1488] sm:$0xff] %v1569_v17  ;;  %v1575_v20 = vld [vmem:[%s11780_s18 + $0x2940] sm:$0xff] }
 0x15f   : > { %1572 = vst [vmem:[%s11785_s19 + $0x1490] sm:$0xff] %v1571_v18  ;;  %1574 = vst [vmem:[%s11785_s19 + $0x1498] sm:$0xff] %v1573_v19  ;;  %v1577_v21 = vld [vmem:[%s11780_s18 + $0x2948] sm:$0xff]  ;;  %v1579_v22 = vld [vmem:[%s11780_s18 + $0x2950] sm:$0xff] }
 0x160   : > { %1576 = vst [vmem:[%s11785_s19 + $0x14a0] sm:$0xff] %v1575_v20  ;;  %1578 = vst [vmem:[%s11785_s19 + $0x14a8] sm:$0xff] %v1577_v21  ;;  %v1581_v23 = vld [vmem:[%s11780_s18 + $0x2958] sm:$0xff]  ;;  %v1583_v24 = vld [vmem:[%s11780_s18 + $0x2960] sm:$0xff] }
 0x161   : > { %1580 = vst [vmem:[%s11785_s19 + $0x14b0] sm:$0xff] %v1579_v22  ;;  %v1585_v25 = vld [vmem:[%s11780_s18 + $0x2968] sm:$0xff]  ;;  %1582 = vst [vmem:[%s11785_s19 + $0x14b8] sm:$0xff] %v1581_v23  ;;  %v1587_v26 = vld [vmem:[%s11780_s18 + $0x29a0] sm:$0xff] }
 0x162   : > { %1584 = vst [vmem:[%s11785_s19 + $0x14c0] sm:$0xff] %v1583_v24  ;;  %1586 = vst [vmem:[%s11785_s19 + $0x14c8] sm:$0xff] %v1585_v25  ;;  %v1589_v27 = vld [vmem:[%s11780_s18 + $0x29a8] sm:$0xff]  ;;  %v1591_v28 = vld [vmem:[%s11780_s18 + $0x29b0] sm:$0xff] }
 0x163   : > { %1588 = vst [vmem:[%s11785_s19 + $0x14d0] sm:$0xff] %v1587_v26  ;;  %1590 = vst [vmem:[%s11785_s19 + $0x14d8] sm:$0xff] %v1589_v27  ;;  %v1593_v29 = vld [vmem:[%s11780_s18 + $0x29b8] sm:$0xff]  ;;  %v1595_v30 = vld [vmem:[%s11780_s18 + $0x29c0] sm:$0xff] }
 0x164   : > { %1592 = vst [vmem:[%s11785_s19 + $0x14e0] sm:$0xff] %v1591_v28  ;;  %v1597_v31 = vld [vmem:[%s11780_s18 + $0x29c8] sm:$0xff]  ;;  %1594 = vst [vmem:[%s11785_s19 + $0x14e8] sm:$0xff] %v1593_v29  ;;  %v1599_v32 = vld [vmem:[%s11780_s18 + $0x2a00] sm:$0xff] }
 0x165   : > { %1596 = vst [vmem:[%s11785_s19 + $0x14f0] sm:$0xff] %v1595_v30  ;;  %1598 = vst [vmem:[%s11785_s19 + $0x14f8] sm:$0xff] %v1597_v31  ;;  %v1601_v33 = vld [vmem:[%s11780_s18 + $0x2a08] sm:$0xff]  ;;  %v1603_v34 = vld [vmem:[%s11780_s18 + $0x2a10] sm:$0xff] }
 0x166   : > { %1600 = vst [vmem:[%s11785_s19 + $0x1500] sm:$0xff] %v1599_v32  ;;  %1602 = vst [vmem:[%s11785_s19 + $0x1508] sm:$0xff] %v1601_v33  ;;  %v1605_v35 = vld [vmem:[%s11780_s18 + $0x2a18] sm:$0xff]  ;;  %v1607_v36 = vld [vmem:[%s11780_s18 + $0x2a20] sm:$0xff] }
 0x167   : > { %1604 = vst [vmem:[%s11785_s19 + $0x1510] sm:$0xff] %v1603_v34  ;;  %v1609_v37 = vld [vmem:[%s11780_s18 + $0x2a28] sm:$0xff]  ;;  %1606 = vst [vmem:[%s11785_s19 + $0x1518] sm:$0xff] %v1605_v35  ;;  %v1611_v38 = vld [vmem:[%s11780_s18 + $0x2a60] sm:$0xff] }
 0x168   : > { %1608 = vst [vmem:[%s11785_s19 + $0x1520] sm:$0xff] %v1607_v36  ;;  %1610 = vst [vmem:[%s11785_s19 + $0x1528] sm:$0xff] %v1609_v37  ;;  %v1613_v39 = vld [vmem:[%s11780_s18 + $0x2a68] sm:$0xff]  ;;  %v1615_v40 = vld [vmem:[%s11780_s18 + $0x2a70] sm:$0xff] }
 0x169   : > { %1612 = vst [vmem:[%s11785_s19 + $0x1530] sm:$0xff] %v1611_v38  ;;  %1614 = vst [vmem:[%s11785_s19 + $0x1538] sm:$0xff] %v1613_v39  ;;  %v1617_v41 = vld [vmem:[%s11780_s18 + $0x2a78] sm:$0xff]  ;;  %v1619_v42 = vld [vmem:[%s11780_s18 + $0x2a80] sm:$0xff] }
 0x16a   : > { %1616 = vst [vmem:[%s11785_s19 + $0x1540] sm:$0xff] %v1615_v40  ;;  %v1621_v43 = vld [vmem:[%s11780_s18 + $0x2a88] sm:$0xff]  ;;  %1618 = vst [vmem:[%s11785_s19 + $0x1548] sm:$0xff] %v1617_v41  ;;  %v1623_v44 = vld [vmem:[%s11780_s18 + $0x2ac0] sm:$0xff] }
 0x16b   : > { %1620 = vst [vmem:[%s11785_s19 + $0x1550] sm:$0xff] %v1619_v42  ;;  %1622 = vst [vmem:[%s11785_s19 + $0x1558] sm:$0xff] %v1621_v43  ;;  %v1625_v45 = vld [vmem:[%s11780_s18 + $0x2ac8] sm:$0xff]  ;;  %v1627_v46 = vld [vmem:[%s11780_s18 + $0x2ad0] sm:$0xff] }
 0x16c   : > { %1624 = vst [vmem:[%s11785_s19 + $0x1560] sm:$0xff] %v1623_v44  ;;  %1626 = vst [vmem:[%s11785_s19 + $0x1568] sm:$0xff] %v1625_v45  ;;  %v1629_v47 = vld [vmem:[%s11780_s18 + $0x2ad8] sm:$0xff]  ;;  %v1631_v48 = vld [vmem:[%s11780_s18 + $0x2ae0] sm:$0xff] }
 0x16d   : > { %1628 = vst [vmem:[%s11785_s19 + $0x1570] sm:$0xff] %v1627_v46  ;;  %v1633_v49 = vld [vmem:[%s11780_s18 + $0x2ae8] sm:$0xff]  ;;  %1630 = vst [vmem:[%s11785_s19 + $0x1578] sm:$0xff] %v1629_v47  ;;  %v1635_v50 = vld [vmem:[%s11780_s18 + $0x2b20] sm:$0xff] }
 0x16e   : > { %1632 = vst [vmem:[%s11785_s19 + $0x1580] sm:$0xff] %v1631_v48  ;;  %1634 = vst [vmem:[%s11785_s19 + $0x1588] sm:$0xff] %v1633_v49  ;;  %v1637_v51 = vld [vmem:[%s11780_s18 + $0x2b28] sm:$0xff]  ;;  %v1639_v52 = vld [vmem:[%s11780_s18 + $0x2b30] sm:$0xff] }
 0x16f   : > { %1636 = vst [vmem:[%s11785_s19 + $0x1590] sm:$0xff] %v1635_v50  ;;  %1638 = vst [vmem:[%s11785_s19 + $0x1598] sm:$0xff] %v1637_v51  ;;  %v1641_v53 = vld [vmem:[%s11780_s18 + $0x2b38] sm:$0xff]  ;;  %v1643_v54 = vld [vmem:[%s11780_s18 + $0x2b40] sm:$0xff] }
 0x170   : > { %1640 = vst [vmem:[%s11785_s19 + $0x15a0] sm:$0xff] %v1639_v52  ;;  %v1645_v55 = vld [vmem:[%s11780_s18 + $0x2b48] sm:$0xff]  ;;  %1642 = vst [vmem:[%s11785_s19 + $0x15a8] sm:$0xff] %v1641_v53  ;;  %v1647_v56 = vld [vmem:[%s11780_s18 + $0x2b80] sm:$0xff] }
 0x171   : > { %1644 = vst [vmem:[%s11785_s19 + $0x15b0] sm:$0xff] %v1643_v54  ;;  %1646 = vst [vmem:[%s11785_s19 + $0x15b8] sm:$0xff] %v1645_v55  ;;  %v1649_v57 = vld [vmem:[%s11780_s18 + $0x2b88] sm:$0xff]  ;;  %v1651_v58 = vld [vmem:[%s11780_s18 + $0x2b90] sm:$0xff] }
 0x172   : > { %1648 = vst [vmem:[%s11785_s19 + $0x15c0] sm:$0xff] %v1647_v56  ;;  %1650 = vst [vmem:[%s11785_s19 + $0x15c8] sm:$0xff] %v1649_v57  ;;  %v1653_v59 = vld [vmem:[%s11780_s18 + $0x2b98] sm:$0xff]  ;;  %v1655_v60 = vld [vmem:[%s11780_s18 + $0x2ba0] sm:$0xff] }
 0x173   : > { %1652 = vst [vmem:[%s11785_s19 + $0x15d0] sm:$0xff] %v1651_v58  ;;  %v1657_v61 = vld [vmem:[%s11780_s18 + $0x2ba8] sm:$0xff]  ;;  %1654 = vst [vmem:[%s11785_s19 + $0x15d8] sm:$0xff] %v1653_v59  ;;  %v1659_v62 = vld [vmem:[%s11780_s18 + $0x2be0] sm:$0xff] }
 0x174   : > { %1656 = vst [vmem:[%s11785_s19 + $0x15e0] sm:$0xff] %v1655_v60  ;;  %1658 = vst [vmem:[%s11785_s19 + $0x15e8] sm:$0xff] %v1657_v61  ;;  %v1661_v63 = vld [vmem:[%s11780_s18 + $0x2be8] sm:$0xff]  ;;  %v1663_v0 = vld [vmem:[%s11780_s18 + $0x2bf0] sm:$0xff] }
 0x175   : > { %1660 = vst [vmem:[%s11785_s19 + $0x15f0] sm:$0xff] %v1659_v62  ;;  %1662 = vst [vmem:[%s11785_s19 + $0x15f8] sm:$0xff] %v1661_v63  ;;  %v1665_v1 = vld [vmem:[%s11780_s18 + $0x2bf8] sm:$0xff]  ;;  %v1667_v2 = vld [vmem:[%s11780_s18 + $0x2c00] sm:$0xff] }
 0x176   : > { %1664 = vst [vmem:[%s11785_s19 + $0x1600] sm:$0xff] %v1663_v0  ;;  %v1669_v3 = vld [vmem:[%s11780_s18 + $0x2c08] sm:$0xff]  ;;  %1666 = vst [vmem:[%s11785_s19 + $0x1608] sm:$0xff] %v1665_v1  ;;  %v1671_v4 = vld [vmem:[%s11780_s18 + $0x2c40] sm:$0xff] }
 0x177   : > { %1668 = vst [vmem:[%s11785_s19 + $0x1610] sm:$0xff] %v1667_v2  ;;  %1670 = vst [vmem:[%s11785_s19 + $0x1618] sm:$0xff] %v1669_v3  ;;  %v1673_v5 = vld [vmem:[%s11780_s18 + $0x2c48] sm:$0xff]  ;;  %v1675_v6 = vld [vmem:[%s11780_s18 + $0x2c50] sm:$0xff] }
 0x178   : > { %1672 = vst [vmem:[%s11785_s19 + $0x1620] sm:$0xff] %v1671_v4  ;;  %1674 = vst [vmem:[%s11785_s19 + $0x1628] sm:$0xff] %v1673_v5  ;;  %v1677_v7 = vld [vmem:[%s11780_s18 + $0x2c58] sm:$0xff]  ;;  %v1679_v8 = vld [vmem:[%s11780_s18 + $0x2c60] sm:$0xff] }
 0x179   : > { %1676 = vst [vmem:[%s11785_s19 + $0x1630] sm:$0xff] %v1675_v6  ;;  %v1681_v9 = vld [vmem:[%s11780_s18 + $0x2c68] sm:$0xff]  ;;  %1678 = vst [vmem:[%s11785_s19 + $0x1638] sm:$0xff] %v1677_v7  ;;  %v1683_v10 = vld [vmem:[%s11780_s18 + $0x2ca0] sm:$0xff] }
 0x17a   : > { %1680 = vst [vmem:[%s11785_s19 + $0x1640] sm:$0xff] %v1679_v8  ;;  %1682 = vst [vmem:[%s11785_s19 + $0x1648] sm:$0xff] %v1681_v9  ;;  %v1685_v11 = vld [vmem:[%s11780_s18 + $0x2ca8] sm:$0xff]  ;;  %v1687_v12 = vld [vmem:[%s11780_s18 + $0x2cb0] sm:$0xff] }
 0x17b   : > { %1684 = vst [vmem:[%s11785_s19 + $0x1650] sm:$0xff] %v1683_v10  ;;  %1686 = vst [vmem:[%s11785_s19 + $0x1658] sm:$0xff] %v1685_v11  ;;  %v1689_v13 = vld [vmem:[%s11780_s18 + $0x2cb8] sm:$0xff]  ;;  %v1691_v14 = vld [vmem:[%s11780_s18 + $0x2cc0] sm:$0xff] }
 0x17c   : > { %1688 = vst [vmem:[%s11785_s19 + $0x1660] sm:$0xff] %v1687_v12  ;;  %v1693_v15 = vld [vmem:[%s11780_s18 + $0x2cc8] sm:$0xff]  ;;  %1690 = vst [vmem:[%s11785_s19 + $0x1668] sm:$0xff] %v1689_v13  ;;  %v1695_v16 = vld [vmem:[%s11780_s18 + $0x2d00] sm:$0xff] }
 0x17d   : > { %1692 = vst [vmem:[%s11785_s19 + $0x1670] sm:$0xff] %v1691_v14  ;;  %1694 = vst [vmem:[%s11785_s19 + $0x1678] sm:$0xff] %v1693_v15  ;;  %v1697_v17 = vld [vmem:[%s11780_s18 + $0x2d08] sm:$0xff]  ;;  %v1699_v18 = vld [vmem:[%s11780_s18 + $0x2d10] sm:$0xff] }
 0x17e   : > { %1696 = vst [vmem:[%s11785_s19 + $0x1680] sm:$0xff] %v1695_v16  ;;  %1698 = vst [vmem:[%s11785_s19 + $0x1688] sm:$0xff] %v1697_v17  ;;  %v1701_v19 = vld [vmem:[%s11780_s18 + $0x2d18] sm:$0xff]  ;;  %v1703_v20 = vld [vmem:[%s11780_s18 + $0x2d20] sm:$0xff] }
 0x17f   : > { %1700 = vst [vmem:[%s11785_s19 + $0x1690] sm:$0xff] %v1699_v18  ;;  %v1705_v21 = vld [vmem:[%s11780_s18 + $0x2d28] sm:$0xff]  ;;  %1702 = vst [vmem:[%s11785_s19 + $0x1698] sm:$0xff] %v1701_v19  ;;  %v1707_v22 = vld [vmem:[%s11780_s18 + $0x2d60] sm:$0xff] }
 0x180   : > { %1704 = vst [vmem:[%s11785_s19 + $0x16a0] sm:$0xff] %v1703_v20  ;;  %1706 = vst [vmem:[%s11785_s19 + $0x16a8] sm:$0xff] %v1705_v21  ;;  %v1709_v23 = vld [vmem:[%s11780_s18 + $0x2d68] sm:$0xff]  ;;  %v1711_v24 = vld [vmem:[%s11780_s18 + $0x2d70] sm:$0xff] }
 0x181   : > { %1708 = vst [vmem:[%s11785_s19 + $0x16b0] sm:$0xff] %v1707_v22  ;;  %1710 = vst [vmem:[%s11785_s19 + $0x16b8] sm:$0xff] %v1709_v23  ;;  %v1713_v25 = vld [vmem:[%s11780_s18 + $0x2d78] sm:$0xff]  ;;  %v1715_v26 = vld [vmem:[%s11780_s18 + $0x2d80] sm:$0xff] }
 0x182   : > { %1712 = vst [vmem:[%s11785_s19 + $0x16c0] sm:$0xff] %v1711_v24  ;;  %v1717_v27 = vld [vmem:[%s11780_s18 + $0x2d88] sm:$0xff]  ;;  %1714 = vst [vmem:[%s11785_s19 + $0x16c8] sm:$0xff] %v1713_v25  ;;  %v1719_v28 = vld [vmem:[%s11780_s18 + $0x2dc0] sm:$0xff] }
 0x183   : > { %1716 = vst [vmem:[%s11785_s19 + $0x16d0] sm:$0xff] %v1715_v26  ;;  %1718 = vst [vmem:[%s11785_s19 + $0x16d8] sm:$0xff] %v1717_v27  ;;  %v1721_v29 = vld [vmem:[%s11780_s18 + $0x2dc8] sm:$0xff]  ;;  %v1723_v30 = vld [vmem:[%s11780_s18 + $0x2dd0] sm:$0xff] }
 0x184   : > { %1720 = vst [vmem:[%s11785_s19 + $0x16e0] sm:$0xff] %v1719_v28  ;;  %1722 = vst [vmem:[%s11785_s19 + $0x16e8] sm:$0xff] %v1721_v29  ;;  %v1725_v31 = vld [vmem:[%s11780_s18 + $0x2dd8] sm:$0xff]  ;;  %v1727_v32 = vld [vmem:[%s11780_s18 + $0x2de0] sm:$0xff] }
 0x185   : > { %1724 = vst [vmem:[%s11785_s19 + $0x16f0] sm:$0xff] %v1723_v30  ;;  %v1729_v33 = vld [vmem:[%s11780_s18 + $0x2de8] sm:$0xff]  ;;  %1726 = vst [vmem:[%s11785_s19 + $0x16f8] sm:$0xff] %v1725_v31  ;;  %v1731_v34 = vld [vmem:[%s11780_s18 + $0x2e20] sm:$0xff] }
 0x186   : > { %1728 = vst [vmem:[%s11785_s19 + $0x1700] sm:$0xff] %v1727_v32  ;;  %1730 = vst [vmem:[%s11785_s19 + $0x1708] sm:$0xff] %v1729_v33  ;;  %v1733_v35 = vld [vmem:[%s11780_s18 + $0x2e28] sm:$0xff]  ;;  %v1735_v36 = vld [vmem:[%s11780_s18 + $0x2e30] sm:$0xff] }
 0x187   : > { %1732 = vst [vmem:[%s11785_s19 + $0x1710] sm:$0xff] %v1731_v34  ;;  %1734 = vst [vmem:[%s11785_s19 + $0x1718] sm:$0xff] %v1733_v35  ;;  %v1737_v37 = vld [vmem:[%s11780_s18 + $0x2e38] sm:$0xff]  ;;  %v1739_v38 = vld [vmem:[%s11780_s18 + $0x2e40] sm:$0xff] }
 0x188   : > { %1736 = vst [vmem:[%s11785_s19 + $0x1720] sm:$0xff] %v1735_v36  ;;  %v1741_v39 = vld [vmem:[%s11780_s18 + $0x2e48] sm:$0xff]  ;;  %1738 = vst [vmem:[%s11785_s19 + $0x1728] sm:$0xff] %v1737_v37  ;;  %v1743_v40 = vld [vmem:[%s11780_s18 + $0x2e80] sm:$0xff] }
 0x189   : > { %1740 = vst [vmem:[%s11785_s19 + $0x1730] sm:$0xff] %v1739_v38  ;;  %1742 = vst [vmem:[%s11785_s19 + $0x1738] sm:$0xff] %v1741_v39  ;;  %v1745_v41 = vld [vmem:[%s11780_s18 + $0x2e88] sm:$0xff]  ;;  %v1747_v42 = vld [vmem:[%s11780_s18 + $0x2e90] sm:$0xff] }
 0x18a   : > { %1744 = vst [vmem:[%s11785_s19 + $0x1740] sm:$0xff] %v1743_v40  ;;  %1746 = vst [vmem:[%s11785_s19 + $0x1748] sm:$0xff] %v1745_v41  ;;  %v1749_v43 = vld [vmem:[%s11780_s18 + $0x2e98] sm:$0xff]  ;;  %v1751_v44 = vld [vmem:[%s11780_s18 + $0x2ea0] sm:$0xff] }
 0x18b   : > { %1748 = vst [vmem:[%s11785_s19 + $0x1750] sm:$0xff] %v1747_v42  ;;  %v1753_v45 = vld [vmem:[%s11780_s18 + $0x2ea8] sm:$0xff]  ;;  %1750 = vst [vmem:[%s11785_s19 + $0x1758] sm:$0xff] %v1749_v43 }
 0x18c   : > { %1752 = vst [vmem:[%s11785_s19 + $0x1760] sm:$0xff] %v1751_v44  ;;  %1754 = vst [vmem:[%s11785_s19 + $0x1768] sm:$0xff] %v1753_v45 }
 0x18d PF: > { %p9397_p10 = scmp.ge.s32.totalorder %s11680_s27, 1  ;;  %p1767_p11 = scmp.lt.s32.totalorder %s11680_s27, 3 }
 0x18f   : > { %p1768_p12 = pnand %p9397_p10, %p1767_p11 }
 0x190   : > { %s13555_s22 = sand.u32 (!%p1768_p12), 1, %s11672_s25   ;;  %s1810_s8 = smul.u32 (!%p1768_p12), 12, %s11746_s28 }
 0x191   : > { %1771 = sbr.rel (%p1768_p12) target bundleno = 1871 (0x74f), region = 67  ;;  %s9305_s21 = scalar_lea.sflag (!%p1768_p12), [#allocation4], %s13555_s22 }
 0x192   : > { %s10388_s23 = smul.u32 (!%p1768_p12), 6000, %s13555_s22  ;;  %p1811_p13 = scmp.lt.s32.totalorder (!%p1768_p12), %s1810_s8, 23 }
 0x194   : > { %s13570_s18 = scalar_lea.vmem (!%p1768_p12), [#allocation2], %s10388_s23  ;;  %s10389_s23 = smul.u32 (!%p1768_p12), 24, %s13555_s22 }
 0x196   : > { %v1823_v46 = vld [vmem:[%s14998_s1 + $0x20] sm:$0x33]  ;;  %vm1881_vm0 = vcmask 1041408   ;;  %v1824_v47 = vld [vmem:[%s14998_s1 + $0x28] sm:$0x33]  ;;  %v11682_v62 = vmov 0  }
 0x197   : > { %v9403_v48 = vcombine.high %v1823_v46, %v1823_v46  ;;  %v9405_v49 = vcombine.high %v1824_v47, %v1824_v47  ;;  %v9402_v50 = vcombine.low %v1823_v46, %v1823_v46  ;;  %v9404_v51 = vcombine.low %v1824_v47, %v1824_v47  ;;  %v10435_v52 = vld [vmem:[%s14998_s1 + $0x4] ss:$16 sps:$4 sm:$0xff]   ;;  %v10437_v53 = vld [vmem:[%s14998_s1 + $0xc] ss:$16 sps:$4 sm:$0xff]   ;;  %v10439_v54 = vld [vmem:[%s14998_s1] ss:$16 sps:$4 sm:$0xff]   ;;  %1926 = vmatprep.mubr.bf16.mxu0 %v11682_v62 }
 0x198   : > { %v10440_v57 = vld [vmem:[%s14998_s1 + $0x8] ss:$16 sps:$4 sm:$0xff]   ;;  %v1817_v58 = vld [vmem:[%s14997_s0] sm:$0x3]  ;;  %1967 = vmatprep.mubr.bf16.mxu1 %v11682_v62  ;;  %vm1877_vm1 = vcmask 162816   ;;  %vm3226_vm2 = vcmask 130048  }
 0x199   : > { %9406 = vmatprep.subr.msk.bf16.mxu0 %vm1881_vm0, %v9403_v48  ;;  %9408 = vmatprep.subr.msk.bf16.mxu1 %vm1881_vm0, %v9405_v49  ;;  %v1883_v55 = vsel %vm1881_vm0, %v9402_v50, 0  ;;  %v1889_v56 = vsel %vm1881_vm0, %v9404_v51, 0  ;;  %v2040_v59 = vld [vmem:[%s15000_s3 + $0x1c0] sm:$0xff]  ;;  %v1818_v1 = vpack.c.bf16 %v1817_v58, %v1817_v58  ;;  %vm8142_vm3 = vcmask 1043456   ;;  %s15014_s8 = smov (!%p1811_p13, %s1810_s8), 23  ;;  %s14651_s15 = scalar_lea.vmem [#allocation3], %s10389_s23 }
 0x19a   : > { %1907 = vmatpush1.bf16.msra.mxu0 %v1883_v55  ;;  %1948 = vmatpush1.bf16.msra.mxu1 %v1889_v56  ;;  %v2044_v60 = vld [vmem:[%s15000_s3 + $0x1e0] sm:$0xff]  ;;  %vm8138_vm4 = vcmask 850944   ;;  %s14280_s14 = scalar_lea.vmem %s15003_s6, %s15014_s8  ;;  %s9319_s16 = sshll.u32 %s14651_s15, 4  ;;  %s9320_s16 = int_to_ptr.vmem [resolvable:$true] %s9319_s16 }
 0x19b   : > { %1908 = vmatprep.subr.bf16.mxu0 %v10435_v52  ;;  %1949 = vmatprep.subr.bf16.mxu1 %v10437_v53  ;;  %v9467_v61 = vcombine.high %v2040_v59, %v2044_v60  ;;  %v2032_v63 = vld [vmem:[%s15000_s3 + $0x180] sm:$0xff]  ;;  %v9466_v2 = vcombine.low %v2040_v59, %v2044_v60  ;;  %s11620_s29 = scalar_lea.vmem %s9320_s16, 384  ;;  %s11684_s8 = smov [#allocation3]  }
 0x19c   : > { %v2036_v0 = vld [vmem:[%s15000_s3 + $0x1a0] sm:$0xff]  ;;  %p11621_p0 = scmp.ne.s32.totalorder %s9320_s16, %s11620_s29 }
 0x19d   : > { %v9459_v3 = vcombine.high %v2032_v63, %v2036_v0  ;;  %v2168_v4 = vld [vmem:[%s15000_s3 + $0x5c0] sm:$0xff]  ;;  %v9458_v12 = vcombine.low %v2032_v63, %v2036_v0 }
 0x19e   : > { %1909 = vmatpush1.bf16.msra.mxu0 %v10439_v54  ;;  %1950 = vmatpush1.bf16.msra.mxu1 %v10440_v57  ;;  %v2172_v5 = vld [vmem:[%s15000_s3 + $0x5e0] sm:$0xff]  ;;  %p11622_p1 = pnand %p11621_p0, %p11764_p6 }
 0x19f   : > { %3230 = vmatprep.subr.bf16.mxu0 %v9467_v61  ;;  %v2024_v6 = vld [vmem:[%s15000_s3 + $0x140] sm:$0xff]  ;;  %v9594_v8 = vcombine.low %v2168_v4, %v2172_v5  ;;  %v9595_v9 = vcombine.high %v2168_v4, %v2172_v5 }
 0x1a0   : > { %v2028_v7 = vld [vmem:[%s15000_s3 + $0x160] sm:$0xff]  ;;  %p11623_p2 = pneg %p11622_p1 }
 0x1a1   : > { %v2160_v10 = vld [vmem:[%s15000_s3 + $0x580] sm:$0xff]  ;;  %9407 = vmatmul.mubr.msk.bf16.vlgmr.msra.gmra.mxu0 %vm1877_vm1, %v1818_v1  ;;  %9409 = vmatmul.mubr.msk.bf16.vlgmr.msra.gmra.mxu1 %vm1877_vm1, %v1818_v1  ;;  %v9451_v16 = vcombine.high %v2024_v6, %v2028_v7  ;;  %v9450_v23 = vcombine.low %v2024_v6, %v2028_v7 }
 0x1a2   : > { %v2164_v11 = vld [vmem:[%s15000_s3 + $0x5a0] sm:$0xff]  ;;  %3231 = vmatpush1.bf16.msra.mxu0 %v9466_v2  ;;  %3271 = vmatprep.subr.bf16.mxu1 %v9595_v9 }
 0x1a3   : > { %v9587_v13 = vcombine.high %v2160_v10, %v2164_v11  ;;  %v2152_v14 = vld [vmem:[%s15000_s3 + $0x540] sm:$0xff]  ;;  %3232 = vmatprep.subr.bf16.mxu0 %v9459_v3  ;;  %3272 = vmatpush1.bf16.msra.mxu1 %v9594_v8  ;;  %v9586_v17 = vcombine.low %v2160_v10, %v2164_v11 }
 0x1a4   : > { %v2156_v15 = vld [vmem:[%s15000_s3 + $0x560] sm:$0xff] }
 0x1a5   : > { %v2016_v18 = vld [vmem:[%s15000_s3 + $0x100] sm:$0xff]  ;;  %3273 = vmatprep.subr.bf16.mxu1 %v9587_v13  ;;  %v9579_v20 = vcombine.high %v2152_v14, %v2156_v15  ;;  %v9578_v25 = vcombine.low %v2152_v14, %v2156_v15 }
 0x1a6   : > { %v2020_v19 = vld [vmem:[%s15000_s3 + $0x120] sm:$0xff]  ;;  %3233 = vmatpush1.bf16.msra.mxu0 %v9458_v12 }
 0x1a7   : > { %v2144_v21 = vld [vmem:[%s15000_s3 + $0x500] sm:$0xff]  ;;  %3234 = vmatprep.subr.bf16.mxu0 %v9451_v16  ;;  %v9443_v24 = vcombine.high %v2016_v18, %v2020_v19  ;;  %3274 = vmatpush1.bf16.msra.mxu1 %v9586_v17  ;;  %v9442_v31 = vcombine.low %v2016_v18, %v2020_v19 }
 0x1a8   : > { %v2148_v22 = vld [vmem:[%s15000_s3 + $0x520] sm:$0xff]  ;;  %3275 = vmatprep.subr.bf16.mxu1 %v9579_v20 }
 0x1a9   : > { %v2008_v26 = vld [vmem:[%s15000_s3 + $0xc0] sm:$0xff]  ;;  %v9571_v28 = vcombine.high %v2144_v21, %v2148_v22  ;;  %v9570_v33 = vcombine.low %v2144_v21, %v2148_v22 }
 0x1aa   : > { %v2012_v27 = vld [vmem:[%s15000_s3 + $0xe0] sm:$0xff]  ;;  %3235 = vmatpush1.bf16.msra.mxu0 %v9450_v23 }
 0x1ab   : > { %v2136_v29 = vld [vmem:[%s15000_s3 + $0x4c0] sm:$0xff]  ;;  %3236 = vmatprep.subr.bf16.mxu0 %v9443_v24  ;;  %v9435_v32 = vcombine.high %v2008_v26, %v2012_v27  ;;  %3276 = vmatpush1.bf16.msra.mxu1 %v9578_v25  ;;  %v9434_v39 = vcombine.low %v2008_v26, %v2012_v27 }
 0x1ac   : > { %v2140_v30 = vld [vmem:[%s15000_s3 + $0x4e0] sm:$0xff]  ;;  %3277 = vmatprep.subr.bf16.mxu1 %v9571_v28 }
 0x1ad   : > { %v2000_v34 = vld [vmem:[%s15000_s3 + $0x80] sm:$0xff]  ;;  %v9563_v36 = vcombine.high %v2136_v29, %v2140_v30  ;;  %v9562_v41 = vcombine.low %v2136_v29, %v2140_v30 }
 0x1ae   : > { %v2004_v35 = vld [vmem:[%s15000_s3 + $0xa0] sm:$0xff]  ;;  %3237 = vmatpush1.bf16.msra.mxu0 %v9442_v31 }
 0x1af   : > { %v2128_v37 = vld [vmem:[%s15000_s3 + $0x480] sm:$0xff]  ;;  %3238 = vmatprep.subr.bf16.mxu0 %v9435_v32  ;;  %v9427_v40 = vcombine.high %v2000_v34, %v2004_v35  ;;  %3278 = vmatpush1.bf16.msra.mxu1 %v9570_v33  ;;  %v9426_v47 = vcombine.low %v2000_v34, %v2004_v35  ;;  %v2041_v33 = vld [vmem:[%s15000_s3 + $0x1c8] sm:$0xff] }
 0x1b0   : > { %v2132_v38 = vld [vmem:[%s15000_s3 + $0x4a0] sm:$0xff]  ;;  %3279 = vmatprep.subr.bf16.mxu1 %v9563_v36  ;;  %v2045_v34 = vld [vmem:[%s15000_s3 + $0x1e8] sm:$0xff] }
 0x1b1   : > { %v1992_v42 = vld [vmem:[%s15000_s3 + $0x40] sm:$0xff]  ;;  %v9555_v44 = vcombine.high %v2128_v37, %v2132_v38  ;;  %v9554_v49 = vcombine.low %v2128_v37, %v2132_v38  ;;  %v2169_v35 = vld [vmem:[%s15000_s3 + $0x5c8] sm:$0xff]  ;;  %v9469_v36 = vcombine.high %v2041_v33, %v2045_v34  ;;  %v9468_v38 = vcombine.low %v2041_v33, %v2045_v34 }
 0x1b2   : > { %v1996_v43 = vld [vmem:[%s15000_s3 + $0x60] sm:$0xff]  ;;  %3239 = vmatpush1.bf16.msra.mxu0 %v9434_v39  ;;  %v2173_v37 = vld [vmem:[%s15000_s3 + $0x5e8] sm:$0xff] }
 0x1b3   : > { %v2120_v45 = vld [vmem:[%s15000_s3 + $0x440] sm:$0xff]  ;;  %3240 = vmatprep.subr.bf16.mxu0 %v9427_v40  ;;  %v9419_v48 = vcombine.high %v1992_v42, %v1996_v43  ;;  %3280 = vmatpush1.bf16.msra.mxu1 %v9562_v41  ;;  %v9418_v53 = vcombine.low %v1992_v42, %v1996_v43  ;;  %v9596_v39 = vcombine.low %v2169_v35, %v2173_v37  ;;  %v1827_v41 = vlaneseq  ;;  %v2141_v33 = vld [vmem:[%s15000_s3 + $0x4e8] sm:$0xff] }
 0x1b4   : > { %v2124_v46 = vld [vmem:[%s15000_s3 + $0x460] sm:$0xff]  ;;  %3281 = vmatprep.subr.bf16.mxu1 %v9555_v44  ;;  %v9597_v40 = vcombine.high %v2169_v35, %v2173_v37 }
 0x1b5   : > { %v1984_v50 = vld [vmem:[%s15000_s3] sm:$0xff]  ;;  %v9547_v52 = vcombine.high %v2120_v45, %v2124_v46  ;;  %v9546_v55 = vcombine.low %v2120_v45, %v2124_v46  ;;  %v13469_v42 = vshrl.u32 %v1827_v41, 7  ;;  %v2133_v41 = vld [vmem:[%s15000_s3 + $0x4a8] sm:$0xff] }
 0x1b6   : > { %v1988_v51 = vld [vmem:[%s15000_s3 + $0x20] sm:$0xff]  ;;  %3241 = vmatpush1.bf16.msra.mxu0 %v9426_v47 }
 0x1b7   : > { %3242 = vmatprep.subr.bf16.mxu0 %v9419_v48  ;;  %v9411_v54 = vcombine.high %v1984_v50, %v1988_v51  ;;  %3282 = vmatpush1.bf16.msra.mxu1 %v9554_v49  ;;  %v2104_v56 = vld [vmem:[%s15000_s3 + $0x3c0] sm:$0xff]  ;;  %v9410_v58 = vcombine.low %v1984_v50, %v1988_v51  ;;  %v13472_v43 = vsub.s32 0, %v13469_v42  ;;  %v13475_v44 = vsub.s32 2, %v13469_v42 }
 0x1b8   : > { %v2108_v57 = vld [vmem:[%s15000_s3 + $0x3e0] sm:$0xff]  ;;  %3283 = vmatprep.subr.bf16.mxu1 %v9547_v52  ;;  %v13481_v46 = vsub.s32 1, %v13469_v42  ;;  %v13484_v47 = vsub.s32 3, %v13469_v42 }
 0x1b9   : > { %v9531_v59 = vcombine.high %v2104_v56, %v2108_v57  ;;  %v2096_v60 = vld [vmem:[%s15000_s3 + $0x380] sm:$0xff]  ;;  %v9530_v62 = vcombine.low %v2104_v56, %v2108_v57 }
 0x1ba   : > { %3243 = vmatpush1.bf16.msra.mxu0 %v9418_v53  ;;  %v2100_v61 = vld [vmem:[%s15000_s3 + $0x3a0] sm:$0xff] }
 0x1bb   : > { %3244 = vmatprep.subr.bf16.mxu0 %v9411_v54  ;;  %3284 = vmatpush1.bf16.msra.mxu1 %v9546_v55  ;;  %v9523_v63 = vcombine.high %v2096_v60, %v2100_v61  ;;  %v2088_v0 = vld [vmem:[%s15000_s3 + $0x340] sm:$0xff]  ;;  %v9522_v2 = vcombine.low %v2096_v60, %v2100_v61 }
 0x1bc   : > { %v2092_v1 = vld [vmem:[%s15000_s3 + $0x360] sm:$0xff] }
 0x1bd   : > { %v9515_v3 = vcombine.high %v2088_v0, %v2092_v1  ;;  %v2080_v4 = vld [vmem:[%s15000_s3 + $0x300] sm:$0xff]  ;;  %v9514_v6 = vcombine.low %v2088_v0, %v2092_v1 }
 0x1be   : > { %3245 = vmatpush1.bf16.msra.mxu0 %v9410_v58  ;;  %v2084_v5 = vld [vmem:[%s15000_s3 + $0x320] sm:$0xff] }
 0x1bf   : > { %3246 = vmatprep.subr.bf16.mxu0 %v9531_v59  ;;  %v9507_v7 = vcombine.high %v2080_v4, %v2084_v5  ;;  %v2072_v8 = vld [vmem:[%s15000_s3 + $0x2c0] sm:$0xff]  ;;  %v9506_v10 = vcombine.low %v2080_v4, %v2084_v5 }
 0x1c0   : > { %v2076_v9 = vld [vmem:[%s15000_s3 + $0x2e0] sm:$0xff] }
 0x1c1   : > { %v9499_v11 = vcombine.high %v2072_v8, %v2076_v9  ;;  %v2064_v12 = vld [vmem:[%s15000_s3 + $0x280] sm:$0xff]  ;;  %v9498_v14 = vcombine.low %v2072_v8, %v2076_v9 }
 0x1c2   : > { %3247 = vmatpush2.bf16.msra.mxu0 %v9530_v62  ;;  %v2068_v13 = vld [vmem:[%s15000_s3 + $0x2a0] sm:$0xff] }
 0x1c3   : > { %3248 = vmatprep.subr.bf16.mxu0 %v9523_v63  ;;  %v9491_v15 = vcombine.high %v2064_v12, %v2068_v13  ;;  %v9490_v16 = vcombine.low %v2064_v12, %v2068_v13  ;;  %v2056_v17 = vld [vmem:[%s15000_s3 + $0x240] sm:$0xff]  ;;  %v2025_v13 = vld [vmem:[%s15000_s3 + $0x148] sm:$0xff] }
 0x1c4   : > { %v2060_v18 = vld [vmem:[%s15000_s3 + $0x260] sm:$0xff] }
 0x1c5   : > { %v2112_v19 = vld [vmem:[%s15000_s3 + $0x400] sm:$0xff]  ;;  %v9483_v20 = vcombine.high %v2056_v17, %v2060_v18  ;;  %v9482_v22 = vcombine.low %v2056_v17, %v2060_v18  ;;  %v2157_v17 = vld [vmem:[%s15000_s3 + $0x568] sm:$0xff] }
 0x1c6   : > { %3249 = vmatpush2.bf16.msra.mxu0 %v9522_v2  ;;  %v2116_v21 = vld [vmem:[%s15000_s3 + $0x420] sm:$0xff]  ;;  %v2033_v2 = vld [vmem:[%s15000_s3 + $0x188] sm:$0xff] }
 0x1c7   : > { %3250 = vmatprep.subr.bf16.mxu0 %v9515_v3  ;;  %v9538_v23 = vcombine.low %v2112_v19, %v2116_v21  ;;  %v9539_v24 = vcombine.high %v2112_v19, %v2116_v21  ;;  %v2048_v25 = vld [vmem:[%s15000_s3 + $0x200] sm:$0xff]  ;;  %v2037_v3 = vld [vmem:[%s15000_s3 + $0x1a8] sm:$0xff] }
 0x1c8   : > { %v2052_v26 = vld [vmem:[%s15000_s3 + $0x220] sm:$0xff]  ;;  %v9461_v12 = vcombine.high %v2033_v2, %v2037_v3  ;;  %v9460_v18 = vcombine.low %v2033_v2, %v2037_v3  ;;  %v2109_v2 = vld [vmem:[%s15000_s3 + $0x3e8] sm:$0xff] }
 0x1c9   : > { %3285 = vmatprep.subr.bf16.mxu1 %v9539_v24  ;;  %v2176_v27 = vld [vmem:[%s15000_s3 + $0x600] sm:$0xff]  ;;  %v9475_v28 = vcombine.high %v2048_v25, %v2052_v26  ;;  %v9474_v30 = vcombine.low %v2048_v25, %v2052_v26  ;;  %v2145_v24 = vld [vmem:[%s15000_s3 + $0x508] sm:$0xff] }
 0x1ca   : > { %3251 = vmatpush2.bf16.msra.mxu0 %v9514_v6  ;;  %3286 = vmatpush1.bf16.msra.mxu1 %v9538_v23  ;;  %v2180_v29 = vld [vmem:[%s15000_s3 + $0x620] sm:$0xff]  ;;  %v2161_v6 = vld [vmem:[%s15000_s3 + $0x588] sm:$0xff] }
 0x1cb   : > { %3252 = vmatprep.subr.bf16.mxu0 %v9507_v7  ;;  %v9602_v31 = vcombine.low %v2176_v27, %v2180_v29  ;;  %v9603_v32 = vcombine.high %v2176_v27, %v2180_v29  ;;  %v1825_v45 = vld [vmem:[%s14999_s2] sm:$0xf]  ;;  %v2165_v7 = vld [vmem:[%s15000_s3 + $0x5a8] sm:$0xff] }
 0x1cc   : > { %v1830_v48 = vrot.slane %v1825_v45, %v13472_v43  ;;  %v1838_v49 = vrot.slane %v1825_v45, %v13475_v44  ;;  %v1834_v50 = vrot.slane %v1825_v45, %v13481_v46  ;;  %v1842_v51 = vrot.slane %v1825_v45, %v13484_v47  ;;  %v2021_v23 = vld [vmem:[%s15000_s3 + $0x128] sm:$0xff] }
 0x1cd   : > { %3301 = vmatprep.subr.bf16.mxu1 %v9603_v32  ;;  %v9588_v19 = vcombine.low %v2161_v6, %v2165_v7  ;;  %v2149_v25 = vld [vmem:[%s15000_s3 + $0x528] sm:$0xff] }
 0x1ce   : > { %3253 = vmatpush2.bf16.msra.mxu0 %v9506_v10  ;;  %3302 = vmatpush2.bf16.msra.mxu1 %v9602_v31  ;;  %v9573_v29 = vcombine.high %v2145_v24, %v2149_v25  ;;  %v2013_v31 = vld [vmem:[%s15000_s3 + $0xe8] sm:$0xff]  ;;  %v9572_v35 = vcombine.low %v2145_v24, %v2149_v25  ;;  %v2034_v25 = vld [vmem:[%s15000_s3 + $0x190] sm:$0xff] }
 0x1cf   : > { %3254 = vmatprep.subr.bf16.mxu0 %v9499_v11  ;;  %3312 = vmatprep.subr.bf16.mxu1 %v9469_v36  ;;  %v2137_v32 = vld [vmem:[%s15000_s3 + $0x4c8] sm:$0xff] }
 0x1d0   : > { %v9565_v37 = vcombine.high %v2137_v32, %v2141_v33  ;;  %v2177_v3 = vld [vmem:[%s15000_s3 + $0x608] sm:$0xff] }
 0x1d2   : > { %3255 = vmatpush2.bf16.msra.mxu0 %v9498_v14  ;;  %v9589_v14 = vcombine.high %v2161_v6, %v2165_v7 }
 0x1d3   : > { %3256 = vmatprep.subr.bf16.mxu0 %v9491_v15  ;;  %v2029_v15 = vld [vmem:[%s15000_s3 + $0x168] sm:$0xff] }
 0x1d4   : > { %v9452_v26 = vcombine.low %v2025_v13, %v2029_v15 }
 0x1d6   : > { %3257 = vmatpush2.bf16.msra.mxu0 %v9490_v16  ;;  %v2153_v16 = vld [vmem:[%s15000_s3 + $0x548] sm:$0xff] }
 0x1d7   : > { %3258 = vmatprep.subr.bf16.mxu0 %v9483_v20  ;;  %v9453_v20 = vcombine.high %v2025_v13, %v2029_v15  ;;  %v9581_v21 = vcombine.high %v2153_v16, %v2157_v17  ;;  %v9580_v27 = vcombine.low %v2153_v16, %v2157_v17  ;;  %v2097_v13 = vld [vmem:[%s15000_s3 + $0x388] sm:$0xff]  ;;  %v2042_v15 = vld [vmem:[%s15000_s3 + $0x1d0] sm:$0xff] }
 0x1d8   : > { %v2046_v16 = vld [vmem:[%s15000_s3 + $0x1f0] sm:$0xff] }
 0x1d9   : > { %v9471_v24 = vcombine.high %v2042_v15, %v2046_v16 }
 0x1da   : > { %3259 = vmatpush2.bf16.msra.mxu0 %v9482_v22  ;;  %v2017_v22 = vld [vmem:[%s15000_s3 + $0x108] sm:$0xff] }
 0x1db   : > { %3260 = vmatprep.subr.bf16.mxu0 %v9475_v28  ;;  %v9445_v28 = vcombine.high %v2017_v22, %v2021_v23  ;;  %v9444_v34 = vcombine.low %v2017_v22, %v2021_v23  ;;  %v2093_v22 = vld [vmem:[%s15000_s3 + $0x368] sm:$0xff] }
 0x1de   : > { %3261 = vmatpush2.bf16.msra.mxu0 %v9474_v30  ;;  %v2009_v30 = vld [vmem:[%s15000_s3 + $0xc8] sm:$0xff] }
 0x1df   : > { %3353 = vmatprep.subr.bf16.mxu0 %v9597_v40  ;;  %v9437_v36 = vcombine.high %v2009_v30, %v2013_v31  ;;  %v2129_v40 = vld [vmem:[%s15000_s3 + $0x488] sm:$0xff]  ;;  %v9436_v45 = vcombine.low %v2009_v30, %v2013_v31  ;;  %v2026_v31 = vld [vmem:[%s15000_s3 + $0x150] sm:$0xff] }
 0x1e0   : > { %v2085_v30 = vld [vmem:[%s15000_s3 + $0x328] sm:$0xff] }
 0x261   : > { %v1928_v52 = vpop.f32.mrf.mxu0  ;;  %v1969_v53 = vpop.f32.mrf.mxu1 }
 0x262   : > { %v1929_v54 = vadd.f32 %v1928_v52, %v1830_v48  ;;  %v1970_v55 = vadd.f32 %v1969_v53, %v1838_v49  ;;  %v9564_v48 = vcombine.low %v2137_v32, %v2141_v33  ;;  %v1993_v49 = vld [vmem:[%s15000_s3 + $0x48] sm:$0xff]  ;;  %v2030_v32 = vld [vmem:[%s15000_s3 + $0x170] sm:$0xff] }
 0x263   : > { %v1930_v56 = vpop.f32.mrf.mxu0  ;;  %v1971_v57 = vpop.f32.mrf.mxu1  ;;  %v2125_v52 = vld [vmem:[%s15000_s3 + $0x468] sm:$0xff] }
 0x264   : > { %v1976_v58 = vmax.f32 %v1929_v54, 0.0  ;;  %v1931_v59 = vadd.f32 %v1930_v56, %v1834_v50  ;;  %v1972_v60 = vadd.f32 %v1971_v57, %v1842_v51  ;;  %v1978_v61 = vmax.f32 %v1970_v55, 0.0  ;;  %v1997_v50 = vld [vmem:[%s15000_s3 + $0x68] sm:$0xff] }
 0x265   : > { %v1973_v62 = vpop.f32.mrf.mxu1  ;;  %v1932_v63 = vpop.f32.mrf.mxu0  ;;  %v2121_v51 = vld [vmem:[%s15000_s3 + $0x448] sm:$0xff]  ;;  %v9557_v54 = vcombine.high %v2129_v40, %v2133_v41  ;;  %v9556_v56 = vcombine.low %v2129_v40, %v2133_v41  ;;  %v9455_v40 = vcombine.high %v2026_v31, %v2030_v32  ;;  %v2018_v41 = vld [vmem:[%s15000_s3 + $0x110] sm:$0xff] }
 0x266   : > { %v1977_v0 = vmax.f32 %v1931_v59, 0.0  ;;  %v1979_v1 = vmax.f32 %v1972_v60, 0.0  ;;  %v13496_v4 = vpack.c.bf16 %v1976_v58, %v1976_v58  ;;  %v13508_v11 = vpack.c.bf16 %v1978_v61, %v1978_v61  ;;  %v1985_v57 = vld [vmem:[%s15000_s3 + $0x8] sm:$0xff] }
 0x267   : > { %v1974_v5 = vpop.f32.mrf.mxu1  ;;  %v1933_v8 = vpop.f32.mrf.mxu0  ;;  %v1989_v58 = vld [vmem:[%s15000_s3 + $0x28] sm:$0xff]  ;;  %v9421_v61 = vcombine.high %v1993_v49, %v1997_v50  ;;  %v9549_v62 = vcombine.high %v2121_v51, %v2125_v52  ;;  %v9420_v63 = vcombine.low %v1993_v49, %v1997_v50  ;;  %v9454_v49 = vcombine.low %v2026_v31, %v2030_v32  ;;  %v2102_v31 = vld [vmem:[%s15000_s3 + $0x3b0] sm:$0xff] }
 0x268   : > { %v13504_v9 = vpack.c.bf16 %v1977_v0, %v1977_v0  ;;  %v13506_v10 = vpack.c.bf16 %v1979_v1, %v1979_v1  ;;  %v2113_v59 = vld [vmem:[%s15000_s3 + $0x408] sm:$0xff]  ;;  %v9548_v0 = vcombine.low %v2121_v51, %v2125_v52  ;;  %v9413_v6 = vcombine.high %v1985_v57, %v1989_v58  ;;  %v2154_v32 = vld [vmem:[%s15000_s3 + $0x550] sm:$0xff] }
 0x269   : > { %v2117_v60 = vld [vmem:[%s15000_s3 + $0x428] sm:$0xff]  ;;  %v9412_v8 = vcombine.low %v1985_v57, %v1989_v58 }
 0x26a   : > { %3262 = vmatprep.mubr.bf16.mxu0 %v13504_v9  ;;  %9610 = vmatprep.mubr.msk.bf16.mxu1 %vm3226_vm2, %v13506_v10  ;;  %v2105_v1 = vld [vmem:[%s15000_s3 + $0x3c8] sm:$0xff]  ;;  %v9541_v7 = vcombine.high %v2113_v59, %v2117_v60 }
 0x26b   : > { %3263 = vmatmul.mubr.bf16.vlgmr.msra.gmra.mxu0 %v13496_v4  ;;  %3304 = vmatmul.mubr.bf16.vlgmr.msra.gmra.mxu1 %v13508_v11  ;;  %v2181_v5 = vld [vmem:[%s15000_s3 + $0x628] sm:$0xff]  ;;  %v9533_v17 = vcombine.high %v2105_v1, %v2109_v2 }
 0x26c   : > { %3313 = vmatpush1.bf16.msra.mxu1 %v9468_v38  ;;  %3354 = vmatpush1.bf16.msra.mxu0 %v9596_v39  ;;  %v2001_v38 = vld [vmem:[%s15000_s3 + $0x88] sm:$0xff] }
 0x26d   : > { %9611 = vmatprep.mubr.msk.bf16.mxu0 %vm3226_vm2, %v13506_v10  ;;  %3314 = vmatprep.subr.bf16.mxu1 %v9461_v12  ;;  %v2005_v39 = vld [vmem:[%s15000_s3 + $0xa8] sm:$0xff]  ;;  %v9540_v12 = vcombine.low %v2113_v59, %v2117_v60 }
 0x26e   : > { %3355 = vmatprep.subr.bf16.mxu0 %v9589_v14  ;;  %3344 = vmatprep.mubr.bf16.mxu1 %v13504_v9  ;;  %v9429_v53 = vcombine.high %v2001_v38, %v2005_v39  ;;  %v9428_v55 = vcombine.low %v2001_v38, %v2005_v39  ;;  %v2101_v14 = vld [vmem:[%s15000_s3 + $0x3a8] sm:$0xff] }
 0x26f   : > { %v9525_v23 = vcombine.high %v2097_v13, %v2101_v14  ;;  %v2077_v38 = vld [vmem:[%s15000_s3 + $0x2e8] sm:$0xff] }
 0x270   : > { %3315 = vmatpush1.bf16.msra.mxu1 %v9460_v18  ;;  %3356 = vmatpush1.bf16.msra.mxu0 %v9588_v19  ;;  %v9605_v18 = vcombine.high %v2177_v3, %v2181_v5  ;;  %v9532_v19 = vcombine.low %v2105_v1, %v2109_v2  ;;  %v2065_v50 = vld [vmem:[%s15000_s3 + $0x288] sm:$0xff] }
 0x271   : > { %3316 = vmatprep.subr.bf16.mxu1 %v9453_v20  ;;  %3357 = vmatprep.subr.bf16.mxu0 %v9581_v21  ;;  %v9604_v20 = vcombine.low %v2177_v3, %v2181_v5  ;;  %v2089_v21 = vld [vmem:[%s15000_s3 + $0x348] sm:$0xff] }
 0x272   : > { %v9517_v33 = vcombine.high %v2089_v21, %v2093_v22  ;;  %v2069_v51 = vld [vmem:[%s15000_s3 + $0x2a8] sm:$0xff] }
 0x273   : > { %v2057_v58 = vld [vmem:[%s15000_s3 + $0x248] sm:$0xff]  ;;  %v9493_v60 = vcombine.high %v2065_v50, %v2069_v51 }
 0x274   : > { %3317 = vmatpush1.bf16.msra.mxu1 %v9452_v26  ;;  %3358 = vmatpush1.bf16.msra.mxu0 %v9580_v27  ;;  %v2038_v26 = vld [vmem:[%s15000_s3 + $0x1b0] sm:$0xff]  ;;  %v9524_v27 = vcombine.low %v2097_v13, %v2101_v14  ;;  %v2061_v59 = vld [vmem:[%s15000_s3 + $0x268] sm:$0xff] }
 0x275   : > { %3318 = vmatprep.subr.bf16.mxu1 %v9445_v28  ;;  %3359 = vmatprep.subr.bf16.mxu0 %v9573_v29  ;;  %v9470_v28 = vcombine.low %v2042_v15, %v2046_v16  ;;  %v2081_v29 = vld [vmem:[%s15000_s3 + $0x308] sm:$0xff]  ;;  %v9485_v5 = vcombine.high %v2057_v58, %v2061_v59  ;;  %v1986_v14 = vld [vmem:[%s15000_s3 + $0x10] sm:$0xff] }
 0x276   : > { %v9509_v39 = vcombine.high %v2081_v29, %v2085_v30  ;;  %v2049_v2 = vld [vmem:[%s15000_s3 + $0x208] sm:$0xff]  ;;  %v1990_v15 = vld [vmem:[%s15000_s3 + $0x30] sm:$0xff] }
 0x277   : > { %v2053_v3 = vld [vmem:[%s15000_s3 + $0x228] sm:$0xff] }
 0x278   : > { %3319 = vmatpush1.bf16.msra.mxu1 %v9444_v34  ;;  %3360 = vmatpush1.bf16.msra.mxu0 %v9572_v35  ;;  %v9463_v34 = vcombine.high %v2034_v25, %v2038_v26  ;;  %v9516_v35 = vcombine.low %v2089_v21, %v2093_v22  ;;  %v9477_v16 = vcombine.high %v2049_v2, %v2053_v3  ;;  %v2106_v22 = vld [vmem:[%s15000_s3 + $0x3d0] sm:$0xff] }
 0x279   : > { %3320 = vmatprep.subr.bf16.mxu1 %v9437_v36  ;;  %3361 = vmatprep.subr.bf16.mxu0 %v9565_v37  ;;  %v9462_v36 = vcombine.low %v2034_v25, %v2038_v26  ;;  %v2073_v37 = vld [vmem:[%s15000_s3 + $0x2c8] sm:$0xff]  ;;  %v2162_v26 = vld [vmem:[%s15000_s3 + $0x590] sm:$0xff] }
 0x27a   : > { %v9501_v52 = vcombine.high %v2073_v37, %v2077_v38 }
 0x27c   : > { %3321 = vmatpush1.bf16.msra.mxu1 %v9436_v45  ;;  %3362 = vmatpush1.bf16.msra.mxu0 %v9564_v48  ;;  %v2022_v45 = vld [vmem:[%s15000_s3 + $0x130] sm:$0xff]  ;;  %v9508_v48 = vcombine.low %v2081_v29, %v2085_v30 }
 0x27d   : > { %3322 = vmatprep.subr.bf16.mxu1 %v9429_v53  ;;  %3363 = vmatprep.subr.bf16.mxu0 %v9557_v54  ;;  %v9447_v53 = vcombine.high %v2018_v41, %v2022_v45  ;;  %v2010_v54 = vld [vmem:[%s15000_s3 + $0xd0] sm:$0xff]  ;;  %v9446_v57 = vcombine.low %v2018_v41, %v2022_v45 }
 0x27e   : > { %v2098_v30 = vld [vmem:[%s15000_s3 + $0x390] sm:$0xff] }
 0x27f   : > { %v2150_v41 = vld [vmem:[%s15000_s3 + $0x530] sm:$0xff]  ;;  %v9527_v45 = vcombine.high %v2098_v30, %v2102_v31 }
 0x280   : > { %3323 = vmatpush1.bf16.msra.mxu1 %v9428_v55  ;;  %3364 = vmatpush1.bf16.msra.mxu0 %v9556_v56  ;;  %v2014_v55 = vld [vmem:[%s15000_s3 + $0xf0] sm:$0xff]  ;;  %v9500_v56 = vcombine.low %v2073_v37, %v2077_v38 }
 0x281   : > { %3324 = vmatprep.subr.bf16.mxu1 %v9421_v61  ;;  %3365 = vmatprep.subr.bf16.mxu0 %v9549_v62  ;;  %v9439_v61 = vcombine.high %v2010_v54, %v2014_v55  ;;  %v2002_v62 = vld [vmem:[%s15000_s3 + $0x90] sm:$0xff]  ;;  %v9438_v1 = vcombine.low %v2010_v54, %v2014_v55 }
 0x282   : > { %v2090_v38 = vld [vmem:[%s15000_s3 + $0x350] sm:$0xff] }
 0x283   : > { %v2142_v54 = vld [vmem:[%s15000_s3 + $0x4f0] sm:$0xff] }
 0x284   : > { %3325 = vmatpush1.bf16.msra.mxu1 %v9420_v63  ;;  %3366 = vmatpush1.bf16.msra.mxu0 %v9548_v0  ;;  %v2006_v63 = vld [vmem:[%s15000_s3 + $0xb0] sm:$0xff]  ;;  %v9492_v0 = vcombine.low %v2065_v50, %v2069_v51 }
 0x285   : > { %3326 = vmatprep.subr.bf16.mxu1 %v9413_v6  ;;  %3367 = vmatprep.subr.bf16.mxu0 %v9541_v7  ;;  %v9431_v6 = vcombine.high %v2002_v62, %v2006_v63  ;;  %v1994_v7 = vld [vmem:[%s15000_s3 + $0x50] sm:$0xff]  ;;  %v9430_v13 = vcombine.low %v2002_v62, %v2006_v63 }
 0x286   : > { %v2082_v51 = vld [vmem:[%s15000_s3 + $0x310] sm:$0xff] }
 0x287   : > { %v2130_v63 = vld [vmem:[%s15000_s3 + $0x490] sm:$0xff] }
 0x288   : > { %3327 = vmatpush1.bf16.msra.mxu1 %v9412_v8  ;;  %3368 = vmatpush1.bf16.msra.mxu0 %v9540_v12  ;;  %v1998_v8 = vld [vmem:[%s15000_s3 + $0x70] sm:$0xff]  ;;  %v9484_v12 = vcombine.low %v2057_v58, %v2061_v59 }
 0x289   : > { %3328 = vmatprep.subr.bf16.mxu1 %v9533_v17  ;;  %3383 = vmatprep.subr.bf16.mxu0 %v9605_v18  ;;  %v9423_v17 = vcombine.high %v1994_v7, %v1998_v8  ;;  %v2170_v18 = vld [vmem:[%s15000_s3 + $0x5d0] sm:$0xff]  ;;  %v9422_v21 = vcombine.low %v1994_v7, %v1998_v8 }
 0x28a   : > { %v2074_v59 = vld [vmem:[%s15000_s3 + $0x2d0] sm:$0xff] }
 0x28b   : > { %v2070_v7 = vld [vmem:[%s15000_s3 + $0x2b0] sm:$0xff] }
 0x28c   : > { %3329 = vmatpush2.bf16.msra.mxu1 %v9532_v19  ;;  %3384 = vmatpush2.bf16.msra.mxu0 %v9604_v20  ;;  %v2174_v19 = vld [vmem:[%s15000_s3 + $0x5f0] sm:$0xff]  ;;  %v9476_v20 = vcombine.low %v2049_v2, %v2053_v3 }
 0x28d   : > { %3330 = vmatprep.subr.bf16.mxu1 %v9525_v23  ;;  %3394 = vmatprep.subr.bf16.mxu0 %v9471_v24  ;;  %v2110_v23 = vld [vmem:[%s15000_s3 + $0x3f0] sm:$0xff]  ;;  %v9415_v24 = vcombine.high %v1986_v14, %v1990_v15  ;;  %v9599_v25 = vcombine.high %v2170_v18, %v2174_v19  ;;  %v9598_v29 = vcombine.low %v2170_v18, %v2174_v19 }
 0x28e   : > { %v2122_v8 = vld [vmem:[%s15000_s3 + $0x450] sm:$0xff] }
 0x28f   : > { %3386 = vmatmul.mubr.bf16.vlgmr.msra.gmra.mxu0 %v13508_v11  ;;  %v2118_v18 = vld [vmem:[%s15000_s3 + $0x430] sm:$0xff] }
 0x290   : > { %3331 = vmatpush2.bf16.msra.mxu1 %v9524_v27  ;;  %3395 = vmatpush1.bf16.msra.mxu0 %v9470_v28  ;;  %v2166_v27 = vld [vmem:[%s15000_s3 + $0x5b0] sm:$0xff]  ;;  %v9414_v28 = vcombine.low %v1986_v14, %v1990_v15 }
 0x291   : > { %3426 = vmatprep.mubr.bf16.mxu0 %v13504_v9  ;;  %3332 = vmatprep.subr.bf16.mxu1 %v9517_v33  ;;  %v2158_v33 = vld [vmem:[%s15000_s3 + $0x570] sm:$0xff]  ;;  %v9590_v37 = vcombine.low %v2162_v26, %v2166_v27 }
 0x292   : > { %3396 = vmatprep.subr.bf16.mxu0 %v9463_v34  ;;  %v9535_v34 = vcombine.high %v2106_v22, %v2110_v23  ;;  %v9582_v50 = vcombine.low %v2154_v32, %v2158_v33  ;;  %v2058_v15 = vld [vmem:[%s15000_s3 + $0x250] sm:$0xff] }
 0x294   : > { %3333 = vmatpush2.bf16.msra.mxu1 %v9516_v35  ;;  %3397 = vmatpush1.bf16.msra.mxu0 %v9462_v36  ;;  %v9591_v35 = vcombine.high %v2162_v26, %v2166_v27  ;;  %v9534_v36 = vcombine.low %v2106_v22, %v2110_v23  ;;  %v2050_v23 = vld [vmem:[%s15000_s3 + $0x210] sm:$0xff] }
 0x295   : > { %3334 = vmatprep.subr.bf16.mxu1 %v9509_v39  ;;  %3398 = vmatprep.subr.bf16.mxu0 %v9455_v40  ;;  %v2094_v39 = vld [vmem:[%s15000_s3 + $0x370] sm:$0xff] }
 0x296   : > { %v2146_v40 = vld [vmem:[%s15000_s3 + $0x510] sm:$0xff]  ;;  %v9519_v55 = vcombine.high %v2090_v38, %v2094_v39 }
 0x297   : > { %v9574_v58 = vcombine.low %v2146_v40, %v2150_v41  ;;  %v2182_v26 = vld [vmem:[%s15000_s3 + $0x630] sm:$0xff] }
 0x298   : > { %3335 = vmatpush2.bf16.msra.mxu1 %v9508_v48  ;;  %3399 = vmatpush1.bf16.msra.mxu0 %v9454_v49  ;;  %v9583_v48 = vcombine.high %v2154_v32, %v2158_v33  ;;  %v9526_v49 = vcombine.low %v2098_v30, %v2102_v31  ;;  %v2043_v31 = vld [vmem:[%s15000_s3 + $0x1d8] sm:$0xff] }
 0x299   : > { %3336 = vmatprep.subr.bf16.mxu1 %v9501_v52  ;;  %3400 = vmatprep.subr.bf16.mxu0 %v9447_v53  ;;  %v2086_v52 = vld [vmem:[%s15000_s3 + $0x330] sm:$0xff]  ;;  %v2047_v32 = vld [vmem:[%s15000_s3 + $0x1f8] sm:$0xff] }
 0x29a   : > { %v2138_v53 = vld [vmem:[%s15000_s3 + $0x4d0] sm:$0xff]  ;;  %v2171_v33 = vld [vmem:[%s15000_s3 + $0x5d8] sm:$0xff] }
 0x29b   : > { %v9567_v62 = vcombine.high %v2138_v53, %v2142_v54  ;;  %v9566_v2 = vcombine.low %v2138_v53, %v2142_v54 }
 0x29c   : > { %3337 = vmatpush2.bf16.msra.mxu1 %v9500_v56  ;;  %3401 = vmatpush1.bf16.msra.mxu0 %v9446_v57  ;;  %v9575_v56 = vcombine.high %v2146_v40, %v2150_v41  ;;  %v9518_v57 = vcombine.low %v2090_v38, %v2094_v39  ;;  %v9473_v39 = vcombine.high %v2043_v31, %v2047_v32  ;;  %v2035_v41 = vld [vmem:[%s15000_s3 + $0x198] sm:$0xff] }
 0x29d   : > { %3338 = vmatprep.subr.bf16.mxu1 %v9493_v60  ;;  %3402 = vmatprep.subr.bf16.mxu0 %v9439_v61  ;;  %v2078_v60 = vld [vmem:[%s15000_s3 + $0x2f0] sm:$0xff]  ;;  %v9511_v61 = vcombine.high %v2082_v51, %v2086_v52 }
 0x29e   : > { %v9503_v3 = vcombine.high %v2074_v59, %v2078_v60 }
 0x2a0   : > { %3339 = vmatpush2.bf16.msra.mxu1 %v9492_v0  ;;  %3403 = vmatpush1.bf16.msra.mxu0 %v9438_v1  ;;  %v2134_v0 = vld [vmem:[%s15000_s3 + $0x4b0] sm:$0xff]  ;;  %v9510_v1 = vcombine.low %v2082_v51, %v2086_v52  ;;  %v2027_v51 = vld [vmem:[%s15000_s3 + $0x158] sm:$0xff] }
 0x2a1   : > { %3340 = vmatprep.subr.bf16.mxu1 %v9485_v5  ;;  %3404 = vmatprep.subr.bf16.mxu0 %v9431_v6  ;;  %v9559_v5 = vcombine.high %v2130_v63, %v2134_v0  ;;  %v2066_v6 = vld [vmem:[%s15000_s3 + $0x290] sm:$0xff]  ;;  %v9558_v14 = vcombine.low %v2130_v63, %v2134_v0  ;;  %v2031_v52 = vld [vmem:[%s15000_s3 + $0x178] sm:$0xff] }
 0x2a2   : > { %v9495_v19 = vcombine.high %v2066_v6, %v2070_v7  ;;  %v2151_v0 = vld [vmem:[%s15000_s3 + $0x538] sm:$0xff] }
 0x2a4   : > { %3341 = vmatpush2.bf16.msra.mxu1 %v9484_v12  ;;  %3405 = vmatpush1.bf16.msra.mxu0 %v9430_v13  ;;  %v2126_v12 = vld [vmem:[%s15000_s3 + $0x470] sm:$0xff]  ;;  %v9502_v13 = vcombine.low %v2074_v59, %v2078_v60  ;;  %v2019_v59 = vld [vmem:[%s15000_s3 + $0x118] sm:$0xff] }
 0x2a5   : > { %3342 = vmatprep.subr.bf16.mxu1 %v9477_v16  ;;  %3406 = vmatprep.subr.bf16.mxu0 %v9423_v17  ;;  %v2062_v16 = vld [vmem:[%s15000_s3 + $0x270] sm:$0xff]  ;;  %v9550_v22 = vcombine.low %v2122_v8, %v2126_v12  ;;  %v2023_v60 = vld [vmem:[%s15000_s3 + $0x138] sm:$0xff] }
 0x2a6   : > { %v2114_v17 = vld [vmem:[%s15000_s3 + $0x410] sm:$0xff]  ;;  %v9487_v27 = vcombine.high %v2058_v15, %v2062_v16 }
 0x2a7   : > { %v9542_v30 = vcombine.low %v2114_v17, %v2118_v18 }
 0x2a8   : > { %3343 = vmatpush2.bf16.msra.mxu1 %v9476_v20  ;;  %3407 = vmatpush1.bf16.msra.mxu0 %v9422_v21  ;;  %v9551_v20 = vcombine.high %v2122_v8, %v2126_v12  ;;  %v9494_v21 = vcombine.low %v2066_v6, %v2070_v7  ;;  %v2015_v6 = vld [vmem:[%s15000_s3 + $0xf8] sm:$0xff]  ;;  %v9448_v12 = vcombine.low %v2019_v59, %v2023_v60 }
 0x2a9   : > { %3408 = vmatprep.subr.bf16.mxu0 %v9415_v24  ;;  %3435 = vmatprep.subr.bf16.mxu1 %v9599_v25  ;;  %v2054_v24 = vld [vmem:[%s15000_s3 + $0x230] sm:$0xff]  ;;  %v2139_v7 = vld [vmem:[%s15000_s3 + $0x4d8] sm:$0xff] }
 0x2aa   : > { %v2178_v25 = vld [vmem:[%s15000_s3 + $0x610] sm:$0xff]  ;;  %v2143_v8 = vld [vmem:[%s15000_s3 + $0x4f8] sm:$0xff] }
 0x2ab   : > { %3345 = vmatmul.mubr.bf16.vlgmr.msra.gmra.mxu1 %v13496_v4  ;;  %v9606_v38 = vcombine.low %v2178_v25, %v2182_v26 }
 0x2ac   : > { %3409 = vmatpush1.bf16.msra.mxu0 %v9414_v28  ;;  %3436 = vmatpush1.bf16.msra.mxu1 %v9598_v29  ;;  %v9543_v28 = vcombine.high %v2114_v17, %v2118_v18  ;;  %v9486_v29 = vcombine.low %v2058_v15, %v2062_v16  ;;  %v9569_v15 = vcombine.high %v2139_v7, %v2143_v8  ;;  %v2003_v16 = vld [vmem:[%s15000_s3 + $0x98] sm:$0xff] }
 0x2ad   : > { %9612 = vmatprep.mubr.msk.bf16.mxu1 %vm3226_vm2, %v13506_v10  ;;  %3410 = vmatprep.subr.bf16.mxu0 %v9535_v34  ;;  %v2175_v34 = vld [vmem:[%s15000_s3 + $0x5f8] sm:$0xff] }
 0x2ae   : > { %3437 = vmatprep.subr.bf16.mxu1 %v9591_v35  ;;  %v9479_v35 = vcombine.high %v2050_v23, %v2054_v24  ;;  %v9601_v40 = vcombine.high %v2171_v33, %v2175_v34  ;;  %v9600_v53 = vcombine.low %v2171_v33, %v2175_v34  ;;  %v2007_v17 = vld [vmem:[%s15000_s3 + $0xb8] sm:$0xff] }
 0x2af   : > { %v2131_v18 = vld [vmem:[%s15000_s3 + $0x498] sm:$0xff] }
 0x2b0   : > { %3411 = vmatpush2.bf16.msra.mxu0 %v9534_v36  ;;  %3438 = vmatpush1.bf16.msra.mxu1 %v9590_v37  ;;  %v9607_v36 = vcombine.high %v2178_v25, %v2182_v26  ;;  %v9478_v37 = vcombine.low %v2050_v23, %v2054_v24  ;;  %v9568_v23 = vcombine.low %v2139_v7, %v2143_v8  ;;  %v2123_v25 = vld [vmem:[%s15000_s3 + $0x458] sm:$0xff]  ;;  %v10449_v7 = vld [vmem:[%s13570_s18 + $0x1e4] ss:$48 sps:$4 sm:$0xff]  }
 0x2b1   : > { %3412 = vmatprep.subr.bf16.mxu0 %v9527_v45  ;;  %3439 = vmatprep.subr.bf16.mxu1 %v9583_v48  ;;  %v2039_v45 = vld [vmem:[%s15000_s3 + $0x1b8] sm:$0xff]  ;;  %v9433_v24 = vcombine.high %v2003_v16, %v2007_v17 }
 0x2b2   : > { %v2163_v48 = vld [vmem:[%s15000_s3 + $0x598] sm:$0xff]  ;;  %v9465_v54 = vcombine.high %v2035_v41, %v2039_v45 }
 0x2b3   : > { %v2127_v26 = vld [vmem:[%s15000_s3 + $0x478] sm:$0xff] }
 0x2b4   : > { %3413 = vmatpush2.bf16.msra.mxu0 %v9526_v49  ;;  %3440 = vmatpush1.bf16.msra.mxu1 %v9582_v50  ;;  %v2167_v49 = vld [vmem:[%s15000_s3 + $0x5b8] sm:$0xff]  ;;  %v9472_v50 = vcombine.low %v2043_v31, %v2047_v32 }
 0x2b5   : > { %3414 = vmatprep.subr.bf16.mxu0 %v9519_v55  ;;  %3441 = vmatprep.subr.bf16.mxu1 %v9575_v56  ;;  %v9593_v55 = vcombine.high %v2163_v48, %v2167_v49  ;;  %v2155_v56 = vld [vmem:[%s15000_s3 + $0x558] sm:$0xff] }
 0x2b6   : > { %v2115_v33 = vld [vmem:[%s15000_s3 + $0x418] sm:$0xff] }
 0x2b7   : > { %v2119_v34 = vld [vmem:[%s15000_s3 + $0x438] sm:$0xff] }
 0x2b8   : > { %3415 = vmatpush2.bf16.msra.mxu0 %v9518_v57  ;;  %3442 = vmatpush1.bf16.msra.mxu1 %v9574_v58  ;;  %v2159_v57 = vld [vmem:[%s15000_s3 + $0x578] sm:$0xff]  ;;  %v9464_v58 = vcombine.low %v2035_v41, %v2039_v45 }
 0x2b9   : > { %3416 = vmatprep.subr.bf16.mxu0 %v9511_v61  ;;  %3443 = vmatprep.subr.bf16.mxu1 %v9567_v62  ;;  %v9592_v61 = vcombine.low %v2163_v48, %v2167_v49  ;;  %v9457_v62 = vcombine.high %v2027_v51, %v2031_v52  ;;  %v9585_v63 = vcombine.high %v2155_v56, %v2159_v57  ;;  %v2179_v41 = vld [vmem:[%s15000_s3 + $0x618] sm:$0xff] }
 0x2ba   : > { %v2183_v45 = vld [vmem:[%s15000_s3 + $0x638] sm:$0xff]  ;;  %v9545_v48 = vcombine.high %v2115_v33, %v2119_v34 }
 0x2bc   : > { %3417 = vmatpush2.bf16.msra.mxu0 %v9510_v1  ;;  %3444 = vmatpush1.bf16.msra.mxu1 %v9566_v2  ;;  %v9456_v1 = vcombine.low %v2027_v51, %v2031_v52  ;;  %v9584_v2 = vcombine.low %v2155_v56, %v2159_v57  ;;  %v9544_v51 = vcombine.low %v2115_v33, %v2119_v34  ;;  %v10491_v33 = vld [vmem:[%s13570_s18 + $0x8a4] ss:$48 sps:$4 sm:$0xff]  }
 0x2bd   : > { %3418 = vmatprep.subr.bf16.mxu0 %v9503_v3  ;;  %3445 = vmatprep.subr.bf16.mxu1 %v9559_v5  ;;  %v9449_v3 = vcombine.high %v2019_v59, %v2023_v60  ;;  %v2011_v5 = vld [vmem:[%s15000_s3 + $0xd8] sm:$0xff]  ;;  %v9608_v56 = vcombine.low %v2179_v41, %v2183_v45  ;;  %v10443_v60 = vld [vmem:[%s13570_s18 + $0x2a4] ss:$48 sps:$4 sm:$0xff]  }
 0x2be   : > { %v2095_v59 = vld [vmem:[%s15000_s3 + $0x378] sm:$0xff] }
 0x2c0   : > { %3419 = vmatpush2.bf16.msra.mxu0 %v9502_v13  ;;  %3446 = vmatpush1.bf16.msra.mxu1 %v9558_v14  ;;  %v9441_v14 = vcombine.high %v2011_v5, %v2015_v6 }
 0x2c1   : > { %3420 = vmatprep.subr.bf16.mxu0 %v9495_v19  ;;  %3447 = vmatprep.subr.bf16.mxu1 %v9551_v20  ;;  %v2135_v19 = vld [vmem:[%s15000_s3 + $0x4b8] sm:$0xff]  ;;  %v9440_v20 = vcombine.low %v2011_v5, %v2015_v6 }
 0x2c2   : > { %v9560_v31 = vcombine.low %v2131_v18, %v2135_v19  ;;  %v2079_v6 = vld [vmem:[%s15000_s3 + $0x2f8] sm:$0xff] }
 0x2c4   : > { %3421 = vmatpush2.bf16.msra.mxu0 %v9494_v21  ;;  %3448 = vmatpush1.bf16.msra.mxu1 %v9550_v22  ;;  %v1995_v21 = vld [vmem:[%s15000_s3 + $0x58] sm:$0xff] }
 0x2c5   : > { %3422 = vmatprep.subr.bf16.mxu0 %v9487_v27  ;;  %3449 = vmatprep.subr.bf16.mxu1 %v9543_v28  ;;  %v1999_v22 = vld [vmem:[%s15000_s3 + $0x78] sm:$0xff]  ;;  %v9561_v27 = vcombine.high %v2131_v18, %v2135_v19  ;;  %v9432_v28 = vcombine.low %v2003_v16, %v2007_v17  ;;  %v10450_v16 = vld [vmem:[%s13570_s18 + $0x180] ss:$48 sps:$4 sm:$0xff]  }
 0x2c6   : > { %v9425_v32 = vcombine.high %v1995_v21, %v1999_v22  ;;  %v2059_v18 = vld [vmem:[%s15000_s3 + $0x258] sm:$0xff] }
 0x2c7   : > { %v2063_v19 = vld [vmem:[%s15000_s3 + $0x278] sm:$0xff] }
 0x2c8   : > { %3423 = vmatpush2.bf16.msra.mxu0 %v9486_v29  ;;  %3450 = vmatpush1.bf16.msra.mxu1 %v9542_v30  ;;  %v1987_v29 = vld [vmem:[%s15000_s3 + $0x18] sm:$0xff] }
 0x2c9   : > { %3424 = vmatprep.subr.bf16.mxu0 %v9479_v35  ;;  %3465 = vmatprep.subr.bf16.mxu1 %v9607_v36  ;;  %v1991_v30 = vld [vmem:[%s15000_s3 + $0x38] sm:$0xff]  ;;  %v9553_v35 = vcombine.high %v2123_v25, %v2127_v26  ;;  %v9424_v36 = vcombine.low %v1995_v21, %v1999_v22  ;;  %v10453_v22 = vld [vmem:[%s13570_s18 + $0x120] ss:$48 sps:$4 sm:$0xff]  }
 0x2ca   : > { %v9416_v49 = vcombine.low %v1987_v29, %v1991_v30 }
 0x2cc   : > { %3425 = vmatpush2.bf16.msra.mxu0 %v9478_v37  ;;  %3466 = vmatpush2.bf16.msra.mxu1 %v9606_v38  ;;  %v2107_v37 = vld [vmem:[%s15000_s3 + $0x3d8] sm:$0xff] }
 0x2cd   : > { %3476 = vmatprep.subr.bf16.mxu1 %v9473_v39  ;;  %3517 = vmatprep.subr.bf16.mxu0 %v9601_v40  ;;  %v2111_v38 = vld [vmem:[%s15000_s3 + $0x3f8] sm:$0xff]  ;;  %v9552_v39 = vcombine.low %v2123_v25, %v2127_v26  ;;  %v9417_v40 = vcombine.high %v1987_v29, %v1991_v30  ;;  %v10458_v26 = vld [vmem:[%s13570_s18 + $0xc4] ss:$48 sps:$4 sm:$0xff]   ;;  %v9488_v29 = vcombine.low %v2059_v18, %v2063_v19 }
 0x2ce   : > { %v9537_v52 = vcombine.high %v2107_v37, %v2111_v38  ;;  %v2055_v25 = vld [vmem:[%s15000_s3 + $0x238] sm:$0xff]  ;;  %v10461_v30 = vld [vmem:[%s13570_s18 + $0x64] ss:$48 sps:$4 sm:$0xff]  }
 0x2cf   : > { %3427 = vmatmul.mubr.bf16.vlgmr.msra.gmra.mxu0 %v13496_v4  ;;  %3468 = vmatmul.mubr.bf16.vlgmr.msra.gmra.mxu1 %v13508_v11 }
 0x2d0   : > { %3477 = vmatpush1.bf16.msra.mxu1 %v9472_v50  ;;  %3508 = vmatprep.mubr.bf16.mxu1 %v13504_v9  ;;  %v2147_v9 = vld [vmem:[%s15000_s3 + $0x518] sm:$0xff] }
 0x2d1   : > { %3518 = vmatpush1.bf16.msra.mxu0 %v9600_v53  ;;  %9613 = vmatprep.mubr.msk.bf16.mxu0 %vm3226_vm2, %v13506_v10  ;;  %v9577_v10 = vcombine.high %v2147_v9, %v2151_v0  ;;  %v9576_v13 = vcombine.low %v2147_v9, %v2151_v0  ;;  %v2099_v50 = vld [vmem:[%s15000_s3 + $0x398] sm:$0xff]  ;;  %v9609_v53 = vcombine.high %v2179_v41, %v2183_v45  ;;  %v10465_v41 = vld [vmem:[%s13570_s18 + $0x5a0] ss:$48 sps:$4 sm:$0xff]   ;;  %v10470_v45 = vld [vmem:[%s13570_s18 + $0x544] ss:$48 sps:$4 sm:$0xff]  }
 0x2d2   : > { %3478 = vmatprep.subr.bf16.mxu1 %v9465_v54  ;;  %3519 = vmatprep.subr.bf16.mxu0 %v9593_v55  ;;  %v2103_v54 = vld [vmem:[%s15000_s3 + $0x3b8] sm:$0xff]  ;;  %v9536_v55 = vcombine.low %v2107_v37, %v2111_v38  ;;  %v10462_v37 = vld [vmem:[%s13570_s18] ss:$48 sps:$4 sm:$0xff]   ;;  %v10494_v38 = vld [vmem:[%s13570_s18 + $0x844] ss:$48 sps:$4 sm:$0xff]  }
 0x2d3   : > { %v9529_v57 = vcombine.high %v2099_v50, %v2103_v54  ;;  %v2083_v9 = vld [vmem:[%s15000_s3 + $0x318] sm:$0xff] }
 0x2d4   : > { %3479 = vmatpush1.bf16.msra.mxu1 %v9464_v58  ;;  %v2091_v58 = vld [vmem:[%s15000_s3 + $0x358] sm:$0xff] }
 0x2d5   : > { %3520 = vmatpush1.bf16.msra.mxu0 %v9592_v61  ;;  %3480 = vmatprep.subr.bf16.mxu1 %v9457_v62  ;;  %v10441_v61 = vld [vmem:[%s13570_s18 + $0x2a0] ss:$48 sps:$4 sm:$0xff]   ;;  %v9528_v62 = vcombine.low %v2099_v50, %v2103_v54  ;;  %v2087_v0 = vld [vmem:[%s15000_s3 + $0x338] sm:$0xff]  ;;  %v10503_v54 = vld [vmem:[%s13570_s18 + $0x724] ss:$48 sps:$4 sm:$0xff]  }
 0x2d6   : > { %3521 = vmatprep.subr.bf16.mxu0 %v9585_v63  ;;  %v9521_v63 = vcombine.high %v2091_v58, %v2095_v59  ;;  %v9513_v5 = vcombine.high %v2083_v9, %v2087_v0  ;;  %v10468_v50 = vld [vmem:[%s13570_s18 + $0x540] ss:$48 sps:$4 sm:$0xff]  }
 0x2d8   : > { %3481 = vmatpush1.bf16.msra.mxu1 %v9456_v1  ;;  %v10446_v1 = vld [vmem:[%s13570_s18 + $0x244] ss:$48 sps:$4 sm:$0xff]  }
 0x2d9   : > { %3522 = vmatpush1.bf16.msra.mxu0 %v9584_v2  ;;  %3482 = vmatprep.subr.bf16.mxu1 %v9449_v3  ;;  %v10444_v2 = vld [vmem:[%s13570_s18 + $0x240] ss:$48 sps:$4 sm:$0xff]   ;;  %v9520_v3 = vcombine.low %v2091_v58, %v2095_v59  ;;  %v10506_v59 = vld [vmem:[%s13570_s18 + $0x6c4] ss:$48 sps:$4 sm:$0xff]  }
 0x2da   : > { %3523 = vmatprep.subr.bf16.mxu0 %v9577_v10  ;;  %v2075_v10 = vld [vmem:[%s15000_s3 + $0x2d8] sm:$0xff]  ;;  %v10501_v58 = vld [vmem:[%s13570_s18 + $0x720] ss:$48 sps:$4 sm:$0xff]  }
 0x2db   : > { %v9505_v8 = vcombine.high %v2075_v10, %v2079_v6  ;;  %v9504_v17 = vcombine.low %v2075_v10, %v2079_v6  ;;  %v10488_v6 = vld [vmem:[%s13570_s18 + $0x304] ss:$48 sps:$4 sm:$0xff]  }
 0x2dc   : > { %3483 = vmatpush1.bf16.msra.mxu1 %v9448_v12  ;;  %v10447_v12 = vld [vmem:[%s13570_s18 + $0x1e0] ss:$48 sps:$4 sm:$0xff]  }
 0x2dd   : > { %3524 = vmatpush1.bf16.msra.mxu0 %v9576_v13  ;;  %3484 = vmatprep.subr.bf16.mxu1 %v9441_v14  ;;  %v2067_v13 = vld [vmem:[%s15000_s3 + $0x298] sm:$0xff] }
 0x2de   : > { %3525 = vmatprep.subr.bf16.mxu0 %v9569_v15  ;;  %v2071_v14 = vld [vmem:[%s15000_s3 + $0x2b8] sm:$0xff]  ;;  %v10452_v15 = vld [vmem:[%s13570_s18 + $0x184] ss:$48 sps:$4 sm:$0xff]  }
 0x2df   : > { %v9497_v21 = vcombine.high %v2067_v13, %v2071_v14 }
 0x2e0   : > { %3485 = vmatpush1.bf16.msra.mxu1 %v9440_v20  ;;  %v10455_v20 = vld [vmem:[%s13570_s18 + $0x124] ss:$48 sps:$4 sm:$0xff]  }
 0x2e1   : > { %3526 = vmatpush1.bf16.msra.mxu0 %v9568_v23  ;;  %3486 = vmatprep.subr.bf16.mxu1 %v9433_v24  ;;  %v9496_v23 = vcombine.low %v2067_v13, %v2071_v14  ;;  %v2051_v24 = vld [vmem:[%s15000_s3 + $0x218] sm:$0xff] }
 0x2e2   : > { %3527 = vmatprep.subr.bf16.mxu0 %v9561_v27  ;;  %v9489_v27 = vcombine.high %v2059_v18, %v2063_v19  ;;  %v9480_v34 = vcombine.low %v2051_v24, %v2055_v25 }
 0x2e4   : > { %3487 = vmatpush1.bf16.msra.mxu1 %v9432_v28  ;;  %v10456_v28 = vld [vmem:[%s13570_s18 + $0xc0] ss:$48 sps:$4 sm:$0xff]  }
 0x2e5   : > { %3528 = vmatpush1.bf16.msra.mxu0 %v9560_v31  ;;  %3488 = vmatprep.subr.bf16.mxu1 %v9425_v32  ;;  %v9481_v31 = vcombine.high %v2051_v24, %v2055_v25  ;;  %v10459_v32 = vld [vmem:[%s13570_s18 + $0x60] ss:$48 sps:$4 sm:$0xff]  }
 0x2e6   : > { %3529 = vmatprep.subr.bf16.mxu0 %v9553_v35  ;;  %v10464_v35 = vld [vmem:[%s13570_s18 + $0x4] ss:$48 sps:$4 sm:$0xff]  }
 0x2e8   : > { %3489 = vmatpush1.bf16.msra.mxu1 %v9424_v36  ;;  %v10489_v36 = vld [vmem:[%s13570_s18 + $0x8a0] ss:$48 sps:$4 sm:$0xff]  }
 0x2e9   : > { %3530 = vmatpush1.bf16.msra.mxu0 %v9552_v39  ;;  %3490 = vmatprep.subr.bf16.mxu1 %v9417_v40  ;;  %v10467_v39 = vld [vmem:[%s13570_s18 + $0x5a4] ss:$48 sps:$4 sm:$0xff]   ;;  %v10492_v40 = vld [vmem:[%s13570_s18 + $0x840] ss:$48 sps:$4 sm:$0xff]  }
 0x2ea   : > { %3531 = vmatprep.subr.bf16.mxu0 %v9545_v48  ;;  %v10497_v48 = vld [vmem:[%s13570_s18 + $0x7e4] ss:$48 sps:$4 sm:$0xff]  }
 0x2ec   : > { %3491 = vmatpush1.bf16.msra.mxu1 %v9416_v49  ;;  %v10495_v49 = vld [vmem:[%s13570_s18 + $0x7e0] ss:$48 sps:$4 sm:$0xff]  }
 0x2ed   : > { %3532 = vmatpush1.bf16.msra.mxu0 %v9544_v51  ;;  %3492 = vmatprep.subr.bf16.mxu1 %v9537_v52  ;;  %v10473_v51 = vld [vmem:[%s13570_s18 + $0x4e4] ss:$48 sps:$4 sm:$0xff]   ;;  %v10498_v52 = vld [vmem:[%s13570_s18 + $0x780] ss:$48 sps:$4 sm:$0xff]  }
 0x2ee   : > { %3547 = vmatprep.subr.bf16.mxu0 %v9609_v53  ;;  %v10471_v53 = vld [vmem:[%s13570_s18 + $0x4e0] ss:$48 sps:$4 sm:$0xff]  }
 0x2f0   : > { %3493 = vmatpush2.bf16.msra.mxu1 %v9536_v55  ;;  %v10476_v55 = vld [vmem:[%s13570_s18 + $0x484] ss:$48 sps:$4 sm:$0xff]  }
 0x2f1   : > { %3548 = vmatpush2.bf16.msra.mxu0 %v9608_v56  ;;  %3494 = vmatprep.subr.bf16.mxu1 %v9529_v57  ;;  %v10474_v56 = vld [vmem:[%s13570_s18 + $0x480] ss:$48 sps:$4 sm:$0xff]   ;;  %v10479_v57 = vld [vmem:[%s13570_s18 + $0x424] ss:$48 sps:$4 sm:$0xff]  }
 0x2f2   : > { %8179 = vmatprep.subr.bf16.mxu0 %v10443_v60  ;;  %v10477_v60 = vld [vmem:[%s13570_s18 + $0x420] ss:$48 sps:$4 sm:$0xff]  }
 0x2f4   : > { %3550 = vmatmul.mubr.bf16.vlgmr.msra.gmra.mxu0 %v13508_v11  ;;  %3495 = vmatpush2.bf16.msra.mxu1 %v9528_v62  ;;  %v9512_v11 = vcombine.low %v2083_v9, %v2087_v0  ;;  %v10504_v62 = vld [vmem:[%s13570_s18 + $0x6c0] ss:$48 sps:$4 sm:$0xff]  }
 0x2f5   : > { %3496 = vmatprep.subr.bf16.mxu1 %v9521_v63  ;;  %8180 = vmatpush1.bf16.msra.mxu0 %v10441_v61  ;;  %v10482_v61 = vld [vmem:[%s13570_s18 + $0x3c4] ss:$48 sps:$4 sm:$0xff]   ;;  %v10480_v0 = vld [vmem:[%s13570_s18 + $0x3c0] ss:$48 sps:$4 sm:$0xff]  }
 0x2f6   : > { %8181 = vmatprep.subr.bf16.mxu0 %v10446_v1  ;;  %v10509_v63 = vld [vmem:[%s13570_s18 + $0x664] ss:$48 sps:$4 sm:$0xff]  }
 0x2f7   : > { %v14005_v9 = vld [vmem:[%s15001_s4] sm:$0xff] }
 0x2f8   : > { %3497 = vmatpush2.bf16.msra.mxu1 %v9520_v3  ;;  %v10485_v1 = vld [vmem:[%s13570_s18 + $0x364] ss:$48 sps:$4 sm:$0xff]   ;;  %v2189_v10 = vrot.slane %v14005_v9, %v13472_v43 }
 0x2f9   : > { %3498 = vmatprep.subr.bf16.mxu1 %v9513_v5  ;;  %8182 = vmatpush1.bf16.msra.mxu0 %v10444_v2  ;;  %v10507_v2 = vld [vmem:[%s13570_s18 + $0x660] ss:$48 sps:$4 sm:$0xff]   ;;  %v10512_v3 = vld [vmem:[%s13570_s18 + $0x604] ss:$48 sps:$4 sm:$0xff]  }
 0x2fa   : > { %8183 = vmatprep.subr.bf16.mxu0 %v10449_v7  ;;  %v10483_v5 = vld [vmem:[%s13570_s18 + $0x360] ss:$48 sps:$4 sm:$0xff]  }
 0x2fb   : > { %v10510_v7 = vld [vmem:[%s13570_s18 + $0x600] ss:$48 sps:$4 sm:$0xff]  }
 0x2fc   : > { %3499 = vmatpush2.bf16.msra.mxu1 %v9512_v11  ;;  %v10515_v11 = vld [vmem:[%s13570_s18 + $0xba4] ss:$48 sps:$4 sm:$0xff]  }
 0x2fd   : > { %3500 = vmatprep.subr.bf16.mxu1 %v9505_v8  ;;  %8184 = vmatpush1.bf16.msra.mxu0 %v10447_v12  ;;  %v2193_v8 = vrot.slane %v14005_v9, %v13481_v46 }
 0x2fe   : > { %8185 = vmatprep.subr.bf16.mxu0 %v10452_v15  ;;  %v10486_v15 = vld [vmem:[%s13570_s18 + $0x300] ss:$48 sps:$4 sm:$0xff]  }
 0x300   : > { %3501 = vmatpush2.bf16.msra.mxu1 %v9504_v17  ;;  %v10518_v17 = vld [vmem:[%s13570_s18 + $0xea4] ss:$48 sps:$4 sm:$0xff]  }
 0x301   : > { %3502 = vmatprep.subr.bf16.mxu1 %v9497_v21  ;;  %8186 = vmatpush1.bf16.msra.mxu0 %v10450_v16  ;;  %v10513_v16 = vld [vmem:[%s13570_s18 + $0xba0] ss:$48 sps:$4 sm:$0xff]  }
 0x302   : > { %8187 = vmatprep.subr.bf16.mxu0 %v10455_v20  ;;  %v10521_v20 = vld [vmem:[%s13570_s18 + $0xb44] ss:$48 sps:$4 sm:$0xff]  }
 0x304   : > { %3503 = vmatpush2.bf16.msra.mxu1 %v9496_v23 }
 0x305   : > { %3504 = vmatprep.subr.bf16.mxu1 %v9489_v27  ;;  %8188 = vmatpush1.bf16.msra.mxu0 %v10453_v22 }
 0x306   : > { %8189 = vmatprep.subr.bf16.mxu0 %v10458_v26  ;;  %v10519_v26 = vld [vmem:[%s13570_s18 + $0xb40] ss:$48 sps:$4 sm:$0xff]  }
 0x308   : > { %3505 = vmatpush2.bf16.msra.mxu1 %v9488_v29 }
 0x309   : > { %3506 = vmatprep.subr.bf16.mxu1 %v9481_v31  ;;  %8190 = vmatpush1.bf16.msra.mxu0 %v10456_v28 }
 0x30a   : > { %8191 = vmatprep.subr.bf16.mxu0 %v10461_v30  ;;  %v10527_v30 = vld [vmem:[%s13570_s18 + $0xae4] ss:$48 sps:$4 sm:$0xff]  }
 0x30c   : > { %3507 = vmatpush2.bf16.msra.mxu1 %v9480_v34 }
 0x30d   : > { %8192 = vmatpush1.bf16.msra.mxu0 %v10459_v32  ;;  %8220 = vmatprep.subr.bf16.mxu1 %v10491_v33  ;;  %v10516_v32 = vld [vmem:[%s13570_s18 + $0xea0] ss:$48 sps:$4 sm:$0xff]  }
 0x30e   : > { %8193 = vmatprep.subr.bf16.mxu0 %v10464_v35  ;;  %v10525_v33 = vld [vmem:[%s13570_s18 + $0xae0] ss:$48 sps:$4 sm:$0xff]  }
 0x30f   : > { %3509 = vmatmul.mubr.bf16.vlgmr.msra.gmra.mxu1 %v13496_v4  ;;  %v10500_v4 = vld [vmem:[%s13570_s18 + $0x784] ss:$48 sps:$4 sm:$0xff]  }
 0x310   : > { %8221 = vmatpush1.bf16.msra.mxu1 %v10489_v36  ;;  %v10524_v36 = vld [vmem:[%s13570_s18 + $0xe44] ss:$48 sps:$4 sm:$0xff]  }
 0x311   : > { %8194 = vmatpush1.bf16.msra.mxu0 %v10462_v37  ;;  %8222 = vmatprep.subr.bf16.mxu1 %v10494_v38  ;;  %v10533_v37 = vld [vmem:[%s13570_s18 + $0xa84] ss:$48 sps:$4 sm:$0xff]   ;;  %v10522_v38 = vld [vmem:[%s13570_s18 + $0xe40] ss:$48 sps:$4 sm:$0xff]  }
 0x312   : > { %8195 = vmatprep.subr.bf16.mxu0 %v10467_v39  ;;  %v10531_v39 = vld [vmem:[%s13570_s18 + $0xa80] ss:$48 sps:$4 sm:$0xff]  }
 0x314   : > { %8223 = vmatpush1.bf16.msra.mxu1 %v10492_v40  ;;  %v10530_v40 = vld [vmem:[%s13570_s18 + $0xde4] ss:$48 sps:$4 sm:$0xff]  }
 0x315   : > { %8196 = vmatpush2.bf16.msra.mxu0 %v10465_v41  ;;  %8224 = vmatprep.subr.bf16.mxu1 %v10497_v48  ;;  %v10539_v41 = vld [vmem:[%s13570_s18 + $0xa24] ss:$48 sps:$4 sm:$0xff]  }
 0x316   : > { %8197 = vmatprep.subr.bf16.mxu0 %v10470_v45  ;;  %v10528_v45 = vld [vmem:[%s13570_s18 + $0xde0] ss:$48 sps:$4 sm:$0xff]   ;;  %v10536_v48 = vld [vmem:[%s13570_s18 + $0xd84] ss:$48 sps:$4 sm:$0xff]  }
 0x318   : > { %8225 = vmatpush1.bf16.msra.mxu1 %v10495_v49  ;;  %v10537_v49 = vld [vmem:[%s13570_s18 + $0xa20] ss:$48 sps:$4 sm:$0xff]  }
 0x319   : > { %8198 = vmatpush2.bf16.msra.mxu0 %v10468_v50  ;;  %8226 = vmatprep.subr.bf16.mxu1 %v10500_v4  ;;  %v10545_v50 = vld [vmem:[%s13570_s18 + $0x9c4] ss:$48 sps:$4 sm:$0xff]  }
 0x31a   : > { %8199 = vmatprep.subr.bf16.mxu0 %v10473_v51  ;;  %v10534_v51 = vld [vmem:[%s13570_s18 + $0xd80] ss:$48 sps:$4 sm:$0xff]   ;;  %v10542_v4 = vld [vmem:[%s13570_s18 + $0xd24] ss:$48 sps:$4 sm:$0xff]  }
 0x31c   : > { %8227 = vmatpush1.bf16.msra.mxu1 %v10498_v52  ;;  %v10543_v52 = vld [vmem:[%s13570_s18 + $0x9c0] ss:$48 sps:$4 sm:$0xff]  }
 0x31d   : > { %8200 = vmatpush2.bf16.msra.mxu0 %v10471_v53  ;;  %8228 = vmatprep.subr.bf16.mxu1 %v10503_v54  ;;  %v10551_v53 = vld [vmem:[%s13570_s18 + $0x964] ss:$48 sps:$4 sm:$0xff]   ;;  %v10540_v54 = vld [vmem:[%s13570_s18 + $0xd20] ss:$48 sps:$4 sm:$0xff]  }
 0x31e   : > { %8201 = vmatprep.subr.bf16.mxu0 %v10476_v55  ;;  %v10548_v55 = vld [vmem:[%s13570_s18 + $0xcc4] ss:$48 sps:$4 sm:$0xff]  }
 0x320   : > { %8229 = vmatpush1.bf16.msra.mxu1 %v10501_v58  ;;  %v10546_v58 = vld [vmem:[%s13570_s18 + $0xcc0] ss:$48 sps:$4 sm:$0xff]  }
 0x321   : > { %8202 = vmatpush2.bf16.msra.mxu0 %v10474_v56  ;;  %8230 = vmatprep.subr.bf16.mxu1 %v10506_v59  ;;  %v10549_v56 = vld [vmem:[%s13570_s18 + $0x960] ss:$48 sps:$4 sm:$0xff]   ;;  %v10554_v59 = vld [vmem:[%s13570_s18 + $0xc64] ss:$48 sps:$4 sm:$0xff]  }
 0x322   : > { %8203 = vmatprep.subr.bf16.mxu0 %v10479_v57  ;;  %v10557_v57 = vld [vmem:[%s13570_s18 + $0x904] ss:$48 sps:$4 sm:$0xff]  }
 0x324   : > { %8231 = vmatpush1.bf16.msra.mxu1 %v10504_v62  ;;  %v10552_v62 = vld [vmem:[%s13570_s18 + $0xc60] ss:$48 sps:$4 sm:$0xff]  }
 0x325   : > { %8204 = vmatpush2.bf16.msra.mxu0 %v10477_v60  ;;  %8232 = vmatprep.subr.bf16.mxu1 %v10509_v63  ;;  %v10555_v60 = vld [vmem:[%s13570_s18 + $0x900] ss:$48 sps:$4 sm:$0xff]   ;;  %v10560_v63 = vld [vmem:[%s13570_s18 + $0xc04] ss:$48 sps:$4 sm:$0xff]  }
 0x326   : > { %8205 = vmatprep.subr.bf16.mxu0 %v10482_v61  ;;  %v10590_v61 = vld [vmem:[%s13570_s18 + $0x14a4] ss:$48 sps:$4 sm:$0xff]  }
 0x328   : > { %8233 = vmatpush1.bf16.msra.mxu1 %v10507_v2 }
 0x329   : > { %8206 = vmatpush2.bf16.msra.mxu0 %v10480_v0  ;;  %8234 = vmatprep.subr.bf16.mxu1 %v10512_v3  ;;  %v10558_v0 = vld [vmem:[%s13570_s18 + $0xc00] ss:$48 sps:$4 sm:$0xff]   ;;  %v10563_v3 = vld [vmem:[%s13570_s18 + $0x11a4] ss:$48 sps:$4 sm:$0xff]  }
 0x32a   : > { %8207 = vmatprep.subr.bf16.mxu0 %v10485_v1 }
 0x32b   : > { %v3264_v12 = vpop.f32.mrf.mxu0  ;;  %v3305_v13 = vpop.f32.mrf.mxu1 }
 0x32c   : > { %v3265_v14 = vadd.f32 %v3264_v12, %v2189_v10  ;;  %8235 = vmatpush1.bf16.msra.mxu1 %v10510_v7  ;;  %v10561_v10 = vld [vmem:[%s13570_s18 + $0x11a0] ss:$48 sps:$4 sm:$0xff]   ;;  %v10566_v7 = vld [vmem:[%s13570_s18 + $0x1144] ss:$48 sps:$4 sm:$0xff]  }
 0x32d   : > { %v3266_v18 = vpop.f32.mrf.mxu0  ;;  %v3307_v19 = vpop.f32.mrf.mxu1  ;;  %8208 = vmatpush2.bf16.msra.mxu0 %v10483_v5  ;;  %8236 = vmatprep.subr.bf16.mxu1 %v10515_v11  ;;  %v10564_v11 = vld [vmem:[%s13570_s18 + $0x1140] ss:$48 sps:$4 sm:$0xff]  }
 0x32e   : > { %v3306_v21 = vadd.f32 %v3305_v13, %v3265_v14  ;;  %v3267_v22 = vadd.f32 %v3266_v18, %v2193_v8  ;;  %8209 = vmatprep.subr.bf16.mxu0 %v10488_v6  ;;  %v10569_v8 = vld [vmem:[%s13570_s18 + $0x10e4] ss:$48 sps:$4 sm:$0xff]   ;;  %v10567_v12 = vld [vmem:[%s13570_s18 + $0x10e0] ss:$48 sps:$4 sm:$0xff]   ;;  %v2197_v18 = vrot.slane %v14005_v9, %v13475_v44 }
 0x32f   : > { %v3309_v23 = vpop.f32.mrf.mxu1  ;;  %v3268_v24 = vpop.f32.mrf.mxu0  ;;  %v10572_v13 = vld [vmem:[%s13570_s18 + $0x1084] ss:$48 sps:$4 sm:$0xff]   ;;  %v10570_v14 = vld [vmem:[%s13570_s18 + $0x1080] ss:$48 sps:$4 sm:$0xff]  }
 0x330   : > { %v3308_v25 = vadd.f32 %v3307_v19, %v3267_v22  ;;  %8237 = vmatpush2.bf16.msra.mxu1 %v10513_v16  ;;  %v3558_v27 = vmax.f32 %v3306_v21, 0.0  ;;  %v10573_v16 = vld [vmem:[%s13570_s18 + $0x1020] ss:$48 sps:$4 sm:$0xff]   ;;  %v2201_v21 = vrot.slane %v14005_v9, %v13484_v47 }
 0x331   : > { %v3310_v28 = vpop.f32.mrf.mxu1  ;;  %8210 = vmatpush2.bf16.msra.mxu0 %v10486_v15  ;;  %v3269_v29 = vpop.f32.mrf.mxu0  ;;  %8238 = vmatprep.subr.bf16.mxu1 %v10521_v20  ;;  %v10575_v15 = vld [vmem:[%s13570_s18 + $0x1024] ss:$48 sps:$4 sm:$0xff]   ;;  %v10576_v19 = vld [vmem:[%s13570_s18 + $0xfc0] ss:$48 sps:$4 sm:$0xff]  }
 0x332   : > { %v3559_v31 = vmax.f32 %v3308_v25, 0.0  ;;  %8261 = vmatprep.subr.bf16.mxu0 %v10518_v17  ;;  %v14029_v35 = vpack.c.bf16 %v3558_v27, %v3558_v27  ;;  %v10578_v17 = vld [vmem:[%s13570_s18 + $0xfc4] ss:$48 sps:$4 sm:$0xff]   ;;  %v10579_v24 = vld [vmem:[%s13570_s18 + $0xf60] ss:$48 sps:$4 sm:$0xff]  }
 0x333   : > { %v10581_v20 = vld [vmem:[%s13570_s18 + $0xf64] ss:$48 sps:$4 sm:$0xff]  }
 0x334   : > { %v14027_v34 = vpack.c.bf16 %v3559_v31, %v3559_v31  ;;  %8239 = vmatpush2.bf16.msra.mxu1 %v10519_v26  ;;  %v10584_v26 = vld [vmem:[%s13570_s18 + $0xf04] ss:$48 sps:$4 sm:$0xff]   ;;  %v10582_v31 = vld [vmem:[%s13570_s18 + $0xf00] ss:$48 sps:$4 sm:$0xff]  }
 0x335   : > { %8240 = vmatprep.subr.bf16.mxu1 %v10527_v30 }
 0x336   : > { %8211 = vmatprep.mubr.bf16.mxu0 %v14027_v34 }
 0x337   : > { %8212 = vmatmul.mubr.bf16.vlgmr.msra.gmra.mxu0 %v14029_v35 }
 0x338   : > { %8262 = vmatpush1.bf16.msra.mxu0 %v10516_v32  ;;  %8241 = vmatpush2.bf16.msra.mxu1 %v10525_v33 }
 0x339   : > { %8263 = vmatprep.subr.bf16.mxu0 %v10524_v36  ;;  %8242 = vmatprep.subr.bf16.mxu1 %v10533_v37  ;;  %v10587_v36 = vld [vmem:[%s13570_s18 + $0x8ac] ss:$48 sps:$4 sm:$0xff]  }
 0x33c   : > { %8264 = vmatpush1.bf16.msra.mxu0 %v10522_v38  ;;  %8243 = vmatpush2.bf16.msra.mxu1 %v10531_v39  ;;  %v10588_v39 = vld [vmem:[%s13570_s18 + $0x14a0] ss:$48 sps:$4 sm:$0xff]  }
 0x33d   : > { %8265 = vmatprep.subr.bf16.mxu0 %v10530_v40  ;;  %8244 = vmatprep.subr.bf16.mxu1 %v10539_v41  ;;  %v10596_v41 = vld [vmem:[%s13570_s18 + $0x1444] ss:$48 sps:$4 sm:$0xff]  }
 0x340   : > { %8266 = vmatpush1.bf16.msra.mxu0 %v10528_v45  ;;  %8245 = vmatpush2.bf16.msra.mxu1 %v10537_v49  ;;  %v10594_v45 = vld [vmem:[%s13570_s18 + $0x1440] ss:$48 sps:$4 sm:$0xff]  }
 0x341   : > { %8267 = vmatprep.subr.bf16.mxu0 %v10536_v48  ;;  %8246 = vmatprep.subr.bf16.mxu1 %v10545_v50  ;;  %v10602_v48 = vld [vmem:[%s13570_s18 + $0x13e4] ss:$48 sps:$4 sm:$0xff]   ;;  %v10600_v49 = vld [vmem:[%s13570_s18 + $0x13e0] ss:$48 sps:$4 sm:$0xff]  }
 0x342   : > { %v10608_v50 = vld [vmem:[%s13570_s18 + $0x1384] ss:$48 sps:$4 sm:$0xff]  }
 0x344   : > { %8268 = vmatpush1.bf16.msra.mxu0 %v10534_v51  ;;  %8247 = vmatpush2.bf16.msra.mxu1 %v10543_v52  ;;  %v10606_v51 = vld [vmem:[%s13570_s18 + $0x1380] ss:$48 sps:$4 sm:$0xff]  }
 0x345   : > { %8269 = vmatprep.subr.bf16.mxu0 %v10542_v4  ;;  %8248 = vmatprep.subr.bf16.mxu1 %v10551_v53  ;;  %v10614_v4 = vld [vmem:[%s13570_s18 + $0x1324] ss:$48 sps:$4 sm:$0xff]   ;;  %v10612_v52 = vld [vmem:[%s13570_s18 + $0x1320] ss:$48 sps:$4 sm:$0xff]  }
 0x346   : > { %v10620_v53 = vld [vmem:[%s13570_s18 + $0x12c4] ss:$48 sps:$4 sm:$0xff]  }
 0x348   : > { %8270 = vmatpush1.bf16.msra.mxu0 %v10540_v54  ;;  %8249 = vmatpush2.bf16.msra.mxu1 %v10549_v56  ;;  %v2204_v54 = vsub.s32 4, %v13469_v42  ;;  %v10626_v56 = vld [vmem:[%s13570_s18 + $0x1264] ss:$48 sps:$4 sm:$0xff]  }
 0x349   : > { %8271 = vmatprep.subr.bf16.mxu0 %v10548_v55  ;;  %8250 = vmatprep.subr.bf16.mxu1 %v10557_v57  ;;  %v10618_v55 = vld [vmem:[%s13570_s18 + $0x12c0] ss:$48 sps:$4 sm:$0xff]   ;;  %v2208_v57 = vsub.s32 5, %v13469_v42 }
 0x34c   : > { %8272 = vmatpush1.bf16.msra.mxu0 %v10546_v58  ;;  %8251 = vmatpush2.bf16.msra.mxu1 %v10555_v60  ;;  %v2205_v58 = vrot.slane %v14005_v9, %v2204_v54  ;;  %v10632_v60 = vld [vmem:[%s13570_s18 + $0x1204] ss:$48 sps:$4 sm:$0xff]  }
 0x34d   : > { %8273 = vmatprep.subr.bf16.mxu0 %v10554_v59  ;;  %8302 = vmatprep.subr.bf16.mxu1 %v10590_v61  ;;  %v10624_v59 = vld [vmem:[%s13570_s18 + $0x1260] ss:$48 sps:$4 sm:$0xff]  }
 0x34e   : > { %v4318_v61 = vld [vmem:[%s13570_s18 + $0x1740] sm:$0xff] }
 0x34f   : > { %v3387_v1 = vpop.f32.mrf.mxu0 }
 0x350   : > { %8274 = vmatpush1.bf16.msra.mxu0 %v10552_v62  ;;  %v2209_v62 = vrot.slane %v14005_v9, %v2208_v57 }
 0x351   : > { %v3389_v2 = vpop.f32.mrf.mxu0  ;;  %8275 = vmatprep.subr.bf16.mxu0 %v10560_v63 }
 0x353   : > { %v3391_v5 = vpop.f32.mrf.mxu0 }
 0x354   : > { %8276 = vmatpush1.bf16.msra.mxu0 %v10558_v0  ;;  %v10359_v5 = vcombine.high %v4318_v61, %v4318_v61 }
 0x355   : > { %v3392_v6 = vpop.f32.mrf.mxu0  ;;  %8277 = vmatprep.subr.bf16.mxu0 %v10563_v3 }
 0x356   : > { %v10358_v6 = vcombine.low %v4318_v61, %v4318_v61  ;;  %v10633_v61 = vld [vmem:[%s13570_s18 + $0xba8] ss:$48 sps:$4 sm:$0xff]  }
 0x358   : > { %8278 = vmatpush2.bf16.msra.mxu0 %v10561_v10 }
 0x359   : > { %8279 = vmatprep.subr.bf16.mxu0 %v10566_v7 }
 0x35c   : > { %8280 = vmatpush2.bf16.msra.mxu0 %v10564_v11 }
 0x35d   : > { %8281 = vmatprep.subr.bf16.mxu0 %v10569_v8 }
 0x360   : > { %8282 = vmatpush2.bf16.msra.mxu0 %v10567_v12 }
 0x361   : > { %8283 = vmatprep.subr.bf16.mxu0 %v10572_v13  ;;  %v10643_v13 = vld [vmem:[%s13570_s18 + $0x16e4] ss:$48 sps:$4 sm:$0xff]  }
 0x364   : > { %8284 = vmatpush2.bf16.msra.mxu0 %v10570_v14 }
 0x365   : > { %8285 = vmatprep.subr.bf16.mxu0 %v10575_v15 }
 0x368   : > { %8286 = vmatpush2.bf16.msra.mxu0 %v10573_v16 }
 0x369   : > { %8287 = vmatprep.subr.bf16.mxu0 %v10578_v17  ;;  %v8144_v17 = vsel %vm8142_vm3, %v10358_v6, 0  ;;  %v10658_v6 = vld [vmem:[%s13570_s18 + $0xa2c] ss:$48 sps:$4 sm:$0xff]  }
 0x36b   : > { %v3346_v22 = vpop.f32.mrf.mxu1 }
 0x36c   : > { %v3347_v23 = vadd.f32 %v3346_v22, %v2197_v18  ;;  %8288 = vmatpush2.bf16.msra.mxu0 %v10576_v19  ;;  %v10585_v19 = vld [vmem:[%s13570_s18 + $0x8a8] ss:$48 sps:$4 sm:$0xff]  }
 0x36d   : > { %v3348_v25 = vpop.f32.mrf.mxu1  ;;  %8289 = vmatprep.subr.bf16.mxu0 %v10581_v20  ;;  %v10593_v20 = vld [vmem:[%s13570_s18 + $0x84c] ss:$48 sps:$4 sm:$0xff]  }
 0x36e   : > { %v3388_v27 = vadd.f32 %v3387_v1, %v3347_v23  ;;  %v3349_v28 = vadd.f32 %v3348_v25, %v2201_v21  ;;  %v10641_v21 = vld [vmem:[%s13570_s18 + $0x16e0] ss:$48 sps:$4 sm:$0xff]   ;;  %v10591_v25 = vld [vmem:[%s13570_s18 + $0x848] ss:$48 sps:$4 sm:$0xff]  }
 0x36f   : > { %v3350_v29 = vpop.f32.mrf.mxu1 }
 0x370   : > { %v3390_v30 = vadd.f32 %v3389_v2, %v3349_v28  ;;  %8290 = vmatpush2.bf16.msra.mxu0 %v10579_v24  ;;  %v3560_v32 = vmax.f32 %v3388_v27, 0.0  ;;  %v10630_v2 = vld [vmem:[%s13570_s18 + $0x1200] ss:$48 sps:$4 sm:$0xff]   ;;  %v10649_v24 = vld [vmem:[%s13570_s18 + $0x1684] ss:$48 sps:$4 sm:$0xff]  }
 0x371   : > { %v3351_v33 = vpop.f32.mrf.mxu1  ;;  %8291 = vmatprep.subr.bf16.mxu0 %v10584_v26  ;;  %v10599_v26 = vld [vmem:[%s13570_s18 + $0x7ec] ss:$48 sps:$4 sm:$0xff]   ;;  %v10647_v27 = vld [vmem:[%s13570_s18 + $0x1680] ss:$48 sps:$4 sm:$0xff]   ;;  %v10597_v28 = vld [vmem:[%s13570_s18 + $0x7e8] ss:$48 sps:$4 sm:$0xff]  }
 0x372   : > { %v3561_v37 = vmax.f32 %v3390_v30, 0.0  ;;  %v14082_v40 = vpack.c.bf16 %v3560_v32, %v3560_v32  ;;  %v10655_v29 = vld [vmem:[%s13570_s18 + $0x1624] ss:$48 sps:$4 sm:$0xff]   ;;  %v10605_v30 = vld [vmem:[%s13570_s18 + $0x78c] ss:$48 sps:$4 sm:$0xff]  }
 0x373   : > { %v10603_v32 = vld [vmem:[%s13570_s18 + $0x788] ss:$48 sps:$4 sm:$0xff]   ;;  %v10661_v33 = vld [vmem:[%s13570_s18 + $0x15c4] ss:$48 sps:$4 sm:$0xff]  }
 0x374   : > { %v14079_v38 = vpack.c.bf16 %v3561_v37, %v3561_v37  ;;  %8292 = vmatpush2.bf16.msra.mxu0 %v10582_v31  ;;  %v10653_v31 = vld [vmem:[%s13570_s18 + $0x1620] ss:$48 sps:$4 sm:$0xff]  }
 0x375   : > { %8384 = vmatprep.subr.bf16.mxu0 %v10587_v36  ;;  %v10611_v36 = vld [vmem:[%s13570_s18 + $0x72c] ss:$48 sps:$4 sm:$0xff]   ;;  %v10659_v37 = vld [vmem:[%s13570_s18 + $0x15c0] ss:$48 sps:$4 sm:$0xff]  }
 0x376   : > { %8252 = vmatprep.mubr.bf16.mxu1 %v14079_v38 }
 0x377   : > { %8253 = vmatmul.mubr.bf16.vlgmr.msra.gmra.mxu1 %v14082_v40 }
 0x378   : > { %8303 = vmatpush1.bf16.msra.mxu1 %v10588_v39  ;;  %v10609_v39 = vld [vmem:[%s13570_s18 + $0x728] ss:$48 sps:$4 sm:$0xff]  }
 0x379   : > { %8304 = vmatprep.subr.bf16.mxu1 %v10596_v41  ;;  %v10667_v41 = vld [vmem:[%s13570_s18 + $0x1564] ss:$48 sps:$4 sm:$0xff]  }
 0x37c   : > { %8305 = vmatpush1.bf16.msra.mxu1 %v10594_v45  ;;  %v10617_v45 = vld [vmem:[%s13570_s18 + $0x6cc] ss:$48 sps:$4 sm:$0xff]  }
 0x37d   : > { %8306 = vmatprep.subr.bf16.mxu1 %v10602_v48  ;;  %v10665_v48 = vld [vmem:[%s13570_s18 + $0x1560] ss:$48 sps:$4 sm:$0xff]  }
 0x380   : > { %8307 = vmatpush1.bf16.msra.mxu1 %v10600_v49  ;;  %v10615_v49 = vld [vmem:[%s13570_s18 + $0x6c8] ss:$48 sps:$4 sm:$0xff]  }
 0x381   : > { %8308 = vmatprep.subr.bf16.mxu1 %v10608_v50  ;;  %v10673_v50 = vld [vmem:[%s13570_s18 + $0x1504] ss:$48 sps:$4 sm:$0xff]  }
 0x384   : > { %8309 = vmatpush1.bf16.msra.mxu1 %v10606_v51  ;;  %v10623_v51 = vld [vmem:[%s13570_s18 + $0x66c] ss:$48 sps:$4 sm:$0xff]  }
 0x385   : > { %8310 = vmatprep.subr.bf16.mxu1 %v10614_v4  ;;  %v10671_v4 = vld [vmem:[%s13570_s18 + $0x1500] ss:$48 sps:$4 sm:$0xff]  }
 0x388   : > { %8311 = vmatpush1.bf16.msra.mxu1 %v10612_v52  ;;  %v10621_v52 = vld [vmem:[%s13570_s18 + $0x668] ss:$48 sps:$4 sm:$0xff]  }
 0x389   : > { %8312 = vmatprep.subr.bf16.mxu1 %v10620_v53  ;;  %v10679_v53 = vld [vmem:[%s13570_s18 + $0x2ac] ss:$48 sps:$4 sm:$0xff]  }
 0x38c   : > { %8313 = vmatpush1.bf16.msra.mxu1 %v10618_v55  ;;  %v10629_v55 = vld [vmem:[%s13570_s18 + $0x60c] ss:$48 sps:$4 sm:$0xff]  }
 0x38d   : > { %8314 = vmatprep.subr.bf16.mxu1 %v10626_v56  ;;  %v10627_v56 = vld [vmem:[%s13570_s18 + $0x608] ss:$48 sps:$4 sm:$0xff]  }
 0x38f   : > { %v3428_v63 = vpop.f32.mrf.mxu0  ;;  %v3469_v0 = vpop.f32.mrf.mxu1 }
 0x390   : > { %v3429_v1 = vadd.f32 %v3428_v63, %v2205_v58  ;;  %8315 = vmatpush1.bf16.msra.mxu1 %v10624_v59  ;;  %v10635_v59 = vld [vmem:[%s13570_s18 + $0xbac] ss:$48 sps:$4 sm:$0xff]  }
 0x391   : > { %v3430_v3 = vpop.f32.mrf.mxu0  ;;  %v3471_v10 = vpop.f32.mrf.mxu1  ;;  %8316 = vmatprep.subr.bf16.mxu1 %v10632_v60 }
 0x392   : > { %v3470_v7 = vadd.f32 %v3469_v0, %v3429_v1  ;;  %v3431_v11 = vadd.f32 %v3430_v3, %v2209_v62  ;;  %v10639_v62 = vld [vmem:[%s13570_s18 + $0xb4c] ss:$48 sps:$4 sm:$0xff]   ;;  %v10637_v1 = vld [vmem:[%s13570_s18 + $0xb48] ss:$48 sps:$4 sm:$0xff]  }
 0x393   : > { %v3432_v8 = vpop.f32.mrf.mxu0  ;;  %v3473_v12 = vpop.f32.mrf.mxu1  ;;  %v10644_v3 = vld [vmem:[%s13570_s18 + $0xae8] ss:$48 sps:$4 sm:$0xff]  }
 0x394   : > { %v3472_v9 = vadd.f32 %v3471_v10, %v3431_v11  ;;  %8317 = vmatpush1.bf16.msra.mxu1 %v10630_v2  ;;  %v3562_v14 = vmax.f32 %v3470_v7, 0.0  ;;  %v10646_v2 = vld [vmem:[%s13570_s18 + $0xaec] ss:$48 sps:$4 sm:$0xff]   ;;  %v10656_v7 = vld [vmem:[%s13570_s18 + $0xa28] ss:$48 sps:$4 sm:$0xff]   ;;  %v2212_v11 = vsub.s32 6, %v13469_v42 }
 0x395   : > { %v3433_v15 = vpop.f32.mrf.mxu0  ;;  %v3474_v16 = vpop.f32.mrf.mxu1  ;;  %10370 = vmatprep.subr.msk.bf16.mxu1 %vm8142_vm3, %v10359_v5  ;;  %v10652_v10 = vld [vmem:[%s13570_s18 + $0xa8c] ss:$48 sps:$4 sm:$0xff]   ;;  %v10650_v5 = vld [vmem:[%s13570_s18 + $0xa88] ss:$48 sps:$4 sm:$0xff]  }
 0x396   : > { %v3563_v18 = vmax.f32 %v3472_v9, 0.0  ;;  %v14117_v23 = vpack.c.bf16 %v3562_v14, %v3562_v14  ;;  %v10664_v8 = vld [vmem:[%s13570_s18 + $0x9cc] ss:$48 sps:$4 sm:$0xff]   ;;  %v10662_v12 = vld [vmem:[%s13570_s18 + $0x9c8] ss:$48 sps:$4 sm:$0xff]   ;;  %v2216_v9 = vsub.s32 7, %v13469_v42 }
 0x397   : > { %v10670_v15 = vld [vmem:[%s13570_s18 + $0x96c] ss:$48 sps:$4 sm:$0xff]  }
 0x398   : > { %v14115_v22 = vpack.c.bf16 %v3563_v18, %v3563_v18  ;;  %8321 = vmatpush2.bf16.msra.mxu1 %v8144_v17 }
 0x399   : > { %8322 = vmatprep.subr.bf16.mxu1 %v10643_v13  ;;  %v11617_v13 = vld [vmem:[%s15001_s4] sm:$0xff] }
 0x39a   : > { %8293 = vmatprep.mubr.bf16.mxu0 %v14115_v22  ;;  %v2213_v14 = vrot.slane %v11617_v13, %v2212_v11  ;;  %v2217_v16 = vrot.slane %v11617_v13, %v2216_v9  ;;  %v10719_v13 = vld [vmem:[%s13570_s18 + $0x8] ss:$48 sps:$4 sm:$0xff]  }
 0x39b   : > { %8294 = vmatmul.mubr.bf16.vlgmr.msra.gmra.mxu0 %v14117_v23 }
 0x39c   : > { %8385 = vmatpush1.bf16.msra.mxu0 %v10585_v19  ;;  %8416 = vmatprep.mubr.bf16.mxu0 %v14079_v38  ;;  %v10668_v19 = vld [vmem:[%s13570_s18 + $0x968] ss:$48 sps:$4 sm:$0xff]  }
 0x39d   : > { %8386 = vmatprep.subr.bf16.mxu0 %v10593_v20  ;;  %8323 = vmatpush2.bf16.msra.mxu1 %v10641_v21  ;;  %v10676_v21 = vld [vmem:[%s13570_s18 + $0x90c] ss:$48 sps:$4 sm:$0xff]  }
 0x39e   : > { %8324 = vmatprep.subr.bf16.mxu1 %v10649_v24 }
 0x3a0   : > { %8387 = vmatpush1.bf16.msra.mxu0 %v10591_v25 }
 0x3a1   : > { %8388 = vmatprep.subr.bf16.mxu0 %v10599_v26  ;;  %8325 = vmatpush2.bf16.msra.mxu1 %v10647_v27 }
 0x3a2   : > { %8326 = vmatprep.subr.bf16.mxu1 %v10655_v29 }
 0x3a4   : > { %8389 = vmatpush1.bf16.msra.mxu0 %v10597_v28  ;;  %v10674_v28 = vld [vmem:[%s13570_s18 + $0x908] ss:$48 sps:$4 sm:$0xff]  }
 0x3a5   : > { %8390 = vmatprep.subr.bf16.mxu0 %v10605_v30  ;;  %8327 = vmatpush2.bf16.msra.mxu1 %v10653_v31  ;;  %v10682_v31 = vld [vmem:[%s13570_s18 + $0x14ac] ss:$48 sps:$4 sm:$0xff]  }
 0x3a6   : > { %8328 = vmatprep.subr.bf16.mxu1 %v10661_v33 }
 0x3a8   : > { %8391 = vmatpush1.bf16.msra.mxu0 %v10603_v32 }
 0x3a9   : > { %8392 = vmatprep.subr.bf16.mxu0 %v10611_v36  ;;  %8329 = vmatpush2.bf16.msra.mxu1 %v10659_v37  ;;  %v10677_v36 = vld [vmem:[%s13570_s18 + $0x2a8] ss:$48 sps:$4 sm:$0xff]  }
 0x3aa   : > { %8330 = vmatprep.subr.bf16.mxu1 %v10667_v41  ;;  %v10680_v37 = vld [vmem:[%s13570_s18 + $0x14a8] ss:$48 sps:$4 sm:$0xff]   ;;  %v10685_v41 = vld [vmem:[%s13570_s18 + $0x24c] ss:$48 sps:$4 sm:$0xff]  }
 0x3ac   : > { %8393 = vmatpush1.bf16.msra.mxu0 %v10609_v39 }
 0x3ad   : > { %8394 = vmatprep.subr.bf16.mxu0 %v10617_v45  ;;  %8331 = vmatpush2.bf16.msra.mxu1 %v10665_v48  ;;  %v10688_v45 = vld [vmem:[%s13570_s18 + $0x144c] ss:$48 sps:$4 sm:$0xff]   ;;  %v10683_v48 = vld [vmem:[%s13570_s18 + $0x248] ss:$48 sps:$4 sm:$0xff]  }
 0x3ae   : > { %8332 = vmatprep.subr.bf16.mxu1 %v10673_v50  ;;  %v10691_v50 = vld [vmem:[%s13570_s18 + $0x1ec] ss:$48 sps:$4 sm:$0xff]  }
 0x3b0   : > { %8395 = vmatpush1.bf16.msra.mxu0 %v10615_v49  ;;  %v10686_v49 = vld [vmem:[%s13570_s18 + $0x1448] ss:$48 sps:$4 sm:$0xff]  }
 0x3b1   : > { %8396 = vmatprep.subr.bf16.mxu0 %v10623_v51  ;;  %8333 = vmatpush2.bf16.msra.mxu1 %v10671_v4  ;;  %v10694_v51 = vld [vmem:[%s13570_s18 + $0x13ec] ss:$48 sps:$4 sm:$0xff]   ;;  %v10689_v4 = vld [vmem:[%s13570_s18 + $0x1e8] ss:$48 sps:$4 sm:$0xff]  }
 0x3b2   : > { %8343 = vmatprep.subr.bf16.mxu1 %v10679_v53  ;;  %v10697_v53 = vld [vmem:[%s13570_s18 + $0x18c] ss:$48 sps:$4 sm:$0xff]  }
 0x3b4   : > { %v3551_v58 = vpop.f32.mrf.mxu0  ;;  %8397 = vmatpush1.bf16.msra.mxu0 %v10621_v52  ;;  %v10692_v52 = vld [vmem:[%s13570_s18 + $0x13e8] ss:$48 sps:$4 sm:$0xff]  }
 0x3b5   : > { %8398 = vmatprep.subr.bf16.mxu0 %v10629_v55  ;;  %v10700_v55 = vld [vmem:[%s13570_s18 + $0x138c] ss:$48 sps:$4 sm:$0xff]  }
 0x3b6   : > { %v3553_v60 = vpop.f32.mrf.mxu0 }
 0x3b8   : > { %v3555_v63 = vpop.f32.mrf.mxu0  ;;  %8399 = vmatpush1.bf16.msra.mxu0 %v10627_v56  ;;  %v10695_v56 = vld [vmem:[%s13570_s18 + $0x188] ss:$48 sps:$4 sm:$0xff]  }
 0x3b9   : > { %8400 = vmatprep.subr.bf16.mxu0 %v10635_v59  ;;  %v10703_v59 = vld [vmem:[%s13570_s18 + $0x12c] ss:$48 sps:$4 sm:$0xff]  }
 0x3ba   : > { %v3556_v0 = vpop.f32.mrf.mxu0  ;;  %v10709_v63 = vld [vmem:[%s13570_s18 + $0xcc] ss:$48 sps:$4 sm:$0xff]  }
 0x3bb   : > { %v10712_v0 = vld [vmem:[%s13570_s18 + $0x12cc] ss:$48 sps:$4 sm:$0xff]  }
 0x3bc   : > { %8401 = vmatpush2.bf16.msra.mxu0 %v10633_v61  ;;  %v10701_v61 = vld [vmem:[%s13570_s18 + $0x128] ss:$48 sps:$4 sm:$0xff]  }
 0x3bd   : > { %8402 = vmatprep.subr.bf16.mxu0 %v10639_v62  ;;  %v10704_v62 = vld [vmem:[%s13570_s18 + $0x1328] ss:$48 sps:$4 sm:$0xff]  }
 0x3c0   : > { %8403 = vmatpush2.bf16.msra.mxu0 %v10637_v1  ;;  %v10707_v1 = vld [vmem:[%s13570_s18 + $0xc8] ss:$48 sps:$4 sm:$0xff]  }
 0x3c1   : > { %8404 = vmatprep.subr.bf16.mxu0 %v10646_v2  ;;  %v10710_v2 = vld [vmem:[%s13570_s18 + $0x12c8] ss:$48 sps:$4 sm:$0xff]  }
 0x3c4   : > { %8405 = vmatpush2.bf16.msra.mxu0 %v10644_v3  ;;  %v10715_v3 = vld [vmem:[%s13570_s18 + $0x6c] ss:$48 sps:$4 sm:$0xff]  }
 0x3c5   : > { %8406 = vmatprep.subr.bf16.mxu0 %v10652_v10  ;;  %v10718_v10 = vld [vmem:[%s13570_s18 + $0x126c] ss:$48 sps:$4 sm:$0xff]  }
 0x3c8   : > { %8407 = vmatpush2.bf16.msra.mxu0 %v10650_v5  ;;  %v10713_v5 = vld [vmem:[%s13570_s18 + $0x68] ss:$48 sps:$4 sm:$0xff]  }
 0x3c9   : > { %8408 = vmatprep.subr.bf16.mxu0 %v10658_v6  ;;  %v10716_v6 = vld [vmem:[%s13570_s18 + $0x1268] ss:$48 sps:$4 sm:$0xff]  }
 0x3cc   : > { %8409 = vmatpush2.bf16.msra.mxu0 %v10656_v7  ;;  %v10721_v7 = vld [vmem:[%s13570_s18 + $0xc] ss:$48 sps:$4 sm:$0xff]  }
 0x3cd   : > { %8410 = vmatprep.subr.bf16.mxu0 %v10664_v8  ;;  %v10724_v8 = vld [vmem:[%s13570_s18 + $0x120c] ss:$48 sps:$4 sm:$0xff]  }
 0x3cf   : > { %v3510_v17 = vpop.f32.mrf.mxu1 }
 0x3d0   : > { %v3511_v18 = vadd.f32 %v3510_v17, %v2213_v14  ;;  %8411 = vmatpush2.bf16.msra.mxu0 %v10662_v12  ;;  %v4319_v12 = vld [vmem:[%s13570_s18 + $0x1748] sm:$0xff] }
 0x3d1   : > { %v3512_v20 = vpop.f32.mrf.mxu1  ;;  %8412 = vmatprep.subr.bf16.mxu0 %v10670_v15  ;;  %v10722_v14 = vld [vmem:[%s13570_s18 + $0x1208] ss:$48 sps:$4 sm:$0xff]   ;;  %v10727_v15 = vld [vmem:[%s13570_s18 + $0x5ac] ss:$48 sps:$4 sm:$0xff]   ;;  %v10360_v17 = vcombine.low %v4319_v12, %v4319_v12 }
 0x3d2   : > { %v3552_v24 = vadd.f32 %v3551_v58, %v3511_v18  ;;  %v3513_v25 = vadd.f32 %v3512_v20, %v2217_v16  ;;  %v10698_v58 = vld [vmem:[%s13570_s18 + $0x1388] ss:$48 sps:$4 sm:$0xff]   ;;  %v10361_v16 = vcombine.high %v4319_v12, %v4319_v12  ;;  %v10781_v12 = vld [vmem:[%s13570_s18 + $0x1f0] ss:$48 sps:$4 sm:$0xff]  }
 0x3d3   : > { %v3514_v26 = vpop.f32.mrf.mxu1 }
 0x3d4   : > { %v3554_v27 = vadd.f32 %v3553_v60, %v3513_v25  ;;  %8413 = vmatpush2.bf16.msra.mxu0 %v10668_v19  ;;  %v3564_v29 = vmax.f32 %v3552_v24, 0.0  ;;  %v10706_v60 = vld [vmem:[%s13570_s18 + $0x132c] ss:$48 sps:$4 sm:$0xff]   ;;  %v10725_v19 = vld [vmem:[%s13570_s18 + $0x5a8] ss:$48 sps:$4 sm:$0xff]  }
 0x3d5   : > { %v3515_v30 = vpop.f32.mrf.mxu1  ;;  %8414 = vmatprep.subr.bf16.mxu0 %v10676_v21  ;;  %v8150_v21 = vsel %vm8142_vm3, %v10360_v17, 0  ;;  %v10732_v24 = vld [vmem:[%s13570_s18 + $0x54c] ss:$48 sps:$4 sm:$0xff]  }
 0x3d6   : > { %v3565_v32 = vmax.f32 %v3554_v27, 0.0  ;;  %v14176_v39 = vpack.c.bf16 %v3564_v29, %v3564_v29  ;;  %v10735_v25 = vld [vmem:[%s13570_s18 + $0x16ec] ss:$48 sps:$4 sm:$0xff]   ;;  %v10730_v27 = vld [vmem:[%s13570_s18 + $0x548] ss:$48 sps:$4 sm:$0xff]  }
 0x3d7   : > { %v10738_v30 = vld [vmem:[%s13570_s18 + $0x4ec] ss:$48 sps:$4 sm:$0xff]  }
 0x3d8   : > { %v14172_v33 = vpack.c.bf16 %v3565_v32, %v3565_v32  ;;  %8415 = vmatpush2.bf16.msra.mxu0 %v10674_v28  ;;  %v10733_v28 = vld [vmem:[%s13570_s18 + $0x16e8] ss:$48 sps:$4 sm:$0xff]   ;;  %v10792_v17 = vld [vmem:[%s13570_s18 + $0xd8c] ss:$48 sps:$4 sm:$0xff]  }
 0x3d9   : > { %8466 = vmatprep.subr.bf16.mxu0 %v10682_v31  ;;  %v10741_v31 = vld [vmem:[%s13570_s18 + $0x168c] ss:$48 sps:$4 sm:$0xff]   ;;  %v10736_v32 = vld [vmem:[%s13570_s18 + $0x4e8] ss:$48 sps:$4 sm:$0xff]  }
 0x3da   : > { %10371 = vmatprep.mubr.msk.bf16.mxu1 %vm8138_vm4, %v14172_v33 }
 0x3db   : > { %8417 = vmatmul.mubr.bf16.vlgmr.msra.gmra.mxu0 %v14082_v40  ;;  %8335 = vmatmul.mubr.bf16.vlgmr.msra.gmra.mxu1 %v14176_v39 }
 0x3dc   : > { %8344 = vmatpush1.bf16.msra.mxu1 %v10677_v36  ;;  %8467 = vmatpush1.bf16.msra.mxu0 %v10680_v37  ;;  %v10739_v36 = vld [vmem:[%s13570_s18 + $0x1688] ss:$48 sps:$4 sm:$0xff]   ;;  %v10744_v37 = vld [vmem:[%s13570_s18 + $0x48c] ss:$48 sps:$4 sm:$0xff]  }
 0x3dd   : > { %10373 = vmatprep.mubr.msk.bf16.mxu0 %vm8138_vm4, %v14172_v33  ;;  %8375 = vmatprep.mubr.bf16.mxu1 %v14027_v34 }
 0x3de   : > { %8345 = vmatprep.subr.bf16.mxu1 %v10685_v41  ;;  %8468 = vmatprep.subr.bf16.mxu0 %v10688_v45  ;;  %v10747_v41 = vld [vmem:[%s13570_s18 + $0x162c] ss:$48 sps:$4 sm:$0xff]   ;;  %v10742_v45 = vld [vmem:[%s13570_s18 + $0x488] ss:$48 sps:$4 sm:$0xff]  }
 0x3e0   : > { %8346 = vmatpush1.bf16.msra.mxu1 %v10683_v48  ;;  %8469 = vmatpush1.bf16.msra.mxu0 %v10686_v49  ;;  %v10745_v48 = vld [vmem:[%s13570_s18 + $0x1628] ss:$48 sps:$4 sm:$0xff]   ;;  %v10750_v49 = vld [vmem:[%s13570_s18 + $0x42c] ss:$48 sps:$4 sm:$0xff]  }
 0x3e1   : > { %8347 = vmatprep.subr.bf16.mxu1 %v10691_v50  ;;  %8470 = vmatprep.subr.bf16.mxu0 %v10694_v51  ;;  %v10753_v50 = vld [vmem:[%s13570_s18 + $0x15cc] ss:$48 sps:$4 sm:$0xff]   ;;  %v10748_v51 = vld [vmem:[%s13570_s18 + $0x428] ss:$48 sps:$4 sm:$0xff]  }
 0x3e4   : > { %8348 = vmatpush1.bf16.msra.mxu1 %v10689_v4  ;;  %8471 = vmatpush1.bf16.msra.mxu0 %v10692_v52  ;;  %v10751_v4 = vld [vmem:[%s13570_s18 + $0x15c8] ss:$48 sps:$4 sm:$0xff]   ;;  %v10756_v52 = vld [vmem:[%s13570_s18 + $0x3cc] ss:$48 sps:$4 sm:$0xff]  }
 0x3e5   : > { %8349 = vmatprep.subr.bf16.mxu1 %v10697_v53  ;;  %8472 = vmatprep.subr.bf16.mxu0 %v10700_v55  ;;  %v10759_v53 = vld [vmem:[%s13570_s18 + $0x156c] ss:$48 sps:$4 sm:$0xff]   ;;  %v10754_v55 = vld [vmem:[%s13570_s18 + $0x3c8] ss:$48 sps:$4 sm:$0xff]  }
 0x3e8   : > { %8350 = vmatpush1.bf16.msra.mxu1 %v10695_v56  ;;  %8473 = vmatpush1.bf16.msra.mxu0 %v10698_v58  ;;  %v10757_v56 = vld [vmem:[%s13570_s18 + $0x1568] ss:$48 sps:$4 sm:$0xff]   ;;  %v10762_v58 = vld [vmem:[%s13570_s18 + $0x36c] ss:$48 sps:$4 sm:$0xff]  }
 0x3e9   : > { %8351 = vmatprep.subr.bf16.mxu1 %v10703_v59  ;;  %8474 = vmatprep.subr.bf16.mxu0 %v10706_v60  ;;  %v10765_v59 = vld [vmem:[%s13570_s18 + $0x150c] ss:$48 sps:$4 sm:$0xff]   ;;  %v10760_v60 = vld [vmem:[%s13570_s18 + $0x368] ss:$48 sps:$4 sm:$0xff]  }
 0x3ec   : > { %8352 = vmatpush1.bf16.msra.mxu1 %v10701_v61  ;;  %8475 = vmatpush1.bf16.msra.mxu0 %v10704_v62  ;;  %v10763_v61 = vld [vmem:[%s13570_s18 + $0x1508] ss:$48 sps:$4 sm:$0xff]   ;;  %v10768_v62 = vld [vmem:[%s13570_s18 + $0x30c] ss:$48 sps:$4 sm:$0xff]  }
 0x3ed   : > { %8353 = vmatprep.subr.bf16.mxu1 %v10709_v63  ;;  %8476 = vmatprep.subr.bf16.mxu0 %v10712_v0  ;;  %v10771_v63 = vld [vmem:[%s13570_s18 + $0x2b4] ss:$48 sps:$4 sm:$0xff]   ;;  %v10766_v0 = vld [vmem:[%s13570_s18 + $0x308] ss:$48 sps:$4 sm:$0xff]  }
 0x3f0   : > { %8354 = vmatpush1.bf16.msra.mxu1 %v10707_v1  ;;  %8477 = vmatpush1.bf16.msra.mxu0 %v10710_v2  ;;  %v10769_v1 = vld [vmem:[%s13570_s18 + $0x2b0] ss:$48 sps:$4 sm:$0xff]   ;;  %v10774_v2 = vld [vmem:[%s13570_s18 + $0xeac] ss:$48 sps:$4 sm:$0xff]  }
 0x3f1   : > { %8355 = vmatprep.subr.bf16.mxu1 %v10715_v3  ;;  %8478 = vmatprep.subr.bf16.mxu0 %v10718_v10  ;;  %v10777_v3 = vld [vmem:[%s13570_s18 + $0x254] ss:$48 sps:$4 sm:$0xff]   ;;  %v10772_v10 = vld [vmem:[%s13570_s18 + $0xea8] ss:$48 sps:$4 sm:$0xff]  }
 0x3f4   : > { %8356 = vmatpush1.bf16.msra.mxu1 %v10713_v5  ;;  %8479 = vmatpush1.bf16.msra.mxu0 %v10716_v6  ;;  %v10775_v5 = vld [vmem:[%s13570_s18 + $0x250] ss:$48 sps:$4 sm:$0xff]   ;;  %v10780_v6 = vld [vmem:[%s13570_s18 + $0xe4c] ss:$48 sps:$4 sm:$0xff]  }
 0x3f5   : > { %8357 = vmatprep.subr.bf16.mxu1 %v10721_v7  ;;  %8480 = vmatprep.subr.bf16.mxu0 %v10724_v8  ;;  %v10783_v7 = vld [vmem:[%s13570_s18 + $0x1f4] ss:$48 sps:$4 sm:$0xff]   ;;  %v10778_v8 = vld [vmem:[%s13570_s18 + $0xe48] ss:$48 sps:$4 sm:$0xff]  }
 0x3f7   : > { %v14215_v18 = vpop.f32.mrf.mxu0 }
 0x3f8   : > { %8358 = vmatpush1.bf16.msra.mxu1 %v10719_v13  ;;  %8481 = vmatpush1.bf16.msra.mxu0 %v10722_v14  ;;  %v10786_v13 = vld [vmem:[%s13570_s18 + $0xdec] ss:$48 sps:$4 sm:$0xff]   ;;  %v10789_v14 = vld [vmem:[%s13570_s18 + $0x194] ss:$48 sps:$4 sm:$0xff]  }
 0x3f9   : > { %v14218_v20 = vpop.f32.mrf.mxu0  ;;  %8359 = vmatprep.subr.bf16.mxu1 %v10727_v15  ;;  %10372 = vmatprep.subr.msk.bf16.mxu0 %vm8142_vm3, %v10361_v16  ;;  %v10784_v15 = vld [vmem:[%s13570_s18 + $0xde8] ss:$48 sps:$4 sm:$0xff]   ;;  %v10787_v16 = vld [vmem:[%s13570_s18 + $0x190] ss:$48 sps:$4 sm:$0xff]  }
 0x3fb   : > { %v8217_v26 = vpop.f32.mrf.mxu0 }
 0x3fc   : > { %8360 = vmatpush2.bf16.msra.mxu1 %v10725_v19  ;;  %8485 = vmatpush2.bf16.msra.mxu0 %v8150_v21  ;;  %v10795_v19 = vld [vmem:[%s13570_s18 + $0x134] ss:$48 sps:$4 sm:$0xff]   ;;  %v10790_v21 = vld [vmem:[%s13570_s18 + $0xd88] ss:$48 sps:$4 sm:$0xff]  }
 0x3fd   : > { %v8218_v29 = vpop.f32.mrf.mxu0  ;;  %8361 = vmatprep.subr.bf16.mxu1 %v10732_v24  ;;  %8486 = vmatprep.subr.bf16.mxu0 %v10735_v25  ;;  %v10793_v24 = vld [vmem:[%s13570_s18 + $0x130] ss:$48 sps:$4 sm:$0xff]   ;;  %v10798_v25 = vld [vmem:[%s13570_s18 + $0xd2c] ss:$48 sps:$4 sm:$0xff]   ;;  %v10801_v26 = vld [vmem:[%s13570_s18 + $0xd4] ss:$48 sps:$4 sm:$0xff]  }
 0x3fe   : > { %v10804_v29 = vld [vmem:[%s13570_s18 + $0xccc] ss:$48 sps:$4 sm:$0xff]  }
 0x400   : > { %8362 = vmatpush2.bf16.msra.mxu1 %v10730_v27  ;;  %8487 = vmatpush2.bf16.msra.mxu0 %v10733_v28  ;;  %v10796_v27 = vld [vmem:[%s13570_s18 + $0xd28] ss:$48 sps:$4 sm:$0xff]   ;;  %v10799_v28 = vld [vmem:[%s13570_s18 + $0xd0] ss:$48 sps:$4 sm:$0xff]  }
 0x401   : > { %8363 = vmatprep.subr.bf16.mxu1 %v10738_v30  ;;  %8488 = vmatprep.subr.bf16.mxu0 %v10741_v31  ;;  %v10807_v30 = vld [vmem:[%s13570_s18 + $0x74] ss:$48 sps:$4 sm:$0xff]   ;;  %v10802_v31 = vld [vmem:[%s13570_s18 + $0xcc8] ss:$48 sps:$4 sm:$0xff]  }
 0x404   : > { %8364 = vmatpush2.bf16.msra.mxu1 %v10736_v32  ;;  %8489 = vmatpush2.bf16.msra.mxu0 %v10739_v36  ;;  %v10805_v32 = vld [vmem:[%s13570_s18 + $0x70] ss:$48 sps:$4 sm:$0xff]   ;;  %v10810_v36 = vld [vmem:[%s13570_s18 + $0xc6c] ss:$48 sps:$4 sm:$0xff]  }
 0x405   : > { %8365 = vmatprep.subr.bf16.mxu1 %v10744_v37  ;;  %8490 = vmatprep.subr.bf16.mxu0 %v10747_v41  ;;  %v10813_v37 = vld [vmem:[%s13570_s18 + $0x14] ss:$48 sps:$4 sm:$0xff]  }
 0x406   : > { %v4324_v41 = vld [vmem:[%s14280_s14] sm:$0xff] }
 0x408   : > { %8366 = vmatpush2.bf16.msra.mxu1 %v10742_v45  ;;  %8491 = vmatpush2.bf16.msra.mxu0 %v10745_v48  ;;  %v10808_v45 = vld [vmem:[%s13570_s18 + $0xc68] ss:$48 sps:$4 sm:$0xff]   ;;  %v10811_v48 = vld [vmem:[%s13570_s18 + $0x10] ss:$48 sps:$4 sm:$0xff]  }
 0x409   : > { %8367 = vmatprep.subr.bf16.mxu1 %v10750_v49  ;;  %8492 = vmatprep.subr.bf16.mxu0 %v10753_v50  ;;  %v10816_v49 = vld [vmem:[%s13570_s18 + $0xc0c] ss:$48 sps:$4 sm:$0xff]   ;;  %v4331_v50 = vrot.slane %v4324_v41, %v13472_v43 }
 0x40c   : > { %8368 = vmatpush2.bf16.msra.mxu1 %v10748_v51  ;;  %8493 = vmatpush2.bf16.msra.mxu0 %v10751_v4  ;;  %v10819_v51 = vld [vmem:[%s13570_s18 + $0x5b4] ss:$48 sps:$4 sm:$0xff]   ;;  %v4335_v4 = vrot.slane %v4324_v41, %v13481_v46  ;;  %v10862_v41 = vld [vmem:[%s13570_s18 + $0xf08] ss:$48 sps:$4 sm:$0xff]  }
 0x40d   : > { %8369 = vmatprep.subr.bf16.mxu1 %v10756_v52  ;;  %8494 = vmatprep.subr.bf16.mxu0 %v10759_v53  ;;  %v10814_v52 = vld [vmem:[%s13570_s18 + $0xc08] ss:$48 sps:$4 sm:$0xff]   ;;  %v10817_v53 = vld [vmem:[%s13570_s18 + $0x5b0] ss:$48 sps:$4 sm:$0xff]  }
 0x410   : > { %8370 = vmatpush2.bf16.msra.mxu1 %v10754_v55  ;;  %8495 = vmatpush2.bf16.msra.mxu0 %v10757_v56  ;;  %v10822_v55 = vld [vmem:[%s13570_s18 + $0x11ac] ss:$48 sps:$4 sm:$0xff]   ;;  %v8214_v56 = vadd.f32 %v14215_v18, %v4331_v50  ;;  %v10868_v50 = vld [vmem:[%s13570_s18 + $0x8b0] ss:$48 sps:$4 sm:$0xff]  }
 0x411   : > { %8371 = vmatprep.subr.bf16.mxu1 %v10762_v58  ;;  %8496 = vmatprep.subr.bf16.mxu0 %v10765_v59  ;;  %v10825_v58 = vld [vmem:[%s13570_s18 + $0x554] ss:$48 sps:$4 sm:$0xff]  }
 0x414   : > { %8372 = vmatpush2.bf16.msra.mxu1 %v10760_v60  ;;  %8497 = vmatpush2.bf16.msra.mxu0 %v10763_v61  ;;  %v8216_v60 = vadd.f32 %v14218_v20, %v4335_v4  ;;  %v10876_v4 = vld [vmem:[%s13570_s18 + $0x854] ss:$48 sps:$4 sm:$0xff]  }
 0x415   : > { %8373 = vmatprep.subr.bf16.mxu1 %v10768_v62  ;;  %8507 = vmatprep.subr.bf16.mxu0 %v10771_v63  ;;  %v10820_v62 = vld [vmem:[%s13570_s18 + $0x11a8] ss:$48 sps:$4 sm:$0xff]  }
 0x417   : > { %8499 = vmatmul.mubr.bf16.vlgmr.msra.gmra.mxu0 %v14176_v39 }
 0x418   : > { %8374 = vmatpush2.bf16.msra.mxu1 %v10766_v0  ;;  %8508 = vmatpush1.bf16.msra.mxu0 %v10769_v1  ;;  %v10823_v0 = vld [vmem:[%s13570_s18 + $0x550] ss:$48 sps:$4 sm:$0xff]   ;;  %v10828_v1 = vld [vmem:[%s13570_s18 + $0x114c] ss:$48 sps:$4 sm:$0xff]  }
 0x419   : > { %8539 = vmatprep.mubr.bf16.mxu0 %v14027_v34  ;;  %8425 = vmatprep.subr.bf16.mxu1 %v10774_v2  ;;  %v10831_v2 = vld [vmem:[%s13570_s18 + $0x4f4] ss:$48 sps:$4 sm:$0xff]  }
 0x41a   : > { %8509 = vmatprep.subr.bf16.mxu0 %v10777_v3  ;;  %v10826_v3 = vld [vmem:[%s13570_s18 + $0x1148] ss:$48 sps:$4 sm:$0xff]  }
 0x41b   : > { %8376 = vmatmul.mubr.bf16.vlgmr.msra.gmra.mxu1 %v14029_v35 }
 0x41c   : > { %8426 = vmatpush1.bf16.msra.mxu1 %v10772_v10  ;;  %8457 = vmatprep.mubr.bf16.mxu1 %v14115_v22 }
 0x41d   : > { %8510 = vmatpush1.bf16.msra.mxu0 %v10775_v5  ;;  %8427 = vmatprep.subr.bf16.mxu1 %v10780_v6  ;;  %v10829_v5 = vld [vmem:[%s13570_s18 + $0x4f0] ss:$48 sps:$4 sm:$0xff]   ;;  %v10834_v6 = vld [vmem:[%s13570_s18 + $0x10ec] ss:$48 sps:$4 sm:$0xff]  }
 0x41e   : > { %8511 = vmatprep.subr.bf16.mxu0 %v10783_v7  ;;  %v10837_v7 = vld [vmem:[%s13570_s18 + $0x494] ss:$48 sps:$4 sm:$0xff]  }
 0x420   : > { %8428 = vmatpush1.bf16.msra.mxu1 %v10778_v8  ;;  %v10832_v8 = vld [vmem:[%s13570_s18 + $0x10e8] ss:$48 sps:$4 sm:$0xff]  }
 0x421   : > { %8512 = vmatpush1.bf16.msra.mxu0 %v10781_v12  ;;  %8429 = vmatprep.subr.bf16.mxu1 %v10786_v13  ;;  %v10835_v12 = vld [vmem:[%s13570_s18 + $0x490] ss:$48 sps:$4 sm:$0xff]   ;;  %v10840_v13 = vld [vmem:[%s13570_s18 + $0x108c] ss:$48 sps:$4 sm:$0xff]  }
 0x422   : > { %8513 = vmatprep.subr.bf16.mxu0 %v10789_v14  ;;  %v10843_v14 = vld [vmem:[%s13570_s18 + $0x434] ss:$48 sps:$4 sm:$0xff]  }
 0x424   : > { %8430 = vmatpush1.bf16.msra.mxu1 %v10784_v15  ;;  %v10838_v15 = vld [vmem:[%s13570_s18 + $0x1088] ss:$48 sps:$4 sm:$0xff]  }
 0x425   : > { %8514 = vmatpush1.bf16.msra.mxu0 %v10787_v16  ;;  %8431 = vmatprep.subr.bf16.mxu1 %v10792_v17  ;;  %v10841_v16 = vld [vmem:[%s13570_s18 + $0x430] ss:$48 sps:$4 sm:$0xff]   ;;  %v10846_v17 = vld [vmem:[%s13570_s18 + $0x102c] ss:$48 sps:$4 sm:$0xff]  }
 0x426   : > { %8515 = vmatprep.subr.bf16.mxu0 %v10795_v19  ;;  %v10849_v19 = vld [vmem:[%s13570_s18 + $0x3d4] ss:$48 sps:$4 sm:$0xff]  }
 0x428   : > { %8432 = vmatpush1.bf16.msra.mxu1 %v10790_v21  ;;  %v10844_v21 = vld [vmem:[%s13570_s18 + $0x1028] ss:$48 sps:$4 sm:$0xff]  }
 0x429   : > { %8516 = vmatpush1.bf16.msra.mxu0 %v10793_v24  ;;  %8433 = vmatprep.subr.bf16.mxu1 %v10798_v25  ;;  %v10847_v24 = vld [vmem:[%s13570_s18 + $0x3d0] ss:$48 sps:$4 sm:$0xff]   ;;  %v10852_v25 = vld [vmem:[%s13570_s18 + $0xfcc] ss:$48 sps:$4 sm:$0xff]  }
 0x42a   : > { %8517 = vmatprep.subr.bf16.mxu0 %v10801_v26  ;;  %v10855_v26 = vld [vmem:[%s13570_s18 + $0x374] ss:$48 sps:$4 sm:$0xff]  }
 0x42c   : > { %8434 = vmatpush1.bf16.msra.mxu1 %v10796_v27  ;;  %v10850_v27 = vld [vmem:[%s13570_s18 + $0xfc8] ss:$48 sps:$4 sm:$0xff]  }
 0x42d   : > { %8518 = vmatpush1.bf16.msra.mxu0 %v10799_v28  ;;  %8435 = vmatprep.subr.bf16.mxu1 %v10804_v29  ;;  %v10853_v28 = vld [vmem:[%s13570_s18 + $0x370] ss:$48 sps:$4 sm:$0xff]   ;;  %v10858_v29 = vld [vmem:[%s13570_s18 + $0xf6c] ss:$48 sps:$4 sm:$0xff]  }
 0x42e   : > { %8519 = vmatprep.subr.bf16.mxu0 %v10807_v30  ;;  %v10861_v30 = vld [vmem:[%s13570_s18 + $0x314] ss:$48 sps:$4 sm:$0xff]  }
 0x430   : > { %8436 = vmatpush1.bf16.msra.mxu1 %v10802_v31  ;;  %v10856_v31 = vld [vmem:[%s13570_s18 + $0xf68] ss:$48 sps:$4 sm:$0xff]  }
 0x431   : > { %8520 = vmatpush1.bf16.msra.mxu0 %v10805_v32  ;;  %8437 = vmatprep.subr.bf16.mxu1 %v10810_v36  ;;  %v10859_v32 = vld [vmem:[%s13570_s18 + $0x310] ss:$48 sps:$4 sm:$0xff]   ;;  %v10864_v36 = vld [vmem:[%s13570_s18 + $0xf0c] ss:$48 sps:$4 sm:$0xff]  }
 0x432   : > { %8521 = vmatprep.subr.bf16.mxu0 %v10813_v37  ;;  %v10867_v37 = vld [vmem:[%s13570_s18 + $0xeb4] ss:$48 sps:$4 sm:$0xff]  }
 0x434   : > { %8438 = vmatpush1.bf16.msra.mxu1 %v10808_v45  ;;  %v10865_v45 = vld [vmem:[%s13570_s18 + $0xeb0] ss:$48 sps:$4 sm:$0xff]  }
 0x435   : > { %8522 = vmatpush1.bf16.msra.mxu0 %v10811_v48  ;;  %8439 = vmatprep.subr.bf16.mxu1 %v10816_v49  ;;  %v10870_v48 = vld [vmem:[%s13570_s18 + $0x8b4] ss:$48 sps:$4 sm:$0xff]  }
 0x436   : > { %8523 = vmatprep.subr.bf16.mxu0 %v10819_v51  ;;  %v10873_v49 = vld [vmem:[%s13570_s18 + $0xe54] ss:$48 sps:$4 sm:$0xff]   ;;  %v10871_v51 = vld [vmem:[%s13570_s18 + $0xe50] ss:$48 sps:$4 sm:$0xff]  }
 0x437   : > { %v8254_v59 = vpop.f32.mrf.mxu1 }
 0x438   : > { %v14299_v61 = vadd.f32 %v8254_v59, %v8214_v56  ;;  %8440 = vmatpush1.bf16.msra.mxu1 %v10814_v52  ;;  %v10879_v52 = vld [vmem:[%s13570_s18 + $0xdf4] ss:$48 sps:$4 sm:$0xff]   ;;  %v10874_v56 = vld [vmem:[%s13570_s18 + $0x850] ss:$48 sps:$4 sm:$0xff]  }
 0x439   : > { %8524 = vmatpush2.bf16.msra.mxu0 %v10817_v53  ;;  %v8256_v63 = vpop.f32.mrf.mxu1  ;;  %8441 = vmatprep.subr.bf16.mxu1 %v10822_v55  ;;  %v10877_v59 = vld [vmem:[%s13570_s18 + $0xdf0] ss:$48 sps:$4 sm:$0xff]  }
 0x43a   : > { %v14304_v18 = vadd.f32 %v8256_v63, %v8216_v60  ;;  %8525 = vmatprep.subr.bf16.mxu0 %v10825_v58  ;;  %v10882_v60 = vld [vmem:[%s13570_s18 + $0x7f4] ss:$48 sps:$4 sm:$0xff]  }
 0x43b   : > { %v8258_v20 = vpop.f32.mrf.mxu1 }
 0x43c   : > { %8442 = vmatpush2.bf16.msra.mxu1 %v10820_v62  ;;  %v10888_v20 = vld [vmem:[%s13570_s18 + $0x794] ss:$48 sps:$4 sm:$0xff]  }
 0x43d   : > { %8526 = vmatpush2.bf16.msra.mxu0 %v10823_v0  ;;  %v8259_v10 = vpop.f32.mrf.mxu1  ;;  %8443 = vmatprep.subr.bf16.mxu1 %v10828_v1  ;;  %v10880_v0 = vld [vmem:[%s13570_s18 + $0x7f0] ss:$48 sps:$4 sm:$0xff]  }
 0x43e   : > { %8527 = vmatprep.subr.bf16.mxu0 %v10831_v2  ;;  %v10883_v2 = vld [vmem:[%s13570_s18 + $0xd90] ss:$48 sps:$4 sm:$0xff]  }
 0x43f   : > { %v10889_v10 = vld [vmem:[%s13570_s18 + $0xd30] ss:$48 sps:$4 sm:$0xff]  }
 0x440   : > { %8444 = vmatpush2.bf16.msra.mxu1 %v10826_v3  ;;  %v10891_v3 = vld [vmem:[%s13570_s18 + $0xd34] ss:$48 sps:$4 sm:$0xff]  }
 0x441   : > { %8528 = vmatpush2.bf16.msra.mxu0 %v10829_v5  ;;  %8445 = vmatprep.subr.bf16.mxu1 %v10834_v6  ;;  %v10894_v5 = vld [vmem:[%s13570_s18 + $0x734] ss:$48 sps:$4 sm:$0xff]  }
 0x442   : > { %8529 = vmatprep.subr.bf16.mxu0 %v10837_v7  ;;  %v10897_v6 = vld [vmem:[%s13570_s18 + $0xcd4] ss:$48 sps:$4 sm:$0xff]   ;;  %v10892_v7 = vld [vmem:[%s13570_s18 + $0x730] ss:$48 sps:$4 sm:$0xff]  }
 0x444   : > { %8446 = vmatpush2.bf16.msra.mxu1 %v10832_v8  ;;  %v10895_v8 = vld [vmem:[%s13570_s18 + $0xcd0] ss:$48 sps:$4 sm:$0xff]  }
 0x445   : > { %8530 = vmatpush2.bf16.msra.mxu0 %v10835_v12  ;;  %8447 = vmatprep.subr.bf16.mxu1 %v10840_v13  ;;  %v10900_v12 = vld [vmem:[%s13570_s18 + $0x6d4] ss:$48 sps:$4 sm:$0xff]  }
 0x446   : > { %8531 = vmatprep.subr.bf16.mxu0 %v10843_v14  ;;  %v10903_v13 = vld [vmem:[%s13570_s18 + $0xc74] ss:$48 sps:$4 sm:$0xff]   ;;  %v10898_v14 = vld [vmem:[%s13570_s18 + $0x6d0] ss:$48 sps:$4 sm:$0xff]  }
 0x448   : > { %8448 = vmatpush2.bf16.msra.mxu1 %v10838_v15  ;;  %v10901_v15 = vld [vmem:[%s13570_s18 + $0xc70] ss:$48 sps:$4 sm:$0xff]  }
 0x449   : > { %8532 = vmatpush2.bf16.msra.mxu0 %v10841_v16  ;;  %8449 = vmatprep.subr.bf16.mxu1 %v10846_v17  ;;  %v10906_v16 = vld [vmem:[%s13570_s18 + $0x674] ss:$48 sps:$4 sm:$0xff]  }
 0x44a   : > { %8533 = vmatprep.subr.bf16.mxu0 %v10849_v19  ;;  %v10909_v17 = vld [vmem:[%s13570_s18 + $0xc14] ss:$48 sps:$4 sm:$0xff]   ;;  %v10904_v19 = vld [vmem:[%s13570_s18 + $0x670] ss:$48 sps:$4 sm:$0xff]  }
 0x44c   : > { %8450 = vmatpush2.bf16.msra.mxu1 %v10844_v21  ;;  %v10907_v21 = vld [vmem:[%s13570_s18 + $0xc10] ss:$48 sps:$4 sm:$0xff]  }
 0x44d   : > { %8534 = vmatpush2.bf16.msra.mxu0 %v10847_v24  ;;  %8451 = vmatprep.subr.bf16.mxu1 %v10852_v25  ;;  %v10912_v24 = vld [vmem:[%s13570_s18 + $0x614] ss:$48 sps:$4 sm:$0xff]  }
 0x44e   : > { %8535 = vmatprep.subr.bf16.mxu0 %v10855_v26  ;;  %v10915_v25 = vld [vmem:[%s13570_s18 + $0x11b4] ss:$48 sps:$4 sm:$0xff]   ;;  %v10910_v26 = vld [vmem:[%s13570_s18 + $0x610] ss:$48 sps:$4 sm:$0xff]  }
 0x450   : > { %8452 = vmatpush2.bf16.msra.mxu1 %v10850_v27  ;;  %v10913_v27 = vld [vmem:[%s13570_s18 + $0x11b0] ss:$48 sps:$4 sm:$0xff]  }
 0x451   : > { %8536 = vmatpush2.bf16.msra.mxu0 %v10853_v28  ;;  %8453 = vmatprep.subr.bf16.mxu1 %v10858_v29  ;;  %v10918_v28 = vld [vmem:[%s13570_s18 + $0xbb4] ss:$48 sps:$4 sm:$0xff]  }
 0x452   : > { %8537 = vmatprep.subr.bf16.mxu0 %v10861_v30  ;;  %v10921_v29 = vld [vmem:[%s13570_s18 + $0x1154] ss:$48 sps:$4 sm:$0xff]   ;;  %v10916_v30 = vld [vmem:[%s13570_s18 + $0xbb0] ss:$48 sps:$4 sm:$0xff]  }
 0x454   : > { %8454 = vmatpush2.bf16.msra.mxu1 %v10856_v31  ;;  %v10919_v31 = vld [vmem:[%s13570_s18 + $0x1150] ss:$48 sps:$4 sm:$0xff]  }
 0x455   : > { %8538 = vmatpush2.bf16.msra.mxu0 %v10859_v32  ;;  %8455 = vmatprep.subr.bf16.mxu1 %v10864_v36  ;;  %v10924_v32 = vld [vmem:[%s13570_s18 + $0xb54] ss:$48 sps:$4 sm:$0xff]  }
 0x456   : > { %8589 = vmatprep.subr.bf16.mxu0 %v10867_v37  ;;  %v10927_v36 = vld [vmem:[%s13570_s18 + $0x10f4] ss:$48 sps:$4 sm:$0xff]   ;;  %v10922_v37 = vld [vmem:[%s13570_s18 + $0xb50] ss:$48 sps:$4 sm:$0xff]  }
 0x458   : > { %8540 = vmatmul.mubr.bf16.vlgmr.msra.gmra.mxu0 %v14029_v35  ;;  %8456 = vmatpush2.bf16.msra.mxu1 %v10862_v41  ;;  %v10925_v41 = vld [vmem:[%s13570_s18 + $0x10f0] ss:$48 sps:$4 sm:$0xff]  }
 0x459   : > { %8590 = vmatpush1.bf16.msra.mxu0 %v10865_v45  ;;  %8621 = vmatprep.mubr.bf16.mxu0 %v14115_v22  ;;  %v10930_v45 = vld [vmem:[%s13570_s18 + $0xaf4] ss:$48 sps:$4 sm:$0xff]  }
 0x45a   : > { %8548 = vmatprep.subr.bf16.mxu1 %v10870_v48  ;;  %8591 = vmatprep.subr.bf16.mxu0 %v10873_v49  ;;  %v10933_v48 = vld [vmem:[%s13570_s18 + $0x1094] ss:$48 sps:$4 sm:$0xff]   ;;  %v10928_v49 = vld [vmem:[%s13570_s18 + $0xaf0] ss:$48 sps:$4 sm:$0xff]  }
 0x45b   : > { %8458 = vmatmul.mubr.bf16.vlgmr.msra.gmra.mxu1 %v14117_v23  ;;  %v8295_v53 = vpop.f32.mrf.mxu0 }
 0x45c   : > { %v14343_v55 = vadd.f32 %v8295_v53, %v14299_v61  ;;  %8549 = vmatpush1.bf16.msra.mxu1 %v10868_v50  ;;  %8580 = vmatprep.mubr.bf16.mxu1 %v14079_v38  ;;  %v10885_v61 = vld [vmem:[%s13570_s18 + $0xd94] ss:$48 sps:$4 sm:$0xff]   ;;  %v10931_v50 = vld [vmem:[%s13570_s18 + $0x1090] ss:$48 sps:$4 sm:$0xff]  }
 0x45d   : > { %8592 = vmatpush1.bf16.msra.mxu0 %v10871_v51  ;;  %v8297_v58 = vpop.f32.mrf.mxu0  ;;  %8550 = vmatprep.subr.bf16.mxu1 %v10876_v4  ;;  %v10936_v51 = vld [vmem:[%s13570_s18 + $0xa94] ss:$48 sps:$4 sm:$0xff]   ;;  %v10937_v53 = vld [vmem:[%s13570_s18 + $0x1030] ss:$48 sps:$4 sm:$0xff]  }
 0x45e   : > { %v14350_v62 = vadd.f32 %v8297_v58, %v14304_v18  ;;  %8593 = vmatprep.subr.bf16.mxu0 %v10879_v52  ;;  %v10886_v18 = vld [vmem:[%s13570_s18 + $0x790] ss:$48 sps:$4 sm:$0xff]   ;;  %v10939_v4 = vld [vmem:[%s13570_s18 + $0x1034] ss:$48 sps:$4 sm:$0xff]  }
 0x45f   : > { %v8299_v63 = vpop.f32.mrf.mxu0  ;;  %v10934_v52 = vld [vmem:[%s13570_s18 + $0xa90] ss:$48 sps:$4 sm:$0xff]   ;;  %v10945_v58 = vld [vmem:[%s13570_s18 + $0xfd4] ss:$48 sps:$4 sm:$0xff]  }
 0x460   : > { %8551 = vmatpush1.bf16.msra.mxu1 %v10874_v56  ;;  %v10942_v56 = vld [vmem:[%s13570_s18 + $0xa34] ss:$48 sps:$4 sm:$0xff]  }
 0x461   : > { %8594 = vmatpush1.bf16.msra.mxu0 %v10877_v59  ;;  %v8300_v1 = vpop.f32.mrf.mxu0  ;;  %8552 = vmatprep.subr.bf16.mxu1 %v10882_v60  ;;  %v10940_v59 = vld [vmem:[%s13570_s18 + $0xa30] ss:$48 sps:$4 sm:$0xff]   ;;  %v10951_v63 = vld [vmem:[%s13570_s18 + $0xf74] ss:$48 sps:$4 sm:$0xff]  }
 0x462   : > { %8595 = vmatprep.subr.bf16.mxu0 %v10885_v61  ;;  %v10943_v60 = vld [vmem:[%s13570_s18 + $0xfd0] ss:$48 sps:$4 sm:$0xff]   ;;  %v10948_v61 = vld [vmem:[%s13570_s18 + $0x9d4] ss:$48 sps:$4 sm:$0xff]  }
 0x463   : > { %v10949_v1 = vld [vmem:[%s13570_s18 + $0xf70] ss:$48 sps:$4 sm:$0xff]  }
 0x464   : > { %8553 = vmatpush1.bf16.msra.mxu1 %v10880_v0  ;;  %v10946_v0 = vld [vmem:[%s13570_s18 + $0x9d0] ss:$48 sps:$4 sm:$0xff]  }
 0x465   : > { %8596 = vmatpush1.bf16.msra.mxu0 %v10883_v2  ;;  %8554 = vmatprep.subr.bf16.mxu1 %v10888_v20  ;;  %v10954_v2 = vld [vmem:[%s13570_s18 + $0x974] ss:$48 sps:$4 sm:$0xff]  }
 0x466   : > { %8597 = vmatprep.subr.bf16.mxu0 %v10891_v3  ;;  %v10957_v20 = vld [vmem:[%s13570_s18 + $0xf14] ss:$48 sps:$4 sm:$0xff]   ;;  %v10952_v3 = vld [vmem:[%s13570_s18 + $0x970] ss:$48 sps:$4 sm:$0xff]  }
 0x468   : > { %8555 = vmatpush1.bf16.msra.mxu1 %v10886_v18  ;;  %v10955_v18 = vld [vmem:[%s13570_s18 + $0xf10] ss:$48 sps:$4 sm:$0xff]  }
 0x469   : > { %8598 = vmatpush1.bf16.msra.mxu0 %v10889_v10  ;;  %8556 = vmatprep.subr.bf16.mxu1 %v10894_v5  ;;  %v10960_v10 = vld [vmem:[%s13570_s18 + $0x914] ss:$48 sps:$4 sm:$0xff]   ;;  %v10963_v5 = vld [vmem:[%s13570_s18 + $0x8bc] ss:$48 sps:$4 sm:$0xff]  }
 0x46a   : > { %8599 = vmatprep.subr.bf16.mxu0 %v10897_v6  ;;  %v10958_v6 = vld [vmem:[%s13570_s18 + $0x910] ss:$48 sps:$4 sm:$0xff]  }
 0x46c   : > { %8557 = vmatpush1.bf16.msra.mxu1 %v10892_v7  ;;  %v10961_v7 = vld [vmem:[%s13570_s18 + $0x8b8] ss:$48 sps:$4 sm:$0xff]  }
 0x46d   : > { %8600 = vmatpush1.bf16.msra.mxu0 %v10895_v8  ;;  %8558 = vmatprep.subr.bf16.mxu1 %v10900_v12  ;;  %v10966_v8 = vld [vmem:[%s13570_s18 + $0x14b4] ss:$48 sps:$4 sm:$0xff]   ;;  %v10969_v12 = vld [vmem:[%s13570_s18 + $0x85c] ss:$48 sps:$4 sm:$0xff]  }
 0x46e   : > { %8601 = vmatprep.subr.bf16.mxu0 %v10903_v13  ;;  %v10964_v13 = vld [vmem:[%s13570_s18 + $0x14b0] ss:$48 sps:$4 sm:$0xff]  }
 0x470   : > { %8559 = vmatpush1.bf16.msra.mxu1 %v10898_v14  ;;  %v10967_v14 = vld [vmem:[%s13570_s18 + $0x858] ss:$48 sps:$4 sm:$0xff]  }
 0x471   : > { %8602 = vmatpush1.bf16.msra.mxu0 %v10901_v15  ;;  %8560 = vmatprep.subr.bf16.mxu1 %v10906_v16  ;;  %v10972_v15 = vld [vmem:[%s13570_s18 + $0x1454] ss:$48 sps:$4 sm:$0xff]   ;;  %v10975_v16 = vld [vmem:[%s13570_s18 + $0x7fc] ss:$48 sps:$4 sm:$0xff]  }
 0x472   : > { %8603 = vmatprep.subr.bf16.mxu0 %v10909_v17 }
 0x474   : > { %8561 = vmatpush1.bf16.msra.mxu1 %v10904_v19 }
 0x475   : > { %8604 = vmatpush1.bf16.msra.mxu0 %v10907_v21  ;;  %8562 = vmatprep.subr.bf16.mxu1 %v10912_v24  ;;  %v10970_v24 = vld [vmem:[%s13570_s18 + $0x1450] ss:$48 sps:$4 sm:$0xff]  }
 0x476   : > { %8605 = vmatprep.subr.bf16.mxu0 %v10915_v25 }
 0x478   : > { %8563 = vmatpush1.bf16.msra.mxu1 %v10910_v26 }
 0x479   : > { %8606 = vmatpush2.bf16.msra.mxu0 %v10913_v27  ;;  %8564 = vmatprep.subr.bf16.mxu1 %v10918_v28  ;;  %v10973_v27 = vld [vmem:[%s13570_s18 + $0x7f8] ss:$48 sps:$4 sm:$0xff]   ;;  %v10978_v28 = vld [vmem:[%s13570_s18 + $0x13f4] ss:$48 sps:$4 sm:$0xff]  }
 0x47a   : > { %8607 = vmatprep.subr.bf16.mxu0 %v10921_v29 }
 0x47c   : > { %8565 = vmatpush2.bf16.msra.mxu1 %v10916_v30 }
 0x47d   : > { %8608 = vmatpush2.bf16.msra.mxu0 %v10919_v31  ;;  %8566 = vmatprep.subr.bf16.mxu1 %v10924_v32 }
 0x47e   : > { %8609 = vmatprep.subr.bf16.mxu0 %v10927_v36 }
 0x480   : > { %8567 = vmatpush2.bf16.msra.mxu1 %v10922_v37 }
 0x481   : > { %8610 = vmatpush2.bf16.msra.mxu0 %v10925_v41  ;;  %8568 = vmatprep.subr.bf16.mxu1 %v10930_v45  ;;  %v10976_v41 = vld [vmem:[%s13570_s18 + $0x13f0] ss:$48 sps:$4 sm:$0xff]  }
 0x482   : > { %8611 = vmatprep.subr.bf16.mxu0 %v10933_v48 }
 0x484   : > { %8569 = vmatpush2.bf16.msra.mxu1 %v10928_v49  ;;  %v10979_v49 = vld [vmem:[%s13570_s18 + $0x798] ss:$48 sps:$4 sm:$0xff]  }
 0x485   : > { %8612 = vmatpush2.bf16.msra.mxu0 %v10931_v50  ;;  %8570 = vmatprep.subr.bf16.mxu1 %v10936_v51  ;;  %v10987_v51 = vld [vmem:[%s13570_s18 + $0x73c] ss:$48 sps:$4 sm:$0xff]  }
 0x486   : > { %8613 = vmatprep.subr.bf16.mxu0 %v10939_v4  ;;  %v10982_v4 = vld [vmem:[%s13570_s18 + $0x1390] ss:$48 sps:$4 sm:$0xff]  }
 0x488   : > { %8571 = vmatpush2.bf16.msra.mxu1 %v10934_v52  ;;  %v10985_v52 = vld [vmem:[%s13570_s18 + $0x738] ss:$48 sps:$4 sm:$0xff]  }
 0x489   : > { %8614 = vmatpush2.bf16.msra.mxu0 %v10937_v53  ;;  %8572 = vmatprep.subr.bf16.mxu1 %v10942_v56  ;;  %v10990_v53 = vld [vmem:[%s13570_s18 + $0x1334] ss:$48 sps:$4 sm:$0xff]   ;;  %v10993_v56 = vld [vmem:[%s13570_s18 + $0x6dc] ss:$48 sps:$4 sm:$0xff]  }
 0x48a   : > { %8615 = vmatprep.subr.bf16.mxu0 %v10945_v58  ;;  %v10988_v58 = vld [vmem:[%s13570_s18 + $0x1330] ss:$48 sps:$4 sm:$0xff]  }
 0x48c   : > { %8573 = vmatpush2.bf16.msra.mxu1 %v10940_v59  ;;  %v10991_v59 = vld [vmem:[%s13570_s18 + $0x6d8] ss:$48 sps:$4 sm:$0xff]  }
 0x48d   : > { %8616 = vmatpush2.bf16.msra.mxu0 %v10943_v60  ;;  %8574 = vmatprep.subr.bf16.mxu1 %v10948_v61  ;;  %v10996_v60 = vld [vmem:[%s13570_s18 + $0x12d4] ss:$48 sps:$4 sm:$0xff]   ;;  %v10999_v61 = vld [vmem:[%s13570_s18 + $0x67c] ss:$48 sps:$4 sm:$0xff]  }
 0x48e   : > { %8617 = vmatprep.subr.bf16.mxu0 %v10951_v63  ;;  %v10994_v63 = vld [vmem:[%s13570_s18 + $0x12d0] ss:$48 sps:$4 sm:$0xff]  }
 0x490   : > { %8575 = vmatpush2.bf16.msra.mxu1 %v10946_v0  ;;  %v10997_v0 = vld [vmem:[%s13570_s18 + $0x678] ss:$48 sps:$4 sm:$0xff]  }
 0x491   : > { %8618 = vmatpush2.bf16.msra.mxu0 %v10949_v1  ;;  %8576 = vmatprep.subr.bf16.mxu1 %v10954_v2  ;;  %v11002_v1 = vld [vmem:[%s13570_s18 + $0x1274] ss:$48 sps:$4 sm:$0xff]   ;;  %v11005_v2 = vld [vmem:[%s13570_s18 + $0x61c] ss:$48 sps:$4 sm:$0xff]  }
 0x492   : > { %8619 = vmatprep.subr.bf16.mxu0 %v10957_v20 }
 0x494   : > { %8577 = vmatpush2.bf16.msra.mxu1 %v10952_v3 }
 0x495   : > { %8620 = vmatpush2.bf16.msra.mxu0 %v10955_v18  ;;  %8578 = vmatprep.subr.bf16.mxu1 %v10960_v10  ;;  %v11000_v18 = vld [vmem:[%s13570_s18 + $0x1270] ss:$48 sps:$4 sm:$0xff]  }
 0x496   : > { %8712 = vmatprep.subr.bf16.mxu0 %v10963_v5  ;;  %v11003_v5 = vld [vmem:[%s13570_s18 + $0x618] ss:$48 sps:$4 sm:$0xff]  }
 0x498   : > { %8622 = vmatmul.mubr.bf16.vlgmr.msra.gmra.mxu0 %v14117_v23  ;;  %8579 = vmatpush2.bf16.msra.mxu1 %v10958_v6  ;;  %v11008_v6 = vld [vmem:[%s13570_s18 + $0x1214] ss:$48 sps:$4 sm:$0xff]  }
 0x499   : > { %8713 = vmatpush1.bf16.msra.mxu0 %v10961_v7  ;;  %8744 = vmatprep.mubr.bf16.mxu0 %v14079_v38 }
 0x49a   : > { %8630 = vmatprep.subr.bf16.mxu1 %v10966_v8  ;;  %8714 = vmatprep.subr.bf16.mxu0 %v10969_v12  ;;  %v11011_v8 = vld [vmem:[%s13570_s18 + $0xbbc] ss:$48 sps:$4 sm:$0xff]   ;;  %v4320_v12 = vld [vmem:[%s13570_s18 + $0x1750] sm:$0xff] }
 0x49b   : > { %v14415_v17 = vpop.f32.mrf.mxu0  ;;  %8581 = vmatmul.mubr.bf16.vlgmr.msra.gmra.mxu1 %v14082_v40  ;;  %v8336_v19 = vpop.f32.mrf.mxu1 }
 0x49c   : > { %v8337_v21 = vadd.f32 %v8336_v19, %v14343_v55  ;;  %8631 = vmatpush1.bf16.msra.mxu1 %v10964_v13  ;;  %10375 = vmatprep.mubr.msk.bf16.mxu1 %vm8138_vm4, %v14172_v33  ;;  %v10981_v55 = vld [vmem:[%s13570_s18 + $0x79c] ss:$48 sps:$4 sm:$0xff]   ;;  %v11006_v13 = vld [vmem:[%s13570_s18 + $0x1210] ss:$48 sps:$4 sm:$0xff]  }
 0x49d   : > { %8715 = vmatpush1.bf16.msra.mxu0 %v10967_v14  ;;  %v14422_v25 = vpop.f32.mrf.mxu0  ;;  %v8338_v26 = vpop.f32.mrf.mxu1  ;;  %8632 = vmatprep.subr.bf16.mxu1 %v10972_v15  ;;  %v11009_v14 = vld [vmem:[%s13570_s18 + $0xbb8] ss:$48 sps:$4 sm:$0xff]   ;;  %v10363_v15 = vcombine.high %v4320_v12, %v4320_v12  ;;  %v11015_v19 = vld [vmem:[%s13570_s18 + $0xb5c] ss:$48 sps:$4 sm:$0xff]  }
 0x49e   : > { %v9163_v29 = vsub.f32 0.0, %v8337_v21  ;;  %v8339_v30 = vadd.f32 %v8338_v26, %v14350_v62  ;;  %8716 = vmatprep.subr.bf16.mxu0 %v10975_v16  ;;  %v10984_v62 = vld [vmem:[%s13570_s18 + $0x1394] ss:$48 sps:$4 sm:$0xff]   ;;  %v10362_v16 = vcombine.low %v4320_v12, %v4320_v12  ;;  %v11013_v21 = vld [vmem:[%s13570_s18 + $0xb58] ss:$48 sps:$4 sm:$0xff]  }
 0x49f   : > { %v8422_v31 = vpop.f32.mrf.mxu0  ;;  %v8340_v32 = vpop.f32.mrf.mxu1  ;;  %v11019_v26 = vld [vmem:[%s13570_s18 + $0x16f4] ss:$48 sps:$4 sm:$0xff]   ;;  %v11067_v12 = vld [vmem:[%s13570_s18 + $0x1fc] ss:$48 sps:$4 sm:$0xff]  }
 0x4a0   : > { %v9175_v36 = vmul.f32 1.442695, %v9163_v29  ;;  %v9164_v37 = vsub.f32 0.0, %v8339_v30  ;;  %8633 = vmatpush1.bf16.msra.mxu1 %v10970_v24  ;;  %v8156_v24 = vsel %vm8142_vm3, %v10362_v16, 0  ;;  %v11020_v29 = vld [vmem:[%s13570_s18 + $0xaf8] ss:$48 sps:$4 sm:$0xff]  }
 0x4a1   : > { %8717 = vmatpush1.bf16.msra.mxu0 %v10973_v27  ;;  %v8423_v45 = vpop.f32.mrf.mxu0  ;;  %v8341_v48 = vpop.f32.mrf.mxu1  ;;  %8634 = vmatprep.subr.bf16.mxu1 %v10978_v28  ;;  %v11022_v27 = vld [vmem:[%s13570_s18 + $0xafc] ss:$48 sps:$4 sm:$0xff]   ;;  %v11017_v28 = vld [vmem:[%s13570_s18 + $0x16f0] ss:$48 sps:$4 sm:$0xff]   ;;  %v11025_v30 = vld [vmem:[%s13570_s18 + $0x1694] ss:$48 sps:$4 sm:$0xff]  }
 0x4a2   : > { %11569 = vpow2.f32 %v9175_v36  ;;  %v9177_v50 = vmul.f32 1.442695, %v9164_v37  ;;  %8718 = vmatprep.subr.bf16.mxu0 %v10981_v55  ;;  %v11028_v55 = vld [vmem:[%s13570_s18 + $0xa9c] ss:$48 sps:$4 sm:$0xff]   ;;  %v11023_v32 = vld [vmem:[%s13570_s18 + $0x1690] ss:$48 sps:$4 sm:$0xff]  }
 0x4a3   : > { %v11026_v37 = vld [vmem:[%s13570_s18 + $0xa98] ss:$48 sps:$4 sm:$0xff]   ;;  %v11034_v45 = vld [vmem:[%s13570_s18 + $0xa3c] ss:$48 sps:$4 sm:$0xff]  }
 0x4a4   : > { %11571 = vpow2.f32 %v9177_v50  ;;  %8635 = vmatpush1.bf16.msra.mxu1 %v10976_v41  ;;  %v11031_v41 = vld [vmem:[%s13570_s18 + $0x1634] ss:$48 sps:$4 sm:$0xff]   ;;  %v11065_v16 = vld [vmem:[%s13570_s18 + $0x1f8] ss:$48 sps:$4 sm:$0xff]  }
 0x4a5   : > { %8719 = vmatpush1.bf16.msra.mxu0 %v10979_v49  ;;  %8636 = vmatprep.subr.bf16.mxu1 %v10984_v62  ;;  %v11029_v49 = vld [vmem:[%s13570_s18 + $0x1630] ss:$48 sps:$4 sm:$0xff]   ;;  %v11032_v62 = vld [vmem:[%s13570_s18 + $0xa38] ss:$48 sps:$4 sm:$0xff]   ;;  %v11037_v50 = vld [vmem:[%s13570_s18 + $0x15d4] ss:$48 sps:$4 sm:$0xff]  }
 0x4a6   : > { %8720 = vmatprep.subr.bf16.mxu0 %v10987_v51  ;;  %v11040_v51 = vld [vmem:[%s13570_s18 + $0x9dc] ss:$48 sps:$4 sm:$0xff]  }
 0x4a8   : > { %8637 = vmatpush1.bf16.msra.mxu1 %v10982_v4  ;;  %v11035_v4 = vld [vmem:[%s13570_s18 + $0x15d0] ss:$48 sps:$4 sm:$0xff]  }
 0x4a9   : > { %8721 = vmatpush1.bf16.msra.mxu0 %v10985_v52  ;;  %8638 = vmatprep.subr.bf16.mxu1 %v10990_v53  ;;  %v11038_v52 = vld [vmem:[%s13570_s18 + $0x9d8] ss:$48 sps:$4 sm:$0xff]   ;;  %v11043_v53 = vld [vmem:[%s13570_s18 + $0x1574] ss:$48 sps:$4 sm:$0xff]  }
 0x4aa   : > { %8722 = vmatprep.subr.bf16.mxu0 %v10993_v56  ;;  %v11046_v56 = vld [vmem:[%s13570_s18 + $0x97c] ss:$48 sps:$4 sm:$0xff]  }
 0x4ac   : > { %8639 = vmatpush1.bf16.msra.mxu1 %v10988_v58  ;;  %v11041_v58 = vld [vmem:[%s13570_s18 + $0x1570] ss:$48 sps:$4 sm:$0xff]  }
 0x4ad   : > { %8723 = vmatpush1.bf16.msra.mxu0 %v10991_v59  ;;  %8640 = vmatprep.subr.bf16.mxu1 %v10996_v60  ;;  %v11044_v59 = vld [vmem:[%s13570_s18 + $0x978] ss:$48 sps:$4 sm:$0xff]   ;;  %v11049_v60 = vld [vmem:[%s13570_s18 + $0x1514] ss:$48 sps:$4 sm:$0xff]  }
 0x4ae   : > { %8724 = vmatprep.subr.bf16.mxu0 %v10999_v61  ;;  %v11052_v61 = vld [vmem:[%s13570_s18 + $0x91c] ss:$48 sps:$4 sm:$0xff]  }
 0x4af   : > { %v11570_v20 = vpop.eup %11569 }
 0x4b0   : > { %v9199_v3 = vadd.f32 1.0, %v11570_v20  ;;  %8641 = vmatpush1.bf16.msra.mxu1 %v10994_v63  ;;  %v11047_v63 = vld [vmem:[%s13570_s18 + $0x1510] ss:$48 sps:$4 sm:$0xff]   ;;  %v11053_v20 = vld [vmem:[%s13570_s18 + $0x2b8] ss:$48 sps:$4 sm:$0xff]  }
 0x4b1   : > { %v11572_v10 = vpop.eup %11571  ;;  %8725 = vmatpush1.bf16.msra.mxu0 %v10997_v0  ;;  %8642 = vmatprep.subr.bf16.mxu1 %v11002_v1  ;;  %v11050_v0 = vld [vmem:[%s13570_s18 + $0x918] ss:$48 sps:$4 sm:$0xff]   ;;  %v11055_v1 = vld [vmem:[%s13570_s18 + $0x2bc] ss:$48 sps:$4 sm:$0xff]  }
 0x4b2   : > { %v9200_v7 = vadd.f32 1.0, %v11572_v10  ;;  %8726 = vmatprep.subr.bf16.mxu0 %v11005_v2  ;;  %11573 = vrcp.f32 %v9199_v3  ;;  %v11058_v2 = vld [vmem:[%s13570_s18 + $0x14bc] ss:$48 sps:$4 sm:$0xff]   ;;  %v11056_v3 = vld [vmem:[%s13570_s18 + $0x14b8] ss:$48 sps:$4 sm:$0xff]  }
 0x4b4   : > { %11575 = vrcp.f32 %v9200_v7  ;;  %8643 = vmatpush1.bf16.msra.mxu1 %v11000_v18  ;;  %v11061_v18 = vld [vmem:[%s13570_s18 + $0x25c] ss:$48 sps:$4 sm:$0xff]  }
 0x4b5   : > { %8727 = vmatpush1.bf16.msra.mxu0 %v11003_v5  ;;  %8644 = vmatprep.subr.bf16.mxu1 %v11008_v6  ;;  %v11064_v5 = vld [vmem:[%s13570_s18 + $0x145c] ss:$48 sps:$4 sm:$0xff]   ;;  %v11059_v6 = vld [vmem:[%s13570_s18 + $0x258] ss:$48 sps:$4 sm:$0xff]  }
 0x4b6   : > { %8728 = vmatprep.subr.bf16.mxu0 %v11011_v8  ;;  %v11062_v8 = vld [vmem:[%s13570_s18 + $0x1458] ss:$48 sps:$4 sm:$0xff]  }
 0x4b8   : > { %8645 = vmatpush1.bf16.msra.mxu1 %v11006_v13  ;;  %v11070_v13 = vld [vmem:[%s13570_s18 + $0x13fc] ss:$48 sps:$4 sm:$0xff]  }
 0x4b9   : > { %8729 = vmatpush2.bf16.msra.mxu0 %v11009_v14  ;;  %10374 = vmatprep.subr.msk.bf16.mxu1 %vm8142_vm3, %v10363_v15 }
 0x4ba   : > { %8730 = vmatprep.subr.bf16.mxu0 %v11015_v19 }
 0x4bc   : > { %8649 = vmatpush2.bf16.msra.mxu1 %v8156_v24  ;;  %v11068_v24 = vld [vmem:[%s13570_s18 + $0x13f8] ss:$48 sps:$4 sm:$0xff]  }
 0x4bd   : > { %8731 = vmatpush2.bf16.msra.mxu0 %v11013_v21  ;;  %8650 = vmatprep.subr.bf16.mxu1 %v11019_v26  ;;  %v11073_v26 = vld [vmem:[%s13570_s18 + $0x19c] ss:$48 sps:$4 sm:$0xff]  }
 0x4be   : > { %8732 = vmatprep.subr.bf16.mxu0 %v11022_v27  ;;  %v11076_v27 = vld [vmem:[%s13570_s18 + $0x139c] ss:$48 sps:$4 sm:$0xff]  }
 0x4bf   : > { %v14461_v31 = vpop.eup %11573 }
 0x4c0   : > { %8651 = vmatpush2.bf16.msra.mxu1 %v11017_v28 }
 0x4c1   : > { %v14464_v36 = vpop.eup %11575  ;;  %8733 = vmatpush2.bf16.msra.mxu0 %v11020_v29  ;;  %8652 = vmatprep.subr.bf16.mxu1 %v11025_v30  ;;  %v11071_v29 = vld [vmem:[%s13570_s18 + $0x198] ss:$48 sps:$4 sm:$0xff]  }
 0x4c2   : > { %8734 = vmatprep.subr.bf16.mxu0 %v11028_v55  ;;  %v9247_v48 = vcombine.low %v14461_v31, %v14464_v36  ;;  %v11074_v55 = vld [vmem:[%s13570_s18 + $0x1398] ss:$48 sps:$4 sm:$0xff]   ;;  %v11235_v36 = vld [vmem:[%s13570_s18 + $0x320] ss:$48 sps:$4 sm:$0xff]  }
 0x4c3   : > { %v11232_v31 = vld [vmem:[%s13570_s18 + $0xf78] ss:$48 sps:$4 sm:$0xff]  }
 0x4c4   : > { %8653 = vmatpush2.bf16.msra.mxu1 %v11023_v32  ;;  %v11079_v32 = vld [vmem:[%s13570_s18 + $0x13c] ss:$48 sps:$4 sm:$0xff]  }
 0x4c5   : > { %8735 = vmatpush2.bf16.msra.mxu0 %v11026_v37  ;;  %8654 = vmatprep.subr.bf16.mxu1 %v11031_v41  ;;  %v11082_v37 = vld [vmem:[%s13570_s18 + $0x133c] ss:$48 sps:$4 sm:$0xff]   ;;  %v11077_v41 = vld [vmem:[%s13570_s18 + $0x138] ss:$48 sps:$4 sm:$0xff]  }
 0x4c6   : > { %8736 = vmatprep.subr.bf16.mxu0 %v11034_v45  ;;  %v11080_v45 = vld [vmem:[%s13570_s18 + $0x1338] ss:$48 sps:$4 sm:$0xff]  }
 0x4c8   : > { %8655 = vmatpush2.bf16.msra.mxu1 %v11029_v49  ;;  %v11085_v49 = vld [vmem:[%s13570_s18 + $0xdc] ss:$48 sps:$4 sm:$0xff]  }
 0x4c9   : > { %8737 = vmatpush2.bf16.msra.mxu0 %v11032_v62  ;;  %8656 = vmatprep.subr.bf16.mxu1 %v11037_v50  ;;  %v11088_v62 = vld [vmem:[%s13570_s18 + $0x12dc] ss:$48 sps:$4 sm:$0xff]   ;;  %v11083_v50 = vld [vmem:[%s13570_s18 + $0xd8] ss:$48 sps:$4 sm:$0xff]  }
 0x4ca   : > { %8738 = vmatprep.subr.bf16.mxu0 %v11040_v51  ;;  %v11086_v51 = vld [vmem:[%s13570_s18 + $0x12d8] ss:$48 sps:$4 sm:$0xff]  }
 0x4cc   : > { %8657 = vmatpush2.bf16.msra.mxu1 %v11035_v4  ;;  %v11091_v4 = vld [vmem:[%s13570_s18 + $0x7c] ss:$48 sps:$4 sm:$0xff]  }
 0x4cd   : > { %8739 = vmatpush2.bf16.msra.mxu0 %v11038_v52  ;;  %8658 = vmatprep.subr.bf16.mxu1 %v11043_v53  ;;  %v11094_v52 = vld [vmem:[%s13570_s18 + $0x127c] ss:$48 sps:$4 sm:$0xff]   ;;  %v11089_v53 = vld [vmem:[%s13570_s18 + $0x78] ss:$48 sps:$4 sm:$0xff]  }
 0x4ce   : > { %8740 = vmatprep.subr.bf16.mxu0 %v11046_v56  ;;  %v11092_v56 = vld [vmem:[%s13570_s18 + $0x1278] ss:$48 sps:$4 sm:$0xff]  }
 0x4d0   : > { %8659 = vmatpush2.bf16.msra.mxu1 %v11041_v58  ;;  %v11097_v58 = vld [vmem:[%s13570_s18 + $0x1c] ss:$48 sps:$4 sm:$0xff]  }
 0x4d1   : > { %8741 = vmatpush2.bf16.msra.mxu0 %v11044_v59  ;;  %8660 = vmatprep.subr.bf16.mxu1 %v11049_v60  ;;  %v11100_v59 = vld [vmem:[%s13570_s18 + $0x121c] ss:$48 sps:$4 sm:$0xff]  }
 0x4d2   : > { %8742 = vmatprep.subr.bf16.mxu0 %v11052_v61  ;;  %v4321_v60 = vld [vmem:[%s13570_s18 + $0x1758] sm:$0xff] }
 0x4d3   : > { %v11095_v61 = vld [vmem:[%s13570_s18 + $0x18] ss:$48 sps:$4 sm:$0xff]  }
 0x4d4   : > { %8661 = vmatpush2.bf16.msra.mxu1 %v11047_v63  ;;  %v11098_v63 = vld [vmem:[%s13570_s18 + $0x1218] ss:$48 sps:$4 sm:$0xff]  }
 0x4d5   : > { %8743 = vmatpush2.bf16.msra.mxu0 %v11050_v0  ;;  %8671 = vmatprep.subr.bf16.mxu1 %v11055_v1  ;;  %v11103_v0 = vld [vmem:[%s13570_s18 + $0x5bc] ss:$48 sps:$4 sm:$0xff]   ;;  %v10365_v1 = vcombine.high %v4321_v60, %v4321_v60 }
 0x4d6   : > { %8794 = vmatprep.subr.bf16.mxu0 %v11058_v2  ;;  %v10364_v2 = vcombine.low %v4321_v60, %v4321_v60  ;;  %v11150_v60 = vld [vmem:[%s13570_s18 + $0xebc] ss:$48 sps:$4 sm:$0xff]  }
 0x4d7   : > { %v14490_v10 = vpop.f32.mrf.mxu0  ;;  %8663 = vmatmul.mubr.bf16.vlgmr.msra.gmra.mxu1 %v14176_v39 }
 0x4d8   : > { %8745 = vmatmul.mubr.bf16.vlgmr.msra.gmra.mxu0 %v14082_v40  ;;  %8672 = vmatpush1.bf16.msra.mxu1 %v11053_v20  ;;  %v11101_v20 = vld [vmem:[%s13570_s18 + $0x5b8] ss:$48 sps:$4 sm:$0xff]  }
 0x4d9   : > { %8703 = vmatprep.mubr.bf16.mxu1 %v14027_v34  ;;  %8795 = vmatpush1.bf16.msra.mxu0 %v11056_v3  ;;  %v14497_v7 = vpop.f32.mrf.mxu0  ;;  %v11108_v3 = vld [vmem:[%s13570_s18 + $0x55c] ss:$48 sps:$4 sm:$0xff]  }
 0x4da   : > { %10377 = vmatprep.mubr.msk.bf16.mxu0 %vm8138_vm4, %v14172_v33  ;;  %8673 = vmatprep.subr.bf16.mxu1 %v11061_v18  ;;  %v8162_v18 = vsel %vm8142_vm3, %v10364_v2, 0  ;;  %v11156_v2 = vld [vmem:[%s13570_s18 + $0xe5c] ss:$48 sps:$4 sm:$0xff]  }
 0x4db   : > { %v14504_v14 = vpop.f32.mrf.mxu1  ;;  %v8504_v15 = vpop.f32.mrf.mxu0  ;;  %8796 = vmatprep.subr.bf16.mxu0 %v11064_v5  ;;  %v11111_v5 = vld [vmem:[%s13570_s18 + $0x16fc] ss:$48 sps:$4 sm:$0xff]  }
 0x4dc   : > { %8674 = vmatpush1.bf16.msra.mxu1 %v11059_v6  ;;  %v11106_v6 = vld [vmem:[%s13570_s18 + $0x558] ss:$48 sps:$4 sm:$0xff]  }
 0x4dd   : > { %8797 = vmatpush1.bf16.msra.mxu0 %v11062_v8  ;;  %v14507_v19 = vpop.f32.mrf.mxu1  ;;  %v8505_v21 = vpop.f32.mrf.mxu0  ;;  %8675 = vmatprep.subr.bf16.mxu1 %v11067_v12  ;;  %v11109_v8 = vld [vmem:[%s13570_s18 + $0x16f8] ss:$48 sps:$4 sm:$0xff]   ;;  %v11114_v12 = vld [vmem:[%s13570_s18 + $0x4fc] ss:$48 sps:$4 sm:$0xff]  }
 0x4de   : > { %8798 = vmatprep.subr.bf16.mxu0 %v11070_v13  ;;  %v11117_v13 = vld [vmem:[%s13570_s18 + $0x169c] ss:$48 sps:$4 sm:$0xff]   ;;  %v11112_v15 = vld [vmem:[%s13570_s18 + $0x4f8] ss:$48 sps:$4 sm:$0xff]  }
 0x4df   : > { %v8381_v28 = vpop.f32.mrf.mxu1  ;;  %v11120_v21 = vld [vmem:[%s13570_s18 + $0x49c] ss:$48 sps:$4 sm:$0xff]  }
 0x4e0   : > { %8676 = vmatpush1.bf16.msra.mxu1 %v11065_v16  ;;  %v11115_v16 = vld [vmem:[%s13570_s18 + $0x1698] ss:$48 sps:$4 sm:$0xff]   ;;  %v11126_v28 = vld [vmem:[%s13570_s18 + $0x43c] ss:$48 sps:$4 sm:$0xff]  }
 0x4e1   : > { %8799 = vmatpush1.bf16.msra.mxu0 %v11068_v24  ;;  %v8382_v30 = vpop.f32.mrf.mxu1  ;;  %8677 = vmatprep.subr.bf16.mxu1 %v11073_v26  ;;  %v11123_v24 = vld [vmem:[%s13570_s18 + $0x163c] ss:$48 sps:$4 sm:$0xff]   ;;  %v11118_v26 = vld [vmem:[%s13570_s18 + $0x498] ss:$48 sps:$4 sm:$0xff]  }
 0x4e2   : > { %8800 = vmatprep.subr.bf16.mxu0 %v11076_v27  ;;  %v11121_v27 = vld [vmem:[%s13570_s18 + $0x1638] ss:$48 sps:$4 sm:$0xff]  }
 0x4e3   : > { %v11124_v30 = vld [vmem:[%s13570_s18 + $0x438] ss:$48 sps:$4 sm:$0xff]  }
 0x4e4   : > { %8678 = vmatpush1.bf16.msra.mxu1 %v11071_v29  ;;  %v11129_v29 = vld [vmem:[%s13570_s18 + $0x15dc] ss:$48 sps:$4 sm:$0xff]  }
 0x4e5   : > { %8801 = vmatpush1.bf16.msra.mxu0 %v11074_v55  ;;  %8679 = vmatprep.subr.bf16.mxu1 %v11079_v32  ;;  %v11127_v55 = vld [vmem:[%s13570_s18 + $0x15d8] ss:$48 sps:$4 sm:$0xff]   ;;  %v11132_v32 = vld [vmem:[%s13570_s18 + $0x3dc] ss:$48 sps:$4 sm:$0xff]  }
 0x4e6   : > { %8802 = vmatprep.subr.bf16.mxu0 %v11082_v37  ;;  %v11135_v37 = vld [vmem:[%s13570_s18 + $0x157c] ss:$48 sps:$4 sm:$0xff]  }
 0x4e8   : > { %8680 = vmatpush1.bf16.msra.mxu1 %v11077_v41  ;;  %v11130_v41 = vld [vmem:[%s13570_s18 + $0x3d8] ss:$48 sps:$4 sm:$0xff]  }
 0x4e9   : > { %8803 = vmatpush1.bf16.msra.mxu0 %v11080_v45  ;;  %8681 = vmatprep.subr.bf16.mxu1 %v11085_v49  ;;  %v11133_v45 = vld [vmem:[%s13570_s18 + $0x1578] ss:$48 sps:$4 sm:$0xff]   ;;  %v11138_v49 = vld [vmem:[%s13570_s18 + $0x37c] ss:$48 sps:$4 sm:$0xff]  }
 0x4ea   : > { %8804 = vmatprep.subr.bf16.mxu0 %v11088_v62  ;;  %v11141_v62 = vld [vmem:[%s13570_s18 + $0x151c] ss:$48 sps:$4 sm:$0xff]  }
 0x4ec   : > { %8682 = vmatpush1.bf16.msra.mxu1 %v11083_v50  ;;  %v11136_v50 = vld [vmem:[%s13570_s18 + $0x378] ss:$48 sps:$4 sm:$0xff]  }
 0x4ed   : > { %8805 = vmatpush1.bf16.msra.mxu0 %v11086_v51  ;;  %8683 = vmatprep.subr.bf16.mxu1 %v11091_v4  ;;  %v11139_v51 = vld [vmem:[%s13570_s18 + $0x1518] ss:$48 sps:$4 sm:$0xff]   ;;  %v11144_v4 = vld [vmem:[%s13570_s18 + $0x31c] ss:$48 sps:$4 sm:$0xff]  }
 0x4ee   : > { %8806 = vmatprep.subr.bf16.mxu0 %v11094_v52  ;;  %v11147_v52 = vld [vmem:[%s13570_s18 + $0x2c4] ss:$48 sps:$4 sm:$0xff]  }
 0x4f0   : > { %8684 = vmatpush1.bf16.msra.mxu1 %v11089_v53  ;;  %v11142_v53 = vld [vmem:[%s13570_s18 + $0x318] ss:$48 sps:$4 sm:$0xff]  }
 0x4f1   : > { %8807 = vmatpush1.bf16.msra.mxu0 %v11092_v56  ;;  %8685 = vmatprep.subr.bf16.mxu1 %v11097_v58  ;;  %v11145_v56 = vld [vmem:[%s13570_s18 + $0x2c0] ss:$48 sps:$4 sm:$0xff]  }
 0x4f2   : > { %8808 = vmatprep.subr.bf16.mxu0 %v11100_v59  ;;  %v14564_v58 = vld [vmem:[%s14280_s14] sm:$0xff] }
 0x4f3   : > { %v4339_v59 = vrot.slane %v14564_v58, %v13475_v44 }
 0x4f4   : > { %8686 = vmatpush1.bf16.msra.mxu1 %v11095_v61  ;;  %v11153_v61 = vld [vmem:[%s13570_s18 + $0x264] ss:$48 sps:$4 sm:$0xff]  }
 0x4f5   : > { %8809 = vmatpush1.bf16.msra.mxu0 %v11098_v63  ;;  %8687 = vmatprep.subr.bf16.mxu1 %v11103_v0  ;;  %v4343_v63 = vrot.slane %v14564_v58, %v13484_v47  ;;  %v11148_v0 = vld [vmem:[%s13570_s18 + $0xeb8] ss:$48 sps:$4 sm:$0xff]  }
 0x4f6   : > { %10376 = vmatprep.subr.msk.bf16.mxu0 %vm8142_vm3, %v10365_v1  ;;  %v11151_v1 = vld [vmem:[%s13570_s18 + $0x260] ss:$48 sps:$4 sm:$0xff]  }
 0x4f8   : > { %8688 = vmatpush2.bf16.msra.mxu1 %v11101_v20  ;;  %v8378_v20 = vadd.f32 %v14504_v14, %v4339_v59  ;;  %v11162_v14 = vld [vmem:[%s13570_s18 + $0xdfc] ss:$48 sps:$4 sm:$0xff]   ;;  %v11183_v59 = vld [vmem:[%s13570_s18 + $0x84] ss:$48 sps:$4 sm:$0xff]  }
 0x4f9   : > { %8813 = vmatpush2.bf16.msra.mxu0 %v8162_v18  ;;  %8689 = vmatprep.subr.bf16.mxu1 %v11108_v3  ;;  %v11159_v3 = vld [vmem:[%s13570_s18 + $0x204] ss:$48 sps:$4 sm:$0xff]   ;;  %v8380_v18 = vadd.f32 %v14507_v19, %v4343_v63  ;;  %v11186_v63 = vld [vmem:[%s13570_s18 + $0xc7c] ss:$48 sps:$4 sm:$0xff]  }
 0x4fa   : > { %8814 = vmatprep.subr.bf16.mxu0 %v11111_v5 }
 0x4fc   : > { %8690 = vmatpush2.bf16.msra.mxu1 %v11106_v6  ;;  %v11154_v6 = vld [vmem:[%s13570_s18 + $0xe58] ss:$48 sps:$4 sm:$0xff]  }
 0x4fd   : > { %8815 = vmatpush2.bf16.msra.mxu0 %v11109_v8  ;;  %8691 = vmatprep.subr.bf16.mxu1 %v11114_v12  ;;  %v11157_v8 = vld [vmem:[%s13570_s18 + $0x200] ss:$48 sps:$4 sm:$0xff]  }
 0x4fe   : > { %8816 = vmatprep.subr.bf16.mxu0 %v11117_v13  ;;  %v8419_v13 = vadd.f32 %v14415_v17, %v8378_v20  ;;  %v11192_v20 = vld [vmem:[%s13570_s18 + $0xc1c] ss:$48 sps:$4 sm:$0xff]  }
 0x500   : > { %8692 = vmatpush2.bf16.msra.mxu1 %v11112_v15  ;;  %v11165_v15 = vld [vmem:[%s13570_s18 + $0x1a4] ss:$48 sps:$4 sm:$0xff]  }
 0x501   : > { %8817 = vmatpush2.bf16.msra.mxu0 %v11115_v16  ;;  %8693 = vmatprep.subr.bf16.mxu1 %v11120_v21 }
 0x502   : > { %8818 = vmatprep.subr.bf16.mxu0 %v11123_v24  ;;  %v8421_v24 = vadd.f32 %v14422_v25, %v8380_v18  ;;  %v11190_v18 = vld [vmem:[%s13570_s18 + $0xc18] ss:$48 sps:$4 sm:$0xff]  }
 0x504   : > { %8694 = vmatpush2.bf16.msra.mxu1 %v11118_v26  ;;  %v11160_v26 = vld [vmem:[%s13570_s18 + $0xdf8] ss:$48 sps:$4 sm:$0xff]  }
 0x505   : > { %8819 = vmatpush2.bf16.msra.mxu0 %v11121_v27  ;;  %8695 = vmatprep.subr.bf16.mxu1 %v11126_v28  ;;  %v11163_v28 = vld [vmem:[%s13570_s18 + $0x1a0] ss:$48 sps:$4 sm:$0xff]  }
 0x506   : > { %8820 = vmatprep.subr.bf16.mxu0 %v11129_v29  ;;  %v11168_v29 = vld [vmem:[%s13570_s18 + $0xd9c] ss:$48 sps:$4 sm:$0xff]  }
 0x508   : > { %8696 = vmatpush2.bf16.msra.mxu1 %v11124_v30 }
 0x509   : > { %8821 = vmatpush2.bf16.msra.mxu0 %v11127_v55  ;;  %8697 = vmatprep.subr.bf16.mxu1 %v11132_v32  ;;  %v11171_v32 = vld [vmem:[%s13570_s18 + $0x144] ss:$48 sps:$4 sm:$0xff]  }
 0x50a   : > { %8822 = vmatprep.subr.bf16.mxu0 %v11135_v37 }
 0x50c   : > { %8698 = vmatpush2.bf16.msra.mxu1 %v11130_v41 }
 0x50d   : > { %8823 = vmatpush2.bf16.msra.mxu0 %v11133_v45  ;;  %8699 = vmatprep.subr.bf16.mxu1 %v11138_v49  ;;  %v11166_v45 = vld [vmem:[%s13570_s18 + $0xd98] ss:$48 sps:$4 sm:$0xff]  }
 0x50e   : > { %8824 = vmatprep.subr.bf16.mxu0 %v11141_v62  ;;  %v11169_v62 = vld [vmem:[%s13570_s18 + $0x140] ss:$48 sps:$4 sm:$0xff]  }
 0x510   : > { %8700 = vmatpush2.bf16.msra.mxu1 %v11136_v50 }
 0x511   : > { %8825 = vmatpush2.bf16.msra.mxu0 %v11139_v51  ;;  %8701 = vmatprep.subr.bf16.mxu1 %v11144_v4  ;;  %v11177_v4 = vld [vmem:[%s13570_s18 + $0xe4] ss:$48 sps:$4 sm:$0xff]  }
 0x512   : > { %8835 = vmatprep.subr.bf16.mxu0 %v11147_v52 }
 0x514   : > { %8827 = vmatmul.mubr.bf16.vlgmr.msra.gmra.mxu0 %v14176_v39  ;;  %8702 = vmatpush2.bf16.msra.mxu1 %v11142_v53  ;;  %v11175_v53 = vld [vmem:[%s13570_s18 + $0xe0] ss:$48 sps:$4 sm:$0xff]  }
 0x515   : > { %8836 = vmatpush1.bf16.msra.mxu0 %v11145_v56  ;;  %8867 = vmatprep.mubr.bf16.mxu0 %v14027_v34  ;;  %v11180_v56 = vld [vmem:[%s13570_s18 + $0xcdc] ss:$48 sps:$4 sm:$0xff]  }
 0x516   : > { %8753 = vmatprep.subr.bf16.mxu1 %v11150_v60  ;;  %8837 = vmatprep.subr.bf16.mxu0 %v11153_v61  ;;  %v11178_v60 = vld [vmem:[%s13570_s18 + $0xcd8] ss:$48 sps:$4 sm:$0xff]   ;;  %v11181_v61 = vld [vmem:[%s13570_s18 + $0x80] ss:$48 sps:$4 sm:$0xff]  }
 0x517   : > { %8704 = vmatmul.mubr.bf16.vlgmr.msra.gmra.mxu1 %v14029_v35 }
 0x518   : > { %v14581_v5 = vpop.f32.mrf.mxu0  ;;  %8754 = vmatpush1.bf16.msra.mxu1 %v11148_v0  ;;  %8785 = vmatprep.mubr.bf16.mxu1 %v14115_v22  ;;  %v11189_v0 = vld [vmem:[%s13570_s18 + $0x24] ss:$48 sps:$4 sm:$0xff]  }
 0x519   : > { %8838 = vmatpush1.bf16.msra.mxu0 %v11151_v1  ;;  %8755 = vmatprep.subr.bf16.mxu1 %v11156_v2  ;;  %v11184_v1 = vld [vmem:[%s13570_s18 + $0xc78] ss:$48 sps:$4 sm:$0xff]   ;;  %v11187_v2 = vld [vmem:[%s13570_s18 + $0x20] ss:$48 sps:$4 sm:$0xff]  }
 0x51a   : > { %v14587_v12 = vpop.f32.mrf.mxu0  ;;  %8839 = vmatprep.subr.bf16.mxu0 %v11159_v3  ;;  %v11195_v3 = vld [vmem:[%s13570_s18 + $0x5c4] ss:$48 sps:$4 sm:$0xff]  }
 0x51b   : > { %v8459_v19 = vpop.f32.mrf.mxu1 }
 0x51c   : > { %v8460_v16 = vadd.f32 %v8459_v19, %v8419_v13  ;;  %v8545_v21 = vpop.f32.mrf.mxu0  ;;  %8756 = vmatpush1.bf16.msra.mxu1 %v11154_v6 }
 0x51d   : > { %8840 = vmatpush1.bf16.msra.mxu0 %v11157_v8  ;;  %v8461_v27 = vpop.f32.mrf.mxu1  ;;  %8757 = vmatprep.subr.bf16.mxu1 %v11162_v14  ;;  %v11193_v8 = vld [vmem:[%s13570_s18 + $0x5c0] ss:$48 sps:$4 sm:$0xff]   ;;  %v11198_v14 = vld [vmem:[%s13570_s18 + $0x11bc] ss:$48 sps:$4 sm:$0xff]   ;;  %v11196_v21 = vld [vmem:[%s13570_s18 + $0x11b8] ss:$48 sps:$4 sm:$0xff]  }
 0x51e   : > { %v8501_v17 = vadd.f32 %v14490_v10, %v8460_v16  ;;  %v8462_v30 = vadd.f32 %v8461_v27, %v8421_v24  ;;  %v8546_v55 = vpop.f32.mrf.mxu0  ;;  %8841 = vmatprep.subr.bf16.mxu0 %v11165_v15  ;;  %v11174_v10 = vld [vmem:[%s13570_s18 + $0xd3c] ss:$48 sps:$4 sm:$0xff]   ;;  %v11201_v15 = vld [vmem:[%s13570_s18 + $0x564] ss:$48 sps:$4 sm:$0xff]   ;;  %v11199_v24 = vld [vmem:[%s13570_s18 + $0x560] ss:$48 sps:$4 sm:$0xff]  }
 0x51f   : > { %v8463_v37 = vpop.f32.mrf.mxu1  ;;  %v11207_v27 = vld [vmem:[%s13570_s18 + $0x504] ss:$48 sps:$4 sm:$0xff]   ;;  %v11683_v55 = vmov 1983009808  }
 0x520   : > { %v9165_v41 = vsub.f32 0.0, %v8501_v17  ;;  %v8503_v25 = vadd.f32 %v14497_v7, %v8462_v30  ;;  %8758 = vmatpush1.bf16.msra.mxu1 %v11160_v26  ;;  %v11172_v7 = vld [vmem:[%s13570_s18 + $0xd38] ss:$48 sps:$4 sm:$0xff]   ;;  %v11204_v26 = vld [vmem:[%s13570_s18 + $0x115c] ss:$48 sps:$4 sm:$0xff]  }
 0x521   : > { %8842 = vmatpush1.bf16.msra.mxu0 %v11163_v28  ;;  %v8464_v49 = vpop.f32.mrf.mxu1  ;;  %8759 = vmatprep.subr.bf16.mxu1 %v11168_v29  ;;  %v11202_v28 = vld [vmem:[%s13570_s18 + $0x1158] ss:$48 sps:$4 sm:$0xff]   ;;  %v11205_v29 = vld [vmem:[%s13570_s18 + $0x500] ss:$48 sps:$4 sm:$0xff]   ;;  %v11210_v17 = vld [vmem:[%s13570_s18 + $0x10fc] ss:$48 sps:$4 sm:$0xff]  }
 0x522   : > { %v9179_v50 = vmul.f32 1.442695, %v9165_v41  ;;  %v9166_v51 = vsub.f32 0.0, %v8503_v25  ;;  %8843 = vmatprep.subr.bf16.mxu0 %v11171_v32  ;;  %v11213_v30 = vld [vmem:[%s13570_s18 + $0x4a4] ss:$48 sps:$4 sm:$0xff]   ;;  %v9250_v32 = vunpack.c.l.s4 %v11683_v55 }
 0x523   : > { %v11208_v37 = vld [vmem:[%s13570_s18 + $0x10f8] ss:$48 sps:$4 sm:$0xff]   ;;  %v11211_v41 = vld [vmem:[%s13570_s18 + $0x4a0] ss:$48 sps:$4 sm:$0xff]   ;;  %v11216_v25 = vld [vmem:[%s13570_s18 + $0x109c] ss:$48 sps:$4 sm:$0xff]  }
 0x524   : > { %11577 = vpow2.f32 %v9179_v50  ;;  %v9181_v52 = vmul.f32 1.442695, %v9166_v51  ;;  %8760 = vmatpush1.bf16.msra.mxu1 %v11166_v45  ;;  %v11219_v45 = vld [vmem:[%s13570_s18 + $0x444] ss:$48 sps:$4 sm:$0xff]   ;;  %v9251_v49 = vunpack.c.0.s8 %v9250_v32  ;;  %v11222_v50 = vld [vmem:[%s13570_s18 + $0x103c] ss:$48 sps:$4 sm:$0xff]  }
 0x525   : > { %8844 = vmatpush1.bf16.msra.mxu0 %v11169_v62  ;;  %8761 = vmatprep.subr.bf16.mxu1 %v11174_v10  ;;  %v11214_v62 = vld [vmem:[%s13570_s18 + $0x1098] ss:$48 sps:$4 sm:$0xff]   ;;  %v11217_v10 = vld [vmem:[%s13570_s18 + $0x440] ss:$48 sps:$4 sm:$0xff]   ;;  %v11261_v32 = vld [vmem:[%s13570_s18 + $0xda4] ss:$48 sps:$4 sm:$0xff]  }
 0x526   : > { %11579 = vpow2.f32 %v9181_v52  ;;  %8845 = vmatprep.subr.bf16.mxu0 %v11177_v4  ;;  %v11225_v4 = vld [vmem:[%s13570_s18 + $0x3e4] ss:$48 sps:$4 sm:$0xff]   ;;  %v14635_v52 = vsub.s32 %v9251_v49, %v13469_v42  ;;  %v11259_v49 = vld [vmem:[%s13570_s18 + $0xda0] ss:$48 sps:$4 sm:$0xff]   ;;  %v11524_v42 = vld [vmem:[%s13570_s18 + $0xe68] ss:$48 sps:$4 sm:$0xff]  }
 0x528   : > { %8762 = vmatpush1.bf16.msra.mxu1 %v11172_v7 }
 0x529   : > { %8846 = vmatpush1.bf16.msra.mxu0 %v11175_v53  ;;  %8763 = vmatprep.subr.bf16.mxu1 %v11180_v56  ;;  %v11220_v53 = vld [vmem:[%s13570_s18 + $0x1038] ss:$48 sps:$4 sm:$0xff]  }
 0x52a   : > { %8847 = vmatprep.subr.bf16.mxu0 %v11183_v59  ;;  %v11223_v59 = vld [vmem:[%s13570_s18 + $0x3e0] ss:$48 sps:$4 sm:$0xff]  }
 0x52c   : > { %8764 = vmatpush1.bf16.msra.mxu1 %v11178_v60  ;;  %v11228_v60 = vld [vmem:[%s13570_s18 + $0xfdc] ss:$48 sps:$4 sm:$0xff]  }
 0x52d   : > { %8848 = vmatpush1.bf16.msra.mxu0 %v11181_v61  ;;  %8765 = vmatprep.subr.bf16.mxu1 %v11186_v63  ;;  %v11231_v61 = vld [vmem:[%s13570_s18 + $0x384] ss:$48 sps:$4 sm:$0xff]   ;;  %v9255_v63 = vrot.slane %v9247_v48, %v14635_v52  ;;  %v11240_v48 = vld [vmem:[%s13570_s18 + $0xf1c] ss:$48 sps:$4 sm:$0xff]  }
 0x52e   : > { %8849 = vmatprep.subr.bf16.mxu0 %v11189_v0 }
 0x530   : > { %8766 = vmatpush1.bf16.msra.mxu1 %v11184_v1  ;;  %v11226_v1 = vld [vmem:[%s13570_s18 + $0xfd8] ss:$48 sps:$4 sm:$0xff]  }
 0x531   : > { %v11578_v6 = vpop.eup %11577  ;;  %8850 = vmatpush1.bf16.msra.mxu0 %v11187_v2  ;;  %8767 = vmatprep.subr.bf16.mxu1 %v11192_v20  ;;  %v11229_v20 = vld [vmem:[%s13570_s18 + $0x380] ss:$48 sps:$4 sm:$0xff]  }
 0x532   : > { %v9201_v13 = vadd.f32 1.0, %v11578_v6  ;;  %8851 = vmatprep.subr.bf16.mxu0 %v11195_v3  ;;  %v11234_v3 = vld [vmem:[%s13570_s18 + $0xf7c] ss:$48 sps:$4 sm:$0xff]   ;;  %v11243_v6 = vld [vmem:[%s13570_s18 + $0xec4] ss:$48 sps:$4 sm:$0xff]  }
 0x533   : > { %v11580_v19 = vpop.eup %11579 }
 0x534   : > { %v9202_v16 = vadd.f32 1.0, %v11580_v19  ;;  %8768 = vmatpush1.bf16.msra.mxu1 %v11190_v18  ;;  %11581 = vrcp.f32 %v9201_v13  ;;  %v11237_v18 = vld [vmem:[%s13570_s18 + $0x324] ss:$48 sps:$4 sm:$0xff]   ;;  %v11244_v19 = vld [vmem:[%s13570_s18 + $0x8c0] ss:$48 sps:$4 sm:$0xff]  }
 0x535   : > { %8852 = vmatpush2.bf16.msra.mxu0 %v11193_v8  ;;  %8769 = vmatprep.subr.bf16.mxu1 %v11198_v14  ;;  %v11238_v8 = vld [vmem:[%s13570_s18 + $0xf18] ss:$48 sps:$4 sm:$0xff]   ;;  %v11241_v14 = vld [vmem:[%s13570_s18 + $0xec0] ss:$48 sps:$4 sm:$0xff]   ;;  %v11246_v13 = vld [vmem:[%s13570_s18 + $0x8c4] ss:$48 sps:$4 sm:$0xff]  }
 0x536   : > { %11583 = vrcp.f32 %v9202_v16  ;;  %8853 = vmatprep.subr.bf16.mxu0 %v11201_v15  ;;  %v11249_v15 = vld [vmem:[%s13570_s18 + $0xe64] ss:$48 sps:$4 sm:$0xff]   ;;  %v11247_v16 = vld [vmem:[%s13570_s18 + $0xe60] ss:$48 sps:$4 sm:$0xff]  }
 0x538   : > { %8770 = vmatpush2.bf16.msra.mxu1 %v11196_v21  ;;  %v11252_v21 = vld [vmem:[%s13570_s18 + $0x864] ss:$48 sps:$4 sm:$0xff]  }
 0x539   : > { %8854 = vmatpush2.bf16.msra.mxu0 %v11199_v24  ;;  %8771 = vmatprep.subr.bf16.mxu1 %v11204_v26  ;;  %v4347_v24 = vrot.slane %v14564_v58, %v2204_v54  ;;  %v11255_v26 = vld [vmem:[%s13570_s18 + $0xe04] ss:$48 sps:$4 sm:$0xff]   ;;  %v11253_v54 = vld [vmem:[%s13570_s18 + $0xe00] ss:$48 sps:$4 sm:$0xff]  }
 0x53a   : > { %8855 = vmatprep.subr.bf16.mxu0 %v11207_v27  ;;  %v4351_v27 = vrot.slane %v14564_v58, %v2208_v57 }
 0x53c   : > { %8772 = vmatpush2.bf16.msra.mxu1 %v11202_v28  ;;  %v8544_v57 = vadd.f32 %v14587_v12, %v4351_v27  ;;  %v11301_v27 = vld [vmem:[%s13570_s18 + $0x1100] ss:$48 sps:$4 sm:$0xff]  }
 0x53d   : > { %8856 = vmatpush2.bf16.msra.mxu0 %v11205_v29  ;;  %8773 = vmatprep.subr.bf16.mxu1 %v11210_v17  ;;  %v11250_v29 = vld [vmem:[%s13570_s18 + $0x860] ss:$48 sps:$4 sm:$0xff]   ;;  %v11258_v17 = vld [vmem:[%s13570_s18 + $0x804] ss:$48 sps:$4 sm:$0xff]  }
 0x53e   : > { %8857 = vmatprep.subr.bf16.mxu0 %v11213_v30  ;;  %v8542_v30 = vadd.f32 %v14581_v5, %v4347_v24  ;;  %v11303_v24 = vld [vmem:[%s13570_s18 + $0x1104] ss:$48 sps:$4 sm:$0xff]  }
 0x540   : > { %8774 = vmatpush2.bf16.msra.mxu1 %v11208_v37 }
 0x541   : > { %8858 = vmatpush2.bf16.msra.mxu0 %v11211_v41  ;;  %8775 = vmatprep.subr.bf16.mxu1 %v11216_v25  ;;  %v11582_v51 = vpop.eup %11581  ;;  %v11256_v25 = vld [vmem:[%s13570_s18 + $0x800] ss:$48 sps:$4 sm:$0xff]  }
 0x542   : > { %8859 = vmatprep.subr.bf16.mxu0 %v11219_v45 }
 0x543   : > { %v11584_v7 = vpop.eup %11583 }
 0x544   : > { %8776 = vmatpush2.bf16.msra.mxu1 %v11214_v62  ;;  %v9248_v56 = vcombine.low %v11582_v51, %v11584_v7  ;;  %v11264_v62 = vld [vmem:[%s13570_s18 + $0x7a4] ss:$48 sps:$4 sm:$0xff]  }
 0x545   : > { %8860 = vmatpush2.bf16.msra.mxu0 %v11217_v10  ;;  %8777 = vmatprep.subr.bf16.mxu1 %v11222_v50  ;;  %v11267_v50 = vld [vmem:[%s13570_s18 + $0xd44] ss:$48 sps:$4 sm:$0xff]  }
 0x546   : > { %8861 = vmatprep.subr.bf16.mxu0 %v11225_v4  ;;  %v9262_v0 = vrot.slane %v9248_v56, %v14635_v52  ;;  %v11262_v4 = vld [vmem:[%s13570_s18 + $0x7a0] ss:$48 sps:$4 sm:$0xff]  }
 0x547   : > { %v11265_v56 = vld [vmem:[%s13570_s18 + $0xd40] ss:$48 sps:$4 sm:$0xff]  }
 0x548   : > { %8778 = vmatpush2.bf16.msra.mxu1 %v11220_v53  ;;  %v9263_v2 = vcombine.low %v9255_v63, %v9262_v0  ;;  %v11271_v63 = vld [vmem:[%s13570_s18 + $0xce0] ss:$48 sps:$4 sm:$0xff]   ;;  %v11276_v0 = vld [vmem:[%s13570_s18 + $0x6e4] ss:$48 sps:$4 sm:$0xff]  }
 0x549   : > { %8862 = vmatpush2.bf16.msra.mxu0 %v11223_v59  ;;  %8779 = vmatprep.subr.bf16.mxu1 %v11228_v60  ;;  %v11270_v59 = vld [vmem:[%s13570_s18 + $0x744] ss:$48 sps:$4 sm:$0xff]  }
 0x54a   : > { %8863 = vmatprep.subr.bf16.mxu0 %v11231_v61  ;;  %9301 = vst [vmem:[%s14651_s15] sm:$0xff] %v9263_v2  ;;  %v11273_v60 = vld [vmem:[%s13570_s18 + $0xce4] ss:$48 sps:$4 sm:$0xff]   ;;  %v11268_v61 = vld [vmem:[%s13570_s18 + $0x740] ss:$48 sps:$4 sm:$0xff]  }
 0x54b   : > { %v11274_v2 = vld [vmem:[%s13570_s18 + $0x6e0] ss:$48 sps:$4 sm:$0xff]  }
 0x54c   : > { %8780 = vmatpush2.bf16.msra.mxu1 %v11226_v1  ;;  %v11279_v1 = vld [vmem:[%s13570_s18 + $0xc84] ss:$48 sps:$4 sm:$0xff]  }
 0x54d   : > { %8864 = vmatpush2.bf16.msra.mxu0 %v11229_v20  ;;  %8781 = vmatprep.subr.bf16.mxu1 %v11234_v3  ;;  %v11277_v20 = vld [vmem:[%s13570_s18 + $0xc80] ss:$48 sps:$4 sm:$0xff]   ;;  %v11282_v3 = vld [vmem:[%s13570_s18 + $0x684] ss:$48 sps:$4 sm:$0xff]  }
 0x54e   : > { %8865 = vmatprep.subr.bf16.mxu0 %v11237_v18  ;;  %v11285_v18 = vld [vmem:[%s13570_s18 + $0xc24] ss:$48 sps:$4 sm:$0xff]  }
 0x550   : > { %8782 = vmatpush2.bf16.msra.mxu1 %v11232_v31  ;;  %v11280_v31 = vld [vmem:[%s13570_s18 + $0x680] ss:$48 sps:$4 sm:$0xff]  }
 0x551   : > { %8866 = vmatpush2.bf16.msra.mxu0 %v11235_v36  ;;  %8783 = vmatprep.subr.bf16.mxu1 %v11240_v48  ;;  %v11283_v36 = vld [vmem:[%s13570_s18 + $0xc20] ss:$48 sps:$4 sm:$0xff]   ;;  %v11288_v48 = vld [vmem:[%s13570_s18 + $0x624] ss:$48 sps:$4 sm:$0xff]  }
 0x552   : > { %8917 = vmatprep.subr.bf16.mxu0 %v11243_v6  ;;  %v11291_v6 = vld [vmem:[%s13570_s18 + $0x11c4] ss:$48 sps:$4 sm:$0xff]  }
 0x554   : > { %8868 = vmatmul.mubr.bf16.vlgmr.msra.gmra.mxu0 %v14029_v35  ;;  %8784 = vmatpush2.bf16.msra.mxu1 %v11238_v8  ;;  %v11286_v8 = vld [vmem:[%s13570_s18 + $0x620] ss:$48 sps:$4 sm:$0xff]  }
 0x555   : > { %8918 = vmatpush1.bf16.msra.mxu0 %v11241_v14  ;;  %8949 = vmatprep.mubr.bf16.mxu0 %v14115_v22  ;;  %v11289_v14 = vld [vmem:[%s13570_s18 + $0x11c0] ss:$48 sps:$4 sm:$0xff]  }
 0x556   : > { %8876 = vmatprep.subr.bf16.mxu1 %v11246_v13  ;;  %8919 = vmatprep.subr.bf16.mxu0 %v11249_v15  ;;  %v11294_v13 = vld [vmem:[%s13570_s18 + $0xbc4] ss:$48 sps:$4 sm:$0xff]  }
 0x557   : > { %8786 = vmatmul.mubr.bf16.vlgmr.msra.gmra.mxu1 %v14117_v23  ;;  %v11297_v15 = vld [vmem:[%s13570_s18 + $0x1164] ss:$48 sps:$4 sm:$0xff]  }
 0x558   : > { %v8623_v28 = vpop.f32.mrf.mxu0  ;;  %8877 = vmatpush1.bf16.msra.mxu1 %v11244_v19  ;;  %8908 = vmatprep.mubr.bf16.mxu1 %v14079_v38  ;;  %v11292_v19 = vld [vmem:[%s13570_s18 + $0xbc0] ss:$48 sps:$4 sm:$0xff]  }
 0x559   : > { %8920 = vmatpush1.bf16.msra.mxu0 %v11247_v16  ;;  %8878 = vmatprep.subr.bf16.mxu1 %v11252_v21  ;;  %v11295_v16 = vld [vmem:[%s13570_s18 + $0x1160] ss:$48 sps:$4 sm:$0xff]   ;;  %v11300_v21 = vld [vmem:[%s13570_s18 + $0xb64] ss:$48 sps:$4 sm:$0xff]  }
 0x55a   : > { %v8625_v55 = vpop.f32.mrf.mxu0  ;;  %8921 = vmatprep.subr.bf16.mxu0 %v11255_v26  ;;  %v11298_v26 = vld [vmem:[%s13570_s18 + $0xb60] ss:$48 sps:$4 sm:$0xff]  }
 0x55b   : > { %v8582_v37 = vpop.f32.mrf.mxu1 }
 0x55c   : > { %v8583_v58 = vadd.f32 %v8582_v37, %v8542_v30  ;;  %v8627_v41 = vpop.f32.mrf.mxu0  ;;  %8879 = vmatpush1.bf16.msra.mxu1 %v11250_v29  ;;  %v11309_v29 = vld [vmem:[%s13570_s18 + $0x10a4] ss:$48 sps:$4 sm:$0xff]   ;;  %v11313_v37 = vld [vmem:[%s13570_s18 + $0x1040] ss:$48 sps:$4 sm:$0xff]  }
 0x55d   : > { %8922 = vmatpush1.bf16.msra.mxu0 %v11253_v54  ;;  %v8584_v45 = vpop.f32.mrf.mxu1  ;;  %8880 = vmatprep.subr.bf16.mxu1 %v11258_v17  ;;  %v11304_v54 = vld [vmem:[%s13570_s18 + $0xb00] ss:$48 sps:$4 sm:$0xff]   ;;  %v11312_v30 = vld [vmem:[%s13570_s18 + $0xaa4] ss:$48 sps:$4 sm:$0xff]  }
 0x55e   : > { %v8585_v5 = vadd.f32 %v8584_v45, %v8544_v57  ;;  %v8628_v10 = vpop.f32.mrf.mxu0  ;;  %8923 = vmatprep.subr.bf16.mxu0 %v11261_v32  ;;  %v14686_v51 = vadd.f32 %v8623_v28, %v8583_v58  ;;  %v11306_v28 = vld [vmem:[%s13570_s18 + $0xb04] ss:$48 sps:$4 sm:$0xff]   ;;  %v11307_v17 = vld [vmem:[%s13570_s18 + $0x10a0] ss:$48 sps:$4 sm:$0xff]  }
 0x55f   : > { %v8586_v12 = vpop.f32.mrf.mxu1  ;;  %v11310_v32 = vld [vmem:[%s13570_s18 + $0xaa0] ss:$48 sps:$4 sm:$0xff]   ;;  %v11318_v57 = vld [vmem:[%s13570_s18 + $0xa44] ss:$48 sps:$4 sm:$0xff]  }
 0x560   : > { %8881 = vmatpush1.bf16.msra.mxu1 %v11256_v25  ;;  %v14689_v7 = vadd.f32 %v8625_v55, %v8585_v5  ;;  %v11315_v55 = vld [vmem:[%s13570_s18 + $0x1044] ss:$48 sps:$4 sm:$0xff]   ;;  %v11316_v41 = vld [vmem:[%s13570_s18 + $0xa40] ss:$48 sps:$4 sm:$0xff]  }
 0x561   : > { %8924 = vmatpush1.bf16.msra.mxu0 %v11259_v49  ;;  %v8587_v53 = vpop.f32.mrf.mxu1  ;;  %8882 = vmatprep.subr.bf16.mxu1 %v11264_v62  ;;  %v11321_v58 = vld [vmem:[%s13570_s18 + $0xfe4] ss:$48 sps:$4 sm:$0xff]   ;;  %v11319_v25 = vld [vmem:[%s13570_s18 + $0xfe0] ss:$48 sps:$4 sm:$0xff]  }
 0x562   : > { %8925 = vmatprep.subr.bf16.mxu0 %v11267_v50  ;;  %v11324_v45 = vld [vmem:[%s13570_s18 + $0x9e4] ss:$48 sps:$4 sm:$0xff]   ;;  %v11322_v62 = vld [vmem:[%s13570_s18 + $0x9e0] ss:$48 sps:$4 sm:$0xff]  }
 0x563   : > { %v11327_v49 = vld [vmem:[%s13570_s18 + $0xf84] ss:$48 sps:$4 sm:$0xff]   ;;  %v11325_v5 = vld [vmem:[%s13570_s18 + $0xf80] ss:$48 sps:$4 sm:$0xff]  }
 0x564   : > { %8883 = vmatpush1.bf16.msra.mxu1 %v11262_v4  ;;  %v11330_v10 = vld [vmem:[%s13570_s18 + $0x984] ss:$48 sps:$4 sm:$0xff]   ;;  %v11328_v12 = vld [vmem:[%s13570_s18 + $0x980] ss:$48 sps:$4 sm:$0xff]  }
 0x565   : > { %8926 = vmatpush1.bf16.msra.mxu0 %v11265_v56  ;;  %8884 = vmatprep.subr.bf16.mxu1 %v11270_v59  ;;  %v11333_v50 = vld [vmem:[%s13570_s18 + $0xf24] ss:$48 sps:$4 sm:$0xff]   ;;  %v11331_v4 = vld [vmem:[%s13570_s18 + $0xf20] ss:$48 sps:$4 sm:$0xff]   ;;  %v11339_v56 = vld [vmem:[%s13570_s18 + $0x8cc] ss:$48 sps:$4 sm:$0xff]  }
 0x566   : > { %8927 = vmatprep.subr.bf16.mxu0 %v11273_v60  ;;  %v11336_v53 = vld [vmem:[%s13570_s18 + $0x924] ss:$48 sps:$4 sm:$0xff]   ;;  %v11334_v59 = vld [vmem:[%s13570_s18 + $0x920] ss:$48 sps:$4 sm:$0xff]   ;;  %v11337_v60 = vld [vmem:[%s13570_s18 + $0x8c8] ss:$48 sps:$4 sm:$0xff]  }
 0x568   : > { %8885 = vmatpush1.bf16.msra.mxu1 %v11268_v61  ;;  %v11342_v61 = vld [vmem:[%s13570_s18 + $0x14c4] ss:$48 sps:$4 sm:$0xff]  }
 0x569   : > { %8928 = vmatpush1.bf16.msra.mxu0 %v11271_v63  ;;  %8886 = vmatprep.subr.bf16.mxu1 %v11276_v0  ;;  %v11345_v63 = vld [vmem:[%s13570_s18 + $0x86c] ss:$48 sps:$4 sm:$0xff]   ;;  %v11340_v0 = vld [vmem:[%s13570_s18 + $0x14c0] ss:$48 sps:$4 sm:$0xff]  }
 0x56a   : > { %8929 = vmatprep.subr.bf16.mxu0 %v11279_v1  ;;  %v11343_v1 = vld [vmem:[%s13570_s18 + $0x868] ss:$48 sps:$4 sm:$0xff]  }
 0x56c   : > { %8887 = vmatpush1.bf16.msra.mxu1 %v11274_v2  ;;  %v11348_v2 = vld [vmem:[%s13570_s18 + $0x1464] ss:$48 sps:$4 sm:$0xff]  }
 0x56d   : > { %8930 = vmatpush1.bf16.msra.mxu0 %v11277_v20  ;;  %8888 = vmatprep.subr.bf16.mxu1 %v11282_v3  ;;  %v11351_v20 = vld [vmem:[%s13570_s18 + $0x80c] ss:$48 sps:$4 sm:$0xff]  }
 0x56e   : > { %8931 = vmatprep.subr.bf16.mxu0 %v11285_v18 }
 0x570   : > { %8889 = vmatpush1.bf16.msra.mxu1 %v11280_v31 }
 0x571   : > { %8932 = vmatpush1.bf16.msra.mxu0 %v11283_v36  ;;  %8890 = vmatprep.subr.bf16.mxu1 %v11288_v48  ;;  %v11349_v48 = vld [vmem:[%s13570_s18 + $0x808] ss:$48 sps:$4 sm:$0xff]  }
 0x572   : > { %8933 = vmatprep.subr.bf16.mxu0 %v11291_v6  ;;  %v11354_v6 = vld [vmem:[%s13570_s18 + $0x1404] ss:$48 sps:$4 sm:$0xff]  }
 0x574   : > { %8891 = vmatpush1.bf16.msra.mxu1 %v11286_v8 }
 0x575   : > { %8934 = vmatpush2.bf16.msra.mxu0 %v11289_v14  ;;  %8892 = vmatprep.subr.bf16.mxu1 %v11294_v13 }
 0x576   : > { %8935 = vmatprep.subr.bf16.mxu0 %v11297_v15 }
 0x578   : > { %8893 = vmatpush2.bf16.msra.mxu1 %v11292_v19 }
 0x579   : > { %8936 = vmatpush2.bf16.msra.mxu0 %v11295_v16  ;;  %8894 = vmatprep.subr.bf16.mxu1 %v11300_v21 }
 0x57a   : > { %8937 = vmatprep.subr.bf16.mxu0 %v11303_v24  ;;  %v11352_v24 = vld [vmem:[%s13570_s18 + $0x1400] ss:$48 sps:$4 sm:$0xff]  }
 0x57c   : > { %8895 = vmatpush2.bf16.msra.mxu1 %v11298_v26 }
 0x57d   : > { %8938 = vmatpush2.bf16.msra.mxu0 %v11301_v27  ;;  %8896 = vmatprep.subr.bf16.mxu1 %v11306_v28  ;;  %v11355_v27 = vld [vmem:[%s13570_s18 + $0x7a8] ss:$48 sps:$4 sm:$0xff]  }
 0x57e   : > { %8939 = vmatprep.subr.bf16.mxu0 %v11309_v29 }
 0x580   : > { %8897 = vmatpush2.bf16.msra.mxu1 %v11304_v54  ;;  %v11363_v54 = vld [vmem:[%s13570_s18 + $0x74c] ss:$48 sps:$4 sm:$0xff]  }
 0x581   : > { %8940 = vmatpush2.bf16.msra.mxu0 %v11307_v17  ;;  %8898 = vmatprep.subr.bf16.mxu1 %v11312_v30  ;;  %v11358_v17 = vld [vmem:[%s13570_s18 + $0x13a0] ss:$48 sps:$4 sm:$0xff]   ;;  %v11361_v30 = vld [vmem:[%s13570_s18 + $0x748] ss:$48 sps:$4 sm:$0xff]  }
 0x582   : > { %8941 = vmatprep.subr.bf16.mxu0 %v11315_v55  ;;  %v11366_v55 = vld [vmem:[%s13570_s18 + $0x1344] ss:$48 sps:$4 sm:$0xff]  }
 0x584   : > { %8899 = vmatpush2.bf16.msra.mxu1 %v11310_v32  ;;  %v11369_v32 = vld [vmem:[%s13570_s18 + $0x6ec] ss:$48 sps:$4 sm:$0xff]  }
 0x585   : > { %8942 = vmatpush2.bf16.msra.mxu0 %v11313_v37  ;;  %8900 = vmatprep.subr.bf16.mxu1 %v11318_v57  ;;  %v11364_v37 = vld [vmem:[%s13570_s18 + $0x1340] ss:$48 sps:$4 sm:$0xff]   ;;  %v11367_v57 = vld [vmem:[%s13570_s18 + $0x6e8] ss:$48 sps:$4 sm:$0xff]  }
 0x586   : > { %8943 = vmatprep.subr.bf16.mxu0 %v11321_v58  ;;  %v11372_v58 = vld [vmem:[%s13570_s18 + $0x12e4] ss:$48 sps:$4 sm:$0xff]  }
 0x588   : > { %8901 = vmatpush2.bf16.msra.mxu1 %v11316_v41  ;;  %v11375_v41 = vld [vmem:[%s13570_s18 + $0x68c] ss:$48 sps:$4 sm:$0xff]  }
 0x589   : > { %8944 = vmatpush2.bf16.msra.mxu0 %v11319_v25  ;;  %8902 = vmatprep.subr.bf16.mxu1 %v11324_v45  ;;  %v11370_v25 = vld [vmem:[%s13570_s18 + $0x12e0] ss:$48 sps:$4 sm:$0xff]   ;;  %v11373_v45 = vld [vmem:[%s13570_s18 + $0x688] ss:$48 sps:$4 sm:$0xff]  }
 0x58a   : > { %8945 = vmatprep.subr.bf16.mxu0 %v11327_v49  ;;  %v11378_v49 = vld [vmem:[%s13570_s18 + $0x1284] ss:$48 sps:$4 sm:$0xff]  }
 0x58c   : > { %8903 = vmatpush2.bf16.msra.mxu1 %v11322_v62  ;;  %v11381_v62 = vld [vmem:[%s13570_s18 + $0x62c] ss:$48 sps:$4 sm:$0xff]  }
 0x58d   : > { %8946 = vmatpush2.bf16.msra.mxu0 %v11325_v5  ;;  %8904 = vmatprep.subr.bf16.mxu1 %v11330_v10 }
 0x58e   : > { %8947 = vmatprep.subr.bf16.mxu0 %v11333_v50  ;;  %v11376_v50 = vld [vmem:[%s13570_s18 + $0x1280] ss:$48 sps:$4 sm:$0xff]  }
 0x590   : > { %8905 = vmatpush2.bf16.msra.mxu1 %v11328_v12 }
 0x591   : > { %8948 = vmatpush2.bf16.msra.mxu0 %v11331_v4  ;;  %8906 = vmatprep.subr.bf16.mxu1 %v11336_v53  ;;  %v11379_v4 = vld [vmem:[%s13570_s18 + $0x628] ss:$48 sps:$4 sm:$0xff]   ;;  %v11384_v53 = vld [vmem:[%s13570_s18 + $0x1224] ss:$48 sps:$4 sm:$0xff]  }
 0x592   : > { %9040 = vmatprep.subr.bf16.mxu0 %v11339_v56 }
 0x594   : > { %8950 = vmatmul.mubr.bf16.vlgmr.msra.gmra.mxu0 %v14117_v23  ;;  %8907 = vmatpush2.bf16.msra.mxu1 %v11334_v59  ;;  %v11387_v59 = vld [vmem:[%s13570_s18 + $0xbcc] ss:$48 sps:$4 sm:$0xff]  }
 0x595   : > { %9041 = vmatpush1.bf16.msra.mxu0 %v11337_v60  ;;  %9072 = vmatprep.mubr.bf16.mxu0 %v14079_v38  ;;  %v11346_v38 = vld [vmem:[%s13570_s18 + $0x1460] ss:$48 sps:$4 sm:$0xff]  }
 0x596   : > { %8958 = vmatprep.subr.bf16.mxu1 %v11342_v61  ;;  %9042 = vmatprep.subr.bf16.mxu0 %v11345_v63  ;;  %v4322_v60 = vld [vmem:[%s13570_s18 + $0x1760] sm:$0xff]  ;;  %v11385_v63 = vld [vmem:[%s13570_s18 + $0xbc8] ss:$48 sps:$4 sm:$0xff]  }
 0x597   : > { %v8664_v3 = vpop.f32.mrf.mxu1  ;;  %8909 = vmatmul.mubr.bf16.vlgmr.msra.gmra.mxu1 %v14082_v40  ;;  %v11382_v61 = vld [vmem:[%s13570_s18 + $0x1220] ss:$48 sps:$4 sm:$0xff]  }
 0x598   : > { %v8665_v18 = vadd.f32 %v8664_v3, %v14686_v51  ;;  %v14750_v31 = vpop.f32.mrf.mxu0  ;;  %8959 = vmatpush1.bf16.msra.mxu1 %v11340_v0  ;;  %10379 = vmatprep.mubr.msk.bf16.mxu1 %vm8138_vm4, %v14172_v33  ;;  %v11357_v51 = vld [vmem:[%s13570_s18 + $0x7ac] ss:$48 sps:$4 sm:$0xff]   ;;  %v10367_v0 = vcombine.high %v4322_v60, %v4322_v60 }
 0x599   : > { %9043 = vmatpush1.bf16.msra.mxu0 %v11343_v1  ;;  %v8666_v36 = vpop.f32.mrf.mxu1  ;;  %8960 = vmatprep.subr.bf16.mxu1 %v11348_v2  ;;  %v10366_v1 = vcombine.low %v4322_v60, %v4322_v60  ;;  %v11391_v2 = vld [vmem:[%s13570_s18 + $0xb6c] ss:$48 sps:$4 sm:$0xff]  }
 0x59a   : > { %v9167_v8 = vsub.f32 0.0, %v8665_v18  ;;  %v8667_v14 = vadd.f32 %v8666_v36, %v14689_v7  ;;  %v14758_v13 = vpop.f32.mrf.mxu0  ;;  %9044 = vmatprep.subr.bf16.mxu0 %v11351_v20  ;;  %v11360_v7 = vld [vmem:[%s13570_s18 + $0x13a4] ss:$48 sps:$4 sm:$0xff]   ;;  %v11389_v20 = vld [vmem:[%s13570_s18 + $0xb68] ss:$48 sps:$4 sm:$0xff]  }
 0x59b   : > { %v8668_v15 = vpop.f32.mrf.mxu1  ;;  %v8168_v3 = vsel %vm8142_vm3, %v10366_v1, 0  ;;  %v11395_v18 = vld [vmem:[%s13570_s18 + $0x1704] ss:$48 sps:$4 sm:$0xff]   ;;  %v11393_v36 = vld [vmem:[%s13570_s18 + $0x1700] ss:$48 sps:$4 sm:$0xff]  }
 0x59c   : > { %v9183_v19 = vmul.f32 1.442695, %v9167_v8  ;;  %v9168_v16 = vsub.f32 0.0, %v8667_v14  ;;  %v8750_v21 = vpop.f32.mrf.mxu0  ;;  %8961 = vmatpush1.bf16.msra.mxu1 %v11346_v38  ;;  %v11398_v38 = vld [vmem:[%s13570_s18 + $0xb0c] ss:$48 sps:$4 sm:$0xff]  }
 0x59d   : > { %9045 = vmatpush1.bf16.msra.mxu0 %v11349_v48  ;;  %v8669_v26 = vpop.f32.mrf.mxu1  ;;  %8962 = vmatprep.subr.bf16.mxu1 %v11354_v6  ;;  %v11396_v48 = vld [vmem:[%s13570_s18 + $0xb08] ss:$48 sps:$4 sm:$0xff]   ;;  %v11401_v6 = vld [vmem:[%s13570_s18 + $0x16a4] ss:$48 sps:$4 sm:$0xff]   ;;  %v11404_v8 = vld [vmem:[%s13570_s18 + $0xaac] ss:$48 sps:$4 sm:$0xff]  }
 0x59e   : > { %11585 = vpow2.f32 %v9183_v19  ;;  %v9185_v28 = vmul.f32 1.442695, %v9168_v16  ;;  %v8751_v29 = vpop.f32.mrf.mxu0  ;;  %9046 = vmatprep.subr.bf16.mxu0 %v11357_v51  ;;  %v11399_v51 = vld [vmem:[%s13570_s18 + $0x16a0] ss:$48 sps:$4 sm:$0xff]   ;;  %v11402_v19 = vld [vmem:[%s13570_s18 + $0xaa8] ss:$48 sps:$4 sm:$0xff]  }
 0x59f   : > { %v11407_v16 = vld [vmem:[%s13570_s18 + $0x1644] ss:$48 sps:$4 sm:$0xff]   ;;  %v11410_v21 = vld [vmem:[%s13570_s18 + $0xa4c] ss:$48 sps:$4 sm:$0xff]   ;;  %v11405_v26 = vld [vmem:[%s13570_s18 + $0x1640] ss:$48 sps:$4 sm:$0xff]  }
 0x5a0   : > { %11587 = vpow2.f32 %v9185_v28  ;;  %8963 = vmatpush1.bf16.msra.mxu1 %v11352_v24  ;;  %v11416_v28 = vld [vmem:[%s13570_s18 + $0x9ec] ss:$48 sps:$4 sm:$0xff]   ;;  %v11411_v29 = vld [vmem:[%s13570_s18 + $0x15e0] ss:$48 sps:$4 sm:$0xff]  }
 0x5a1   : > { %9047 = vmatpush1.bf16.msra.mxu0 %v11355_v27  ;;  %8964 = vmatprep.subr.bf16.mxu1 %v11360_v7  ;;  %v11408_v27 = vld [vmem:[%s13570_s18 + $0xa48] ss:$48 sps:$4 sm:$0xff]   ;;  %v11413_v7 = vld [vmem:[%s13570_s18 + $0x15e4] ss:$48 sps:$4 sm:$0xff]   ;;  %v11452_v1 = vld [vmem:[%s13570_s18 + $0x13ac] ss:$48 sps:$4 sm:$0xff]  }
 0x5a2   : > { %9048 = vmatprep.subr.bf16.mxu0 %v11363_v54  ;;  %v11414_v54 = vld [vmem:[%s13570_s18 + $0x9e8] ss:$48 sps:$4 sm:$0xff]  }
 0x5a4   : > { %8965 = vmatpush1.bf16.msra.mxu1 %v11358_v17  ;;  %v11419_v17 = vld [vmem:[%s13570_s18 + $0x1584] ss:$48 sps:$4 sm:$0xff]  }
 0x5a5   : > { %9049 = vmatpush1.bf16.msra.mxu0 %v11361_v30  ;;  %8966 = vmatprep.subr.bf16.mxu1 %v11366_v55  ;;  %v11422_v30 = vld [vmem:[%s13570_s18 + $0x98c] ss:$48 sps:$4 sm:$0xff]   ;;  %v11417_v55 = vld [vmem:[%s13570_s18 + $0x1580] ss:$48 sps:$4 sm:$0xff]  }
 0x5a6   : > { %9050 = vmatprep.subr.bf16.mxu0 %v11369_v32  ;;  %v11420_v32 = vld [vmem:[%s13570_s18 + $0x988] ss:$48 sps:$4 sm:$0xff]  }
 0x5a8   : > { %8967 = vmatpush1.bf16.msra.mxu1 %v11364_v37  ;;  %v11425_v37 = vld [vmem:[%s13570_s18 + $0x1524] ss:$48 sps:$4 sm:$0xff]  }
 0x5a9   : > { %9051 = vmatpush1.bf16.msra.mxu0 %v11367_v57  ;;  %8968 = vmatprep.subr.bf16.mxu1 %v11372_v58  ;;  %v11428_v57 = vld [vmem:[%s13570_s18 + $0x92c] ss:$48 sps:$4 sm:$0xff]   ;;  %v11423_v58 = vld [vmem:[%s13570_s18 + $0x1520] ss:$48 sps:$4 sm:$0xff]  }
 0x5aa   : > { %9052 = vmatprep.subr.bf16.mxu0 %v11375_v41  ;;  %v11426_v41 = vld [vmem:[%s13570_s18 + $0x928] ss:$48 sps:$4 sm:$0xff]  }
 0x5ab   : > { %v11586_v5 = vpop.eup %11585 }
 0x5ac   : > { %v9203_v10 = vadd.f32 1.0, %v11586_v5  ;;  %8969 = vmatpush1.bf16.msra.mxu1 %v11370_v25  ;;  %v11431_v25 = vld [vmem:[%s13570_s18 + $0x2cc] ss:$48 sps:$4 sm:$0xff]  }
 0x5ad   : > { %v11588_v12 = vpop.eup %11587  ;;  %9053 = vmatpush1.bf16.msra.mxu0 %v11373_v45  ;;  %8970 = vmatprep.subr.bf16.mxu1 %v11378_v49  ;;  %v11434_v45 = vld [vmem:[%s13570_s18 + $0x14cc] ss:$48 sps:$4 sm:$0xff]   ;;  %v11429_v49 = vld [vmem:[%s13570_s18 + $0x2c8] ss:$48 sps:$4 sm:$0xff]  }
 0x5ae   : > { %v9204_v56 = vadd.f32 1.0, %v11588_v12  ;;  %9054 = vmatprep.subr.bf16.mxu0 %v11381_v62  ;;  %11589 = vrcp.f32 %v9203_v10  ;;  %v11432_v62 = vld [vmem:[%s13570_s18 + $0x14c8] ss:$48 sps:$4 sm:$0xff]   ;;  %v11437_v5 = vld [vmem:[%s13570_s18 + $0x26c] ss:$48 sps:$4 sm:$0xff]  }
 0x5af   : > { %v11440_v10 = vld [vmem:[%s13570_s18 + $0x146c] ss:$48 sps:$4 sm:$0xff]   ;;  %v11435_v12 = vld [vmem:[%s13570_s18 + $0x268] ss:$48 sps:$4 sm:$0xff]  }
 0x5b0   : > { %11591 = vrcp.f32 %v9204_v56  ;;  %8971 = vmatpush1.bf16.msra.mxu1 %v11376_v50 }
 0x5b1   : > { %9055 = vmatpush1.bf16.msra.mxu0 %v11379_v4  ;;  %8972 = vmatprep.subr.bf16.mxu1 %v11384_v53  ;;  %v11438_v4 = vld [vmem:[%s13570_s18 + $0x1468] ss:$48 sps:$4 sm:$0xff]   ;;  %v11443_v53 = vld [vmem:[%s13570_s18 + $0x20c] ss:$48 sps:$4 sm:$0xff]  }
 0x5b2   : > { %9056 = vmatprep.subr.bf16.mxu0 %v11387_v59  ;;  %v11446_v59 = vld [vmem:[%s13570_s18 + $0x140c] ss:$48 sps:$4 sm:$0xff]  }
 0x5b4   : > { %8973 = vmatpush1.bf16.msra.mxu1 %v11382_v61 }
 0x5b5   : > { %9057 = vmatpush2.bf16.msra.mxu0 %v11385_v63  ;;  %10378 = vmatprep.subr.msk.bf16.mxu1 %vm8142_vm3, %v10367_v0  ;;  %v11449_v63 = vld [vmem:[%s13570_s18 + $0x1ac] ss:$48 sps:$4 sm:$0xff]  }
 0x5b6   : > { %9058 = vmatprep.subr.bf16.mxu0 %v11391_v2 }
 0x5b8   : > { %8977 = vmatpush2.bf16.msra.mxu1 %v8168_v3 }
 0x5b9   : > { %9059 = vmatpush2.bf16.msra.mxu0 %v11389_v20  ;;  %8978 = vmatprep.subr.bf16.mxu1 %v11395_v18  ;;  %v11447_v20 = vld [vmem:[%s13570_s18 + $0x1a8] ss:$48 sps:$4 sm:$0xff]  }
 0x5ba   : > { %9060 = vmatprep.subr.bf16.mxu0 %v11398_v38  ;;  %v11450_v18 = vld [vmem:[%s13570_s18 + $0x13a8] ss:$48 sps:$4 sm:$0xff]   ;;  %v11455_v38 = vld [vmem:[%s13570_s18 + $0x14c] ss:$48 sps:$4 sm:$0xff]  }
 0x5bb   : > { %v14794_v14 = vpop.eup %11589 }
 0x5bc   : > { %8979 = vmatpush2.bf16.msra.mxu1 %v11393_v36  ;;  %v11458_v36 = vld [vmem:[%s13570_s18 + $0x134c] ss:$48 sps:$4 sm:$0xff]  }
 0x5bd   : > { %v14797_v15 = vpop.eup %11591  ;;  %9061 = vmatpush2.bf16.msra.mxu0 %v11396_v48  ;;  %8980 = vmatprep.subr.bf16.mxu1 %v11401_v6  ;;  %v11453_v48 = vld [vmem:[%s13570_s18 + $0x148] ss:$48 sps:$4 sm:$0xff]  }
 0x5be   : > { %9062 = vmatprep.subr.bf16.mxu0 %v11404_v8  ;;  %v9264_v24 = vcombine.low %v14794_v14, %v14797_v15  ;;  %v11456_v6 = vld [vmem:[%s13570_s18 + $0x1348] ss:$48 sps:$4 sm:$0xff]   ;;  %v11461_v8 = vld [vmem:[%s13570_s18 + $0xec] ss:$48 sps:$4 sm:$0xff]  }
 0x5c0   : > { %8981 = vmatpush2.bf16.msra.mxu1 %v11399_v51  ;;  %v11464_v51 = vld [vmem:[%s13570_s18 + $0x12ec] ss:$48 sps:$4 sm:$0xff]  }
 0x5c1   : > { %9063 = vmatpush2.bf16.msra.mxu0 %v11402_v19  ;;  %8982 = vmatprep.subr.bf16.mxu1 %v11407_v16  ;;  %v11459_v19 = vld [vmem:[%s13570_s18 + $0xe8] ss:$48 sps:$4 sm:$0xff]  }
 0x5c2   : > { %9064 = vmatprep.subr.bf16.mxu0 %v11410_v21  ;;  %v11462_v16 = vld [vmem:[%s13570_s18 + $0x12e8] ss:$48 sps:$4 sm:$0xff]   ;;  %v11467_v21 = vld [vmem:[%s13570_s18 + $0x8c] ss:$48 sps:$4 sm:$0xff]  }
 0x5c4   : > { %8983 = vmatpush2.bf16.msra.mxu1 %v11405_v26  ;;  %v11470_v26 = vld [vmem:[%s13570_s18 + $0x128c] ss:$48 sps:$4 sm:$0xff]  }
 0x5c5   : > { %9065 = vmatpush2.bf16.msra.mxu0 %v11408_v27  ;;  %8984 = vmatprep.subr.bf16.mxu1 %v11413_v7  ;;  %v11465_v27 = vld [vmem:[%s13570_s18 + $0x88] ss:$48 sps:$4 sm:$0xff]  }
 0x5c6   : > { %9066 = vmatprep.subr.bf16.mxu0 %v11416_v28  ;;  %v11468_v7 = vld [vmem:[%s13570_s18 + $0x1288] ss:$48 sps:$4 sm:$0xff]   ;;  %v11473_v28 = vld [vmem:[%s13570_s18 + $0x2c] ss:$48 sps:$4 sm:$0xff]  }
 0x5c8   : > { %8985 = vmatpush2.bf16.msra.mxu1 %v11411_v29  ;;  %v11476_v29 = vld [vmem:[%s13570_s18 + $0x122c] ss:$48 sps:$4 sm:$0xff]  }
 0x5c9   : > { %9067 = vmatpush2.bf16.msra.mxu0 %v11414_v54  ;;  %8986 = vmatprep.subr.bf16.mxu1 %v11419_v17  ;;  %v4323_v54 = vld [vmem:[%s13570_s18 + $0x1768] sm:$0xff] }
 0x5ca   : > { %9068 = vmatprep.subr.bf16.mxu0 %v11422_v30  ;;  %v11471_v17 = vld [vmem:[%s13570_s18 + $0x28] ss:$48 sps:$4 sm:$0xff]  }
 0x5cb   : > { %v11474_v30 = vld [vmem:[%s13570_s18 + $0x1228] ss:$48 sps:$4 sm:$0xff]  }
 0x5cc   : > { %8987 = vmatpush2.bf16.msra.mxu1 %v11417_v55  ;;  %v11479_v55 = vld [vmem:[%s13570_s18 + $0x5cc] ss:$48 sps:$4 sm:$0xff]  }
 0x5cd   : > { %9069 = vmatpush2.bf16.msra.mxu0 %v11420_v32  ;;  %8988 = vmatprep.subr.bf16.mxu1 %v11425_v37  ;;  %v10369_v32 = vcombine.high %v4323_v54, %v4323_v54  ;;  %v10368_v37 = vcombine.low %v4323_v54, %v4323_v54 }
 0x5ce   : > { %9070 = vmatprep.subr.bf16.mxu0 %v11428_v57  ;;  %v11477_v57 = vld [vmem:[%s13570_s18 + $0x5c8] ss:$48 sps:$4 sm:$0xff]  }
 0x5d0   : > { %8989 = vmatpush2.bf16.msra.mxu1 %v11423_v58  ;;  %v11484_v58 = vld [vmem:[%s13570_s18 + $0x56c] ss:$48 sps:$4 sm:$0xff]  }
 0x5d1   : > { %9071 = vmatpush2.bf16.msra.mxu0 %v11426_v41  ;;  %8999 = vmatprep.subr.bf16.mxu1 %v11431_v25  ;;  %v8174_v41 = vsel %vm8142_vm3, %v10368_v37, 0  ;;  %v11487_v25 = vld [vmem:[%s13570_s18 + $0x170c] ss:$48 sps:$4 sm:$0xff]  }
 0x5d2   : > { %9122 = vmatprep.subr.bf16.mxu0 %v11434_v45  ;;  %v11482_v45 = vld [vmem:[%s13570_s18 + $0x568] ss:$48 sps:$4 sm:$0xff]  }
 0x5d3   : > { %8991 = vmatmul.mubr.bf16.vlgmr.msra.gmra.mxu1 %v14176_v39 }
 0x5d4   : > { %v14825_v50 = vpop.f32.mrf.mxu0  ;;  %9073 = vmatmul.mubr.bf16.vlgmr.msra.gmra.mxu0 %v14082_v40  ;;  %9000 = vmatpush1.bf16.msra.mxu1 %v11429_v49  ;;  %v11485_v49 = vld [vmem:[%s13570_s18 + $0x1708] ss:$48 sps:$4 sm:$0xff]  }
 0x5d5   : > { %9031 = vmatprep.mubr.bf16.mxu1 %v14027_v34  ;;  %9123 = vmatpush1.bf16.msra.mxu0 %v11432_v62  ;;  %v11441_v34 = vld [vmem:[%s13570_s18 + $0x208] ss:$48 sps:$4 sm:$0xff]   ;;  %v11490_v62 = vld [vmem:[%s13570_s18 + $0x50c] ss:$48 sps:$4 sm:$0xff]  }
 0x5d6   : > { %10381 = vmatprep.mubr.msk.bf16.mxu0 %vm8138_vm4, %v14172_v33  ;;  %v14834_v56 = vpop.f32.mrf.mxu0  ;;  %9001 = vmatprep.subr.bf16.mxu1 %v11437_v5  ;;  %v11444_v33 = vld [vmem:[%s13570_s18 + $0x1408] ss:$48 sps:$4 sm:$0xff]   ;;  %v11493_v5 = vld [vmem:[%s13570_s18 + $0x16ac] ss:$48 sps:$4 sm:$0xff]  }
 0x5d7   : > { %v14837_v60 = vpop.f32.mrf.mxu1  ;;  %9124 = vmatprep.subr.bf16.mxu0 %v11440_v10  ;;  %v11488_v10 = vld [vmem:[%s13570_s18 + $0x508] ss:$48 sps:$4 sm:$0xff]  }
 0x5d8   : > { %v8832_v40 = vpop.f32.mrf.mxu0  ;;  %9002 = vmatpush1.bf16.msra.mxu1 %v11435_v12  ;;  %v11491_v12 = vld [vmem:[%s13570_s18 + $0x16a8] ss:$48 sps:$4 sm:$0xff]  }
 0x5d9   : > { %9125 = vmatpush1.bf16.msra.mxu0 %v11438_v4  ;;  %v14840_v61 = vpop.f32.mrf.mxu1  ;;  %9003 = vmatprep.subr.bf16.mxu1 %v11443_v53  ;;  %v11496_v4 = vld [vmem:[%s13570_s18 + $0x4ac] ss:$48 sps:$4 sm:$0xff]   ;;  %v11497_v40 = vld [vmem:[%s13570_s18 + $0x1648] ss:$48 sps:$4 sm:$0xff]  }
 0x5da   : > { %v8833_v0 = vpop.f32.mrf.mxu0  ;;  %9126 = vmatprep.subr.bf16.mxu0 %v11446_v59  ;;  %v11499_v53 = vld [vmem:[%s13570_s18 + $0x164c] ss:$48 sps:$4 sm:$0xff]   ;;  %v11494_v59 = vld [vmem:[%s13570_s18 + $0x4a8] ss:$48 sps:$4 sm:$0xff]  }
 0x5db   : > { %v8709_v2 = vpop.f32.mrf.mxu1  ;;  %v11503_v0 = vld [vmem:[%s13570_s18 + $0x15e8] ss:$48 sps:$4 sm:$0xff]  }
 0x5dc   : > { %9004 = vmatpush1.bf16.msra.mxu1 %v11441_v34  ;;  %v11502_v34 = vld [vmem:[%s13570_s18 + $0x44c] ss:$48 sps:$4 sm:$0xff]  }
 0x5dd   : > { %9127 = vmatpush1.bf16.msra.mxu0 %v11444_v33  ;;  %v8710_v3 = vpop.f32.mrf.mxu1  ;;  %9005 = vmatprep.subr.bf16.mxu1 %v11449_v63  ;;  %v11505_v33 = vld [vmem:[%s13570_s18 + $0x15ec] ss:$48 sps:$4 sm:$0xff]   ;;  %v11500_v63 = vld [vmem:[%s13570_s18 + $0x448] ss:$48 sps:$4 sm:$0xff]  }
 0x5de   : > { %9128 = vmatprep.subr.bf16.mxu0 %v11452_v1  ;;  %v11508_v1 = vld [vmem:[%s13570_s18 + $0x3ec] ss:$48 sps:$4 sm:$0xff]   ;;  %v11509_v3 = vld [vmem:[%s13570_s18 + $0x1588] ss:$48 sps:$4 sm:$0xff]  }
 0x5df   : > { %v11511_v2 = vld [vmem:[%s13570_s18 + $0x158c] ss:$48 sps:$4 sm:$0xff]  }
 0x5e0   : > { %9006 = vmatpush1.bf16.msra.mxu1 %v11447_v20  ;;  %v11506_v20 = vld [vmem:[%s13570_s18 + $0x3e8] ss:$48 sps:$4 sm:$0xff]  }
 0x5e1   : > { %9129 = vmatpush1.bf16.msra.mxu0 %v11450_v18  ;;  %9007 = vmatprep.subr.bf16.mxu1 %v11455_v38  ;;  %v11514_v18 = vld [vmem:[%s13570_s18 + $0x38c] ss:$48 sps:$4 sm:$0xff]  }
 0x5e2   : > { %9130 = vmatprep.subr.bf16.mxu0 %v11458_v36  ;;  %v11517_v38 = vld [vmem:[%s13570_s18 + $0x152c] ss:$48 sps:$4 sm:$0xff]   ;;  %v11512_v36 = vld [vmem:[%s13570_s18 + $0x388] ss:$48 sps:$4 sm:$0xff]  }
 0x5e4   : > { %9008 = vmatpush1.bf16.msra.mxu1 %v11453_v48  ;;  %v11515_v48 = vld [vmem:[%s13570_s18 + $0x1528] ss:$48 sps:$4 sm:$0xff]  }
 0x5e5   : > { %9131 = vmatpush1.bf16.msra.mxu0 %v11456_v6  ;;  %9009 = vmatprep.subr.bf16.mxu1 %v11461_v8  ;;  %v11520_v6 = vld [vmem:[%s13570_s18 + $0x32c] ss:$48 sps:$4 sm:$0xff]   ;;  %v11518_v8 = vld [vmem:[%s13570_s18 + $0x328] ss:$48 sps:$4 sm:$0xff]  }
 0x5e6   : > { %9132 = vmatprep.subr.bf16.mxu0 %v11464_v51  ;;  %v11523_v51 = vld [vmem:[%s13570_s18 + $0xecc] ss:$48 sps:$4 sm:$0xff]  }
 0x5e8   : > { %9010 = vmatpush1.bf16.msra.mxu1 %v11459_v19  ;;  %v11619_v19 = vld [vmem:[%s14280_s14] sm:$0xff] }
 0x5e9   : > { %9133 = vmatpush1.bf16.msra.mxu0 %v11462_v16  ;;  %9011 = vmatprep.subr.bf16.mxu1 %v11467_v21  ;;  %v4355_v16 = vrot.slane %v11619_v19, %v2212_v11  ;;  %v4359_v21 = vrot.slane %v11619_v19, %v2216_v9  ;;  %v11529_v11 = vld [vmem:[%s13570_s18 + $0xe0c] ss:$48 sps:$4 sm:$0xff]  }
 0x5ea   : > { %9134 = vmatprep.subr.bf16.mxu0 %v11470_v26  ;;  %v11521_v26 = vld [vmem:[%s13570_s18 + $0xec8] ss:$48 sps:$4 sm:$0xff]   ;;  %v11562_v19 = vld [vmem:[%s13570_s18 + $0xfec] ss:$48 sps:$4 sm:$0xff]  }
 0x5ec   : > { %9012 = vmatpush1.bf16.msra.mxu1 %v11465_v27  ;;  %v11526_v27 = vld [vmem:[%s13570_s18 + $0xe6c] ss:$48 sps:$4 sm:$0xff]  }
 0x5ed   : > { %9135 = vmatpush1.bf16.msra.mxu0 %v11468_v7  ;;  %9013 = vmatprep.subr.bf16.mxu1 %v11473_v28  ;;  %v8706_v7 = vadd.f32 %v14837_v60, %v4355_v16  ;;  %v8708_v28 = vadd.f32 %v14840_v61, %v4359_v21  ;;  %v11527_v61 = vld [vmem:[%s13570_s18 + $0xe08] ss:$48 sps:$4 sm:$0xff]   ;;  %v9272_v16 = vrot.slane %v9264_v24, %v14635_v52 }
 0x5ee   : > { %9136 = vmatprep.subr.bf16.mxu0 %v11476_v29 }
 0x5f0   : > { %9014 = vmatpush1.bf16.msra.mxu1 %v11471_v17 }
 0x5f1   : > { %9137 = vmatpush1.bf16.msra.mxu0 %v11474_v30  ;;  %9015 = vmatprep.subr.bf16.mxu1 %v11479_v55  ;;  %v11532_v55 = vld [vmem:[%s13570_s18 + $0xdac] ss:$48 sps:$4 sm:$0xff]  }
 0x5f2   : > { %10380 = vmatprep.subr.msk.bf16.mxu0 %vm8142_vm3, %v10369_v32 }
 0x5f4   : > { %9016 = vmatpush2.bf16.msra.mxu1 %v11477_v57 }
 0x5f5   : > { %9141 = vmatpush2.bf16.msra.mxu0 %v8174_v41  ;;  %9017 = vmatprep.subr.bf16.mxu1 %v11484_v58  ;;  %v11530_v41 = vld [vmem:[%s13570_s18 + $0xda8] ss:$48 sps:$4 sm:$0xff]  }
 0x5f6   : > { %9142 = vmatprep.subr.bf16.mxu0 %v11487_v25 }
 0x5f8   : > { %9018 = vmatpush2.bf16.msra.mxu1 %v11482_v45 }
 0x5f9   : > { %9143 = vmatpush2.bf16.msra.mxu0 %v11485_v49  ;;  %9019 = vmatprep.subr.bf16.mxu1 %v11490_v62  ;;  %v11533_v62 = vld [vmem:[%s13570_s18 + $0xd48] ss:$48 sps:$4 sm:$0xff]  }
 0x5fa   : > { %9144 = vmatprep.subr.bf16.mxu0 %v11493_v5  ;;  %v11538_v5 = vld [vmem:[%s13570_s18 + $0xcec] ss:$48 sps:$4 sm:$0xff]  }
 0x5fc   : > { %9020 = vmatpush2.bf16.msra.mxu1 %v11488_v10  ;;  %v11541_v10 = vld [vmem:[%s13570_s18 + $0xc8c] ss:$48 sps:$4 sm:$0xff]  }
 0x5fd   : > { %9145 = vmatpush2.bf16.msra.mxu0 %v11491_v12  ;;  %9021 = vmatprep.subr.bf16.mxu1 %v11496_v4  ;;  %v11539_v12 = vld [vmem:[%s13570_s18 + $0xc88] ss:$48 sps:$4 sm:$0xff]   ;;  %v11544_v4 = vld [vmem:[%s13570_s18 + $0xc2c] ss:$48 sps:$4 sm:$0xff]  }
 0x5fe   : > { %9146 = vmatprep.subr.bf16.mxu0 %v11499_v53  ;;  %v11542_v53 = vld [vmem:[%s13570_s18 + $0xc28] ss:$48 sps:$4 sm:$0xff]  }
 0x600   : > { %9022 = vmatpush2.bf16.msra.mxu1 %v11494_v59 }
 0x601   : > { %9147 = vmatpush2.bf16.msra.mxu0 %v11497_v40  ;;  %9023 = vmatprep.subr.bf16.mxu1 %v11502_v34  ;;  %v11547_v40 = vld [vmem:[%s13570_s18 + $0x11cc] ss:$48 sps:$4 sm:$0xff]  }
 0x602   : > { %9148 = vmatprep.subr.bf16.mxu0 %v11505_v33 }
 0x604   : > { %9024 = vmatpush2.bf16.msra.mxu1 %v11500_v63 }
 0x605   : > { %9149 = vmatpush2.bf16.msra.mxu0 %v11503_v0  ;;  %9025 = vmatprep.subr.bf16.mxu1 %v11508_v1  ;;  %v11545_v0 = vld [vmem:[%s13570_s18 + $0x11c8] ss:$48 sps:$4 sm:$0xff]   ;;  %v11550_v1 = vld [vmem:[%s13570_s18 + $0x116c] ss:$48 sps:$4 sm:$0xff]  }
 0x606   : > { %9150 = vmatprep.subr.bf16.mxu0 %v11511_v2  ;;  %v11548_v2 = vld [vmem:[%s13570_s18 + $0x1168] ss:$48 sps:$4 sm:$0xff]  }
 0x608   : > { %9026 = vmatpush2.bf16.msra.mxu1 %v11506_v20  ;;  %v11553_v20 = vld [vmem:[%s13570_s18 + $0x110c] ss:$48 sps:$4 sm:$0xff]  }
 0x609   : > { %9151 = vmatpush2.bf16.msra.mxu0 %v11509_v3  ;;  %9027 = vmatprep.subr.bf16.mxu1 %v11514_v18  ;;  %v11551_v3 = vld [vmem:[%s13570_s18 + $0x1108] ss:$48 sps:$4 sm:$0xff]   ;;  %v11556_v18 = vld [vmem:[%s13570_s18 + $0x10ac] ss:$48 sps:$4 sm:$0xff]  }
 0x60a   : > { %9152 = vmatprep.subr.bf16.mxu0 %v11517_v38  ;;  %v11554_v38 = vld [vmem:[%s13570_s18 + $0x10a8] ss:$48 sps:$4 sm:$0xff]  }
 0x60c   : > { %9028 = vmatpush2.bf16.msra.mxu1 %v11512_v36  ;;  %v11559_v36 = vld [vmem:[%s13570_s18 + $0x104c] ss:$48 sps:$4 sm:$0xff]  }
 0x60d   : > { %9153 = vmatpush2.bf16.msra.mxu0 %v11515_v48  ;;  %9029 = vmatprep.subr.bf16.mxu1 %v11520_v6 }
 0x610   : > { %9155 = vmatmul.mubr.bf16.vlgmr.msra.gmra.mxu0 %v14176_v39  ;;  %9030 = vmatpush2.bf16.msra.mxu1 %v11518_v8  ;;  %v8747_v39 = vadd.f32 %v14750_v31, %v8706_v7  ;;  %v11557_v8 = vld [vmem:[%s13570_s18 + $0x1048] ss:$48 sps:$4 sm:$0xff]   ;;  %v11565_v7 = vld [vmem:[%s13570_s18 + $0xf8c] ss:$48 sps:$4 sm:$0xff]  }
 0x611   : > { %9081 = vmatprep.subr.bf16.mxu1 %v11523_v51 }
 0x613   : > { %9032 = vmatmul.mubr.bf16.vlgmr.msra.gmra.mxu1 %v14029_v35  ;;  %v8749_v35 = vadd.f32 %v14758_v13, %v8708_v28  ;;  %v11535_v13 = vld [vmem:[%s13570_s18 + $0xd4c] ss:$48 sps:$4 sm:$0xff]   ;;  %v11563_v28 = vld [vmem:[%s13570_s18 + $0xf88] ss:$48 sps:$4 sm:$0xff]  }
 0x614   : > { %v14906_v29 = vpop.f32.mrf.mxu0  ;;  %9082 = vmatpush1.bf16.msra.mxu1 %v11521_v26  ;;  %9113 = vmatprep.mubr.bf16.mxu1 %v14115_v22  ;;  %v11560_v26 = vld [vmem:[%s13570_s18 + $0xfe8] ss:$48 sps:$4 sm:$0xff]  }
 0x615   : > { %9083 = vmatprep.subr.bf16.mxu1 %v11526_v27 }
 0x616   : > { %v14911_v9 = vpop.f32.mrf.mxu0 }
 0x617   : > { %v8787_v54 = vpop.f32.mrf.mxu1 }
 0x618   : > { %v8788_v60 = vadd.f32 %v8787_v54, %v8747_v39  ;;  %v8873_v17 = vpop.f32.mrf.mxu0  ;;  %9084 = vmatpush1.bf16.msra.mxu1 %v11524_v42  ;;  %v11568_v42 = vld [vmem:[%s13570_s18 + $0xf2c] ss:$48 sps:$4 sm:$0xff]   ;;  %v4325_v39 = vld [vmem:[%s14280_s14 + $0x8] sm:$0xf] }
 0x619   : > { %v8789_v30 = vpop.f32.mrf.mxu1  ;;  %9085 = vmatprep.subr.bf16.mxu1 %v11529_v11  ;;  %v11566_v11 = vld [vmem:[%s13570_s18 + $0xf28] ss:$48 sps:$4 sm:$0xff]   ;;  %v4363_v14 = vrot.slane %v4325_v39, %v13472_v43  ;;  %v4367_v15 = vrot.slane %v4325_v39, %v13481_v46 }
 0x61a   : > { %v8829_v22 = vadd.f32 %v14825_v50, %v8788_v60  ;;  %v8790_v32 = vadd.f32 %v8789_v30, %v8749_v35  ;;  %v8874_v37 = vpop.f32.mrf.mxu0 }
 0x61b   : > { %v8791_v57 = vpop.f32.mrf.mxu1  ;;  %v8870_v54 = vadd.f32 %v14906_v29, %v4363_v14  ;;  %v8872_v35 = vadd.f32 %v14911_v9, %v4367_v15 }
 0x61c   : > { %v9169_v31 = vsub.f32 0.0, %v8829_v22  ;;  %v8831_v58 = vadd.f32 %v14834_v56, %v8790_v32  ;;  %9086 = vmatpush1.bf16.msra.mxu1 %v11527_v61  ;;  %v11536_v56 = vld [vmem:[%s13570_s18 + $0xce8] ss:$48 sps:$4 sm:$0xff]   ;;  %s10386_s18 = smul.u32 384, %s11746_s28  ;;  %s11624_s28 = sshll.u32 %s11684_s8, 4  ;;  %s11625_s28 = int_to_ptr.vmem [resolvable:$false] %s11624_s28 }
 0x61d   : > { %v8792_v25 = vpop.f32.mrf.mxu1  ;;  %9087 = vmatprep.subr.bf16.mxu1 %v11532_v55  ;;  %s11626_s9 = scalar_lea.vmem %s11625_s28, 768  ;;  %p11627_p3 = scmp.lt.s32.totalorder %s9320_s16, %s11625_s28 }
 0x61e   : > { %v9187_v45 = vmul.f32 1.442695, %v9169_v31  ;;  %v9170_v49 = vsub.f32 0.0, %v8831_v58  ;;  %s9317_s20 = scalar_lea.hbm %s15004_s7, %s10386_s18  ;;  %p11628_p4 = scmp.lt.s32.totalorder %s11626_s9, %s11620_s29 }
 0x620   : > { %11593 = vpow2.f32 %v9187_v45  ;;  %v9189_v50 = vmul.f32 1.442695, %v9170_v49  ;;  %9088 = vmatpush1.bf16.msra.mxu1 %v11530_v41  ;;  %p11629_p5 = por %p11628_p4, %p11627_p3 }
 0x621   : > { %9089 = vmatprep.subr.bf16.mxu1 %v11535_v13 }
 0x622   : > { %11595 = vpow2.f32 %v9189_v50  ;;  %p11630_p7 = pnand %p11629_p5, %p11623_p2 }
 0x624   : > { %9090 = vmatpush1.bf16.msra.mxu1 %v11533_v62 }
 0x625   : > { %9091 = vmatprep.subr.bf16.mxu1 %v11538_v5 }
 0x628   : > { %9092 = vmatpush1.bf16.msra.mxu1 %v11536_v56 }
 0x629   : > { %9093 = vmatprep.subr.bf16.mxu1 %v11541_v10 }
 0x62c   : > { %9094 = vmatpush1.bf16.msra.mxu1 %v11539_v12 }
 0x62d   : > { %v11594_v59 = vpop.eup %11593  ;;  %9095 = vmatprep.subr.bf16.mxu1 %v11544_v4 }
 0x62e   : > { %v9205_v34 = vadd.f32 1.0, %v11594_v59 }
 0x62f   : > { %v11596_v33 = vpop.eup %11595 }
 0x630   : > { %v9206_v63 = vadd.f32 1.0, %v11596_v33  ;;  %9096 = vmatpush1.bf16.msra.mxu1 %v11542_v53  ;;  %11597 = vrcp.f32 %v9205_v34 }
 0x631   : > { %9097 = vmatprep.subr.bf16.mxu1 %v11547_v40 }
 0x632   : > { %11599 = vrcp.f32 %v9206_v63 }
 0x634   : > { %9098 = vmatpush2.bf16.msra.mxu1 %v11545_v0 }
 0x635   : > { %9099 = vmatprep.subr.bf16.mxu1 %v11550_v1 }
 0x638   : > { %9100 = vmatpush2.bf16.msra.mxu1 %v11548_v2 }
 0x639   : > { %9101 = vmatprep.subr.bf16.mxu1 %v11553_v20 }
 0x63c   : > { %9102 = vmatpush2.bf16.msra.mxu1 %v11551_v3 }
 0x63d   : > { %9103 = vmatprep.subr.bf16.mxu1 %v11556_v18  ;;  %v11598_v48 = vpop.eup %11597 }
 0x63f   : > { %v11600_v6 = vpop.eup %11599 }
 0x640   : > { %9104 = vmatpush2.bf16.msra.mxu1 %v11554_v38  ;;  %v9265_v51 = vcombine.low %v11598_v48, %v11600_v6  ;;  %v4371_v38 = vrot.slane %v4325_v39, %v13475_v44 }
 0x641   : > { %9105 = vmatprep.subr.bf16.mxu1 %v11559_v36  ;;  %v4375_v36 = vrot.slane %v4325_v39, %v13484_v47 }
 0x642   : > { %v9279_v21 = vrot.slane %v9265_v51, %v14635_v52 }
 0x644   : > { %9106 = vmatpush2.bf16.msra.mxu1 %v11557_v8  ;;  %v9280_v27 = vcombine.low %v9272_v16, %v9279_v21 }
 0x645   : > { %9107 = vmatprep.subr.bf16.mxu1 %v11562_v19 }
 0x646   : > { %9302 = vst [vmem:[%s14651_s15 + $0x8] sm:$0xff] %v9280_v27 }
 0x648   : > { %9108 = vmatpush2.bf16.msra.mxu1 %v11560_v26 }
 0x649   : > { %9109 = vmatprep.subr.bf16.mxu1 %v11565_v7 }
 0x64c   : > { %9110 = vmatpush2.bf16.msra.mxu1 %v11563_v28 }
 0x64d   : > { %9111 = vmatprep.subr.bf16.mxu1 %v11568_v42 }
 0x650   : > { %9112 = vmatpush2.bf16.msra.mxu1 %v11566_v11 }
 0x653   : > { %9114 = vmatmul.mubr.bf16.vlgmr.msra.gmra.mxu1 %v14117_v23 }
 0x654   : > { %v8951_v24 = vpop.f32.mrf.mxu0 }
 0x656   : > { %v8953_v60 = vpop.f32.mrf.mxu0 }
 0x657   : > { %v8910_v17 = vpop.f32.mrf.mxu1 }
 0x658   : > { %v8911_v61 = vadd.f32 %v8910_v17, %v8870_v54  ;;  %v8955_v30 = vpop.f32.mrf.mxu0 }
 0x659   : > { %v8912_v55 = vpop.f32.mrf.mxu1 }
 0x65a   : > { %v8913_v22 = vadd.f32 %v8912_v55, %v8872_v35  ;;  %v8956_v32 = vpop.f32.mrf.mxu0  ;;  %v8952_v37 = vadd.f32 %v8951_v24, %v8911_v61 }
 0x65b   : > { %v8914_v57 = vpop.f32.mrf.mxu1 }
 0x65c   : > { %v8954_v31 = vadd.f32 %v8953_v60, %v8913_v22 }
 0x65d   : > { %v8915_v43 = vpop.f32.mrf.mxu1 }
 0x693   : > { %v8992_v58 = vpop.f32.mrf.mxu1 }
 0x694   : > { %v8993_v23 = vadd.f32 %v8992_v58, %v8952_v37  ;;  %v9074_v41 = vpop.f32.mrf.mxu0 }
 0x695   : > { %v8994_v46 = vpop.f32.mrf.mxu1 }
 0x696   : > { %v9171_v25 = vsub.f32 0.0, %v8993_v23  ;;  %v8995_v13 = vadd.f32 %v8994_v46, %v8954_v31  ;;  %v9076_v29 = vpop.f32.mrf.mxu0 }
 0x697   : > { %v8996_v45 = vpop.f32.mrf.mxu1 }
 0x698   : > { %v9191_v49 = vmul.f32 1.442695, %v9171_v25  ;;  %v9172_v50 = vsub.f32 0.0, %v8995_v13  ;;  %v9078_v9 = vpop.f32.mrf.mxu0 }
 0x699   : > { %v8997_v62 = vpop.f32.mrf.mxu1 }
 0x69a   : > { %11601 = vpow2.f32 %v9191_v49  ;;  %v9193_v5 = vmul.f32 1.442695, %v9172_v50  ;;  %v9079_v56 = vpop.f32.mrf.mxu0 }
 0x69c   : > { %11603 = vpow2.f32 %v9193_v5 }
 0x6a7   : > { %v11602_v10 = vpop.eup %11601 }
 0x6a8   : > { %v9207_v12 = vadd.f32 1.0, %v11602_v10 }
 0x6a9   : > { %v11604_v4 = vpop.eup %11603 }
 0x6aa   : > { %v9208_v53 = vadd.f32 1.0, %v11604_v4  ;;  %11605 = vrcp.f32 %v9207_v12 }
 0x6ac   : > { %11607 = vrcp.f32 %v9208_v53 }
 0x6b7   : > { %v11606_v59 = vpop.eup %11605 }
 0x6b9   : > { %v11608_v40 = vpop.eup %11607 }
 0x6ba   : > { %v9281_v34 = vcombine.low %v11606_v59, %v11608_v40 }
 0x6bc   : > { %v9289_v61 = vrot.slane %v9281_v34, %v14635_v52 }
 0x6d0   : > { %v9156_v33 = vpop.f32.mrf.mxu0 }
 0x6d2   : > { %v9158_v63 = vpop.f32.mrf.mxu0 }
 0x6d3   : > { %v9033_v0 = vpop.f32.mrf.mxu1 }
 0x6d4   : > { %v9160_v1 = vpop.f32.mrf.mxu0  ;;  %v9034_v48 = vadd.f32 %v9033_v0, %v4371_v38 }
 0x6d5   : > { %v9035_v2 = vpop.f32.mrf.mxu1 }
 0x6d6   : > { %v9161_v20 = vpop.f32.mrf.mxu0  ;;  %v9036_v6 = vadd.f32 %v9035_v2, %v4375_v36  ;;  %v9075_v8 = vadd.f32 %v9074_v41, %v9034_v48 }
 0x6d7   : > { %v9037_v3 = vpop.f32.mrf.mxu1 }
 0x6d8   : > { %v9077_v16 = vadd.f32 %v9076_v29, %v9036_v6 }
 0x6d9   : > { %v9038_v18 = vpop.f32.mrf.mxu1 }
 0x713   : > { %v9115_v51 = vpop.f32.mrf.mxu1 }
 0x714   : > { %v9116_v19 = vadd.f32 %v9115_v51, %v9075_v8 }
 0x715   : > { %v9117_v21 = vpop.f32.mrf.mxu1 }
 0x716   : > { %v9157_v26 = vadd.f32 %v9156_v33, %v9116_v19  ;;  %v9118_v27 = vadd.f32 %v9117_v21, %v9077_v16 }
 0x717   : > { %v9119_v7 = vpop.f32.mrf.mxu1 }
 0x718   : > { %v9173_v28 = vsub.f32 0.0, %v9157_v26  ;;  %v9159_v42 = vadd.f32 %v9158_v63, %v9118_v27 }
 0x719   : > { %v9120_v11 = vpop.f32.mrf.mxu1 }
 0x71a   : > { %v9195_v14 = vmul.f32 1.442695, %v9173_v28  ;;  %v9174_v15 = vsub.f32 0.0, %v9159_v42 }
 0x71c   : > { %11609 = vpow2.f32 %v9195_v14  ;;  %v9197_v44 = vmul.f32 1.442695, %v9174_v15 }
 0x71e   : > { %11611 = vpow2.f32 %v9197_v44 }
 0x729   : > { %v11610_v47 = vpop.eup %11609 }
 0x72a   : > { %v9209_v39 = vadd.f32 1.0, %v11610_v47 }
 0x72b   : > { %v11612_v24 = vpop.eup %11611 }
 0x72c   : > { %v9210_v54 = vadd.f32 1.0, %v11612_v24  ;;  %11613 = vrcp.f32 %v9209_v39 }
 0x72e   : > { %11615 = vrcp.f32 %v9210_v54 }
 0x739   : > { %v11614_v60 = vpop.eup %11613 }
 0x73b   : > { %v11616_v17 = vpop.eup %11615 }
 0x73c   : > { %v9282_v35 = vcombine.low %v11614_v60, %v11616_v17 }
 0x73e   : > { %v9296_v30 = vrot.slane %v9282_v35, %v14635_v52 }
 0x740   : > { %v9297_v55 = vcombine.low %v9289_v61, %v9296_v30 }
 0x742   : > { %9303 = vst [vmem:[%s14651_s15 + $0x10] sm:$0xff] %v9297_v55 }
 0x743   : > { %11633 = shalt.err (!%p11630_p7)
}
 0x744   : > { %s11634_s13 = scalar_lea.hbm %s9317_s20, 384  ;;  %s11638_s23 = scalar_lea.hbm %s15004_s7, 768 }
 0x745   : > { %p11635_p10 = scmp.ne.s32.totalorder %s9317_s20, %s11634_s13  ;;  %p11639_p13 = scmp.lt.s32.totalorder %s9317_s20, %s15004_s7 }
 0x746   : > { %p11640_p0 = scmp.lt.s32.totalorder %s11638_s23, %s11634_s13 }
 0x747   : > { %p11636_p11 = pnand %p11635_p10, %p11764_p6 }
 0x748   : > { %p11641_p1 = por %p11640_p0, %p11639_p13 }
 0x749   : > { %p11637_p12 = pneg %p11636_p11 }
 0x74b   : > { %p11642_p9 = pnand %p11641_p1, %p11637_p12 }
 0x74d   : > { %11645 = shalt.err (!%p11642_p9)
}
 0x74e   : > { %10390 = dma.vmem_to_hbm [thread:$0]  (%p11764_p6), %s9320_s16, 384, %s9317_s20, %s9305_s21  }
 0x74f PF: > { %s9331_s17 = sand.u32 1, %s11668_s24   ;;  %p15008_p2 = scmp.ge.s32.totalorder %s11680_s27, 2 }
 0x750   : > { %s9332_s19 = scalar_lea.sflag [#allocation4], %s9331_s17 }
 0x751   : > { %p10393_p3 = pnand %p15008_p2, %p11768_p8 }
 0x753   : > { %p10394_p4 = pneg %p10393_p3 }
 0x755   : > { %11663 = dma.done.wait (%p10394_p4), %s9332_s19, 384  }
 0x756   : > { %11665 = vsyncadd (%p10394_p4), %s9332_s19, 4294966912  ;;  %p17_p9 = scmp.ge.s32.totalorder %s11750_s30, 4   ;;  %s15009_s24 = smov %s11672_s25 }
 0x757   : > { %s15010_s25 = smov %s11676_s26  ;;  %s15011_s26 = smov %s11762_s10 }
 0x758   : > { %s15012_s27 = smov %s11750_s30  ;;  %19 = sbr.rel (!%p17_p9) target bundleno = 3 (0x3), region = 114 }
 0x75d   :  { %9337 = vsyncpa [#allocation4], 1 }
 0x75e   :  { %9339 = vsyncpa [#allocation4 + $0x1], 1 }

</bundles_post_ra>
